<compile_context>
chip_gen: v7x
topology: tpu7x:2x2x1
jax: 0.10.0
libtpu: 0.0.40
codegen_flags: <defaults>
</compile_context>

<pallas_src>
import functools

import jax
import jax.numpy as jnp
from jax.experimental import pallas as pl
from jax.experimental.pallas import tpu as pltpu


# ----------------------------------------------------------------------------- #
# Pallas kernel: fused encoder -> heads -> U/V projection -> decoder
# ----------------------------------------------------------------------------- #
def _uometm_kernel(
    x_ref,
    w1_ref, c1_ref,          # encoder Linear(input_dim,2048) with BN folded in
    w2_ref, c2_ref,          # encoder Linear(2048,128) with BN folded in
    wh_ref, ch_ref,          # fused heads Linear(128, 2*dim_z): [mu(BN-folded) | logVar]
    uv_ref,                  # fused [U | V]  (dim_z, 2*dim_z), f32
    wd1_ref, cd1_ref,        # decoder Linear(dim_z,128) with BN folded in
    wd2_ref, cd2_ref,        # decoder Linear(128,2048) with BN folded in
    wd3_ref, bd3_ref,        # decoder Linear(2048,input_dim)
    recon_ref, lat_ref,
    *, dim_z, lat_width,
):
    bf16 = jnp.bfloat16
    f32 = jnp.float32

    x = x_ref[...].astype(bf16)

    # ---- encoder ----
    h1 = jnp.dot(x, w1_ref[...], preferred_element_type=f32) + c1_ref[...]
    h1 = jnp.maximum(h1, 0.0)                                           # BN folded + ReLU

    h2 = jnp.dot(h1.astype(bf16), w2_ref[...], preferred_element_type=f32) + c2_ref[...]
    h2 = jnp.maximum(h2, 0.0)                                           # BN folded + ReLU

    # ---- fused heads: [mu_linear(BN-folded) | logVar_linear] ----
    heads = jnp.dot(h2.astype(bf16), wh_ref[...], preferred_element_type=f32) + ch_ref[...]
    mu = jnp.tanh(heads[:, :dim_z])                                     # BN folded + Tanh
    log_var = heads[:, dim_z:]

    # ---- eval mode: z0 = mu;  zu0|zv0 in one small matmul ----
    zuv = jnp.dot(mu, uv_ref[...], preferred_element_type=f32)          # [zu0 | zv0]
    encoded = zuv[:, :dim_z] + zuv[:, dim_z:]

    # ---- decoder ----
    d1 = jnp.dot(encoded.astype(bf16), wd1_ref[...], preferred_element_type=f32) + cd1_ref[...]
    d1 = jnp.maximum(d1, 0.0)

    d2 = jnp.dot(d1.astype(bf16), wd2_ref[...], preferred_element_type=f32) + cd2_ref[...]
    d2 = jnp.maximum(d2, 0.0)

    recon = jnp.dot(d2.astype(bf16), wd3_ref[...], preferred_element_type=f32) + bd3_ref[...]
    recon = jnp.maximum(recon, 0.0)
    recon_ref[...] = recon

    # ---- pack narrow outputs into one lane-dense slab: [zu0 | zv0 | mu | logVar | 0pad]
    lat = jnp.concatenate([zuv, mu, log_var], axis=-1)                  # (bt, 4*dim_z)
    pad = lat_width - 4 * dim_z
    if pad:
        lat = jnp.concatenate(
            [lat, jnp.zeros((lat.shape[0], pad), jnp.float32)], axis=-1)
    lat_ref[...] = lat


# ----------------------------------------------------------------------------- #
# Parameter packing: fold eval-mode BatchNorm, fuse heads and U|V, cast to bf16
# ----------------------------------------------------------------------------- #
def pack_params(p):
    bf16 = jnp.bfloat16
    f32 = jnp.float32
    packed = {}
    packed["W1"] = (p["W1"] * p["s1"]).astype(bf16)
    packed["c1"] = (p["b1"] * p["s1"] + p["t1"]).astype(f32)
    packed["W2"] = (p["W2"] * p["s2"]).astype(bf16)
    packed["c2"] = (p["b2"] * p["s2"] + p["t2"]).astype(f32)
    packed["Wh"] = jnp.concatenate([p["Wmu"] * p["smu"], p["Wlv"]], axis=1).astype(bf16)
    packed["ch"] = jnp.concatenate([p["bmu"] * p["smu"] + p["tmu"], p["blv"]], axis=1).astype(f32)
    packed["UV"] = jnp.concatenate([p["U"], p["V"]], axis=1).astype(f32)
    packed["Wd1"] = (p["Wd1"] * p["sd1"]).astype(bf16)
    packed["cd1"] = (p["bd1"] * p["sd1"] + p["td1"]).astype(f32)
    packed["Wd2"] = (p["Wd2"] * p["sd2"]).astype(bf16)
    packed["cd2"] = (p["bd2"] * p["sd2"] + p["td2"]).astype(f32)
    packed["Wd3"] = p["Wd3"].astype(bf16)
    packed["bd3"] = p["bd3"].astype(f32)
    return packed


_PARAM_ORDER = ["W1", "c1", "W2", "c2", "Wh", "ch", "UV",
                "Wd1", "cd1", "Wd2", "cd2", "Wd3", "bd3"]


# ----------------------------------------------------------------------------- #
# Wrapper
# ----------------------------------------------------------------------------- #
def uometm_forward(x, packed, dim_z, *, batch_tile=128):
    B, input_dim = x.shape
    nb = (B + batch_tile - 1) // batch_tile
    b_pad = nb * batch_tile
    if b_pad != B:
        x = jnp.pad(x, ((0, b_pad - B), (0, 0)))

    # Lane-dense latent slab width (>= 128, multiple of 128).
    lat_width = ((4 * dim_z + 127) // 128) * 128

    param_arrays = [packed[n] for n in _PARAM_ORDER]

    # x / outputs are tiled over batch; parameters are replicated (same block).
    in_specs = [pl.BlockSpec((batch_tile, input_dim), lambda i: (i, 0))]
    for a in param_arrays:
        in_specs.append(pl.BlockSpec(a.shape, lambda i: (0, 0)))

    out_shape = (
        jax.ShapeDtypeStruct((b_pad, input_dim), jnp.float32),   # reconstructed
        jax.ShapeDtypeStruct((b_pad, lat_width), jnp.float32),   # [zu0|zv0|mu|logVar|pad]
    )
    out_specs = (
        pl.BlockSpec((batch_tile, input_dim), lambda i: (i, 0)),
        pl.BlockSpec((batch_tile, lat_width), lambda i: (i, 0)),
    )

    kernel = functools.partial(_uometm_kernel, dim_z=dim_z, lat_width=lat_width)

    recon, lat = pl.pallas_call(
        kernel,
        grid=(nb,),
        in_specs=in_specs,
        out_specs=out_specs,
        out_shape=out_shape,
        compiler_params=pltpu.CompilerParams(
            dimension_semantics=("parallel",),
            vmem_limit_bytes=48 * 1024 * 1024,   # fits v7x's 64 MiB physical VMEM
        ),
    )(x, *param_arrays)

    recon = recon[:B]
    lat = lat[:B]
    zu0 = lat[:, 0 * dim_z:1 * dim_z]
    zv0 = lat[:, 1 * dim_z:2 * dim_z]
    mu = lat[:, 2 * dim_z:3 * dim_z]
    log_var = lat[:, 3 * dim_z:4 * dim_z]
    z0 = mu  # eval mode: z0 == mu (aliased, not stored twice)
    return recon, z0, zu0, zv0, mu, log_var


# ----------------------------------------------------------------------------- #
# Deterministic parameter construction (synthetic init; no checkpoint loading)
# ----------------------------------------------------------------------------- #
def _bn_scale_shift(key, n, eps=1e-5):
    k1, k2 = jax.random.split(key)
    gamma = jax.random.uniform(k1, (1, n), jnp.float32, 0.5, 1.5)
    beta = 0.1 * jax.random.normal(k2, (1, n), jnp.float32)
    running_mean = jnp.zeros((1, n), jnp.float32)
    running_var = jnp.ones((1, n), jnp.float32)
    scale = gamma / jnp.sqrt(running_var + eps)
    shift = beta - running_mean * scale
    return scale, shift


def _linear(key, fan_in, fan_out):
    k1, k2 = jax.random.split(key)
    bound = 1.0 / jnp.sqrt(float(fan_in))
    w = jax.random.uniform(k1, (fan_in, fan_out), jnp.float32, -bound, bound)
    b = jax.random.uniform(k2, (1, fan_out), jnp.float32, -bound, bound)
    return w, b


def make_params(key, input_dim, dim_z):
    keys = jax.random.split(key, 16)
    p = {}
    p["W1"], p["b1"] = _linear(keys[0], input_dim, 2048)
    p["s1"], p["t1"] = _bn_scale_shift(keys[1], 2048)
    p["W2"], p["b2"] = _linear(keys[2], 2048, 128)
    p["s2"], p["t2"] = _bn_scale_shift(keys[3], 128)
    p["Wmu"], p["bmu"] = _linear(keys[4], 128, dim_z)
    p["smu"], p["tmu"] = _bn_scale_shift(keys[5], dim_z)
    p["Wlv"], p["blv"] = _linear(keys[6], 128, dim_z)
    # U = diag([1]*(dim_z//2) + [0]*(dim_z - dim_z//2)), V = I - U
    u_diag = jnp.array([1.0] * (dim_z // 2) + [0.0] * (dim_z - dim_z // 2), jnp.float32)
    p["U"] = jnp.diag(u_diag)
    p["V"] = jnp.eye(dim_z, dtype=jnp.float32) - p["U"]
    p["Wd1"], p["bd1"] = _linear(keys[7], dim_z, 128)
    p["sd1"], p["td1"] = _bn_scale_shift(keys[8], 128)
    p["Wd2"], p["bd2"] = _linear(keys[9], 128, 2048)
    p["sd2"], p["td2"] = _bn_scale_shift(keys[10], 2048)
    p["Wd3"], p["bd3"] = _linear(keys[11], 2048, input_dim)
    return p


# ----------------------------------------------------------------------------- #
# References
# ----------------------------------------------------------------------------- #
def uometm_reference_packed(x, pp, dim_z):
    """Same math as the kernel (folded BN, bf16 matmul inputs, f32 accumulation)."""
    def mm(a, w):
        return jnp.dot(a.astype(w.dtype), w, preferred_element_type=jnp.float32)
    h1 = jnp.maximum(mm(x, pp["W1"]) + pp["c1"], 0.0)
    h2 = jnp.maximum(mm(h1, pp["W2"]) + pp["c2"], 0.0)
    heads = mm(h2, pp["Wh"]) + pp["ch"]
    mu = jnp.tanh(heads[:, :dim_z])
    log_var = heads[:, dim_z:]
    zuv = jnp.dot(mu, pp["UV"], preferred_element_type=jnp.float32)
    zu0, zv0 = zuv[:, :dim_z], zuv[:, dim_z:]
    enc = zu0 + zv0
    d1 = jnp.maximum(mm(enc, pp["Wd1"]) + pp["cd1"], 0.0)
    d2 = jnp.maximum(mm(d1, pp["Wd2"]) + pp["cd2"], 0.0)
    recon = jnp.maximum(mm(d2, pp["Wd3"]) + pp["bd3"], 0.0)
    return recon, mu, zu0, zv0, mu, log_var


def uometm_reference_f32(x, p):
    """Original fp32, unfolded-BN reference (loose check against bf16 kernel)."""
    h1 = jnp.maximum((x @ p["W1"] + p["b1"]) * p["s1"] + p["t1"], 0.0)
    h2 = jnp.maximum((h1 @ p["W2"] + p["b2"]) * p["s2"] + p["t2"], 0.0)
    mu = jnp.tanh((h2 @ p["Wmu"] + p["bmu"]) * p["smu"] + p["tmu"])
    log_var = h2 @ p["Wlv"] + p["blv"]
    z0 = mu
    zu0 = z0 @ p["U"]
    zv0 = z0 @ p["V"]
    enc = zu0 + zv0
    d1 = jnp.maximum((enc @ p["Wd1"] + p["bd1"]) * p["sd1"] + p["td1"], 0.0)
    d2 = jnp.maximum((d1 @ p["Wd2"] + p["bd2"]) * p["sd2"] + p["td2"], 0.0)
    recon = jnp.maximum(d2 @ p["Wd3"] + p["bd3"], 0.0)
    return recon, z0, zu0, zv0, mu, log_var


if __name__ == "__main__":
    batch = 256        # batch of flattened images (2 grid steps of 128 -> both TCs on v7x)
    input_dim = 256    # flattened image size (small synthetic)
    dim_z = 16         # latent dimension
    batch_tile = 128

    key = jax.random.PRNGKey(0)
    kx, kp = jax.random.split(key)
    x = jax.random.normal(kx, (batch, input_dim), jnp.float32)
    params = make_params(kp, input_dim, dim_z)
    packed = pack_params(params)

    fwd = jax.jit(functools.partial(uometm_forward, dim_z=dim_z, batch_tile=batch_tile))
    outs = jax.block_until_ready(fwd(x, packed))

    refs_exact = uometm_reference_packed(x, packed, dim_z)   # matches kernel arithmetic
    refs_f32 = uometm_reference_f32(x, params)               # fp32 ground truth (loose)

    names = ["reconstructed", "z0", "zu0", "zv0", "mu", "logVar"]
    for name, got, r_exact, r_f32 in zip(names, outs, refs_exact, refs_f32):
        assert got.shape == r_f32.shape, (name, got.shape, r_f32.shape)
        # Tight check against the bf16-matched reference (validates kernel wiring).
        assert jnp.allclose(got, r_exact, rtol=2e-3, atol=2e-3), name
        # Loose sanity check against the fp32 unfolded-BN reference.
        assert jnp.allclose(got, r_f32, rtol=1e-1, atol=1e-1), name

    print("KERNEL_OK")
</pallas_src>

<mosaic_0001>
module attributes {stable_mosaic.version = 11 : i64} {
  func.func @_uometm_kernel(%arg0: i32, %arg1: memref<128x256xf32, #tpu.memory_space<vmem>>, %arg2: memref<256x2048xbf16, #tpu.memory_space<vmem>>, %arg3: memref<1x2048xf32, #tpu.memory_space<vmem>>, %arg4: memref<2048x128xbf16, #tpu.memory_space<vmem>>, %arg5: memref<1x128xf32, #tpu.memory_space<vmem>>, %arg6: memref<128x32xbf16, #tpu.memory_space<vmem>>, %arg7: memref<1x32xf32, #tpu.memory_space<vmem>>, %arg8: memref<16x32xf32, #tpu.memory_space<vmem>>, %arg9: memref<16x128xbf16, #tpu.memory_space<vmem>>, %arg10: memref<1x128xf32, #tpu.memory_space<vmem>>, %arg11: memref<128x2048xbf16, #tpu.memory_space<vmem>>, %arg12: memref<1x2048xf32, #tpu.memory_space<vmem>>, %arg13: memref<2048x256xbf16, #tpu.memory_space<vmem>>, %arg14: memref<1x256xf32, #tpu.memory_space<vmem>>, %arg15: memref<128x256xf32, #tpu.memory_space<vmem>>, %arg16: memref<128x128xf32, #tpu.memory_space<vmem>>) attributes {dimension_semantics = [#tpu.dimension_semantics<parallel>], iteration_bounds = array<i64: 2>, scalar_prefetch = 0 : i64, scratch_operands = 0 : i64, tpu.core_type = #tpu.core_type<tc>, window_params = [{transform_indices = @transform_0, window_bounds = array<i64: 128, 256>}, {pipeline_mode = #tpu.pipeline_mode<synchronous>, transform_indices = @transform_1, window_bounds = array<i64: 256, 2048>}, {pipeline_mode = #tpu.pipeline_mode<synchronous>, transform_indices = @transform_2, window_bounds = array<i64: 1, 2048>}, {pipeline_mode = #tpu.pipeline_mode<synchronous>, transform_indices = @transform_3, window_bounds = array<i64: 2048, 128>}, {pipeline_mode = #tpu.pipeline_mode<synchronous>, transform_indices = @transform_4, window_bounds = array<i64: 1, 128>}, {pipeline_mode = #tpu.pipeline_mode<synchronous>, transform_indices = @transform_5, window_bounds = array<i64: 128, 32>}, {pipeline_mode = #tpu.pipeline_mode<synchronous>, transform_indices = @transform_6, window_bounds = array<i64: 1, 32>}, {pipeline_mode = #tpu.pipeline_mode<synchronous>, transform_indices = @transform_7, window_bounds = array<i64: 16, 32>}, {pipeline_mode = #tpu.pipeline_mode<synchronous>, transform_indices = @transform_8, window_bounds = array<i64: 16, 128>}, {pipeline_mode = #tpu.pipeline_mode<synchronous>, transform_indices = @transform_9, window_bounds = array<i64: 1, 128>}, {pipeline_mode = #tpu.pipeline_mode<synchronous>, transform_indices = @transform_10, window_bounds = array<i64: 128, 2048>}, {pipeline_mode = #tpu.pipeline_mode<synchronous>, transform_indices = @transform_11, window_bounds = array<i64: 1, 2048>}, {pipeline_mode = #tpu.pipeline_mode<synchronous>, transform_indices = @transform_12, window_bounds = array<i64: 2048, 256>}, {pipeline_mode = #tpu.pipeline_mode<synchronous>, transform_indices = @transform_13, window_bounds = array<i64: 1, 256>}, {transform_indices = @transform_14, window_bounds = array<i64: 128, 256>}, {transform_indices = @transform_15, window_bounds = array<i64: 128, 128>}]} {
    %c0 = arith.constant 0 : index
    %c0_0 = arith.constant 0 : index
    %0 = vector.load %arg1[%c0, %c0_0] : memref<128x256xf32, #tpu.memory_space<vmem>>, vector<128x256xf32>
    %1 = arith.truncf %0 : vector<128x256xf32> to vector<128x256xbf16>
    %c0_1 = arith.constant 0 : index
    %c0_2 = arith.constant 0 : index
    %2 = vector.load %arg2[%c0_1, %c0_2] : memref<256x2048xbf16, #tpu.memory_space<vmem>>, vector<256x2048xbf16>
    %cst = arith.constant dense<0.000000e+00> : vector<128x2048xf32>
    %3 = tpu.matmul %1, %2, %cst {dimension_numbers = #tpu.dot_dimension_numbers<[1], [0], [0], [1], [0, 0, 1, 1], [], []>} : vector<128x256xbf16>, vector<256x2048xbf16>, vector<128x2048xf32> -> vector<128x2048xf32>
    %c0_3 = arith.constant 0 : index
    %c0_4 = arith.constant 0 : index
    %4 = vector.load %arg3[%c0_3, %c0_4] : memref<1x2048xf32, #tpu.memory_space<vmem>>, vector<1x2048xf32>
    %5 = vector.broadcast %4 : vector<1x2048xf32> to vector<128x2048xf32>
    %6 = arith.addf %3, %5 : vector<128x2048xf32>
    %cst_5 = arith.constant 0.000000e+00 : f32
    %7 = vector.broadcast %cst_5 : f32 to vector<128x2048xf32>
    %8 = arith.maximumf %6, %7 : vector<128x2048xf32>
    %9 = arith.truncf %8 : vector<128x2048xf32> to vector<128x2048xbf16>
    %c0_6 = arith.constant 0 : index
    %c0_7 = arith.constant 0 : index
    %10 = vector.load %arg4[%c0_6, %c0_7] : memref<2048x128xbf16, #tpu.memory_space<vmem>>, vector<2048x128xbf16>
    %cst_8 = arith.constant dense<0.000000e+00> : vector<128x128xf32>
    %11 = tpu.matmul %9, %10, %cst_8 {dimension_numbers = #tpu.dot_dimension_numbers<[1], [0], [0], [1], [0, 0, 1, 1], [], []>} : vector<128x2048xbf16>, vector<2048x128xbf16>, vector<128x128xf32> -> vector<128x128xf32>
    %c0_9 = arith.constant 0 : index
    %c0_10 = arith.constant 0 : index
    %12 = vector.load %arg5[%c0_9, %c0_10] : memref<1x128xf32, #tpu.memory_space<vmem>>, vector<1x128xf32>
    %13 = vector.broadcast %12 : vector<1x128xf32> to vector<128x128xf32>
    %14 = arith.addf %11, %13 : vector<128x128xf32>
    %cst_11 = arith.constant 0.000000e+00 : f32
    %15 = vector.broadcast %cst_11 : f32 to vector<128x128xf32>
    %16 = arith.maximumf %14, %15 : vector<128x128xf32>
    %17 = arith.truncf %16 : vector<128x128xf32> to vector<128x128xbf16>
    %c0_12 = arith.constant 0 : index
    %c0_13 = arith.constant 0 : index
    %18 = vector.load %arg6[%c0_12, %c0_13] : memref<128x32xbf16, #tpu.memory_space<vmem>>, vector<128x32xbf16>
    %cst_14 = arith.constant dense<0.000000e+00> : vector<128x32xf32>
    %19 = tpu.matmul %17, %18, %cst_14 {dimension_numbers = #tpu.dot_dimension_numbers<[1], [0], [0], [1], [0, 0, 1, 1], [], []>} : vector<128x128xbf16>, vector<128x32xbf16>, vector<128x32xf32> -> vector<128x32xf32>
    %c0_15 = arith.constant 0 : index
    %c0_16 = arith.constant 0 : index
    %20 = vector.load %arg7[%c0_15, %c0_16] : memref<1x32xf32, #tpu.memory_space<vmem>>, vector<1x32xf32>
    %21 = vector.broadcast %20 : vector<1x32xf32> to vector<128x32xf32>
    %22 = arith.addf %19, %21 : vector<128x32xf32>
    %23 = vector.extract_strided_slice %22 {offsets = [0, 0], sizes = [128, 16], strides = [1, 1]} : vector<128x32xf32> to vector<128x16xf32>
    %24 = math.tanh %23 : vector<128x16xf32>
    %25 = vector.extract_strided_slice %22 {offsets = [0, 16], sizes = [128, 16], strides = [1, 1]} : vector<128x32xf32> to vector<128x16xf32>
    %c0_17 = arith.constant 0 : index
    %c0_18 = arith.constant 0 : index
    %26 = vector.load %arg8[%c0_17, %c0_18] : memref<16x32xf32, #tpu.memory_space<vmem>>, vector<16x32xf32>
    %cst_19 = arith.constant dense<0.000000e+00> : vector<128x32xf32>
    %27 = tpu.matmul %24, %26, %cst_19 {dimension_numbers = #tpu.dot_dimension_numbers<[1], [0], [0], [1], [0, 0, 1, 1], [], []>} : vector<128x16xf32>, vector<16x32xf32>, vector<128x32xf32> -> vector<128x32xf32>
    %28 = vector.extract_strided_slice %27 {offsets = [0, 0], sizes = [128, 16], strides = [1, 1]} : vector<128x32xf32> to vector<128x16xf32>
    %29 = vector.extract_strided_slice %27 {offsets = [0, 16], sizes = [128, 16], strides = [1, 1]} : vector<128x32xf32> to vector<128x16xf32>
    %30 = arith.addf %28, %29 : vector<128x16xf32>
    %31 = arith.truncf %30 : vector<128x16xf32> to vector<128x16xbf16>
    %c0_20 = arith.constant 0 : index
    %c0_21 = arith.constant 0 : index
    %32 = vector.load %arg9[%c0_20, %c0_21] : memref<16x128xbf16, #tpu.memory_space<vmem>>, vector<16x128xbf16>
    %cst_22 = arith.constant dense<0.000000e+00> : vector<128x128xf32>
    %33 = tpu.matmul %31, %32, %cst_22 {dimension_numbers = #tpu.dot_dimension_numbers<[1], [0], [0], [1], [0, 0, 1, 1], [], []>} : vector<128x16xbf16>, vector<16x128xbf16>, vector<128x128xf32> -> vector<128x128xf32>
    %c0_23 = arith.constant 0 : index
    %c0_24 = arith.constant 0 : index
    %34 = vector.load %arg10[%c0_23, %c0_24] : memref<1x128xf32, #tpu.memory_space<vmem>>, vector<1x128xf32>
    %35 = vector.broadcast %34 : vector<1x128xf32> to vector<128x128xf32>
    %36 = arith.addf %33, %35 : vector<128x128xf32>
    %cst_25 = arith.constant 0.000000e+00 : f32
    %37 = vector.broadcast %cst_25 : f32 to vector<128x128xf32>
    %38 = arith.maximumf %36, %37 : vector<128x128xf32>
    %39 = arith.truncf %38 : vector<128x128xf32> to vector<128x128xbf16>
    %c0_26 = arith.constant 0 : index
    %c0_27 = arith.constant 0 : index
    %40 = vector.load %arg11[%c0_26, %c0_27] : memref<128x2048xbf16, #tpu.memory_space<vmem>>, vector<128x2048xbf16>
    %cst_28 = arith.constant dense<0.000000e+00> : vector<128x2048xf32>
    %41 = tpu.matmul %39, %40, %cst_28 {dimension_numbers = #tpu.dot_dimension_numbers<[1], [0], [0], [1], [0, 0, 1, 1], [], []>} : vector<128x128xbf16>, vector<128x2048xbf16>, vector<128x2048xf32> -> vector<128x2048xf32>
    %c0_29 = arith.constant 0 : index
    %c0_30 = arith.constant 0 : index
    %42 = vector.load %arg12[%c0_29, %c0_30] : memref<1x2048xf32, #tpu.memory_space<vmem>>, vector<1x2048xf32>
    %43 = vector.broadcast %42 : vector<1x2048xf32> to vector<128x2048xf32>
    %44 = arith.addf %41, %43 : vector<128x2048xf32>
    %cst_31 = arith.constant 0.000000e+00 : f32
    %45 = vector.broadcast %cst_31 : f32 to vector<128x2048xf32>
    %46 = arith.maximumf %44, %45 : vector<128x2048xf32>
    %47 = arith.truncf %46 : vector<128x2048xf32> to vector<128x2048xbf16>
    %c0_32 = arith.constant 0 : index
    %c0_33 = arith.constant 0 : index
    %48 = vector.load %arg13[%c0_32, %c0_33] : memref<2048x256xbf16, #tpu.memory_space<vmem>>, vector<2048x256xbf16>
    %cst_34 = arith.constant dense<0.000000e+00> : vector<128x256xf32>
    %49 = tpu.matmul %47, %48, %cst_34 {dimension_numbers = #tpu.dot_dimension_numbers<[1], [0], [0], [1], [0, 0, 1, 1], [], []>} : vector<128x2048xbf16>, vector<2048x256xbf16>, vector<128x256xf32> -> vector<128x256xf32>
    %c0_35 = arith.constant 0 : index
    %c0_36 = arith.constant 0 : index
    %50 = vector.load %arg14[%c0_35, %c0_36] : memref<1x256xf32, #tpu.memory_space<vmem>>, vector<1x256xf32>
    %51 = vector.broadcast %50 : vector<1x256xf32> to vector<128x256xf32>
    %52 = arith.addf %49, %51 : vector<128x256xf32>
    %cst_37 = arith.constant 0.000000e+00 : f32
    %53 = vector.broadcast %cst_37 : f32 to vector<128x256xf32>
    %54 = arith.maximumf %52, %53 : vector<128x256xf32>
    %c0_38 = arith.constant 0 : index
    %c0_39 = arith.constant 0 : index
    %55 = vector.load %arg15[%c0_38, %c0_39] : memref<128x256xf32, #tpu.memory_space<vmem>>, vector<128x256xf32>
    tpu.vector_store %arg15[%c0_38, %c0_39], %54 {strides = array<i32>} : memref<128x256xf32, #tpu.memory_space<vmem>>, vector<128x256xf32>,
    %56 = tpu.concatenate %27, %24, %25 in 1 : vector<128x32xf32>, vector<128x16xf32>, vector<128x16xf32> -> vector<128x64xf32>
    %cst_40 = arith.constant 0.000000e+00 : f32
    %57 = vector.broadcast %cst_40 : f32 to vector<128x64xf32>
    %58 = tpu.concatenate %56, %57 in 1 : vector<128x64xf32>, vector<128x64xf32> -> vector<128x128xf32>
    %c0_41 = arith.constant 0 : index
    %c0_42 = arith.constant 0 : index
    %59 = vector.load %arg16[%c0_41, %c0_42] : memref<128x128xf32, #tpu.memory_space<vmem>>, vector<128x128xf32>
    tpu.vector_store %arg16[%c0_41, %c0_42], %58 {strides = array<i32>} : memref<128x128xf32, #tpu.memory_space<vmem>>, vector<128x128xf32>,
    return
  }
  func.func @transform_0(%arg0: i32) -> (i32, i32) {
    %c0_i32 = arith.constant 0 : i32
    %c0_i32_0 = arith.constant 0 : i32
    return %arg0, %c0_i32 : i32, i32
  }
  func.func @transform_1(%arg0: i32) -> (i32, i32) {
    %c0_i32 = arith.constant 0 : i32
    %c0_i32_0 = arith.constant 0 : i32
    %c0_i32_1 = arith.constant 0 : i32
    return %c0_i32, %c0_i32_0 : i32, i32
  }
  func.func @transform_2(%arg0: i32) -> (i32, i32) {
    %c0_i32 = arith.constant 0 : i32
    %c0_i32_0 = arith.constant 0 : i32
    %c0_i32_1 = arith.constant 0 : i32
    return %c0_i32, %c0_i32_0 : i32, i32
  }
  func.func @transform_3(%arg0: i32) -> (i32, i32) {
    %c0_i32 = arith.constant 0 : i32
    %c0_i32_0 = arith.constant 0 : i32
    %c0_i32_1 = arith.constant 0 : i32
    return %c0_i32, %c0_i32_0 : i32, i32
  }
  func.func @transform_4(%arg0: i32) -> (i32, i32) {
    %c0_i32 = arith.constant 0 : i32
    %c0_i32_0 = arith.constant 0 : i32
    %c0_i32_1 = arith.constant 0 : i32
    return %c0_i32, %c0_i32_0 : i32, i32
  }
  func.func @transform_5(%arg0: i32) -> (i32, i32) {
    %c0_i32 = arith.constant 0 : i32
    %c0_i32_0 = arith.constant 0 : i32
    %c0_i32_1 = arith.constant 0 : i32
    return %c0_i32, %c0_i32_0 : i32, i32
  }
  func.func @transform_6(%arg0: i32) -> (i32, i32) {
    %c0_i32 = arith.constant 0 : i32
    %c0_i32_0 = arith.constant 0 : i32
    %c0_i32_1 = arith.constant 0 : i32
    return %c0_i32, %c0_i32_0 : i32, i32
  }
  func.func @transform_7(%arg0: i32) -> (i32, i32) {
    %c0_i32 = arith.constant 0 : i32
    %c0_i32_0 = arith.constant 0 : i32
    %c0_i32_1 = arith.constant 0 : i32
    return %c0_i32, %c0_i32_0 : i32, i32
  }
  func.func @transform_8(%arg0: i32) -> (i32, i32) {
    %c0_i32 = arith.constant 0 : i32
    %c0_i32_0 = arith.constant 0 : i32
    %c0_i32_1 = arith.constant 0 : i32
    return %c0_i32, %c0_i32_0 : i32, i32
  }
  func.func @transform_9(%arg0: i32) -> (i32, i32) {
    %c0_i32 = arith.constant 0 : i32
    %c0_i32_0 = arith.constant 0 : i32
    %c0_i32_1 = arith.constant 0 : i32
    return %c0_i32, %c0_i32_0 : i32, i32
  }
  func.func @transform_10(%arg0: i32) -> (i32, i32) {
    %c0_i32 = arith.constant 0 : i32
    %c0_i32_0 = arith.constant 0 : i32
    %c0_i32_1 = arith.constant 0 : i32
    return %c0_i32, %c0_i32_0 : i32, i32
  }
  func.func @transform_11(%arg0: i32) -> (i32, i32) {
    %c0_i32 = arith.constant 0 : i32
    %c0_i32_0 = arith.constant 0 : i32
    %c0_i32_1 = arith.constant 0 : i32
    return %c0_i32, %c0_i32_0 : i32, i32
  }
  func.func @transform_12(%arg0: i32) -> (i32, i32) {
    %c0_i32 = arith.constant 0 : i32
    %c0_i32_0 = arith.constant 0 : i32
    %c0_i32_1 = arith.constant 0 : i32
    return %c0_i32, %c0_i32_0 : i32, i32
  }
  func.func @transform_13(%arg0: i32) -> (i32, i32) {
    %c0_i32 = arith.constant 0 : i32
    %c0_i32_0 = arith.constant 0 : i32
    %c0_i32_1 = arith.constant 0 : i32
    return %c0_i32, %c0_i32_0 : i32, i32
  }
  func.func @transform_14(%arg0: i32) -> (i32, i32) {
    %c0_i32 = arith.constant 0 : i32
    %c0_i32_0 = arith.constant 0 : i32
    return %arg0, %c0_i32 : i32, i32
  }
  func.func @transform_15(%arg0: i32) -> (i32, i32) {
    %c0_i32 = arith.constant 0 : i32
    %c0_i32_0 = arith.constant 0 : i32
    return %arg0, %c0_i32 : i32, i32
  }
}

</mosaic_0001>

<bundles_post_ra>
// kernel: uometm_forward.1
= control target key start
LH: loop header
LB: loop body
LE: loop exit
PB: predicated region body
PF: predicated region fallthrough
CT: control target
= control target key end

     0   :  { %s16626_s0 = inlined_call_operand.hbm [shape: f32[256,256], index: 0, kind: input, shape index: {}]   ;;  %s16627_s1 = inlined_call_operand.hbm [shape: bf16[256,2048], index: 1, kind: input, shape index: {}]   ;;  %s16628_s2 = inlined_call_operand.vmem [shape: f32[1,2048], index: 2, kind: input, shape index: {}]   ;;  %s16629_s3 = inlined_call_operand.hbm [shape: bf16[2048,128], index: 3, kind: input, shape index: {}]   ;;  %s16630_s4 = inlined_call_operand.vmem [shape: f32[1,128], index: 4, kind: input, shape index: {}]   ;;  %s16631_s5 = inlined_call_operand.vmem [shape: bf16[128,32], index: 5, kind: input, shape index: {}]   ;;  %s16632_s6 = inlined_call_operand.vmem [shape: f32[1,32], index: 6, kind: input, shape index: {}]   ;;  %s16633_s7 = inlined_call_operand.vmem [shape: f32[16,32], index: 7, kind: input, shape index: {}]   ;;  %s16634_s8 = inlined_call_operand.vmem [shape: bf16[16,128], index: 8, kind: input, shape index: {}]   ;;  %s16635_s9 = inlined_call_operand.vmem [shape: f32[1,128], index: 9, kind: input, shape index: {}]   ;;  %s16636_s10 = inlined_call_operand.hbm [shape: bf16[128,2048], index: 10, kind: input, shape index: {}]   ;;  %s16637_s11 = inlined_call_operand.vmem [shape: f32[1,2048], index: 11, kind: input, shape index: {}]   ;;  %s16638_s12 = inlined_call_operand.hbm [shape: bf16[2048,256], index: 12, kind: input, shape index: {}]   ;;  %s16639_s13 = inlined_call_operand.vmem [shape: f32[1,256], index: 13, kind: input, shape index: {}]   ;;  %s16640_s14 = inlined_call_operand.hbm [shape: f32[256,256], index: 14, kind: output, shape index: {0}]   ;;  %s16641_s15 = inlined_call_operand.vmem [shape: f32[256,128], index: 15, kind: output, shape index: {1}]  }
   0x1   :  { %16669 = sst [smem:[#allocation65_spill]] %s16632_s6 }
   0x2   :  { %16670 = sst [smem:[#allocation66_spill]] %s16634_s8 }
   0x3   :  { %16671 = sst [smem:[#allocation67_spill]] %s16635_s9 }
   0x4   :  { %16672 = sst [smem:[#allocation68_spill]] %s16637_s11 }
   0x5   :  { %16673 = sst [smem:[#allocation69_spill]] %s16639_s13 }
   0x6   :  { %16674 = sst [smem:[#allocation70_spill]] %s16640_s14 }
   0x7   :  { %16675 = sst [smem:[#allocation71_spill]] %s16641_s15 }
   0x8   :  { %21 = vsyncpa [#allocation3], 0 }
   0x9   :  { %23 = vsyncpa [#allocation3 + $0x1], 0 }
   0xa   :  { %24 = vsyncpa [#allocation6], 0 }
   0xb   :  { %25 = vsyncpa [#allocation9], 0 }
   0xc   :  { %26 = vsyncpa [#allocation4], 0 }
   0xd   :  { %28 = vsyncpa [#allocation4 + $0x1], 0  ;;  %s13712_s18 = smov 0   ;;  %s13714_s19 = smov 0  }
   0xe   :  { %s13716_s20 = smov 0   ;;  %s13718_s21 = smov 0  }
   0xf LB: > { %16676 = sst [smem:[#allocation16_spill]] %s13600_s18  ;;  %s13733_s22 = sadd.s32 4294967295, %s13612_s21   ;;  %s13612_s21 = sphi %s13718_s21, %s16888_s21   ;;  %s13608_s20 = sphi %s13716_s20, %s16887_s20   ;;  %s13604_s19 = sphi %s13714_s19, %s16886_s19   ;;  %s13600_s18 = sphi %s13712_s18, %s16885_s18  }
  0x10   : > { %s10999_s23 = sadd.s32 4294967294, %s13612_s21   ;;  %p54_p0 = scmp.ne.s32.totalorder %s13604_s19, %s13600_s18 }
  0x11   : > { %p16646_p1 = scmp.eq.s32.totalorder %s13733_s22, 0  ;;  %p357_p3 = scmp.eq.s32.totalorder %s10999_s23, 1 }
  0x12   : > { %p11000_p5 = scmp.ge.s32.totalorder %s13612_s21, 1  ;;  %p390_p7 = scmp.lt.s32.totalorder %s13612_s21, 3 }
  0x13   : > { %p13742_p4 = por %p16646_p1, %p54_p0  ;;  %p13747_p6 = por %p357_p3, %p54_p0 }
  0x14   : > { %p13752_p8 = pnand %p11000_p5, %p390_p7  ;;  %s13614_s27 = smov [#allocation5]  }
  0x15   : > { %s16677_s24 = scalar_select %p13742_p4, 1, 0 }
  0x16   : > { %s16678_s25 = scalar_select %p13747_p6, 1, 0 }
  0x17   : > { %s16680_s26 = scalar_select %p13752_p8, 1, 0 }
  0x18   : > { %16679 = sst [smem:[#allocation17_spill]] %s16678_s25  ;;  %s402_s28 = sshll.u32 %s13614_s27, 4  ;;  %s13756_s28 = int_to_ptr.vmem [resolvable:$true] %s402_s28 }
  0x19   : > { %p12762_p9 = pneg %p13752_p8  ;;  %s13615_s30 = smov [#allocation8]  }
  0x1a   : > { %s449_s16 = sshll.u32 %s13615_s30, 4  ;;  %s13616_s17 = smov [#allocation7]   ;;  %s13767_s16 = int_to_ptr.vmem [resolvable:$true] %s449_s16 }
  0x1b   : > { %p13763_p11 = pnand %p12762_p9, %p16646_p1  ;;  %s13769_s23 = sshll.u32 %s13616_s17, 4  ;;  %s419_s23 = int_to_ptr.vmem [resolvable:$true] %s13769_s23 }
  0x1c   : > { %s13396_s18 = scalar_lea.hbm %s16627_s1, 32768 }
  0x1d   : > { %p13397_p12 = scmp.ne.s32.totalorder %s16627_s1, %s13396_s18  ;;  %p13779_p13 = pneg %p13763_p11 }
  0x1e   : > { %p13403_p5 = scmp.lt.u32.totalorder %s13396_s18, %s16627_s1 }
  0x1f   : > { %p13399_p0 = pnand %p13779_p13, %p13397_p12 }
  0x21   : > { %p13400_p3 = pneg %p13399_p0 }
  0x23   : > { %p13405_p7 = pnand %p13403_p5, %p13400_p3 }
  0x25   : > { %13408 = shalt.err (!%p13405_p7)
}
  0x26   : > { %s13409_s13 = scalar_lea.vmem %s13756_s28, 32768  ;;  %p13417_p2 = scmp.lt.s32.totalorder %s13756_s28, %s13756_s28 }
  0x27   : > { %p13410_p9 = scmp.ne.s32.totalorder %s13756_s28, %s13409_s13  ;;  %p13418_p6 = scmp.lt.s32.totalorder %s13409_s13, %s13409_s13 }
  0x29   : > { %p13412_p10 = pnand %p13410_p9, %p13779_p13  ;;  %p13419_p12 = por %p13418_p6, %p13417_p2 }
  0x2b   : > { %p13413_p1 = pneg %p13412_p10 }
  0x2d   : > { %p13420_p0 = pnand %p13419_p12, %p13413_p1 }
  0x2f   : > { %13423 = shalt.err (!%p13420_p0)
}
  0x30   : > { %s13617_s14 = smov 1024   ;;  %s13618_s18 = smov 64  }
  0x31   : > { %12765 = dma.hbm_to_vmem [thread:$0]  (!%p13763_p11), %s16627_s1, 32768, %s13756_s28, [#allocation6], %s13617_s14, %s13617_s14, %s13618_s18  }
  0x32   : > { %s13424_s9 = scalar_lea.hbm %s16636_s10, 16384 }
  0x33   : > { %p13425_p1 = scmp.ne.s32.totalorder %s16636_s10, %s13424_s9  ;;  %p13431_p10 = scmp.lt.u32.totalorder %s13424_s9, %s16636_s10 }
  0x35   : > { %p13427_p2 = pnand %p13425_p1, %p13779_p13 }
  0x37   : > { %p13428_p6 = pneg %p13427_p2 }
  0x39   : > { %p13433_p3 = pnand %p13431_p10, %p13428_p6 }
  0x3b   : > { %13436 = shalt.err (!%p13433_p3)
}
  0x3c   : > { %s13437_s28 = scalar_lea.vmem %s13767_s16, 16384  ;;  %p13445_p12 = scmp.lt.s32.totalorder %s13767_s16, %s13767_s16 }
  0x3d   : > { %p13438_p5 = scmp.ne.s32.totalorder %s13767_s16, %s13437_s28  ;;  %p13446_p0 = scmp.lt.s32.totalorder %s13437_s28, %s13437_s28 }
  0x3f   : > { %p13440_p7 = pnand %p13438_p5, %p13779_p13  ;;  %p13447_p1 = por %p13446_p0, %p13445_p12 }
  0x41   : > { %p13441_p9 = pneg %p13440_p7 }
  0x43   : > { %p13448_p2 = pnand %p13447_p1, %p13441_p9 }
  0x45   : > { %13451 = shalt.err (!%p13448_p2)
}
  0x46   : > { %12771 = dma.hbm_to_vmem [thread:$0]  (!%p13763_p11), %s16636_s10, 16384, %s13767_s16, [#allocation9], %s13617_s14, %s13617_s14, %s13618_s18  }
  0x47   : > { %s13452_s25 = scalar_lea.hbm %s16629_s3, 16384 }
  0x48   : > { %p13453_p6 = scmp.ne.s32.totalorder %s16629_s3, %s13452_s25  ;;  %p13459_p5 = scmp.lt.u32.totalorder %s13452_s25, %s16629_s3 }
  0x4a   : > { %p13455_p10 = pnand %p13453_p6, %p13779_p13 }
  0x4c   : > { %p13456_p3 = pneg %p13455_p10 }
  0x4e   : > { %p13461_p7 = pnand %p13459_p5, %p13456_p3 }
  0x50   : > { %13464 = shalt.err (!%p13461_p7)
}
  0x51   : > { %s13465_s28 = scalar_lea.vmem %s419_s23, 16384  ;;  %p13473_p1 = scmp.lt.s32.totalorder %s419_s23, %s419_s23 }
  0x52   : > { %p13466_p9 = scmp.ne.s32.totalorder %s419_s23, %s13465_s28  ;;  %p13474_p2 = scmp.lt.s32.totalorder %s13465_s28, %s13465_s28 }
  0x54   : > { %p13468_p12 = pnand %p13466_p9, %p13779_p13  ;;  %p13475_p4 = por %p13474_p2, %p13473_p1 }
  0x56   : > { %p13469_p0 = pneg %p13468_p12 }
  0x58   : > { %p13476_p8 = pnand %p13475_p4, %p13469_p0 }
  0x5a   : > { %13479 = shalt.err (!%p13476_p8)
}
  0x5b   : > { %s13619_s16 = smov 4   ;;  %s13620_s8 = smov [#allocation10]  }
  0x5c   : > { %12768 = dma.hbm_to_vmem [thread:$0]  (!%p13763_p11), %s16629_s3, 16384, %s419_s23, [#allocation6], %s13618_s18, %s13618_s18, %s13619_s16  }
  0x5d   : > { %s465_s9 = sshll.u32 %s13620_s8, 4  ;;  %s13480_s27 = scalar_lea.hbm %s16638_s12, 32768  ;;  %s466_s9 = int_to_ptr.vmem [resolvable:$true] %s465_s9 }
  0x5e   : > { %p13481_p4 = scmp.ne.s32.totalorder %s16638_s12, %s13480_s27  ;;  %p13487_p10 = scmp.lt.u32.totalorder %s13480_s27, %s16638_s12 }
  0x60   : > { %p13483_p8 = pnand %p13481_p4, %p13779_p13 }
  0x62   : > { %p13484_p6 = pneg %p13483_p8 }
  0x64   : > { %p13489_p3 = pnand %p13487_p10, %p13484_p6 }
  0x66   : > { %13492 = shalt.err (!%p13489_p3)
}
  0x67   : > { %s13493_s23 = scalar_lea.vmem %s466_s9, 32768  ;;  %p13501_p12 = scmp.lt.s32.totalorder %s466_s9, %s466_s9 }
  0x68   : > { %p13494_p5 = scmp.ne.s32.totalorder %s466_s9, %s13493_s23  ;;  %p13502_p0 = scmp.lt.s32.totalorder %s13493_s23, %s13493_s23 }
  0x6a   : > { %p13496_p7 = pnand %p13494_p5, %p13779_p13  ;;  %p13503_p1 = por %p13502_p0, %p13501_p12 }
  0x6c   : > { %p13497_p9 = pneg %p13496_p7 }
  0x6e   : > { %p13504_p2 = pnand %p13503_p1, %p13497_p9 }
  0x70   : > { %13507 = shalt.err (!%p13504_p2)
}
  0x71   : > { %s13621_s18 = smov 128   ;;  %s13622_s11 = smov 8  }
  0x72   : > { %12774 = dma.hbm_to_vmem [thread:$0]  (!%p13763_p11), %s16638_s12, 32768, %s466_s9, [#allocation9], %s13621_s18, %s13621_s18, %s13622_s11  }
  0x73   : > { %s13865_s6 = sadd.s32 1, %s13612_s21   ;;  %s41_s15 = sadd.s32 1, %s13608_s20 }
  0x74   : > { %s38_s8 = ssub.s32 %s13612_s21, %s13865_s6  ;;  %p48_p4 = scmp.ne.s32.totalorder %s13608_s20, %s13604_s19 }
  0x75   : > { %p39_p13 = scmp.eq.s32.totalorder %s38_s8, 0  ;;  %p49_p8 = scmp.eq.s32.totalorder %s13612_s21, 0 }
  0x76   : > { %p12787_p6 = scmp.lt.s32.totalorder %s13612_s21, 2  ;;  %p16683_p3 = scmp.eq.s32.totalorder %s13733_s22, 1 }
  0x77   : > { %s13875_s25 = scalar_select %p39_p13, %s13608_s20, %s41_s15  }
  0x78   : > { %p50_p10 = por %p49_p8, %p48_p4  ;;  %p13879_p5 = por %p16683_p3, %p48_p4 }
  0x79   : > { %s482_s29 = sand.u32 1, %s13608_s20   ;;  %s11830_s30 = sshll.u32 %s13612_s21, 12 }
  0x7a   : > { %s11006_s9 = sshll.u32 %s482_s29, 8  ;;  %s13888_s28 = scalar_lea.hbm %s16626_s0, %s11830_s30 }
  0x7b   : > { %s486_s23 = scalar_lea.vmem [#allocation2], %s11006_s9  ;;  %p13890_p11 = pnand %p12787_p6, %p50_p10 }
  0x7c   : > { %s494_s18 = sshll.u32 %s486_s23, 4  ;;  %s13896_s16 = scalar_lea.sflag [#allocation3], %s482_s29  ;;  %s13894_s18 = int_to_ptr.vmem [resolvable:$true] %s494_s18 }
  0x7d   : > { %s13508_s14 = scalar_lea.hbm %s13888_s28, 4096  ;;  %p13510_p9 = pneg %p13890_p11 }
  0x7e   : > { %p13509_p7 = scmp.ne.s32.totalorder %s13888_s28, %s13508_s14  ;;  %s13513_s30 = scalar_lea.hbm %s16626_s0, 8192 }
  0x7f   : > { %p13514_p1 = scmp.lt.u32.totalorder %s13888_s28, %s16626_s0  ;;  %p13515_p2 = scmp.lt.u32.totalorder %s13513_s30, %s13508_s14 }
  0x80   : > { %p13511_p12 = pnand %p13510_p9, %p13509_p7  ;;  %p13517_p4 = scmp.lt.u32.totalorder %s13508_s14, %s13888_s28 }
  0x81   : > { %p13516_p13 = por %p13515_p2, %p13514_p1 }
  0x82   : > { %p13512_p0 = pneg %p13511_p12 }
  0x83   : > { %p13518_p8 = por %p13517_p4, %p13516_p13 }
  0x85   : > { %p13519_p6 = pnand %p13518_p8, %p13512_p0 }
  0x87   : > { %13522 = shalt.err (!%p13519_p6)
}
  0x88   : > { %s13523_s29 = scalar_lea.vmem %s13894_s18, 4096  ;;  %s13623_s13 = smov [#allocation2]  }
  0x89   : > { %p13524_p10 = scmp.ne.s32.totalorder %s13894_s18, %s13523_s29  ;;  %s13528_s23 = sshll.u32 %s13623_s13, 4  ;;  %s13529_s23 = int_to_ptr.vmem [resolvable:$false] %s13528_s23 }
  0x8a   : > { %s13530_s8 = scalar_lea.vmem %s13529_s23, 8192  ;;  %p13531_p12 = scmp.lt.s32.totalorder %s13894_s18, %s13529_s23 }
  0x8b   : > { %p13526_p3 = pnand %p13524_p10, %p13510_p9  ;;  %p13532_p1 = scmp.lt.s32.totalorder %s13530_s8, %s13523_s29 }
  0x8d   : > { %p13527_p7 = pneg %p13526_p3  ;;  %p13533_p2 = por %p13532_p1, %p13531_p12 }
  0x8f   : > { %p13534_p13 = pnand %p13533_p2, %p13527_p7 }
  0x91   : > { %13537 = shalt.err (!%p13534_p13)
}
  0x92   : > { %s13624_s14 = smov 256   ;;  %s13625_s15 = smov 16  }
  0x93   : > { %12778 = dma.hbm_to_vmem [thread:$0]  (!%p13890_p11), %s13888_s28, 4096, %s13894_s18, %s13896_s16, %s13624_s14, %s13624_s14, %s13625_s15  }
  0x94   : > { %p16686_p9 = scmp.ne.s32.totalorder %s16680_s26, 0 }
  0x96   : > { %506 = sbr.rel (%p16686_p9) target bundleno = 2954 (0xb8a), region = 76 }
  0x9d   : > { %s13927_s30 = sand.u32 1, %s13604_s19   ;;  %p16687_p0 = scmp.ne.s32.totalorder %s16677_s24, 0 }
  0x9e   : > { %s11011_s9 = sshll.u32 %s13927_s30, 8  ;;  %s509_s17 = scalar_lea.sflag [#allocation3], %s13927_s30 }
  0x9f   : > { %s13933_s29 = scalar_lea.vmem [#allocation2], %s11011_s9 }
  0xa0   : > { %13583 = dma.done.wait (%p16687_p0), %s509_s17, 4096  }
  0xa1   : > { %13585 = vsyncadd (%p16687_p0), %s509_s17, 4294963200  ;;  %p16688_p11 = scmp.eq.s32.totalorder %s13733_s22, 0 }
  0xa3   : > { %13587 = dma.done.wait (%p16688_p11), [#allocation6], 49152   ;;  %p16689_p4 = pmov %p16688_p11 }
  0xa5   : > { %13589 = vsyncadd (%p16689_p4), [#allocation6], 4294918144  ;;  %p16690_p8 = pmov %p16689_p4 }
  0xa6   : > { %p16691_p6 = pmov %p16689_p4 }
  0xa7   : > { %13591 = dma.done.wait (%p16690_p8), [#allocation9], 49152  }
  0xa8   : > { %13593 = vsyncadd (%p16691_p6), [#allocation9], 4294918144  ;;  %v637_v0 = vld [vmem:[#allocation5] sm:$0xff]  ;;  %v590_v17 = vld [vmem:[%s13933_s29 + $0x8] sm:$0xff]  ;;  %s16796_s13 = sld [smem:[#allocation65_spill]]  ;;  %vm5562_vm0 = vcmask 130048  }
  0xa9   : > { %v645_v1 = vld [vmem:[#allocation5 + $0x40] sm:$0xff]  ;;  %v592_v18 = vld [vmem:[%s13933_s29 + $0x18] sm:$0xff]  ;;  %s16797_s14 = sld [smem:[#allocation66_spill]]  ;;  %s13626_s15 = smov 112   ;;  %vm10772_vm1 = vcmask 261120   ;;  %vm10789_vm2 = vcmask 392192  }
  0xaa   : > { %v653_v2 = vld [vmem:[#allocation5 + $0x80] sm:$0xff]  ;;  %v11020_v3 = vcombine.high %v637_v0, %v645_v1  ;;  %v11019_v4 = vcombine.low %v637_v0, %v645_v1  ;;  %v13949_v20 = vpack.c.bf16 %v592_v18, %v590_v17  ;;  %v638_v1 = vld [vmem:[#allocation5 + $0x8] sm:$0xff]  ;;  %s13627_s17 = smov 32   ;;  %vm10806_vm3 = vcmask 523264   ;;  %s16798_s18 = sld [smem:[#allocation71_spill]] }
  0xab   : > { %v661_v5 = vld [vmem:[#allocation5 + $0xc0] sm:$0xff]  ;;  %s16799_s23 = sld [smem:[#allocation67_spill]]  ;;  %s16877_s28 = sld [smem:[#allocation69_spill]] }
  0xac   : > { %v11036_v6 = vcombine.high %v653_v2, %v661_v5  ;;  %v669_v7 = vld [vmem:[#allocation5 + $0x100] sm:$0xff]  ;;  %2257 = vmatprep.subr.bf16.mxu0 %v11020_v3  ;;  %v11035_v9 = vcombine.low %v653_v2, %v661_v5  ;;  %2289 = vmatprep.mubr.bf16.mxu0 %v13949_v20  ;;  %v646_v2 = vld [vmem:[#allocation5 + $0x48] sm:$0xff]  ;;  %v591_v5 = vld [vmem:[%s13933_s29 + $0x10] sm:$0xff] }
  0xad   : > { %v677_v8 = vld [vmem:[#allocation5 + $0x140] sm:$0xff]  ;;  %2258 = vmatpush1.bf16.msra.mxu0 %v11019_v4  ;;  %3080 = vmatprep.mubr.bf16.mxu1 %v13949_v20 }
  0xae   : > { %2259 = vmatprep.subr.bf16.mxu0 %v11036_v6  ;;  %v11052_v10 = vcombine.high %v669_v7, %v677_v8  ;;  %v685_v11 = vld [vmem:[#allocation5 + $0x180] sm:$0xff]  ;;  %v11051_v13 = vcombine.low %v669_v7, %v677_v8  ;;  %v654_v7 = vld [vmem:[#allocation5 + $0x88] sm:$0xff] }
  0xaf   : > { %v693_v12 = vld [vmem:[#allocation5 + $0x1c0] sm:$0xff]  ;;  %v662_v8 = vld [vmem:[#allocation5 + $0xc8] sm:$0xff] }
  0xb0   : > { %v11068_v14 = vcombine.high %v685_v11, %v693_v12  ;;  %v701_v15 = vld [vmem:[#allocation5 + $0x200] sm:$0xff]  ;;  %v11067_v19 = vcombine.low %v685_v11, %v693_v12  ;;  %v11022_v11 = vcombine.high %v638_v1, %v646_v2  ;;  %v11038_v17 = vcombine.high %v654_v7, %v662_v8 }
  0xb1   : > { %2260 = vmatpush1.bf16.msra.mxu0 %v11035_v9  ;;  %v709_v16 = vld [vmem:[#allocation5 + $0x240] sm:$0xff]  ;;  %v594_v9 = vld [vmem:[%s13933_s29 + $0x28] sm:$0xff] }
  0xb2   : > { %2261 = vmatprep.subr.bf16.mxu0 %v11052_v10  ;;  %v11084_v21 = vcombine.high %v701_v15, %v709_v16  ;;  %v717_v22 = vld [vmem:[#allocation5 + $0x280] sm:$0xff]  ;;  %v11083_v24 = vcombine.low %v701_v15, %v709_v16  ;;  %v596_v10 = vld [vmem:[%s13933_s29 + $0x38] sm:$0xff]  ;;  %v670_v15 = vld [vmem:[#allocation5 + $0x108] sm:$0xff] }
  0xb3   : > { %v725_v23 = vld [vmem:[#allocation5 + $0x2c0] sm:$0xff]  ;;  %v678_v16 = vld [vmem:[#allocation5 + $0x148] sm:$0xff] }
  0xb4   : > { %v11100_v25 = vcombine.high %v717_v22, %v725_v23  ;;  %v733_v26 = vld [vmem:[#allocation5 + $0x300] sm:$0xff]  ;;  %v11099_v28 = vcombine.low %v717_v22, %v725_v23  ;;  %v686_v22 = vld [vmem:[#allocation5 + $0x188] sm:$0xff] }
  0xb5   : > { %2262 = vmatpush1.bf16.msra.mxu0 %v11051_v13  ;;  %v741_v27 = vld [vmem:[#allocation5 + $0x340] sm:$0xff]  ;;  %v11021_v13 = vcombine.low %v638_v1, %v646_v2  ;;  %v694_v23 = vld [vmem:[#allocation5 + $0x1c8] sm:$0xff] }
  0xb6   : > { %2263 = vmatprep.subr.bf16.mxu0 %v11068_v14  ;;  %v11116_v29 = vcombine.high %v733_v26, %v741_v27  ;;  %v749_v30 = vld [vmem:[#allocation5 + $0x380] sm:$0xff]  ;;  %v11115_v32 = vcombine.low %v733_v26, %v741_v27  ;;  %v13959_v14 = vpack.c.bf16 %v596_v10, %v594_v9  ;;  %v11054_v26 = vcombine.high %v670_v15, %v678_v16  ;;  %v790_v1 = vld [vmem:[#allocation5 + $0x4c8] sm:$0xff] }
  0xb7   : > { %v757_v31 = vld [vmem:[#allocation5 + $0x3c0] sm:$0xff]  ;;  %v610_v2 = vld [vmem:[%s13933_s29 + $0xa8] sm:$0xff] }
  0xb8   : > { %v11132_v33 = vcombine.high %v749_v30, %v757_v31  ;;  %v765_v34 = vld [vmem:[#allocation5 + $0x400] sm:$0xff]  ;;  %v11131_v36 = vcombine.low %v749_v30, %v757_v31  ;;  %v702_v30 = vld [vmem:[#allocation5 + $0x208] sm:$0xff] }
  0xb9   : > { %2264 = vmatpush1.bf16.msra.mxu0 %v11067_v19  ;;  %v773_v35 = vld [vmem:[#allocation5 + $0x440] sm:$0xff]  ;;  %v595_v19 = vld [vmem:[%s13933_s29 + $0x30] sm:$0xff]  ;;  %v710_v31 = vld [vmem:[#allocation5 + $0x248] sm:$0xff] }
  0xba   : > { %2265 = vmatprep.subr.bf16.mxu0 %v11084_v21  ;;  %v11148_v37 = vcombine.high %v765_v34, %v773_v35  ;;  %v781_v38 = vld [vmem:[#allocation5 + $0x480] sm:$0xff]  ;;  %v11147_v40 = vcombine.low %v765_v34, %v773_v35  ;;  %v11037_v21 = vcombine.low %v654_v7, %v662_v8  ;;  %v599_v34 = vld [vmem:[%s13933_s29 + $0x50] sm:$0xff]  ;;  %v11069_v35 = vcombine.low %v686_v22, %v694_v23 }
  0xbb   : > { %v789_v39 = vld [vmem:[#allocation5 + $0x4c0] sm:$0xff] }
  0xbc   : > { %v11164_v41 = vcombine.high %v781_v38, %v789_v39  ;;  %v797_v42 = vld [vmem:[#allocation5 + $0x500] sm:$0xff]  ;;  %v11163_v44 = vcombine.low %v781_v38, %v789_v39  ;;  %v602_v38 = vld [vmem:[%s13933_s29 + $0x68] sm:$0xff]  ;;  %v604_v39 = vld [vmem:[%s13933_s29 + $0x78] sm:$0xff] }
  0xbd   : > { %2266 = vmatpush1.bf16.msra.mxu0 %v11083_v24  ;;  %v805_v43 = vld [vmem:[#allocation5 + $0x540] sm:$0xff]  ;;  %v598_v24 = vld [vmem:[%s13933_s29 + $0x48] sm:$0xff] }
  0xbe   : > { %2267 = vmatprep.subr.bf16.mxu0 %v11100_v25  ;;  %v11180_v45 = vcombine.high %v797_v42, %v805_v43  ;;  %v813_v46 = vld [vmem:[#allocation5 + $0x580] sm:$0xff]  ;;  %v11179_v48 = vcombine.low %v797_v42, %v805_v43  ;;  %v600_v25 = vld [vmem:[%s13933_s29 + $0x58] sm:$0xff]  ;;  %v11085_v42 = vcombine.low %v702_v30, %v710_v31  ;;  %v13979_v43 = vpack.c.bf16 %v604_v39, %v602_v38  ;;  %v830_v38 = vld [vmem:[#allocation5 + $0x608] sm:$0xff] }
  0xbf   : > { %v821_v47 = vld [vmem:[#allocation5 + $0x5c0] sm:$0xff]  ;;  %v838_v39 = vld [vmem:[#allocation5 + $0x648] sm:$0xff] }
  0xc0   : > { %v829_v49 = vld [vmem:[#allocation5 + $0x600] sm:$0xff]  ;;  %v11196_v51 = vcombine.high %v813_v46, %v821_v47  ;;  %v11195_v52 = vcombine.low %v813_v46, %v821_v47 }
  0xc1   : > { %2268 = vmatpush1.bf16.msra.mxu0 %v11099_v28  ;;  %v837_v50 = vld [vmem:[#allocation5 + $0x640] sm:$0xff]  ;;  %v11053_v28 = vcombine.low %v670_v15, %v678_v16 }
  0xc2   : > { %2269 = vmatprep.subr.bf16.mxu0 %v11116_v29  ;;  %v845_v53 = vld [vmem:[#allocation5 + $0x680] sm:$0xff]  ;;  %v11212_v55 = vcombine.high %v829_v49, %v837_v50  ;;  %v11211_v56 = vcombine.low %v829_v49, %v837_v50  ;;  %v13969_v29 = vpack.c.bf16 %v600_v25, %v598_v24  ;;  %v750_v50 = vld [vmem:[#allocation5 + $0x388] sm:$0xff] }
  0xc3   : > { %v853_v54 = vld [vmem:[#allocation5 + $0x6c0] sm:$0xff]  ;;  %v814_v24 = vld [vmem:[#allocation5 + $0x588] sm:$0xff] }
  0xc4   : > { %v861_v57 = vld [vmem:[#allocation5 + $0x700] sm:$0xff]  ;;  %v11228_v59 = vcombine.high %v845_v53, %v853_v54  ;;  %v11227_v60 = vcombine.low %v845_v53, %v853_v54  ;;  %v608_v53 = vld [vmem:[%s13933_s29 + $0x98] sm:$0xff]  ;;  %v822_v25 = vld [vmem:[#allocation5 + $0x5c8] sm:$0xff] }
  0xc5   : > { %2270 = vmatpush1.bf16.msra.mxu0 %v11115_v32  ;;  %v869_v58 = vld [vmem:[#allocation5 + $0x740] sm:$0xff]  ;;  %v11070_v32 = vcombine.high %v686_v22, %v694_v23 }
  0xc6   : > { %2271 = vmatprep.subr.bf16.mxu0 %v11132_v33  ;;  %v877_v61 = vld [vmem:[#allocation5 + $0x780] sm:$0xff]  ;;  %v11244_v63 = vcombine.high %v861_v57, %v869_v58  ;;  %v11243_v0 = vcombine.low %v861_v57, %v869_v58  ;;  %v766_v58 = vld [vmem:[#allocation5 + $0x408] sm:$0xff] }
  0xc7   : > { %v885_v62 = vld [vmem:[#allocation5 + $0x7c0] sm:$0xff] }
  0xc8   : > { %v11260_v3 = vcombine.high %v877_v61, %v885_v62  ;;  %v589_v4 = vld [vmem:[%s13933_s29] sm:$0xff]  ;;  %v11259_v6 = vcombine.low %v877_v61, %v885_v62  ;;  %v607_v62 = vld [vmem:[%s13933_s29 + $0x90] sm:$0xff] }
  0xc9   : > { %2272 = vmatpush1.bf16.msra.mxu0 %v11131_v36  ;;  %v13957_v12 = vpack.c.bf16 %v591_v5, %v589_v4  ;;  %v593_v18 = vld [vmem:[%s13933_s29 + $0x20] sm:$0xff]  ;;  %v718_v36 = vld [vmem:[#allocation5 + $0x288] sm:$0xff]  ;;  %v644_v5 = vld [vmem:[#allocation5 + $0x38] sm:$0xff] }
  0xca   : > { %2273 = vmatprep.subr.bf16.mxu0 %v11148_v37  ;;  %v13967_v27 = vpack.c.bf16 %v595_v19, %v593_v18  ;;  %v597_v33 = vld [vmem:[%s13933_s29 + $0x40] sm:$0xff]  ;;  %v726_v37 = vld [vmem:[#allocation5 + $0x2c8] sm:$0xff]  ;;  %v611_v18 = vld [vmem:[%s13933_s29 + $0xb0] sm:$0xff] }
  0xcb   : > { %v11102_v46 = vcombine.high %v718_v36, %v726_v37  ;;  %v601_v47 = vld [vmem:[%s13933_s29 + $0x60] sm:$0xff]  ;;  %v11101_v49 = vcombine.low %v718_v36, %v726_v37  ;;  %v660_v19 = vld [vmem:[#allocation5 + $0xb8] sm:$0xff] }
  0xcc   : > { %v605_v61 = vld [vmem:[%s13933_s29 + $0x80] sm:$0xff] }
  0xcd   : > { %2274 = vmatpush1.bf16.msra.mxu0 %v11147_v40  ;;  %v11086_v40 = vcombine.high %v702_v30, %v710_v31  ;;  %v13997_v7 = vpack.c.bf16 %v607_v62, %v605_v61  ;;  %v11213_v62 = vcombine.low %v830_v38, %v838_v39 }
  0xce   : > { %2275 = vmatprep.subr.bf16.mxu0 %v11164_v41  ;;  %v13977_v41 = vpack.c.bf16 %v599_v34, %v597_v33  ;;  %v684_v33 = vld [vmem:[#allocation5 + $0x178] sm:$0xff] }
  0xd1   : > { %2276 = vmatpush1.bf16.msra.mxu0 %v11163_v44  ;;  %v734_v44 = vld [vmem:[#allocation5 + $0x308] sm:$0xff] }
  0xd2   : > { %2277 = vmatprep.subr.bf16.mxu0 %v11180_v45  ;;  %v742_v45 = vld [vmem:[#allocation5 + $0x348] sm:$0xff] }
  0xd3   : > { %v11118_v54 = vcombine.high %v734_v44, %v742_v45 }
  0xd5   : > { %2278 = vmatpush1.bf16.msra.mxu0 %v11179_v48  ;;  %v603_v48 = vld [vmem:[%s13933_s29 + $0x70] sm:$0xff] }
  0xd6   : > { %2279 = vmatprep.subr.bf16.mxu0 %v11196_v51  ;;  %v758_v51 = vld [vmem:[#allocation5 + $0x3c8] sm:$0xff] }
  0xd9   : > { %2280 = vmatpush1.bf16.msra.mxu0 %v11195_v52  ;;  %v606_v52 = vld [vmem:[%s13933_s29 + $0x88] sm:$0xff] }
  0xda   : > { %2281 = vmatprep.subr.bf16.mxu0 %v11212_v55  ;;  %v13987_v55 = vpack.c.bf16 %v603_v48, %v601_v47  ;;  %v13989_v57 = vpack.c.bf16 %v608_v53, %v606_v52  ;;  %v700_v47 = vld [vmem:[#allocation5 + $0x1f8] sm:$0xff]  ;;  %v618_v52 = vld [vmem:[%s13933_s29 + $0xe8] sm:$0xff] }
  0xdb   : > { %v620_v53 = vld [vmem:[%s13933_s29 + $0xf8] sm:$0xff] }
  0xdd   : > { %2282 = vmatpush1.bf16.msra.mxu0 %v11211_v56  ;;  %v11117_v56 = vcombine.low %v734_v44, %v742_v45  ;;  %v613_v44 = vld [vmem:[%s13933_s29 + $0xc0] sm:$0xff]  ;;  %v615_v45 = vld [vmem:[%s13933_s29 + $0xd0] sm:$0xff] }
  0xde   : > { %2283 = vmatprep.subr.bf16.mxu0 %v11228_v59  ;;  %v774_v59 = vld [vmem:[#allocation5 + $0x448] sm:$0xff] }
  0xdf   : > { %v11150_v4 = vcombine.high %v766_v58, %v774_v59  ;;  %v11149_v9 = vcombine.low %v766_v58, %v774_v59  ;;  %v708_v58 = vld [vmem:[#allocation5 + $0x238] sm:$0xff] }
  0xe0   : > { %v716_v59 = vld [vmem:[#allocation5 + $0x278] sm:$0xff] }
  0xe1   : > { %2284 = vmatpush1.bf16.msra.mxu0 %v11227_v60  ;;  %v11134_v60 = vcombine.high %v750_v50, %v758_v51  ;;  %v11098_v61 = vcombine.high %v708_v58, %v716_v59 }
  0xe2   : > { %2285 = vmatprep.subr.bf16.mxu0 %v11244_v63  ;;  %v11133_v63 = vcombine.low %v750_v50, %v758_v51  ;;  %v846_v50 = vld [vmem:[#allocation5 + $0x688] sm:$0xff] }
  0xe3   : > { %v854_v51 = vld [vmem:[#allocation5 + $0x6c8] sm:$0xff] }
  0xe5   : > { %2286 = vmatpush1.bf16.msra.mxu0 %v11243_v0  ;;  %v782_v0 = vld [vmem:[#allocation5 + $0x488] sm:$0xff] }
  0xe6   : > { %2287 = vmatprep.subr.bf16.mxu0 %v11260_v3  ;;  %v612_v3 = vld [vmem:[%s13933_s29 + $0xb8] sm:$0xff]  ;;  %v11166_v16 = vcombine.high %v782_v0, %v790_v1  ;;  %v11165_v23 = vcombine.low %v782_v0, %v790_v1  ;;  %v862_v0 = vld [vmem:[#allocation5 + $0x708] sm:$0xff] }
  0xe7   : > { %v13999_v10 = vpack.c.bf16 %v612_v3, %v610_v2  ;;  %v870_v1 = vld [vmem:[#allocation5 + $0x748] sm:$0xff]  ;;  %v11097_v2 = vcombine.low %v708_v58, %v716_v59  ;;  %v11230_v3 = vcombine.high %v846_v50, %v854_v51 }
  0xe9   : > { %2288 = vmatpush1.bf16.msra.mxu0 %v11259_v6  ;;  %v652_v6 = vld [vmem:[#allocation5 + $0x78] sm:$0xff] }
  0xea   : > { %2370 = vmatprep.subr.bf16.mxu0 %v11022_v11  ;;  %v11034_v8 = vcombine.high %v644_v5, %v652_v6  ;;  %v798_v11 = vld [vmem:[#allocation5 + $0x508] sm:$0xff]  ;;  %v11033_v15 = vcombine.low %v644_v5, %v652_v6  ;;  %v619_v5 = vld [vmem:[%s13933_s29 + $0xf0] sm:$0xff]  ;;  %v724_v6 = vld [vmem:[#allocation5 + $0x2b8] sm:$0xff] }
  0xec   : > { %2290 = vmatmul.mubr.bf16.vlgmr.msra.gmra.mrb[0].mxu0 %v13957_v12  ;;  %3048 = vmatprep.subr.bf16.mxu1 %v11034_v8  ;;  %v732_v8 = vld [vmem:[#allocation5 + $0x2f8] sm:$0xff] }
  0xed   : > { %2371 = vmatpush1.bf16.msra.mxu0 %v11021_v13  ;;  %2299 = vmatprep.mubr.bf16.mxu0 %v13959_v14  ;;  %v806_v13 = vld [vmem:[#allocation5 + $0x548] sm:$0xff] }
  0xee   : > { %2372 = vmatprep.subr.bf16.mxu0 %v11038_v17  ;;  %v609_v17 = vld [vmem:[%s13933_s29 + $0xa0] sm:$0xff]  ;;  %3049 = vmatpush1.bf16.msra.mxu1 %v11033_v15  ;;  %v11182_v31 = vcombine.high %v798_v11, %v806_v13  ;;  %v11181_v36 = vcombine.low %v798_v11, %v806_v13  ;;  %v11229_v11 = vcombine.low %v846_v50, %v854_v51  ;;  %v878_v13 = vld [vmem:[#allocation5 + $0x788] sm:$0xff]  ;;  %v788_v50 = vld [vmem:[#allocation5 + $0x4b8] sm:$0xff] }
  0xef   : > { %v14007_v34 = vpack.c.bf16 %v611_v18, %v609_v17  ;;  %v886_v15 = vld [vmem:[#allocation5 + $0x7c8] sm:$0xff]  ;;  %v11246_v17 = vcombine.high %v862_v0, %v870_v1  ;;  %v740_v18 = vld [vmem:[#allocation5 + $0x338] sm:$0xff] }
  0xf0   : > { %v796_v51 = vld [vmem:[#allocation5 + $0x4f8] sm:$0xff] }
  0xf1   : > { %2373 = vmatpush1.bf16.msra.mxu0 %v11037_v21  ;;  %v668_v21 = vld [vmem:[#allocation5 + $0xf8] sm:$0xff]  ;;  %v11177_v58 = vcombine.low %v788_v50, %v796_v51 }
  0xf2   : > { %2374 = vmatprep.subr.bf16.mxu0 %v11054_v26  ;;  %v11050_v22 = vcombine.high %v660_v19, %v668_v21  ;;  %v614_v26 = vld [vmem:[%s13933_s29 + $0xc8] sm:$0xff]  ;;  %v11049_v30 = vcombine.low %v660_v19, %v668_v21  ;;  %v748_v19 = vld [vmem:[#allocation5 + $0x378] sm:$0xff] }
  0xf4   : > { %2300 = vmatmul.mubr.bf16.gmra.mrb[4].mxu0 %v13967_v27  ;;  %3050 = vmatprep.subr.bf16.mxu1 %v11050_v22  ;;  %v11130_v22 = vcombine.high %v740_v18, %v748_v19 }
  0xf5   : > { %2375 = vmatpush1.bf16.msra.mxu0 %v11053_v28  ;;  %2309 = vmatprep.mubr.bf16.mxu0 %v13969_v29  ;;  %v616_v28 = vld [vmem:[%s13933_s29 + $0xd8] sm:$0xff] }
  0xf6   : > { %2376 = vmatprep.subr.bf16.mxu0 %v11070_v32  ;;  %3051 = vmatpush1.bf16.msra.mxu1 %v11049_v30  ;;  %v676_v32 = vld [vmem:[#allocation5 + $0x138] sm:$0xff]  ;;  %v14009_v37 = vpack.c.bf16 %v616_v28, %v614_v26  ;;  %v11129_v26 = vcombine.low %v740_v18, %v748_v19  ;;  %v11262_v28 = vcombine.high %v878_v13, %v886_v15 }
  0xf7   : > { %v756_v30 = vld [vmem:[#allocation5 + $0x3b8] sm:$0xff] }
  0xf8   : > { %v836_v18 = vld [vmem:[#allocation5 + $0x638] sm:$0xff] }
  0xf9   : > { %2377 = vmatpush1.bf16.msra.mxu0 %v11069_v35  ;;  %v11066_v35 = vcombine.high %v676_v32, %v684_v33  ;;  %v844_v19 = vld [vmem:[#allocation5 + $0x678] sm:$0xff] }
  0xfa   : > { %2378 = vmatprep.subr.bf16.mxu0 %v11086_v40  ;;  %v11065_v40 = vcombine.low %v676_v32, %v684_v33  ;;  %v11261_v33 = vcombine.low %v878_v13, %v886_v15  ;;  %v719_v13 = vld [vmem:[#allocation5 + $0x290] sm:$0xff] }
  0xfb   : > { %3052 = vmatprep.subr.bf16.mxu1 %v11066_v35  ;;  %v655_v35 = vld [vmem:[#allocation5 + $0x90] sm:$0xff] }
  0xfc   : > { %2310 = vmatmul.mubr.bf16.gmra.mrb[8].mxu0 %v13977_v41  ;;  %3053 = vmatpush1.bf16.msra.mxu1 %v11065_v40  ;;  %v772_v40 = vld [vmem:[#allocation5 + $0x438] sm:$0xff]  ;;  %v727_v15 = vld [vmem:[#allocation5 + $0x2d0] sm:$0xff] }
  0xfd   : > { %2379 = vmatpush1.bf16.msra.mxu0 %v11085_v42  ;;  %2319 = vmatprep.mubr.bf16.mxu0 %v13979_v43  ;;  %v11198_v42 = vcombine.high %v814_v24, %v822_v25 }
  0xfe   : > { %2380 = vmatprep.subr.bf16.mxu0 %v11102_v46  ;;  %v692_v46 = vld [vmem:[#allocation5 + $0x1b8] sm:$0xff] }
  0xff   : > { %v11082_v48 = vcombine.high %v692_v46, %v700_v47 }
 0x101   : > { %2381 = vmatpush1.bf16.msra.mxu0 %v11101_v49  ;;  %v11197_v49 = vcombine.low %v814_v24, %v822_v25  ;;  %3054 = vmatprep.subr.bf16.mxu1 %v11082_v48  ;;  %v639_v24 = vld [vmem:[#allocation5 + $0x10] sm:$0xff] }
 0x102   : > { %2382 = vmatprep.subr.bf16.mxu0 %v11118_v54  ;;  %v11081_v54 = vcombine.low %v692_v46, %v700_v47  ;;  %v647_v25 = vld [vmem:[#allocation5 + $0x50] sm:$0xff] }
 0x103   : > { %v671_v46 = vld [vmem:[#allocation5 + $0x110] sm:$0xff] }
 0x104   : > { %2320 = vmatmul.mubr.bf16.gmra.mrb[12].mxu0 %v13987_v55  ;;  %3055 = vmatpush1.bf16.msra.mxu1 %v11081_v54  ;;  %v679_v47 = vld [vmem:[#allocation5 + $0x150] sm:$0xff] }
 0x105   : > { %2383 = vmatpush1.bf16.msra.mxu0 %v11117_v56  ;;  %2329 = vmatprep.mubr.bf16.mxu0 %v13989_v57  ;;  %v11214_v56 = vcombine.high %v830_v38, %v838_v39  ;;  %v11024_v39 = vcombine.high %v639_v24, %v647_v25  ;;  %v687_v54 = vld [vmem:[#allocation5 + $0x190] sm:$0xff]  ;;  %v11056_v59 = vcombine.high %v671_v46, %v679_v47 }
 0x106   : > { %2384 = vmatprep.subr.bf16.mxu0 %v11134_v60  ;;  %v14017_v60 = vpack.c.bf16 %v615_v45, %v613_v44  ;;  %3056 = vmatprep.subr.bf16.mxu1 %v11098_v61  ;;  %v11023_v45 = vcombine.low %v639_v24, %v647_v25  ;;  %v804_v61 = vld [vmem:[#allocation5 + $0x538] sm:$0xff]  ;;  %v735_v24 = vld [vmem:[#allocation5 + $0x310] sm:$0xff] }
 0x107   : > { %v743_v25 = vld [vmem:[#allocation5 + $0x350] sm:$0xff] }
 0x108   : > { %3057 = vmatpush1.bf16.msra.mxu1 %v11097_v2  ;;  %v703_v2 = vld [vmem:[#allocation5 + $0x210] sm:$0xff] }
 0x109   : > { %2385 = vmatpush1.bf16.msra.mxu0 %v11133_v63  ;;  %v14019_v63 = vpack.c.bf16 %v620_v53, %v618_v52  ;;  %v11178_v52 = vcombine.high %v788_v50, %v796_v51  ;;  %v884_v50 = vld [vmem:[#allocation5 + $0x7b8] sm:$0xff] }
 0x10a   : > { %2386 = vmatprep.subr.bf16.mxu0 %v11150_v4  ;;  %v617_v4 = vld [vmem:[%s13933_s29 + $0xe0] sm:$0xff]  ;;  %v892_v51 = vld [vmem:[#allocation5 + $0x7f8] sm:$0xff]  ;;  %s11017_s29 = sshll.u32 %s13733_s22, 4 }
 0x10b   : > { %v14025_v21 = vpack.c.bf16 %v619_v5, %v617_v4  ;;  %p583_p10 = scmp.lt.s32.totalorder %s11017_s29, 31 }
 0x10c   : > { %2330 = vmatmul.mubr.bf16.gmra.mrb[16].mxu0 %v13997_v7 }
 0x10d   : > { %2387 = vmatpush1.bf16.msra.mxu0 %v11149_v9  ;;  %2339 = vmatprep.mubr.bf16.mxu0 %v13999_v10  ;;  %v11114_v9 = vcombine.high %v724_v6, %v732_v8  ;;  %s16890_s29 = smov (!%p583_p10, %s11017_s29), 31 }
 0x10e   : > { %2388 = vmatprep.subr.bf16.mxu0 %v11166_v16  ;;  %v11113_v16 = vcombine.low %v724_v6, %v732_v8  ;;  %v820_v6 = vld [vmem:[#allocation5 + $0x5b8] sm:$0xff]  ;;  %s11018_s24 = sshll.u32 %s16890_s29, 3 }
 0x10f   : > { %3058 = vmatprep.subr.bf16.mxu1 %v11114_v9  ;;  %v828_v8 = vld [vmem:[#allocation5 + $0x5f8] sm:$0xff]  ;;  %s15529_s11 = scalar_lea.vmem %s16798_s18, %s11018_s24  ;;  %s16513_s18 = scalar_lea.vmem [#allocation11], %s11011_s9 }
 0x110   : > { %3059 = vmatpush1.bf16.msra.mxu1 %v11113_v16  ;;  %v11210_v9 = vcombine.high %v820_v6, %v828_v8  ;;  %v11209_v16 = vcombine.low %v820_v6, %v828_v8  ;;  %v831_v8 = vld [vmem:[#allocation5 + $0x610] sm:$0xff]  ;;  %s11832_s9 = sshll.u32 %s13733_s22, 12  ;;  %s10840_s22 = scalar_lea.sflag [#allocation4], %s13927_s30 }
 0x111   : > { %2389 = vmatpush1.bf16.msra.mxu0 %v11165_v23  ;;  %v11245_v23 = vcombine.low %v862_v0, %v870_v1  ;;  %3060 = vmatprep.subr.bf16.mxu1 %v11130_v22  ;;  %v11055_v1 = vcombine.low %v671_v46, %v679_v47  ;;  %v11226_v22 = vcombine.high %v836_v18, %v844_v19  ;;  %v767_v46 = vld [vmem:[#allocation5 + $0x410] sm:$0xff] }
 0x112   : > { %2390 = vmatprep.subr.bf16.mxu0 %v11182_v31  ;;  %v764_v31 = vld [vmem:[#allocation5 + $0x3f8] sm:$0xff]  ;;  %v775_v47 = vld [vmem:[#allocation5 + $0x450] sm:$0xff] }
 0x113   : > { %v11146_v32 = vcombine.high %v756_v30, %v764_v31  ;;  %v11145_v38 = vcombine.low %v756_v30, %v764_v31  ;;  %v852_v30 = vld [vmem:[#allocation5 + $0x6b8] sm:$0xff] }
 0x114   : > { %2340 = vmatmul.mubr.bf16.gmra.mrb[20].mxu0 %v14007_v34  ;;  %3061 = vmatpush1.bf16.msra.mxu1 %v11129_v26  ;;  %v11225_v26 = vcombine.low %v836_v18, %v844_v19  ;;  %v860_v31 = vld [vmem:[#allocation5 + $0x6f8] sm:$0xff]  ;;  %v863_v19 = vld [vmem:[#allocation5 + $0x710] sm:$0xff] }
 0x115   : > { %2391 = vmatpush1.bf16.msra.mxu0 %v11181_v36  ;;  %2349 = vmatprep.mubr.bf16.mxu0 %v14009_v37  ;;  %v663_v36 = vld [vmem:[#allocation5 + $0xd0] sm:$0xff] }
 0x116   : > { %2392 = vmatprep.subr.bf16.mxu0 %v11198_v42  ;;  %3062 = vmatprep.subr.bf16.mxu1 %v11146_v32  ;;  %v780_v42 = vld [vmem:[#allocation5 + $0x478] sm:$0xff]  ;;  %v11039_v53 = vcombine.low %v655_v35, %v663_v36  ;;  %v11242_v32 = vcombine.high %v852_v30, %v860_v31 }
 0x117   : > { %v11162_v44 = vcombine.high %v772_v40, %v780_v42  ;;  %v11161_v48 = vcombine.low %v772_v40, %v780_v42  ;;  %v868_v40 = vld [vmem:[#allocation5 + $0x738] sm:$0xff] }
 0x118   : > { %3063 = vmatpush1.bf16.msra.mxu1 %v11145_v38  ;;  %v11241_v38 = vcombine.low %v852_v30, %v860_v31  ;;  %v876_v42 = vld [vmem:[#allocation5 + $0x778] sm:$0xff] }
 0x119   : > { %2393 = vmatpush1.bf16.msra.mxu0 %v11197_v49  ;;  %v11040_v49 = vcombine.high %v655_v35, %v663_v36  ;;  %3064 = vmatprep.subr.bf16.mxu1 %v11162_v44  ;;  %v751_v35 = vld [vmem:[#allocation5 + $0x390] sm:$0xff]  ;;  %v11258_v44 = vcombine.high %v868_v40, %v876_v42  ;;  %v640_v31 = vld [vmem:[#allocation5 + $0x18] sm:$0xff] }
 0x11a   : > { %2394 = vmatprep.subr.bf16.mxu0 %v11214_v56  ;;  %v695_v56 = vld [vmem:[#allocation5 + $0x1d0] sm:$0xff] }
 0x11b   : > { %v11072_v5 = vcombine.high %v687_v54, %v695_v56  ;;  %v759_v36 = vld [vmem:[#allocation5 + $0x3d0] sm:$0xff] }
 0x11c   : > { %2350 = vmatmul.mubr.bf16.gmra.mrb[24].mxu0 %v14017_v60  ;;  %3065 = vmatpush1.bf16.msra.mxu1 %v11161_v48  ;;  %v11257_v48 = vcombine.low %v868_v40, %v876_v42  ;;  %v12841_v40 = vld [vmem:[#allocation7 + $0xc0] sm:$0xff]  }
 0x11d   : > { %2395 = vmatpush1.bf16.msra.mxu0 %v11213_v62  ;;  %2359 = vmatprep.mubr.bf16.mxu0 %v14019_v63  ;;  %v812_v62 = vld [vmem:[#allocation5 + $0x578] sm:$0xff] }
 0x11e   : > { %2396 = vmatprep.subr.bf16.mxu0 %v11230_v3  ;;  %3066 = vmatprep.subr.bf16.mxu1 %v11178_v52  ;;  %v11194_v0 = vcombine.high %v804_v61, %v812_v62  ;;  %v711_v3 = vld [vmem:[#allocation5 + $0x250] sm:$0xff]  ;;  %v11193_v4 = vcombine.low %v804_v61, %v812_v62  ;;  %v11274_v52 = vcombine.high %v884_v50, %v892_v51 }
 0x11f   : > { %v11151_v61 = vcombine.low %v767_v46, %v775_v47  ;;  %v799_v62 = vld [vmem:[#allocation5 + $0x510] sm:$0xff] }
 0x120   : > { %3067 = vmatpush1.bf16.msra.mxu1 %v11177_v58  ;;  %v11273_v58 = vcombine.low %v884_v50, %v892_v51  ;;  %v688_v50 = vld [vmem:[#allocation5 + $0x198] sm:$0xff] }
 0x121   : > { %2397 = vmatpush1.bf16.msra.mxu0 %v11229_v11  ;;  %3068 = vmatprep.subr.bf16.mxu1 %v11194_v0  ;;  %v11071_v11 = vcombine.low %v687_v54, %v695_v56  ;;  %v783_v54 = vld [vmem:[#allocation5 + $0x490] sm:$0xff]  ;;  %v696_v51 = vld [vmem:[#allocation5 + $0x1d8] sm:$0xff] }
 0x122   : > { %2398 = vmatprep.subr.bf16.mxu0 %v11246_v17  ;;  %v11088_v17 = vcombine.high %v703_v2, %v711_v3  ;;  %v791_v56 = vld [vmem:[#allocation5 + $0x4d0] sm:$0xff] }
 0x123   : > { %v807_v0 = vld [vmem:[#allocation5 + $0x550] sm:$0xff] }
 0x124   : > { %2360 = vmatmul.mubr.bf16.gmra.mrb[28].mxu0 %v14025_v21  ;;  %3069 = vmatpush1.bf16.msra.mxu1 %v11193_v4  ;;  %v823_v4 = vld [vmem:[#allocation5 + $0x5d0] sm:$0xff]  ;;  %v11183_v6 = vcombine.low %v799_v62, %v807_v0 }
 0x125   : > { %2399 = vmatpush1.bf16.msra.mxu0 %v11245_v23  ;;  %2402 = vmatprep.mubr.bf16.mxu0 %v13949_v20  ;;  %v11087_v23 = vcombine.low %v703_v2, %v711_v3  ;;  %v11167_v2 = vcombine.low %v783_v54, %v791_v56  ;;  %v815_v3 = vld [vmem:[#allocation5 + $0x590] sm:$0xff] }
 0x126   : > { %2400 = vmatprep.subr.bf16.mxu0 %v11262_v28  ;;  %3070 = vmatprep.subr.bf16.mxu1 %v11210_v9  ;;  %v11104_v28 = vcombine.high %v719_v13, %v727_v15  ;;  %v839_v9 = vld [vmem:[#allocation5 + $0x650] sm:$0xff] }
 0x127   : > { %v11215_v18 = vcombine.low %v831_v8, %v839_v9 }
 0x128   : > { %3071 = vmatpush1.bf16.msra.mxu1 %v11209_v16  ;;  %v855_v16 = vld [vmem:[#allocation5 + $0x6d0] sm:$0xff] }
 0x129   : > { %2401 = vmatpush1.bf16.msra.mxu0 %v11261_v33  ;;  %3072 = vmatprep.subr.bf16.mxu1 %v11226_v22  ;;  %v11103_v33 = vcombine.low %v719_v13, %v727_v15  ;;  %v11199_v13 = vcombine.low %v815_v3, %v823_v4  ;;  %v847_v15 = vld [vmem:[#allocation5 + $0x690] sm:$0xff] }
 0x12a   : > { %2483 = vmatprep.subr.bf16.mxu0 %v11024_v39  ;;  %v11120_v39 = vcombine.high %v735_v24, %v743_v25  ;;  %v871_v22 = vld [vmem:[#allocation5 + $0x750] sm:$0xff] }
 0x12b   : > { %v11247_v30 = vcombine.low %v863_v19, %v871_v22 }
 0x12c   : > { %2403 = vmatmul.mubr.bf16.vlgmr.msra.gmra.mrb[32].mxu0 %v13957_v12  ;;  %3073 = vmatpush1.bf16.msra.mxu1 %v11225_v26  ;;  %v887_v26 = vld [vmem:[#allocation5 + $0x7d0] sm:$0xff] }
 0x12d   : > { %2484 = vmatpush1.bf16.msra.mxu0 %v11023_v45  ;;  %2412 = vmatprep.mubr.bf16.mxu0 %v13959_v14  ;;  %v11119_v45 = vcombine.low %v735_v24, %v743_v25  ;;  %v11231_v24 = vcombine.low %v847_v15, %v855_v16  ;;  %v879_v25 = vld [vmem:[#allocation5 + $0x790] sm:$0xff] }
 0x12e   : > { %2485 = vmatprep.subr.bf16.mxu0 %v11040_v49  ;;  %3074 = vmatprep.subr.bf16.mxu1 %v11242_v32  ;;  %v11136_v49 = vcombine.high %v751_v35, %v759_v36  ;;  %v648_v32 = vld [vmem:[#allocation5 + $0x58] sm:$0xff] }
 0x12f   : > { %v11025_v42 = vcombine.low %v640_v31, %v648_v32 }
 0x130   : > { %3075 = vmatpush1.bf16.msra.mxu1 %v11241_v38  ;;  %v664_v38 = vld [vmem:[#allocation5 + $0xd8] sm:$0xff] }
 0x131   : > { %2486 = vmatpush1.bf16.msra.mxu0 %v11039_v53  ;;  %3076 = vmatprep.subr.bf16.mxu1 %v11258_v44  ;;  %v11135_v53 = vcombine.low %v751_v35, %v759_v36  ;;  %v11263_v35 = vcombine.low %v879_v25, %v887_v26  ;;  %v656_v36 = vld [vmem:[#allocation5 + $0x98] sm:$0xff] }
 0x132   : > { %2487 = vmatprep.subr.bf16.mxu0 %v11056_v59  ;;  %v11152_v59 = vcombine.high %v767_v46, %v775_v47  ;;  %v672_v44 = vld [vmem:[#allocation5 + $0x118] sm:$0xff]  ;;  %v12842_v46 = vld [vmem:[#allocation7 + $0x80] sm:$0xff]   ;;  %v11042_v47 = vcombine.high %v656_v36, %v664_v38 }
 0x134   : > { %2413 = vmatmul.mubr.bf16.gmra.mrb[36].mxu0 %v13967_v27  ;;  %3077 = vmatpush1.bf16.msra.mxu1 %v11257_v48  ;;  %v12843_v48 = vld [vmem:[#allocation7 + $0xc8] sm:$0xff]  }
 0x135   : > { %2488 = vmatpush1.bf16.msra.mxu0 %v11055_v1  ;;  %2422 = vmatprep.mubr.bf16.mxu0 %v13969_v29  ;;  %v11168_v1 = vcombine.high %v783_v54, %v791_v56  ;;  %v12845_v54 = vld [vmem:[#allocation7 + $0xd0] sm:$0xff]  }
 0x136   : > { %2489 = vmatprep.subr.bf16.mxu0 %v11072_v5  ;;  %3078 = vmatprep.subr.bf16.mxu1 %v11274_v52  ;;  %v11184_v5 = vcombine.high %v799_v62, %v807_v0  ;;  %v12844_v52 = vld [vmem:[#allocation7 + $0x88] sm:$0xff]   ;;  %v11074_v62 = vcombine.high %v688_v50, %v696_v51  ;;  %v12847_v0 = vld [vmem:[#allocation7 + $0xd8] sm:$0xff]  }
 0x138   : > { %3079 = vmatpush1.bf16.msra.mxu1 %v11273_v58  ;;  %v704_v58 = vld [vmem:[#allocation5 + $0x218] sm:$0xff] }
 0x139   : > { %2490 = vmatpush1.bf16.msra.mxu0 %v11071_v11  ;;  %v11200_v11 = vcombine.high %v815_v3, %v823_v4  ;;  %11897 = vmatprep.subr.bf16.mxu1 %v12841_v40  ;;  %v728_v3 = vld [vmem:[#allocation5 + $0x2d8] sm:$0xff] }
 0x13a   : > { %2491 = vmatprep.subr.bf16.mxu0 %v11088_v17  ;;  %v11216_v17 = vcombine.high %v831_v8, %v839_v9  ;;  %v12848_v4 = vld [vmem:[#allocation7 + $0x98] sm:$0xff]  }
 0x13b   : > { %3081 = vmatmul.mubr.bf16.vlgmr.msra.gmra.mrb[0].mxu1 %v13957_v12  ;;  %v736_v9 = vld [vmem:[#allocation5 + $0x318] sm:$0xff] }
 0x13c   : > { %2423 = vmatmul.mubr.bf16.gmra.mrb[40].mxu0 %v13977_v41  ;;  %3090 = vmatprep.mubr.bf16.mxu1 %v13959_v14 }
 0x13d   : > { %2492 = vmatpush1.bf16.msra.mxu0 %v11087_v23  ;;  %2432 = vmatprep.mubr.bf16.mxu0 %v13979_v43  ;;  %v11232_v23 = vcombine.high %v847_v15, %v855_v16  ;;  %v12851_v16 = vld [vmem:[#allocation7 + $0xe8] sm:$0xff]  }
 0x13e   : > { %2493 = vmatprep.subr.bf16.mxu0 %v11104_v28  ;;  %v11248_v28 = vcombine.high %v863_v19, %v871_v22  ;;  %11898 = vmatpush3.bf16.msra.mxu1 %v12842_v46  ;;  %v760_v19 = vld [vmem:[#allocation5 + $0x3d8] sm:$0xff]  ;;  %v12852_v22 = vld [vmem:[#allocation7 + $0xa8] sm:$0xff]  }
 0x13f   : > { %11899 = vmatprep.subr.bf16.mxu1 %v12843_v48  ;;  %v824_v48 = vld [vmem:[#allocation5 + $0x5d8] sm:$0xff] }
 0x141   : > { %2494 = vmatpush1.bf16.msra.mxu0 %v11103_v33  ;;  %v11264_v33 = vcombine.high %v879_v25, %v887_v26  ;;  %v768_v26 = vld [vmem:[#allocation5 + $0x418] sm:$0xff] }
 0x142   : > { %2495 = vmatprep.subr.bf16.mxu0 %v11120_v39  ;;  %v11026_v39 = vcombine.high %v640_v31, %v648_v32  ;;  %11900 = vmatpush3.bf16.msra.mxu1 %v12844_v52  ;;  %v12855_v32 = vld [vmem:[#allocation7 + $0xf8] sm:$0xff]  }
 0x143   : > { %3091 = vmatmul.mubr.bf16.gmra.mrb[4].mxu1 %v13967_v27  ;;  %11901 = vmatprep.subr.bf16.mxu1 %v12845_v54  ;;  %v840_v52 = vld [vmem:[#allocation5 + $0x658] sm:$0xff] }
 0x144   : > { %2433 = vmatmul.mubr.bf16.gmra.mrb[44].mxu0 %v13987_v55  ;;  %3100 = vmatprep.mubr.bf16.mxu1 %v13969_v29 }
 0x145   : > { %2496 = vmatpush1.bf16.msra.mxu0 %v11119_v45  ;;  %2442 = vmatprep.mubr.bf16.mxu0 %v13989_v57  ;;  %v680_v45 = vld [vmem:[#allocation5 + $0x158] sm:$0xff] }
 0x146   : > { %2497 = vmatprep.subr.bf16.mxu0 %v11136_v49  ;;  %v11041_v49 = vcombine.low %v656_v36, %v664_v38  ;;  %v11057_v56 = vcombine.low %v672_v44, %v680_v45  ;;  %v792_v36 = vld [vmem:[#allocation5 + $0x4d8] sm:$0xff] }
 0x147   : > { %v12856_v38 = vld [vmem:[#allocation7 + $0xb8] sm:$0xff]  }
 0x149   : > { %2498 = vmatpush1.bf16.msra.mxu0 %v11135_v53  ;;  %v11058_v53 = vcombine.high %v672_v44, %v680_v45  ;;  %v808_v44 = vld [vmem:[#allocation5 + $0x558] sm:$0xff] }
 0x14a   : > { %2499 = vmatprep.subr.bf16.mxu0 %v11152_v59  ;;  %v712_v59 = vld [vmem:[#allocation5 + $0x258] sm:$0xff] }
 0x14b   : > { %3101 = vmatmul.mubr.bf16.gmra.mrb[8].mxu1 %v13977_v41  ;;  %v11089_v8 = vcombine.low %v704_v58, %v712_v59 }
 0x14c   : > { %2443 = vmatmul.mubr.bf16.gmra.mrb[48].mxu0 %v13997_v7  ;;  %3110 = vmatprep.mubr.bf16.mxu1 %v13979_v43 }
 0x14d   : > { %2500 = vmatpush1.bf16.msra.mxu0 %v11151_v61  ;;  %2452 = vmatprep.mubr.bf16.mxu0 %v13999_v10  ;;  %v12846_v61 = vld [vmem:[#allocation7 + $0x90] sm:$0xff]  }
 0x14e   : > { %2501 = vmatprep.subr.bf16.mxu0 %v11168_v1  ;;  %11902 = vmatpush3.bf16.msra.mxu1 %v12846_v61  ;;  %v11073_v1 = vcombine.low %v688_v50, %v696_v51  ;;  %v832_v51 = vld [vmem:[#allocation5 + $0x618] sm:$0xff] }
 0x14f   : > { %11903 = vmatprep.subr.bf16.mxu1 %v12847_v0  ;;  %v11217_v61 = vcombine.low %v832_v51, %v840_v52  ;;  %v872_v0 = vld [vmem:[#allocation5 + $0x758] sm:$0xff] }
 0x151   : > { %2502 = vmatpush1.bf16.msra.mxu0 %v11167_v2  ;;  %v720_v2 = vld [vmem:[#allocation5 + $0x298] sm:$0xff] }
 0x152   : > { %2503 = vmatprep.subr.bf16.mxu0 %v11184_v5  ;;  %v11090_v5 = vcombine.high %v704_v58, %v712_v59  ;;  %11904 = vmatpush3.bf16.msra.mxu1 %v12848_v4  ;;  %v11106_v15 = vcombine.high %v720_v2, %v728_v3  ;;  %v856_v58 = vld [vmem:[#allocation5 + $0x6d8] sm:$0xff]  ;;  %v11218_v59 = vcombine.high %v832_v51, %v840_v52 }
 0x153   : > { %3111 = vmatmul.mubr.bf16.gmra.mrb[12].mxu1 %v13987_v55  ;;  %v888_v4 = vld [vmem:[#allocation5 + $0x7d8] sm:$0xff] }
 0x154   : > { %2453 = vmatmul.mubr.bf16.gmra.mrb[52].mxu0 %v14007_v34  ;;  %3120 = vmatprep.mubr.bf16.mxu1 %v13989_v57 }
 0x155   : > { %2504 = vmatpush1.bf16.msra.mxu0 %v11183_v6  ;;  %2462 = vmatprep.mubr.bf16.mxu0 %v14009_v37  ;;  %v12849_v6 = vld [vmem:[#allocation7 + $0xe0] sm:$0xff]  }
 0x156   : > { %2505 = vmatprep.subr.bf16.mxu0 %v11200_v11  ;;  %v744_v11 = vld [vmem:[#allocation5 + $0x358] sm:$0xff]  ;;  %11905 = vmatprep.subr.bf16.mxu1 %v12849_v6 }
 0x157   : > { %v11121_v25 = vcombine.low %v736_v9, %v744_v11 }
 0x159   : > { %2506 = vmatpush1.bf16.msra.mxu0 %v11199_v13  ;;  %v12850_v13 = vld [vmem:[#allocation7 + $0xa0] sm:$0xff]  }
 0x15a   : > { %2507 = vmatprep.subr.bf16.mxu0 %v11216_v17  ;;  %11906 = vmatpush3.bf16.msra.mxu1 %v12850_v13  ;;  %v11105_v17 = vcombine.low %v720_v2, %v728_v3  ;;  %v880_v3 = vld [vmem:[#allocation5 + $0x798] sm:$0xff] }
 0x15b   : > { %3121 = vmatmul.mubr.bf16.gmra.mrb[16].mxu1 %v13997_v7  ;;  %11907 = vmatprep.subr.bf16.mxu1 %v12851_v16  ;;  %v11265_v13 = vcombine.low %v880_v3, %v888_v4  ;;  %v665_v16 = vld [vmem:[#allocation5 + $0xe0] sm:$0xff] }
 0x15c   : > { %2463 = vmatmul.mubr.bf16.gmra.mrb[56].mxu0 %v14017_v60  ;;  %3130 = vmatprep.mubr.bf16.mxu1 %v13999_v10 }
 0x15d   : > { %2508 = vmatpush1.bf16.msra.mxu0 %v11215_v18  ;;  %2472 = vmatprep.mubr.bf16.mxu0 %v14019_v63  ;;  %v752_v18 = vld [vmem:[#allocation5 + $0x398] sm:$0xff] }
 0x15e   : > { %2509 = vmatprep.subr.bf16.mxu0 %v11232_v23  ;;  %v11122_v23 = vcombine.high %v736_v9, %v744_v11  ;;  %11908 = vmatpush3.bf16.msra.mxu1 %v12852_v22  ;;  %v11138_v31 = vcombine.high %v752_v18, %v760_v19  ;;  %v649_v9 = vld [vmem:[#allocation5 + $0x60] sm:$0xff]  ;;  %v11266_v11 = vcombine.high %v880_v3, %v888_v4 }
 0x15f   : > { %v681_v22 = vld [vmem:[#allocation5 + $0x160] sm:$0xff] }
 0x161   : > { %2510 = vmatpush1.bf16.msra.mxu0 %v11231_v24  ;;  %v12853_v24 = vld [vmem:[#allocation7 + $0xf0] sm:$0xff]  }
 0x162   : > { %2511 = vmatprep.subr.bf16.mxu0 %v11248_v28  ;;  %v776_v28 = vld [vmem:[#allocation5 + $0x458] sm:$0xff]  ;;  %11909 = vmatprep.subr.bf16.mxu1 %v12853_v24 }
 0x163   : > { %3131 = vmatmul.mubr.bf16.gmra.mrb[20].mxu1 %v14007_v34  ;;  %v11153_v40 = vcombine.low %v768_v26, %v776_v28 }
 0x164   : > { %2473 = vmatmul.mubr.bf16.gmra.mrb[60].mxu0 %v14025_v21  ;;  %3140 = vmatprep.mubr.bf16.mxu1 %v14009_v37 }
 0x165   : > { %2512 = vmatpush1.bf16.msra.mxu0 %v11247_v30  ;;  %2515 = vmatprep.mubr.bf16.mxu0 %v13949_v20  ;;  %v12854_v30 = vld [vmem:[#allocation7 + $0xb0] sm:$0xff]  }
 0x166   : > { %2513 = vmatprep.subr.bf16.mxu0 %v11264_v33  ;;  %11910 = vmatpush3.bf16.msra.mxu1 %v12854_v30  ;;  %v11137_v33 = vcombine.low %v752_v18, %v760_v19  ;;  %v673_v19 = vld [vmem:[#allocation5 + $0x120] sm:$0xff]  ;;  %v897_v30 = vlaneseq }
 0x167   : > { %11911 = vmatprep.subr.bf16.mxu1 %v12855_v32  ;;  %v705_v32 = vld [vmem:[#allocation5 + $0x220] sm:$0xff] }
 0x169   : > { %2514 = vmatpush1.bf16.msra.mxu0 %v11263_v35  ;;  %v784_v35 = vld [vmem:[#allocation5 + $0x498] sm:$0xff] }
 0x16a   : > { %2596 = vmatprep.subr.bf16.mxu0 %v11026_v39  ;;  %v11154_v39 = vcombine.high %v768_v26, %v776_v28  ;;  %11912 = vmatpush3.bf16.msra.mxu1 %v12856_v38  ;;  %v11170_v45 = vcombine.high %v784_v35, %v792_v36  ;;  %v11169_v46 = vcombine.low %v784_v35, %v792_v36  ;;  %v697_v26 = vld [vmem:[#allocation5 + $0x1e0] sm:$0xff]  ;;  %v14079_v36 = vshrl.u32 %v897_v30, 7 }
 0x16b   : > { %3141 = vmatmul.mubr.bf16.gmra.mrb[24].mxu1 %v14017_v60  ;;  %v11060_v28 = vcombine.high %v673_v19, %v681_v22 }
 0x16c   : > { %2516 = vmatmul.mubr.bf16.vlgmr.msra.gmra.mrb[64].mxu0 %v13957_v12  ;;  %3150 = vmatprep.mubr.bf16.mxu1 %v14019_v63 }
 0x16d   : > { %2597 = vmatpush1.bf16.msra.mxu0 %v11025_v42  ;;  %2525 = vmatprep.mubr.bf16.mxu0 %v13959_v14  ;;  %v800_v42 = vld [vmem:[#allocation5 + $0x518] sm:$0xff] }
 0x16e   : > { %2598 = vmatprep.subr.bf16.mxu0 %v11042_v47  ;;  %v816_v47 = vld [vmem:[#allocation5 + $0x598] sm:$0xff]  ;;  %v11185_v50 = vcombine.low %v800_v42, %v808_v44 }
 0x16f   : > { %v11201_v54 = vcombine.low %v816_v47, %v824_v48 }
 0x171   : > { %2599 = vmatpush1.bf16.msra.mxu0 %v11041_v49  ;;  %v11186_v49 = vcombine.high %v800_v42, %v808_v44  ;;  %v729_v42 = vld [vmem:[#allocation5 + $0x2e0] sm:$0xff]  ;;  %v14083_v44 = vsub.s32 0, %v14079_v36 }
 0x172   : > { %2600 = vmatprep.subr.bf16.mxu0 %v11058_v53  ;;  %v11202_v53 = vcombine.high %v816_v47, %v824_v48  ;;  %v14091_v47 = vsub.s32 1, %v14079_v36 }
 0x173   : > { %3151 = vmatmul.mubr.bf16.gmra.mrb[28].mxu1 %v14025_v21  ;;  %16692 = vst [vmem:[#allocation18_spill] sm:$0xff] %v14083_v44 }
 0x174   : > { %2526 = vmatmul.mubr.bf16.gmra.mrb[68].mxu0 %v13967_v27  ;;  %16693 = vst [vmem:[#allocation19_spill] sm:$0xff] %v14091_v47 }
 0x175   : > { %2601 = vmatpush1.bf16.msra.mxu0 %v11057_v56  ;;  %2535 = vmatprep.mubr.bf16.mxu0 %v13969_v29  ;;  %v848_v56 = vld [vmem:[#allocation5 + $0x698] sm:$0xff] }
 0x176   : > { %2602 = vmatprep.subr.bf16.mxu0 %v11074_v62  ;;  %v864_v62 = vld [vmem:[#allocation5 + $0x718] sm:$0xff]  ;;  %v11233_v2 = vcombine.low %v848_v56, %v856_v58 }
 0x177   : > { %v11249_v6 = vcombine.low %v864_v62, %v872_v0 }
 0x179   : > { %2603 = vmatpush1.bf16.msra.mxu0 %v11073_v1  ;;  %v11234_v1 = vcombine.high %v848_v56, %v856_v58  ;;  %v753_v58 = vld [vmem:[#allocation5 + $0x3a0] sm:$0xff] }
 0x17a   : > { %2604 = vmatprep.subr.bf16.mxu0 %v11090_v5  ;;  %v11250_v5 = vcombine.high %v864_v62, %v872_v0 }
 0x17c   : > { %2536 = vmatmul.mubr.bf16.gmra.mrb[72].mxu0 %v13977_v41 }
 0x17d   : > { %2605 = vmatpush1.bf16.msra.mxu0 %v11089_v8  ;;  %2545 = vmatprep.mubr.bf16.mxu0 %v13979_v43  ;;  %v641_v8 = vld [vmem:[#allocation5 + $0x20] sm:$0xff] }
 0x17e   : > { %2606 = vmatprep.subr.bf16.mxu0 %v11106_v15  ;;  %v657_v15 = vld [vmem:[#allocation5 + $0xa0] sm:$0xff]  ;;  %v11027_v18 = vcombine.low %v641_v8, %v649_v9 }
 0x17f   : > { %v11043_v24 = vcombine.low %v657_v15, %v665_v16 }
 0x181   : > { %2607 = vmatpush1.bf16.msra.mxu0 %v11105_v17  ;;  %v11028_v17 = vcombine.high %v641_v8, %v649_v9  ;;  %v769_v8 = vld [vmem:[#allocation5 + $0x420] sm:$0xff] }
 0x182   : > { %2608 = vmatprep.subr.bf16.mxu0 %v11122_v23  ;;  %v11044_v23 = vcombine.high %v657_v15, %v665_v16  ;;  %v777_v9 = vld [vmem:[#allocation5 + $0x460] sm:$0xff] }
 0x184   : > { %2546 = vmatmul.mubr.bf16.gmra.mrb[76].mxu0 %v13987_v55 }
 0x185   : > { %2609 = vmatpush1.bf16.msra.mxu0 %v11121_v25  ;;  %2555 = vmatprep.mubr.bf16.mxu0 %v13989_v57  ;;  %v689_v25 = vld [vmem:[#allocation5 + $0x1a0] sm:$0xff] }
 0x186   : > { %2610 = vmatprep.subr.bf16.mxu0 %v11138_v31  ;;  %v11059_v31 = vcombine.low %v673_v19, %v681_v22  ;;  %v11076_v35 = vcombine.high %v689_v25, %v697_v26  ;;  %v11075_v38 = vcombine.low %v689_v25, %v697_v26  ;;  %v11156_v19 = vcombine.high %v769_v8, %v777_v9 }
 0x189   : > { %2611 = vmatpush1.bf16.msra.mxu0 %v11137_v33  ;;  %v713_v33 = vld [vmem:[#allocation5 + $0x260] sm:$0xff] }
 0x18a   : > { %2612 = vmatprep.subr.bf16.mxu0 %v11154_v39  ;;  %v11092_v39 = vcombine.high %v705_v32, %v713_v33 }
 0x18c   : > { %2556 = vmatmul.mubr.bf16.gmra.mrb[80].mxu0 %v13997_v7 }
 0x18d   : > { %2613 = vmatpush1.bf16.msra.mxu0 %v11153_v40  ;;  %2565 = vmatprep.mubr.bf16.mxu0 %v13999_v10  ;;  %v721_v40 = vld [vmem:[#allocation5 + $0x2a0] sm:$0xff] }
 0x18e   : > { %2614 = vmatprep.subr.bf16.mxu0 %v11170_v45  ;;  %v11091_v45 = vcombine.low %v705_v32, %v713_v33  ;;  %v11108_v48 = vcombine.high %v721_v40, %v729_v42  ;;  %v11155_v32 = vcombine.low %v769_v8, %v777_v9 }
 0x191   : > { %2615 = vmatpush1.bf16.msra.mxu0 %v11169_v46  ;;  %v14088_v46 = vld [vmem:[%s16628_s2] sm:$0xff] }
 0x192   : > { %2616 = vmatprep.subr.bf16.mxu0 %v11186_v49  ;;  %v737_v49 = vld [vmem:[#allocation5 + $0x320] sm:$0xff]  ;;  %v14096_v51 = vrot.slane %v14088_v46, %v14083_v44  ;;  %v14100_v52 = vrot.slane %v14088_v46, %v14091_v47 }
 0x194   : > { %2566 = vmatmul.mubr.bf16.gmra.mrb[84].mxu0 %v14007_v34 }
 0x195   : > { %2617 = vmatpush1.bf16.msra.mxu0 %v11185_v50  ;;  %2575 = vmatprep.mubr.bf16.mxu0 %v14009_v37  ;;  %v745_v50 = vld [vmem:[#allocation5 + $0x360] sm:$0xff] }
 0x196   : > { %2618 = vmatprep.subr.bf16.mxu0 %v11202_v53  ;;  %v11107_v53 = vcombine.low %v721_v40, %v729_v42  ;;  %v801_v40 = vld [vmem:[#allocation5 + $0x520] sm:$0xff] }
 0x197   : > { %v809_v42 = vld [vmem:[#allocation5 + $0x560] sm:$0xff] }
 0x199   : > { %2619 = vmatpush1.bf16.msra.mxu0 %v11201_v54  ;;  %v11124_v54 = vcombine.high %v737_v49, %v745_v50 }
 0x19a   : > { %2620 = vmatprep.subr.bf16.mxu0 %v11218_v59  ;;  %v761_v59 = vld [vmem:[#allocation5 + $0x3e0] sm:$0xff] }
 0x19c   : > { %2576 = vmatmul.mubr.bf16.gmra.mrb[88].mxu0 %v14017_v60 }
 0x19d   : > { %2621 = vmatpush1.bf16.msra.mxu0 %v11217_v61  ;;  %2585 = vmatprep.mubr.bf16.mxu0 %v14019_v63 }
 0x19e   : > { %2622 = vmatprep.subr.bf16.mxu0 %v11234_v1 }
 0x1a1   : > { %2623 = vmatpush1.bf16.msra.mxu0 %v11233_v2  ;;  %v11123_v2 = vcombine.low %v737_v49, %v745_v50 }
 0x1a2   : > { %2624 = vmatprep.subr.bf16.mxu0 %v11250_v5  ;;  %v11140_v5 = vcombine.high %v753_v58, %v761_v59 }
 0x1a4   : > { %2586 = vmatmul.mubr.bf16.gmra.mrb[92].mxu0 %v14025_v21 }
 0x1a5   : > { %2625 = vmatpush1.bf16.msra.mxu0 %v11249_v6  ;;  %2628 = vmatprep.mubr.bf16.mxu0 %v13949_v20 }
 0x1a6   : > { %2626 = vmatprep.subr.bf16.mxu0 %v11266_v11 }
 0x1a9   : > { %2627 = vmatpush1.bf16.msra.mxu0 %v11265_v13 }
 0x1aa   : > { %2709 = vmatprep.subr.bf16.mxu0 %v11028_v17  ;;  %v11139_v17 = vcombine.low %v753_v58, %v761_v59  ;;  %v817_v59 = vld [vmem:[#allocation5 + $0x5a0] sm:$0xff] }
 0x1ac   : > { %2629 = vmatmul.mubr.bf16.vlgmr.msra.gmra.mrb[96].mxu0 %v13957_v12 }
 0x1ad   : > { %2710 = vmatpush1.bf16.msra.mxu0 %v11027_v18  ;;  %2638 = vmatprep.mubr.bf16.mxu0 %v13959_v14 }
 0x1ae   : > { %2711 = vmatprep.subr.bf16.mxu0 %v11044_v23  ;;  %v785_v23 = vld [vmem:[#allocation5 + $0x4a0] sm:$0xff] }
 0x1b1   : > { %2712 = vmatpush1.bf16.msra.mxu0 %v11043_v24  ;;  %v793_v24 = vld [vmem:[#allocation5 + $0x4e0] sm:$0xff] }
 0x1b2   : > { %2713 = vmatprep.subr.bf16.mxu0 %v11060_v28 }
 0x1b4   : > { %2639 = vmatmul.mubr.bf16.gmra.mrb[100].mxu0 %v13967_v27 }
 0x1b5   : > { %2714 = vmatpush1.bf16.msra.mxu0 %v11059_v31  ;;  %2648 = vmatprep.mubr.bf16.mxu0 %v13969_v29 }
 0x1b6   : > { %2715 = vmatprep.subr.bf16.mxu0 %v11076_v35 }
 0x1b9   : > { %2716 = vmatpush1.bf16.msra.mxu0 %v11075_v38  ;;  %v11172_v38 = vcombine.high %v785_v23, %v793_v24 }
 0x1ba   : > { %2717 = vmatprep.subr.bf16.mxu0 %v11092_v39 }
 0x1bc   : > { %2649 = vmatmul.mubr.bf16.gmra.mrb[104].mxu0 %v13977_v41 }
 0x1bd   : > { %2718 = vmatpush1.bf16.msra.mxu0 %v11091_v45  ;;  %2658 = vmatprep.mubr.bf16.mxu0 %v13979_v43 }
 0x1be   : > { %2719 = vmatprep.subr.bf16.mxu0 %v11108_v48 }
 0x1bf   : > { %v2291_v56 = vpop.f32.mrb[0].mxu0 }
 0x1c0   : > { %v2292_v61 = vadd.f32 %v2291_v56, %v14096_v51  ;;  %v2293_v62 = vpop.f32.mrb[1].mxu0 }
 0x1c1   : > { %v2294_v0 = vadd.f32 %v2293_v62, %v14100_v52  ;;  %v2295_v1 = vpop.f32.mrb[2].mxu0  ;;  %2720 = vmatpush1.bf16.msra.mxu0 %v11107_v53  ;;  %v11171_v53 = vcombine.low %v785_v23, %v793_v24 }
 0x1c2   : > { %v2296_v3 = vadd.f32 %v2295_v1, %v14096_v51  ;;  %v2297_v4 = vpop.f32.mrb[3].mxu0  ;;  %2721 = vmatprep.subr.bf16.mxu0 %v11124_v54  ;;  %v3161_v11 = vmax.f32 %v2292_v61, 0.0  ;;  %v11188_v54 = vcombine.high %v801_v40, %v809_v42  ;;  %v825_v61 = vld [vmem:[#allocation5 + $0x5e0] sm:$0xff] }
 0x1c3   : > { %v2298_v6 = vadd.f32 %v2297_v4, %v14100_v52  ;;  %v3162_v15 = vmax.f32 %v2294_v0, 0.0  ;;  %v11187_v4 = vcombine.low %v801_v40, %v809_v42  ;;  %v11204_v8 = vcombine.high %v817_v59, %v825_v61 }
 0x1c4   : > { %v3177_v13 = vmax.f32 %v2296_v3, 0.0  ;;  %2659 = vmatmul.mubr.bf16.gmra.mrb[108].mxu0 %v13987_v55 }
 0x1c5   : > { %v3178_v16 = vmax.f32 %v2298_v6, 0.0  ;;  %2722 = vmatpush1.bf16.msra.mxu0 %v11123_v2  ;;  %2668 = vmatprep.mubr.bf16.mxu0 %v13989_v57 }
 0x1c6   : > { %v14109_v18 = vpack.c.bf16 %v3177_v13, %v3161_v11  ;;  %2723 = vmatprep.subr.bf16.mxu0 %v11140_v5  ;;  %v833_v11 = vld [vmem:[#allocation5 + $0x620] sm:$0xff] }
 0x1c7   : > { %v2301_v22 = vpop.f32.mrb[4].mxu0  ;;  %v14111_v25 = vpack.c.bf16 %v3178_v16, %v3162_v15  ;;  %v841_v13 = vld [vmem:[#allocation5 + $0x660] sm:$0xff] }
 0x1c8   : > { %v2302_v26 = vadd.f32 %v2301_v22, %v14096_v51  ;;  %v2303_v28 = vpop.f32.mrb[5].mxu0  ;;  %v11203_v22 = vcombine.low %v817_v59, %v825_v61  ;;  %v11220_v23 = vcombine.high %v833_v11, %v841_v13 }
 0x1c9   : > { %v2304_v30 = vadd.f32 %v2303_v28, %v14100_v52  ;;  %v2305_v31 = vpop.f32.mrb[6].mxu0  ;;  %2724 = vmatpush1.bf16.msra.mxu0 %v11139_v17  ;;  %v849_v28 = vld [vmem:[#allocation5 + $0x6a0] sm:$0xff] }
 0x1ca   : > { %v2306_v33 = vadd.f32 %v2305_v31, %v14096_v51  ;;  %v2307_v35 = vpop.f32.mrb[7].mxu0  ;;  %2725 = vmatprep.subr.bf16.mxu0 %v11156_v19  ;;  %v3193_v45 = vmax.f32 %v2302_v26, 0.0 }
 0x1cb   : > { %v2308_v39 = vadd.f32 %v2307_v35, %v14100_v52  ;;  %v3194_v49 = vmax.f32 %v2304_v30, 0.0  ;;  %v857_v30 = vld [vmem:[#allocation5 + $0x6e0] sm:$0xff] }
 0x1cc   : > { %v3209_v48 = vmax.f32 %v2306_v33, 0.0  ;;  %2669 = vmatmul.mubr.bf16.gmra.mrb[112].mxu0 %v13997_v7  ;;  %v11235_v61 = vcombine.low %v849_v28, %v857_v30 }
 0x1cd   : > { %v3210_v50 = vmax.f32 %v2308_v39, 0.0  ;;  %2726 = vmatpush1.bf16.msra.mxu0 %v11155_v32  ;;  %2678 = vmatprep.mubr.bf16.mxu0 %v13999_v10  ;;  %v11219_v39 = vcombine.low %v833_v11, %v841_v13 }
 0x1ce   : > { %2727 = vmatprep.subr.bf16.mxu0 %v11172_v38  ;;  %v14119_v56 = vpack.c.bf16 %v3209_v48, %v3193_v45  ;;  %v11236_v45 = vcombine.high %v849_v28, %v857_v30 }
 0x1cf   : > { %v2311_v58 = vpop.f32.mrb[8].mxu0  ;;  %v14121_v62 = vpack.c.bf16 %v3210_v50, %v3194_v49  ;;  %v865_v49 = vld [vmem:[#allocation5 + $0x720] sm:$0xff] }
 0x1d0   : > { %v2312_v0 = vadd.f32 %v2311_v58, %v14096_v51  ;;  %v2313_v1 = vpop.f32.mrb[9].mxu0  ;;  %v873_v50 = vld [vmem:[#allocation5 + $0x760] sm:$0xff] }
 0x1d1   : > { %v2314_v2 = vadd.f32 %v2313_v1, %v14100_v52  ;;  %v2315_v3 = vpop.f32.mrb[10].mxu0  ;;  %2728 = vmatpush1.bf16.msra.mxu0 %v11171_v53  ;;  %v11251_v13 = vcombine.low %v865_v49, %v873_v50 }
 0x1d2   : > { %v2316_v5 = vadd.f32 %v2315_v3, %v14096_v51  ;;  %v2317_v6 = vpop.f32.mrb[11].mxu0  ;;  %2729 = vmatprep.subr.bf16.mxu0 %v11188_v54  ;;  %v3225_v15 = vmax.f32 %v2312_v0, 0.0  ;;  %v11252_v0 = vcombine.high %v865_v49, %v873_v50  ;;  %v881_v3 = vld [vmem:[#allocation5 + $0x7a0] sm:$0xff] }
 0x1d3   : > { %v2318_v9 = vadd.f32 %v2317_v6, %v14100_v52  ;;  %v3226_v17 = vmax.f32 %v2314_v2, 0.0  ;;  %v12857_v50 = vld [vmem:[#allocation7 + $0x1c0] sm:$0xff]  }
 0x1d4   : > { %v3241_v16 = vmax.f32 %v2316_v5, 0.0  ;;  %2679 = vmatmul.mubr.bf16.gmra.mrb[116].mxu0 %v14007_v34  ;;  %12025 = vmatprep.subr.bf16.mxu1 %v12857_v50 }
 0x1d5   : > { %v3242_v19 = vmax.f32 %v2318_v9, 0.0  ;;  %2730 = vmatpush1.bf16.msra.mxu0 %v11187_v4  ;;  %2688 = vmatprep.mubr.bf16.mxu0 %v14009_v37  ;;  %v889_v4 = vld [vmem:[#allocation5 + $0x7e0] sm:$0xff] }
 0x1d6   : > { %2731 = vmatprep.subr.bf16.mxu0 %v11204_v8  ;;  %v14129_v24 = vpack.c.bf16 %v3241_v16, %v3225_v15 }
 0x1d7   : > { %v2321_v26 = vpop.f32.mrb[12].mxu0  ;;  %v14131_v31 = vpack.c.bf16 %v3242_v19, %v3226_v17  ;;  %v11268_v17 = vcombine.high %v881_v3, %v889_v4 }
 0x1d8   : > { %v2322_v32 = vadd.f32 %v2321_v26, %v14096_v51  ;;  %v2323_v33 = vpop.f32.mrb[13].mxu0 }
 0x1d9   : > { %v2324_v35 = vadd.f32 %v2323_v33, %v14100_v52  ;;  %v2325_v38 = vpop.f32.mrb[14].mxu0  ;;  %2732 = vmatpush1.bf16.msra.mxu0 %v11203_v22  ;;  %v642_v22 = vld [vmem:[#allocation5 + $0x28] sm:$0xff]  ;;  %v11267_v33 = vcombine.low %v881_v3, %v889_v4 }
 0x1da   : > { %v2326_v40 = vadd.f32 %v2325_v38, %v14096_v51  ;;  %v2327_v42 = vpop.f32.mrb[15].mxu0  ;;  %2733 = vmatprep.subr.bf16.mxu0 %v11220_v23  ;;  %v3257_v53 = vmax.f32 %v2322_v32, 0.0  ;;  %v650_v23 = vld [vmem:[#allocation5 + $0x68] sm:$0xff] }
 0x1db   : > { %v2328_v48 = vadd.f32 %v2327_v42, %v14100_v52  ;;  %v3258_v58 = vmax.f32 %v2324_v35, 0.0  ;;  %v11030_v35 = vcombine.high %v642_v22, %v650_v23  ;;  %v666_v42 = vld [vmem:[#allocation5 + $0xe8] sm:$0xff] }
 0x1dc   : > { %v3273_v54 = vmax.f32 %v2326_v40, 0.0  ;;  %2689 = vmatmul.mubr.bf16.gmra.mrb[120].mxu0 %v14017_v60  ;;  %v658_v40 = vld [vmem:[#allocation5 + $0xa8] sm:$0xff] }
 0x1dd   : > { %v3274_v59 = vmax.f32 %v2328_v48, 0.0  ;;  %2734 = vmatpush1.bf16.msra.mxu0 %v11219_v39  ;;  %2698 = vmatprep.mubr.bf16.mxu0 %v14019_v63  ;;  %v674_v3 = vld [vmem:[#allocation5 + $0x128] sm:$0xff] }
 0x1de   : > { %2735 = vmatprep.subr.bf16.mxu0 %v11236_v45  ;;  %v14139_v1 = vpack.c.bf16 %v3273_v54, %v3257_v53  ;;  %v682_v4 = vld [vmem:[#allocation5 + $0x168] sm:$0xff] }
 0x1df   : > { %v2331_v2 = vpop.f32.mrb[16].mxu0  ;;  %v14141_v5 = vpack.c.bf16 %v3274_v59, %v3258_v58  ;;  %v11029_v58 = vcombine.low %v642_v22, %v650_v23  ;;  %v698_v22 = vld [vmem:[#allocation5 + $0x1e8] sm:$0xff] }
 0x1e0   : > { %v2332_v6 = vadd.f32 %v2331_v2, %v14096_v51  ;;  %v2333_v8 = vpop.f32.mrb[17].mxu0 }
 0x1e1   : > { %v2334_v9 = vadd.f32 %v2333_v8, %v14100_v52  ;;  %v2335_v11 = vpop.f32.mrb[18].mxu0  ;;  %2736 = vmatpush1.bf16.msra.mxu0 %v11235_v61 }
 0x1e2   : > { %v2336_v15 = vadd.f32 %v2335_v11, %v14096_v51  ;;  %v2337_v16 = vpop.f32.mrb[19].mxu0  ;;  %2737 = vmatprep.subr.bf16.mxu0 %v11252_v0  ;;  %v3289_v26 = vmax.f32 %v2332_v6, 0.0  ;;  %v11046_v0 = vcombine.high %v658_v40, %v666_v42 }
 0x1e3   : > { %v2338_v19 = vadd.f32 %v2337_v16, %v14100_v52  ;;  %v3290_v30 = vmax.f32 %v2334_v9, 0.0 }
 0x1e4   : > { %v3305_v28 = vmax.f32 %v2336_v15, 0.0  ;;  %2699 = vmatmul.mubr.bf16.gmra.mrb[124].mxu0 %v14025_v21  ;;  %v11062_v15 = vcombine.high %v674_v3, %v682_v4 }
 0x1e5   : > { %v3306_v32 = vmax.f32 %v2338_v19, 0.0  ;;  %2738 = vmatpush1.bf16.msra.mxu0 %v11251_v13  ;;  %2741 = vmatprep.mubr.bf16.mxu0 %v13949_v20  ;;  %v11045_v13 = vcombine.low %v658_v40, %v666_v42  ;;  %v690_v19 = vld [vmem:[#allocation5 + $0x1a8] sm:$0xff] }
 0x1e6   : > { %2739 = vmatprep.subr.bf16.mxu0 %v11268_v17  ;;  %v14149_v38 = vpack.c.bf16 %v3305_v28, %v3289_v26  ;;  %v11078_v40 = vcombine.high %v690_v19, %v698_v22 }
 0x1e7   : > { %v2341_v39 = vpop.f32.mrb[20].mxu0  ;;  %v14151_v45 = vpack.c.bf16 %v3306_v32, %v3290_v30 }
 0x1e8   : > { %v2342_v48 = vadd.f32 %v2341_v39, %v14096_v51  ;;  %v2343_v49 = vpop.f32.mrb[21].mxu0 }
 0x1e9   : > { %v2344_v53 = vadd.f32 %v2343_v49, %v14100_v52  ;;  %v2345_v54 = vpop.f32.mrb[22].mxu0  ;;  %2740 = vmatpush1.bf16.msra.mxu0 %v11267_v33  ;;  %v11061_v33 = vcombine.low %v674_v3, %v682_v4  ;;  %v714_v49 = vld [vmem:[#allocation5 + $0x268] sm:$0xff] }
 0x1ea   : > { %v2346_v59 = vadd.f32 %v2345_v54, %v14096_v51  ;;  %v2347_v61 = vpop.f32.mrb[23].mxu0  ;;  %2822 = vmatprep.subr.bf16.mxu0 %v11030_v35  ;;  %v3321_v6 = vmax.f32 %v2342_v48, 0.0  ;;  %v706_v48 = vld [vmem:[#allocation5 + $0x228] sm:$0xff] }
 0x1eb   : > { %v2348_v2 = vadd.f32 %v2347_v61, %v14100_v52  ;;  %v3322_v9 = vmax.f32 %v2344_v53, 0.0  ;;  %v11094_v61 = vcombine.high %v706_v48, %v714_v49  ;;  %v722_v3 = vld [vmem:[#allocation5 + $0x2a8] sm:$0xff] }
 0x1ec   : > { %v3337_v8 = vmax.f32 %v2346_v59, 0.0  ;;  %2742 = vmatmul.mubr.bf16.vlgmr.msra.gmra.mrb[128].mxu0 %v13957_v12  ;;  %v11077_v59 = vcombine.low %v690_v19, %v698_v22  ;;  %v730_v4 = vld [vmem:[#allocation5 + $0x2e8] sm:$0xff]  ;;  %v14179_v19 = vsub.s32 3, %v14079_v36 }
 0x1ed   : > { %v3338_v11 = vmax.f32 %v2348_v2, 0.0  ;;  %2823 = vmatpush1.bf16.msra.mxu0 %v11029_v58  ;;  %2751 = vmatprep.mubr.bf16.mxu0 %v13959_v14 }
 0x1ee   : > { %2824 = vmatprep.subr.bf16.mxu0 %v11046_v0  ;;  %v14159_v16 = vpack.c.bf16 %v3337_v8, %v3321_v6  ;;  %16699 = vst [vmem:[#allocation25_spill] sm:$0xff] %v14179_v19 }
 0x1ef   : > { %v2351_v17 = vpop.f32.mrb[24].mxu0  ;;  %v14161_v23 = vpack.c.bf16 %v3338_v11, %v3322_v9  ;;  %v14175_v11 = vsub.s32 2, %v14079_v36 }
 0x1f0   : > { %16694 = vst [vmem:[#allocation20_spill] sm:$0xff] %v14159_v16  ;;  %v2352_v26 = vadd.f32 %v2351_v17, %v14096_v51  ;;  %v2353_v28 = vpop.f32.mrb[25].mxu0  ;;  %v11093_v17 = vcombine.low %v706_v48, %v714_v49  ;;  %v11109_v49 = vcombine.low %v722_v3, %v730_v4 }
 0x1f1   : > { %16695 = vst [vmem:[#allocation21_spill] sm:$0xff] %v14161_v23  ;;  %v2354_v30 = vadd.f32 %v2353_v28, %v14100_v52  ;;  %v2355_v32 = vpop.f32.mrb[26].mxu0  ;;  %2825 = vmatpush1.bf16.msra.mxu0 %v11045_v13  ;;  %16698 = vst [vmem:[#allocation24_spill] sm:$0xff] %v14175_v11  ;;  %v11110_v28 = vcombine.high %v722_v3, %v730_v4 }
 0x1f2   : > { %v2356_v35 = vadd.f32 %v2355_v32, %v14096_v51  ;;  %v2357_v39 = vpop.f32.mrb[27].mxu0  ;;  %2826 = vmatprep.subr.bf16.mxu0 %v11062_v15  ;;  %v3353_v50 = vmax.f32 %v2352_v26, 0.0  ;;  %v738_v32 = vld [vmem:[#allocation5 + $0x328] sm:$0xff] }
 0x1f3   : > { %v2358_v42 = vadd.f32 %v2357_v39, %v14100_v52  ;;  %v3354_v54 = vmax.f32 %v2354_v30, 0.0 }
 0x1f4   : > { %v3369_v53 = vmax.f32 %v2356_v35, 0.0  ;;  %2752 = vmatmul.mubr.bf16.gmra.mrb[132].mxu0 %v13967_v27 }
 0x1f5   : > { %v3370_v58 = vmax.f32 %v2358_v42, 0.0  ;;  %2827 = vmatpush1.bf16.msra.mxu0 %v11061_v33  ;;  %2761 = vmatprep.mubr.bf16.mxu0 %v13969_v29  ;;  %v746_v33 = vld [vmem:[#allocation5 + $0x368] sm:$0xff] }
 0x1f6   : > { %2828 = vmatprep.subr.bf16.mxu0 %v11078_v40  ;;  %v14169_v0 = vpack.c.bf16 %v3369_v53, %v3353_v50  ;;  %v14186_v40 = vrot.slane %v14088_v46, %v14175_v11  ;;  %v779_v11 = vld [vmem:[#allocation5 + $0x470] sm:$0xff] }
 0x1f7   : > { %v2361_v2 = vpop.f32.mrb[28].mxu0  ;;  %v14171_v6 = vpack.c.bf16 %v3370_v58, %v3354_v54  ;;  %v754_v54 = vld [vmem:[#allocation5 + $0x3a8] sm:$0xff] }
 0x1f8   : > { %16696 = vst [vmem:[#allocation22_spill] sm:$0xff] %v14169_v0  ;;  %v2362_v8 = vadd.f32 %v2361_v2, %v14096_v51  ;;  %v2363_v9 = vpop.f32.mrb[29].mxu0  ;;  %v762_v58 = vld [vmem:[#allocation5 + $0x3e8] sm:$0xff] }
 0x1f9   : > { %16697 = vst [vmem:[#allocation23_spill] sm:$0xff] %v14171_v6  ;;  %v2364_v13 = vadd.f32 %v2363_v9, %v14100_v52  ;;  %v2365_v15 = vpop.f32.mrb[30].mxu0  ;;  %2829 = vmatpush1.bf16.msra.mxu0 %v11077_v59 }
 0x1fa   : > { %v2366_v22 = vadd.f32 %v2365_v15, %v14096_v51  ;;  %v2367_v26 = vpop.f32.mrb[31].mxu0  ;;  %2830 = vmatprep.subr.bf16.mxu0 %v11094_v61  ;;  %v3385_v35 = vmax.f32 %v2362_v8, 0.0  ;;  %v14190_v51 = vrot.slane %v14088_v46, %v14179_v19  ;;  %v11142_v15 = vcombine.high %v754_v54, %v762_v58 }
 0x1fb   : > { %v2368_v30 = vadd.f32 %v2367_v26, %v14100_v52  ;;  %v3386_v42 = vmax.f32 %v2364_v13, 0.0  ;;  %v11126_v52 = vcombine.high %v738_v32, %v746_v33  ;;  %v11125_v13 = vcombine.low %v738_v32, %v746_v33  ;;  %v778_v26 = vld [vmem:[#allocation5 + $0x468] sm:$0xff] }
 0x1fc   : > { %v3401_v39 = vmax.f32 %v2366_v22, 0.0  ;;  %2762 = vmatmul.mubr.bf16.gmra.mrb[136].mxu0 %v13977_v41  ;;  %v770_v22 = vld [vmem:[#allocation5 + $0x428] sm:$0xff] }
 0x1fd   : > { %v3402_v48 = vmax.f32 %v2368_v30, 0.0  ;;  %2831 = vmatpush1.bf16.msra.mxu0 %v11093_v17  ;;  %2771 = vmatprep.mubr.bf16.mxu0 %v13979_v43  ;;  %v11158_v33 = vcombine.high %v770_v22, %v778_v26 }
 0x1fe   : > { %2832 = vmatprep.subr.bf16.mxu0 %v11110_v28  ;;  %v14193_v50 = vpack.c.bf16 %v3401_v39, %v3385_v35 }
 0x1ff   : > { %v2404_v53 = vpop.f32.mrb[32].mxu0  ;;  %v14195_v59 = vpack.c.bf16 %v3402_v48, %v3386_v42  ;;  %v11141_v42 = vcombine.low %v754_v54, %v762_v58  ;;  %v11157_v54 = vcombine.low %v770_v22, %v778_v26 }
 0x200   : > { %16700 = vst [vmem:[#allocation26_spill] sm:$0xff] %v14193_v50  ;;  %v2405_v61 = vadd.f32 %v2404_v53, %v14186_v40  ;;  %v2406_v2 = vpop.f32.mrb[33].mxu0  ;;  %v794_v53 = vld [vmem:[#allocation5 + $0x4e8] sm:$0xff] }
 0x201   : > { %16701 = vst [vmem:[#allocation27_spill] sm:$0xff] %v14195_v59  ;;  %v2407_v8 = vadd.f32 %v2406_v2, %v14190_v51  ;;  %v2408_v9 = vpop.f32.mrb[34].mxu0  ;;  %2833 = vmatpush1.bf16.msra.mxu0 %v11109_v49  ;;  %v12858_v2 = vld [vmem:[#allocation7 + $0x180] sm:$0xff]  }
 0x202   : > { %v2409_v3 = vadd.f32 %v2408_v9, %v14186_v40  ;;  %v2410_v4 = vpop.f32.mrb[35].mxu0  ;;  %2834 = vmatprep.subr.bf16.mxu0 %v11126_v52  ;;  %v3163_v28 = vmax.f32 %v2405_v61, 0.0  ;;  %v786_v52 = vld [vmem:[#allocation5 + $0x4a8] sm:$0xff] }
 0x203   : > { %v2411_v17 = vadd.f32 %v2410_v4, %v14190_v51  ;;  %v3164_v35 = vmax.f32 %v2407_v8, 0.0  ;;  %v11173_v26 = vcombine.low %v786_v52, %v794_v53 }
 0x204   : > { %v3179_v30 = vmax.f32 %v2409_v3, 0.0  ;;  %2772 = vmatmul.mubr.bf16.gmra.mrb[140].mxu0 %v13987_v55  ;;  %v12861_v3 = vld [vmem:[#allocation7 + $0x1c8] sm:$0xff]  }
 0x205   : > { %v3180_v39 = vmax.f32 %v2411_v17, 0.0  ;;  %2835 = vmatpush1.bf16.msra.mxu0 %v11125_v13  ;;  %2781 = vmatprep.mubr.bf16.mxu0 %v13989_v57 }
 0x206   : > { %v3419_v32 = vpack.c.bf16 %v3179_v30, %v3163_v28  ;;  %2836 = vmatprep.subr.bf16.mxu0 %v11142_v15  ;;  %v11174_v15 = vcombine.high %v786_v52, %v794_v53  ;;  %v802_v28 = vld [vmem:[#allocation5 + $0x528] sm:$0xff] }
 0x207   : > { %v2414_v48 = vpop.f32.mrb[36].mxu0  ;;  %v3420_v49 = vpack.c.bf16 %v3180_v39, %v3164_v35  ;;  %v810_v30 = vld [vmem:[#allocation5 + $0x568] sm:$0xff] }
 0x208   : > { %v2415_v9 = vadd.f32 %v2414_v48, %v14186_v40  ;;  %v2416_v61 = vpop.f32.mrb[37].mxu0  ;;  %v12862_v35 = vld [vmem:[#allocation7 + $0x188] sm:$0xff]   ;;  %v11189_v52 = vcombine.low %v802_v28, %v810_v30 }
 0x209   : > { %v2417_v4 = vadd.f32 %v2416_v61, %v14190_v51  ;;  %v2418_v8 = vpop.f32.mrb[38].mxu0  ;;  %2837 = vmatpush1.bf16.msra.mxu0 %v11141_v42  ;;  %4705 = vmatprep.mubr.bf16.mxu1 %v3420_v49  ;;  %v12863_v42 = vld [vmem:[#allocation7 + $0x1d0] sm:$0xff]  }
 0x20a   : > { %v2419_v58 = vadd.f32 %v2418_v8, %v14186_v40  ;;  %v2420_v13 = vpop.f32.mrb[39].mxu0  ;;  %4706 = vmatmul.mubr.bf16.vlgmr.msra.gmra.mrb[32].mxu1 %v3419_v32  ;;  %2838 = vmatprep.subr.bf16.mxu0 %v11158_v33  ;;  %v3195_v39 = vmax.f32 %v2415_v9, 0.0  ;;  %v11190_v33 = vcombine.high %v802_v28, %v810_v30  ;;  %v12864_v9 = vld [vmem:[#allocation7 + $0x190] sm:$0xff]  }
 0x20b   : > { %v2421_v17 = vadd.f32 %v2420_v13, %v14190_v51  ;;  %12026 = vmatpush3.bf16.msra.mxu1 %v12858_v2  ;;  %v3196_v49 = vmax.f32 %v2417_v4, 0.0  ;;  %v818_v13 = vld [vmem:[#allocation5 + $0x5a8] sm:$0xff] }
 0x20c   : > { %v3211_v48 = vmax.f32 %v2419_v58, 0.0  ;;  %2782 = vmatmul.mubr.bf16.gmra.mrb[144].mxu0 %v13997_v7  ;;  %12027 = vmatprep.subr.bf16.mxu1 %v12861_v3  ;;  %v826_v2 = vld [vmem:[#allocation5 + $0x5e8] sm:$0xff]  ;;  %v12867_v3 = vld [vmem:[#allocation7 + $0x1d8] sm:$0xff]  }
 0x20d   : > { %v3212_v22 = vmax.f32 %v2421_v17, 0.0  ;;  %2839 = vmatpush1.bf16.msra.mxu0 %v11157_v54  ;;  %2791 = vmatprep.mubr.bf16.mxu0 %v13999_v10  ;;  %v11206_v17 = vcombine.high %v818_v13, %v826_v2  ;;  %v11205_v30 = vcombine.low %v818_v13, %v826_v2 }
 0x20e   : > { %2840 = vmatprep.subr.bf16.mxu0 %v11174_v15  ;;  %v3435_v32 = vpack.c.bf16 %v3211_v48, %v3195_v39  ;;  %v834_v39 = vld [vmem:[#allocation5 + $0x628] sm:$0xff] }
 0x20f   : > { %v2424_v61 = vpop.f32.mrb[40].mxu0  ;;  %v3436_v8 = vpack.c.bf16 %v3212_v22, %v3196_v49  ;;  %12028 = vmatpush3.bf16.msra.mxu1 %v12862_v35  ;;  %v842_v48 = vld [vmem:[#allocation5 + $0x668] sm:$0xff]  ;;  %v12868_v49 = vld [vmem:[#allocation7 + $0x198] sm:$0xff]  }
 0x210   : > { %v2425_v58 = vadd.f32 %v2424_v61, %v14186_v40  ;;  %v2426_v19 = vpop.f32.mrb[41].mxu0  ;;  %12029 = vmatprep.subr.bf16.mxu1 %v12863_v42  ;;  %v11221_v13 = vcombine.low %v834_v39, %v842_v48 }
 0x211   : > { %v2427_v4 = vadd.f32 %v2426_v19, %v14190_v51  ;;  %v2428_v54 = vpop.f32.mrb[42].mxu0  ;;  %2841 = vmatpush1.bf16.msra.mxu0 %v11173_v26  ;;  %4713 = vmatprep.mubr.bf16.mxu1 %v3436_v8  ;;  %v12869_v19 = vld [vmem:[#allocation7 + $0x1e0] sm:$0xff]  }
 0x212   : > { %v2429_v53 = vadd.f32 %v2428_v54, %v14186_v40  ;;  %v2430_v15 = vpop.f32.mrb[43].mxu0  ;;  %4714 = vmatmul.mubr.bf16.gmra.mrb[36].mxu1 %v3435_v32  ;;  %2842 = vmatprep.subr.bf16.mxu0 %v11190_v33  ;;  %v3227_v42 = vmax.f32 %v2425_v58, 0.0  ;;  %v11222_v33 = vcombine.high %v834_v39, %v842_v48  ;;  %v850_v54 = vld [vmem:[#allocation5 + $0x6a8] sm:$0xff]  ;;  %v12870_v58 = vld [vmem:[#allocation7 + $0x1a0] sm:$0xff]  }
 0x213   : > { %v2431_v35 = vadd.f32 %v2430_v15, %v14190_v51  ;;  %12030 = vmatpush3.bf16.msra.mxu1 %v12864_v9  ;;  %v3228_v26 = vmax.f32 %v2427_v4, 0.0  ;;  %v858_v9 = vld [vmem:[#allocation5 + $0x6e8] sm:$0xff] }
 0x214   : > { %v3243_v22 = vmax.f32 %v2429_v53, 0.0  ;;  %2792 = vmatmul.mubr.bf16.gmra.mrb[148].mxu0 %v14007_v34  ;;  %12031 = vmatprep.subr.bf16.mxu1 %v12867_v3  ;;  %v12873_v3 = vld [vmem:[#allocation7 + $0x1e8] sm:$0xff]   ;;  %v11237_v48 = vcombine.low %v850_v54, %v858_v9 }
 0x215   : > { %v3244_v28 = vmax.f32 %v2431_v35, 0.0  ;;  %2843 = vmatpush1.bf16.msra.mxu0 %v11189_v52  ;;  %2801 = vmatprep.mubr.bf16.mxu0 %v14009_v37  ;;  %v11238_v35 = vcombine.high %v850_v54, %v858_v9 }
 0x216   : > { %2844 = vmatprep.subr.bf16.mxu0 %v11206_v17  ;;  %v3451_v32 = vpack.c.bf16 %v3243_v22, %v3227_v42  ;;  %v866_v42 = vld [vmem:[#allocation5 + $0x728] sm:$0xff] }
 0x217   : > { %v2434_v61 = vpop.f32.mrb[44].mxu0  ;;  %v3452_v8 = vpack.c.bf16 %v3244_v28, %v3228_v26  ;;  %12032 = vmatpush3.bf16.msra.mxu1 %v12868_v49  ;;  %v874_v22 = vld [vmem:[#allocation5 + $0x768] sm:$0xff] }
 0x218   : > { %v2435_v53 = vadd.f32 %v2434_v61, %v14186_v40  ;;  %v2436_v15 = vpop.f32.mrb[45].mxu0  ;;  %12033 = vmatprep.subr.bf16.mxu1 %v12869_v19  ;;  %v12874_v26 = vld [vmem:[#allocation7 + $0x1a8] sm:$0xff]   ;;  %v11253_v54 = vcombine.low %v866_v42, %v874_v22 }
 0x219   : > { %v2437_v4 = vadd.f32 %v2436_v15, %v14190_v51  ;;  %v2438_v52 = vpop.f32.mrb[46].mxu0  ;;  %2845 = vmatpush1.bf16.msra.mxu0 %v11205_v30  ;;  %4721 = vmatprep.mubr.bf16.mxu1 %v3452_v8  ;;  %v12875_v30 = vld [vmem:[#allocation7 + $0x1f0] sm:$0xff]  }
 0x21a   : > { %v2439_v2 = vadd.f32 %v2438_v52, %v14186_v40  ;;  %v2440_v17 = vpop.f32.mrb[47].mxu0  ;;  %4722 = vmatmul.mubr.bf16.gmra.mrb[40].mxu1 %v3451_v32  ;;  %2846 = vmatprep.subr.bf16.mxu0 %v11222_v33  ;;  %v3259_v19 = vmax.f32 %v2435_v53, 0.0  ;;  %v11254_v33 = vcombine.high %v866_v42, %v874_v22  ;;  %v882_v52 = vld [vmem:[#allocation5 + $0x7a8] sm:$0xff]  ;;  %v12876_v53 = vld [vmem:[#allocation7 + $0x1b0] sm:$0xff]  }
 0x21b   : > { %v2441_v49 = vadd.f32 %v2440_v17, %v14190_v51  ;;  %12034 = vmatpush3.bf16.msra.mxu1 %v12870_v58  ;;  %v3260_v61 = vmax.f32 %v2437_v4, 0.0  ;;  %v890_v58 = vld [vmem:[#allocation5 + $0x7e8] sm:$0xff] }
 0x21c   : > { %v3275_v28 = vmax.f32 %v2439_v2, 0.0  ;;  %2802 = vmatmul.mubr.bf16.gmra.mrb[152].mxu0 %v14017_v60  ;;  %12035 = vmatprep.subr.bf16.mxu1 %v12873_v3  ;;  %v12879_v3 = vld [vmem:[#allocation7 + $0x1f8] sm:$0xff]   ;;  %v11269_v42 = vcombine.low %v882_v52, %v890_v58 }
 0x21d   : > { %v3276_v39 = vmax.f32 %v2441_v49, 0.0  ;;  %2847 = vmatpush1.bf16.msra.mxu0 %v11221_v13  ;;  %2811 = vmatprep.mubr.bf16.mxu0 %v14019_v63  ;;  %v11270_v49 = vcombine.high %v882_v52, %v890_v58 }
 0x21e   : > { %2848 = vmatprep.subr.bf16.mxu0 %v11238_v35  ;;  %v3467_v32 = vpack.c.bf16 %v3275_v28, %v3259_v19  ;;  %v643_v19 = vld [vmem:[#allocation5 + $0x30] sm:$0xff] }
 0x21f   : > { %v2444_v8 = vpop.f32.mrb[48].mxu0  ;;  %v3468_v15 = vpack.c.bf16 %v3276_v39, %v3260_v61  ;;  %12036 = vmatpush3.bf16.msra.mxu1 %v12874_v26  ;;  %v651_v28 = vld [vmem:[#allocation5 + $0x70] sm:$0xff]  ;;  %v12880_v61 = vld [vmem:[#allocation7 + $0x1b8] sm:$0xff]  }
 0x220   : > { %v2445_v2 = vadd.f32 %v2444_v8, %v14186_v40  ;;  %v2446_v17 = vpop.f32.mrb[49].mxu0  ;;  %12037 = vmatprep.subr.bf16.mxu1 %v12875_v30 }
 0x221   : > { %v2447_v4 = vadd.f32 %v2446_v17, %v14190_v51  ;;  %v2448_v13 = vpop.f32.mrb[50].mxu0  ;;  %2849 = vmatpush1.bf16.msra.mxu0 %v11237_v48  ;;  %4729 = vmatprep.mubr.bf16.mxu1 %v3468_v15  ;;  %v659_v17 = vld [vmem:[#allocation5 + $0xb0] sm:$0xff] }
 0x222   : > { %v2449_v9 = vadd.f32 %v2448_v13, %v14186_v40  ;;  %v2450_v35 = vpop.f32.mrb[51].mxu0  ;;  %4730 = vmatmul.mubr.bf16.gmra.mrb[44].mxu1 %v3467_v32  ;;  %2850 = vmatprep.subr.bf16.mxu0 %v11254_v33  ;;  %v3291_v30 = vmax.f32 %v2445_v2, 0.0  ;;  %v11032_v32 = vcombine.high %v643_v19, %v651_v28  ;;  %v667_v13 = vld [vmem:[#allocation5 + $0xf0] sm:$0xff] }
 0x223   : > { %v2451_v26 = vadd.f32 %v2450_v35, %v14190_v51  ;;  %12038 = vmatpush3.bf16.msra.mxu1 %v12876_v53  ;;  %v3292_v48 = vmax.f32 %v2447_v4, 0.0  ;;  %v11031_v4 = vcombine.low %v643_v19, %v651_v28 }
 0x224   : > { %v3307_v39 = vmax.f32 %v2449_v9, 0.0  ;;  %2812 = vmatmul.mubr.bf16.gmra.mrb[156].mxu0 %v14025_v21  ;;  %12039 = vmatprep.subr.bf16.mxu1 %v12879_v3 }
 0x225   : > { %v3308_v8 = vmax.f32 %v2451_v26, 0.0  ;;  %2851 = vmatpush1.bf16.msra.mxu0 %v11253_v54  ;;  %2854 = vmatprep.mubr.bf16.mxu0 %v13949_v20  ;;  %v11048_v54 = vcombine.high %v659_v17, %v667_v13  ;;  %v683_v26 = vld [vmem:[#allocation5 + $0x170] sm:$0xff] }
 0x226   : > { %2852 = vmatprep.subr.bf16.mxu0 %v11270_v49  ;;  %v3483_v22 = vpack.c.bf16 %v3307_v39, %v3291_v30  ;;  %v675_v49 = vld [vmem:[#allocation5 + $0x130] sm:$0xff] }
 0x227   : > { %v2454_v33 = vpop.f32.mrb[52].mxu0  ;;  %v3484_v15 = vpack.c.bf16 %v3308_v8, %v3292_v48  ;;  %12040 = vmatpush3.bf16.msra.mxu1 %v12880_v61  ;;  %v11047_v8 = vcombine.low %v659_v17, %v667_v13  ;;  %v11064_v28 = vcombine.high %v675_v49, %v683_v26 }
 0x228   : > { %v2455_v53 = vadd.f32 %v2454_v33, %v14186_v40  ;;  %v2456_v2 = vpop.f32.mrb[53].mxu0  ;;  %v699_v33 = vld [vmem:[#allocation5 + $0x1f0] sm:$0xff] }
 0x229   : > { %v2457_v9 = vadd.f32 %v2456_v2, %v14190_v51  ;;  %v2458_v3 = vpop.f32.mrb[54].mxu0  ;;  %2853 = vmatpush1.bf16.msra.mxu0 %v11269_v42  ;;  %4737 = vmatprep.mubr.bf16.mxu1 %v3484_v15 }
 0x22a   : > { %v2459_v52 = vadd.f32 %v2458_v3, %v14186_v40  ;;  %v2460_v58 = vpop.f32.mrb[55].mxu0  ;;  %4738 = vmatmul.mubr.bf16.gmra.mrb[48].mxu1 %v3483_v22  ;;  %2935 = vmatprep.subr.bf16.mxu0 %v11032_v32  ;;  %v3323_v61 = vmax.f32 %v2455_v53, 0.0  ;;  %v691_v32 = vld [vmem:[#allocation5 + $0x1b0] sm:$0xff] }
 0x22b   : > { %v2461_v35 = vadd.f32 %v2460_v58, %v14190_v51  ;;  %v3324_v39 = vmax.f32 %v2457_v9, 0.0  ;;  %v11063_v9 = vcombine.low %v675_v49, %v683_v26  ;;  %v707_v58 = vld [vmem:[#allocation5 + $0x230] sm:$0xff] }
 0x22c   : > { %v3339_v30 = vmax.f32 %v2459_v52, 0.0  ;;  %2855 = vmatmul.mubr.bf16.vlgmr.msra.gmra.mrb[160].mxu0 %v13957_v12 }
 0x22d   : > { %v3340_v48 = vmax.f32 %v2461_v35, 0.0  ;;  %2936 = vmatpush1.bf16.msra.mxu0 %v11031_v4  ;;  %2864 = vmatprep.mubr.bf16.mxu0 %v13959_v14  ;;  %v11080_v4 = vcombine.high %v691_v32, %v699_v33 }
 0x22e   : > { %2937 = vmatprep.subr.bf16.mxu0 %v11048_v54  ;;  %v3499_v19 = vpack.c.bf16 %v3339_v30, %v3323_v61  ;;  %v715_v54 = vld [vmem:[#allocation5 + $0x270] sm:$0xff] }
 0x22f   : > { %v2464_v42 = vpop.f32.mrb[56].mxu0  ;;  %v3500_v22 = vpack.c.bf16 %v3340_v48, %v3324_v39  ;;  %v11079_v48 = vcombine.low %v691_v32, %v699_v33  ;;  %v11096_v26 = vcombine.high %v707_v58, %v715_v54  ;;  %v11095_v32 = vcombine.low %v707_v58, %v715_v54 }
 0x230   : > { %v2465_v15 = vadd.f32 %v2464_v42, %v14186_v40  ;;  %v2466_v2 = vpop.f32.mrb[57].mxu0  ;;  %v731_v42 = vld [vmem:[#allocation5 + $0x2f0] sm:$0xff]  ;;  %v14252_v58 = vsub.s32 6, %v14079_v36 }
 0x231   : > { %v2467_v53 = vadd.f32 %v2466_v2, %v14190_v51  ;;  %v2468_v3 = vpop.f32.mrb[58].mxu0  ;;  %2938 = vmatpush1.bf16.msra.mxu0 %v11047_v8  ;;  %4745 = vmatprep.mubr.bf16.mxu1 %v3500_v22 }
 0x232   : > { %v2469_v17 = vadd.f32 %v2468_v3, %v14186_v40  ;;  %v2470_v13 = vpop.f32.mrb[59].mxu0  ;;  %4746 = vmatmul.mubr.bf16.gmra.mrb[52].mxu1 %v3499_v19  ;;  %2939 = vmatprep.subr.bf16.mxu0 %v11064_v28  ;;  %v3355_v35 = vmax.f32 %v2465_v15, 0.0  ;;  %v723_v28 = vld [vmem:[#allocation5 + $0x2b0] sm:$0xff]  ;;  %v14241_v15 = vsub.s32 4, %v14079_v36  ;;  %16703 = vst [vmem:[#allocation29_spill] sm:$0xff] %v14252_v58 }
 0x233   : > { %v2471_v52 = vadd.f32 %v2470_v13, %v14190_v51  ;;  %v3356_v30 = vmax.f32 %v2467_v53, 0.0 }
 0x234   : > { %v3371_v61 = vmax.f32 %v2469_v17, 0.0  ;;  %2865 = vmatmul.mubr.bf16.gmra.mrb[164].mxu0 %v13967_v27  ;;  %16702 = vst [vmem:[#allocation28_spill] sm:$0xff] %v14241_v15  ;;  %v11112_v17 = vcombine.high %v723_v28, %v731_v42 }
 0x235   : > { %v3372_v39 = vmax.f32 %v2471_v52, 0.0  ;;  %2940 = vmatpush1.bf16.msra.mxu0 %v11063_v9  ;;  %2874 = vmatprep.mubr.bf16.mxu0 %v13969_v29  ;;  %v747_v52 = vld [vmem:[#allocation5 + $0x370] sm:$0xff] }
 0x236   : > { %2941 = vmatprep.subr.bf16.mxu0 %v11080_v4  ;;  %v3515_v49 = vpack.c.bf16 %v3371_v61, %v3355_v35  ;;  %v739_v4 = vld [vmem:[#allocation5 + $0x330] sm:$0xff] }
 0x237   : > { %v2474_v8 = vpop.f32.mrb[60].mxu0  ;;  %v3516_v19 = vpack.c.bf16 %v3372_v39, %v3356_v30  ;;  %v14249_v30 = vrot.slane %v14088_v46, %v14241_v15  ;;  %v14255_v39 = vsub.s32 5, %v14079_v36 }
 0x238   : > { %v2475_v22 = vadd.f32 %v2474_v8, %v14186_v40  ;;  %v2476_v2 = vpop.f32.mrb[61].mxu0 }
 0x239   : > { %v2477_v53 = vadd.f32 %v2476_v2, %v14190_v51  ;;  %v2478_v3 = vpop.f32.mrb[62].mxu0  ;;  %2942 = vmatpush1.bf16.msra.mxu0 %v11079_v48  ;;  %4753 = vmatprep.mubr.bf16.mxu1 %v3516_v19  ;;  %16704 = vst [vmem:[#allocation30_spill] sm:$0xff] %v14255_v39  ;;  %v14261_v48 = vld [vmem:[%s16628_s2 + $0x8] sm:$0xff] }
 0x23a   : > { %v2479_v33 = vadd.f32 %v2478_v3, %v14186_v40  ;;  %v2480_v9 = vpop.f32.mrb[63].mxu0  ;;  %4754 = vmatmul.mubr.bf16.gmra.mrb[56].mxu1 %v3515_v49  ;;  %2943 = vmatprep.subr.bf16.mxu0 %v11096_v26  ;;  %v3387_v35 = vmax.f32 %v2475_v22, 0.0  ;;  %v3082_v49 = vpop.f32.mrb[0].mxu1  ;;  %v11128_v26 = vcombine.high %v739_v4, %v747_v52  ;;  %v14265_v8 = vrot.slane %v14261_v48, %v14252_v58 }
 0x23b   : > { %v2481_v13 = vadd.f32 %v2480_v9, %v14190_v51  ;;  %v3388_v40 = vmax.f32 %v2477_v53, 0.0  ;;  %v11111_v51 = vcombine.low %v723_v28, %v731_v42  ;;  %v14267_v19 = vpop.f32.mrb[1].mxu1  ;;  %v755_v28 = vld [vmem:[#allocation5 + $0x3b0] sm:$0xff] }
 0x23c   : > { %v3403_v61 = vmax.f32 %v2479_v33, 0.0  ;;  %2875 = vmatmul.mubr.bf16.gmra.mrb[168].mxu0 %v13977_v41  ;;  %16705 = vst [vmem:[#allocation31_spill] sm:$0xff] %v14265_v8  ;;  %16706 = vst [vmem:[#allocation32_spill] sm:$0xff] %v14267_v19  ;;  %v763_v42 = vld [vmem:[#allocation5 + $0x3f0] sm:$0xff]  ;;  %v3086_v53 = vpop.f32.mrb[2].mxu1  ;;  %v3083_v33 = vadd.f32 %v3082_v49, %v14265_v8 }
 0x23d   : > { %v3404_v54 = vmax.f32 %v2481_v13, 0.0  ;;  %2944 = vmatpush1.bf16.msra.mxu0 %v11095_v32  ;;  %2884 = vmatprep.mubr.bf16.mxu0 %v13979_v43  ;;  %v14271_v9 = vpop.f32.mrb[3].mxu1  ;;  %v11144_v49 = vcombine.high %v755_v28, %v763_v42  ;;  %v771_v19 = vld [vmem:[#allocation5 + $0x430] sm:$0xff] }
 0x23e   : > { %2945 = vmatprep.subr.bf16.mxu0 %v11112_v17  ;;  %v3531_v46 = vpack.c.bf16 %v3403_v61, %v3387_v35  ;;  %16707 = vst [vmem:[#allocation33_spill] sm:$0xff] %v14271_v9  ;;  %v14276_v17 = vld [vmem:[%s16628_s2] sm:$0xff]  ;;  %v11127_v61 = vcombine.low %v739_v4, %v747_v52  ;;  %v3175_v50 = vmax.f32 %v3083_v33, 0.0  ;;  %v11160_v33 = vcombine.high %v771_v19, %v779_v11 }
 0x23f   : > { %v2517_v22 = vpop.f32.mrb[64].mxu0  ;;  %v3532_v2 = vpack.c.bf16 %v3404_v54, %v3388_v40  ;;  %v14280_v13 = vrot.slane %v14276_v17, %v14255_v39  ;;  %v3092_v40 = vpop.f32.mrb[4].mxu1  ;;  %v3087_v39 = vadd.f32 %v3086_v53, %v14265_v8  ;;  %v14294_v53 = vld [vmem:[#allocation5 + $0x4b0] sm:$0xff] }
 0x240   : > { %v2518_v3 = vadd.f32 %v2517_v22, %v14249_v30  ;;  %v2519_v32 = vpop.f32.mrb[65].mxu0  ;;  %v14283_v15 = vpop.f32.mrb[5].mxu1 }
 0x241   : > { %v2521_v35 = vpop.f32.mrb[66].mxu0  ;;  %2946 = vmatpush1.bf16.msra.mxu0 %v11111_v51  ;;  %4761 = vmatprep.mubr.bf16.mxu1 %v3532_v2  ;;  %16708 = vst [vmem:[#allocation34_spill] sm:$0xff] %v14283_v15  ;;  %v3096_v59 = vpop.f32.mrb[6].mxu1  ;;  %v2520_v52 = vadd.f32 %v2519_v32, %v14280_v13 }
 0x242   : > { %v2522_v54 = vadd.f32 %v2521_v35, %v14249_v30  ;;  %v2523_v22 = vpop.f32.mrb[67].mxu0  ;;  %4762 = vmatmul.mubr.bf16.gmra.mrb[60].mxu1 %v3531_v46  ;;  %2947 = vmatprep.subr.bf16.mxu0 %v11128_v26  ;;  %v3165_v51 = vmax.f32 %v2518_v3, 0.0  ;;  %v14288_v4 = vpop.f32.mrb[7].mxu1  ;;  %v11143_v46 = vcombine.low %v755_v28, %v763_v42  ;;  %v3191_v26 = vmax.f32 %v3087_v39, 0.0  ;;  %v14296_v3 = vld [vmem:[#allocation5 + $0x4f0] sm:$0xff] }
 0x243   : > { %v2524_v9 = vadd.f32 %v2523_v22, %v14280_v13  ;;  %16709 = vst [vmem:[#allocation35_spill] sm:$0xff] %v14288_v4  ;;  %v3102_v35 = vpop.f32.mrb[8].mxu1  ;;  %v3097_v4 = vadd.f32 %v3096_v59, %v14265_v8  ;;  %v3166_v6 = vmax.f32 %v2520_v52, 0.0 }
 0x244   : > { %v3181_v2 = vmax.f32 %v2522_v54, 0.0  ;;  %2885 = vmatmul.mubr.bf16.gmra.mrb[172].mxu0 %v13987_v55  ;;  %v3093_v54 = vadd.f32 %v3092_v40, %v14265_v8  ;;  %v14300_v15 = vpop.f32.mrb[9].mxu1  ;;  %v14302_v42 = vpack.c.bf16 %v3191_v26, %v3175_v50  ;;  %v3103_v39 = vadd.f32 %v3102_v35, %v14265_v8 }
 0x245   : > { %2948 = vmatpush1.bf16.msra.mxu0 %v11127_v61  ;;  %2894 = vmatprep.mubr.bf16.mxu0 %v13989_v57  ;;  %16711 = vst [vmem:[#allocation37_spill] sm:$0xff] %v14300_v15  ;;  %v3182_v32 = vmax.f32 %v2524_v9, 0.0  ;;  %v3106_v61 = vpop.f32.mrb[10].mxu1  ;;  %v11159_v15 = vcombine.low %v771_v19, %v779_v11  ;;  %v11176_v50 = vcombine.high %v14294_v53, %v14296_v3 }
 0x246   : > { %v14292_v22 = vpack.c.bf16 %v3181_v2, %v3165_v51  ;;  %2949 = vmatprep.subr.bf16.mxu0 %v11144_v49  ;;  %16712 = vst [vmem:[#allocation38_spill] sm:$0xff] %v14302_v42  ;;  %v3207_v2 = vmax.f32 %v3093_v54, 0.0  ;;  %v14306_v0 = vpop.f32.mrb[11].mxu1  ;;  %v811_v42 = vld [vmem:[#allocation5 + $0x570] sm:$0xff]  ;;  %v3107_v52 = vadd.f32 %v3106_v61, %v14265_v8 }
 0x247   : > { %v2527_v28 = vpop.f32.mrb[68].mxu0  ;;  %16713 = vst [vmem:[#allocation39_spill] sm:$0xff] %v14306_v0  ;;  %v3112_v9 = vpop.f32.mrb[12].mxu1  ;;  %v14318_v19 = vpack.c.bf16 %v3182_v32, %v3166_v6 }
 0x248   : > { %16710 = vst [vmem:[#allocation36_spill] sm:$0xff] %v14292_v22  ;;  %v2528_v49 = vadd.f32 %v2527_v28, %v14249_v30  ;;  %v2529_v51 = vpop.f32.mrb[69].mxu0  ;;  %v3223_v22 = vmax.f32 %v3097_v4, 0.0  ;;  %v803_v28 = vld [vmem:[#allocation5 + $0x530] sm:$0xff]  ;;  %v3239_v4 = vmax.f32 %v3103_v39, 0.0  ;;  %v14315_v0 = vpop.f32.mrb[13].mxu1  ;;  %v3113_v32 = vadd.f32 %v3112_v9, %v14265_v8 }
 0x249   : > { %v2530_v40 = vadd.f32 %v2529_v51, %v14280_v13  ;;  %v2531_v59 = vpop.f32.mrb[70].mxu0  ;;  %2950 = vmatpush1.bf16.msra.mxu0 %v11143_v46  ;;  %16715 = vst [vmem:[#allocation41_spill] sm:$0xff] %v14315_v0  ;;  %v3116_v11 = vpop.f32.mrb[14].mxu1  ;;  %v11192_v39 = vcombine.high %v803_v28, %v811_v42 }
 0x24a   : > { %v2532_v26 = vadd.f32 %v2531_v59, %v14249_v30  ;;  %v2533_v35 = vpop.f32.mrb[71].mxu0  ;;  %2951 = vmatprep.subr.bf16.mxu0 %v11160_v33  ;;  %v14312_v54 = vpack.c.bf16 %v3223_v22, %v3207_v2  ;;  %v3197_v51 = vmax.f32 %v2528_v49, 0.0  ;;  %v3255_v59 = vmax.f32 %v3107_v52, 0.0  ;;  %v14321_v33 = vpop.f32.mrb[15].mxu1  ;;  %v819_v52 = vld [vmem:[#allocation5 + $0x5b0] sm:$0xff] }
 0x24b   : > { %v2534_v46 = vadd.f32 %v2533_v35, %v14280_v13  ;;  %16716 = vst [vmem:[#allocation42_spill] sm:$0xff] %v14321_v33  ;;  %v11175_v22 = vcombine.low %v14294_v53, %v14296_v3  ;;  %v3122_v61 = vpop.f32.mrb[16].mxu1  ;;  %v3198_v2 = vmax.f32 %v2530_v40, 0.0 }
 0x24c   : > { %16714 = vst [vmem:[#allocation40_spill] sm:$0xff] %v14312_v54  ;;  %v3213_v16 = vmax.f32 %v2532_v26, 0.0  ;;  %2895 = vmatmul.mubr.bf16.gmra.mrb[176].mxu0 %v13997_v7  ;;  %v14328_v6 = vpack.c.bf16 %v3255_v59, %v3239_v4  ;;  %v14331_v49 = vpop.f32.mrb[17].mxu1  ;;  %v3123_v53 = vadd.f32 %v3122_v61, %v14265_v8  ;;  %v11191_v59 = vcombine.low %v803_v28, %v811_v42 }
 0x24d   : > { %v3214_v23 = vmax.f32 %v2534_v46, 0.0  ;;  %2952 = vmatpush1.bf16.msra.mxu0 %v11159_v15  ;;  %2904 = vmatprep.mubr.bf16.mxu0 %v13999_v10  ;;  %16718 = vst [vmem:[#allocation44_spill] sm:$0xff] %v14331_v49  ;;  %v827_v15 = vld [vmem:[#allocation5 + $0x5f0] sm:$0xff]  ;;  %v3117_v46 = vadd.f32 %v3116_v11, %v14265_v8  ;;  %v3126_v3 = vpop.f32.mrb[18].mxu1 }
 0x24e   : > { %v14326_v35 = vpack.c.bf16 %v3213_v16, %v3197_v51  ;;  %2953 = vmatprep.subr.bf16.mxu0 %v11176_v50  ;;  %16717 = vst [vmem:[#allocation43_spill] sm:$0xff] %v14328_v6  ;;  %v3271_v16 = vmax.f32 %v3113_v32, 0.0  ;;  %v14336_v51 = vpop.f32.mrb[19].mxu1  ;;  %v11208_v61 = vcombine.high %v819_v52, %v827_v15  ;;  %v3303_v0 = vmax.f32 %v3123_v53, 0.0 }
 0x24f   : > { %v2537_v26 = vpop.f32.mrb[72].mxu0  ;;  %16719 = vst [vmem:[#allocation45_spill] sm:$0xff] %v14336_v51  ;;  %v14338_v50 = vpack.c.bf16 %v3214_v23, %v3198_v2  ;;  %v3287_v6 = vmax.f32 %v3117_v46, 0.0  ;;  %v3132_v49 = vpop.f32.mrb[20].mxu1  ;;  %v835_v2 = vld [vmem:[#allocation5 + $0x630] sm:$0xff] }
 0x250   : > { %v2538_v54 = vadd.f32 %v2537_v26, %v14249_v30  ;;  %v2539_v40 = vpop.f32.mrb[73].mxu0  ;;  %v3127_v26 = vadd.f32 %v3126_v3, %v14265_v8  ;;  %v14343_v32 = vpop.f32.mrb[21].mxu1  ;;  %v843_v51 = vld [vmem:[#allocation5 + $0x670] sm:$0xff]  ;;  %v11207_v3 = vcombine.low %v819_v52, %v827_v15 }
 0x251   : > { %v2540_v9 = vadd.f32 %v2539_v40, %v14280_v13  ;;  %v2541_v4 = vpop.f32.mrb[74].mxu0  ;;  %2954 = vmatpush1.bf16.msra.mxu0 %v11175_v22  ;;  %16720 = vst [vmem:[#allocation46_spill] sm:$0xff] %v14343_v32  ;;  %v14346_v40 = vpack.c.bf16 %v3287_v6, %v3271_v16  ;;  %v3136_v22 = vpop.f32.mrb[22].mxu1  ;;  %v11224_v6 = vcombine.high %v835_v2, %v843_v51 }
 0x252   : > { %v2542_v11 = vadd.f32 %v2541_v4, %v14249_v30  ;;  %v2543_v33 = vpop.f32.mrb[75].mxu0  ;;  %2955 = vmatprep.subr.bf16.mxu0 %v11192_v39  ;;  %v3229_v42 = vmax.f32 %v2538_v54, 0.0  ;;  %v3319_v46 = vmax.f32 %v3127_v26, 0.0  ;;  %v14349_v4 = vpop.f32.mrb[23].mxu1  ;;  %v3133_v54 = vadd.f32 %v3132_v49, %v14265_v8 }
 0x253   : > { %v2544_v23 = vadd.f32 %v2543_v33, %v14280_v13  ;;  %16721 = vst [vmem:[#allocation47_spill] sm:$0xff] %v14346_v40  ;;  %16722 = vst [vmem:[#allocation48_spill] sm:$0xff] %v14349_v4  ;;  %v3230_v39 = vmax.f32 %v2540_v9, 0.0  ;;  %v14352_v32 = vpop.f32.mrb[24].mxu1  ;;  %v851_v40 = vld [vmem:[#allocation5 + $0x6b0] sm:$0xff] }
 0x254   : > { %v3245_v28 = vmax.f32 %v2542_v11, 0.0  ;;  %2905 = vmatmul.mubr.bf16.gmra.mrb[180].mxu0 %v14007_v34  ;;  %16723 = vst [vmem:[#allocation49_spill] sm:$0xff] %v14352_v32  ;;  %v14356_v16 = vpack.c.bf16 %v3319_v46, %v3303_v0  ;;  %v14359_v11 = vpop.f32.mrb[25].mxu1  ;;  %v859_v9 = vld [vmem:[#allocation5 + $0x6f0] sm:$0xff]  ;;  %v11223_v46 = vcombine.low %v835_v2, %v843_v51 }
 0x255   : > { %v3246_v53 = vmax.f32 %v2544_v23, 0.0  ;;  %2956 = vmatpush1.bf16.msra.mxu0 %v11191_v59  ;;  %2914 = vmatprep.mubr.bf16.mxu0 %v14009_v37  ;;  %v3137_v59 = vadd.f32 %v3136_v22, %v14265_v8  ;;  %v14362_v52 = vpop.f32.mrb[26].mxu1 }
 0x256   : > { %v14354_v33 = vpack.c.bf16 %v3245_v28, %v3229_v42  ;;  %2957 = vmatprep.subr.bf16.mxu0 %v11208_v61  ;;  %16724 = vst [vmem:[#allocation50_spill] sm:$0xff] %v14356_v16  ;;  %16725 = vst [vmem:[#allocation51_spill] sm:$0xff] %v14362_v52  ;;  %v3335_v61 = vmax.f32 %v3133_v54, 0.0  ;;  %v14367_v28 = vpop.f32.mrb[27].mxu1  ;;  %v867_v54 = vld [vmem:[#allocation5 + $0x730] sm:$0xff] }
 0x257   : > { %v2547_v26 = vpop.f32.mrb[76].mxu0  ;;  %v14364_v15 = vpack.c.bf16 %v3246_v53, %v3230_v39  ;;  %v3351_v16 = vmax.f32 %v3137_v59, 0.0  ;;  %v14370_v4 = vpop.f32.mrb[28].mxu1  ;;  %v11240_v39 = vcombine.high %v851_v40, %v859_v9  ;;  %v875_v52 = vld [vmem:[#allocation5 + $0x770] sm:$0xff] }
 0x258   : > { %v2548_v23 = vadd.f32 %v2547_v26, %v14249_v30  ;;  %v2549_v42 = vpop.f32.mrb[77].mxu0  ;;  %16726 = vst [vmem:[#allocation52_spill] sm:$0xff] %v14370_v4  ;;  %v14373_v53 = vpop.f32.mrb[29].mxu1 }
 0x259   : > { %v2550_v0 = vadd.f32 %v2549_v42, %v14280_v13  ;;  %v2551_v49 = vpop.f32.mrb[78].mxu0  ;;  %2958 = vmatpush1.bf16.msra.mxu0 %v11207_v3  ;;  %v14376_v8 = vpack.c.bf16 %v3351_v16, %v3335_v61  ;;  %v14378_v42 = vpop.f32.mrb[30].mxu1  ;;  %v883_v61 = vld [vmem:[#allocation5 + $0x7b0] sm:$0xff] }
 0x25a   : > { %v2552_v22 = vadd.f32 %v2551_v49, %v14249_v30  ;;  %v2553_v32 = vpop.f32.mrb[79].mxu0  ;;  %2959 = vmatprep.subr.bf16.mxu0 %v11224_v6  ;;  %16728 = vst [vmem:[#allocation54_spill] sm:$0xff] %v14378_v42  ;;  %v3261_v3 = vmax.f32 %v2548_v23, 0.0  ;;  %v14381_v2 = vpop.f32.mrb[31].mxu1  ;;  %v11239_v6 = vcombine.low %v851_v40, %v859_v9 }
 0x25b   : > { %v2554_v26 = vadd.f32 %v2553_v32, %v14280_v13  ;;  %16727 = vst [vmem:[#allocation53_spill] sm:$0xff] %v14376_v8  ;;  %16729 = vst [vmem:[#allocation55_spill] sm:$0xff] %v14381_v2  ;;  %v3262_v59 = vmax.f32 %v2550_v0, 0.0  ;;  %v11256_v32 = vcombine.high %v867_v54, %v875_v52  ;;  %v891_v8 = vld [vmem:[#allocation5 + $0x7f0] sm:$0xff] }
 0x25c   : > { %v3277_v51 = vmax.f32 %v2552_v22, 0.0  ;;  %2915 = vmatmul.mubr.bf16.gmra.mrb[184].mxu0 %v14017_v60 }
 0x25d   : > { %v3278_v49 = vmax.f32 %v2554_v26, 0.0  ;;  %2960 = vmatpush1.bf16.msra.mxu0 %v11223_v46  ;;  %2924 = vmatprep.mubr.bf16.mxu0 %v14019_v63  ;;  %v11255_v46 = vcombine.low %v867_v54, %v875_v52  ;;  %v11272_v26 = vcombine.high %v883_v61, %v891_v8  ;;  %v12859_v52 = vld [vmem:[#allocation7 + $0x40] sm:$0xff]  }
 0x25e   : > { %v14384_v4 = vpack.c.bf16 %v3277_v51, %v3261_v3  ;;  %2961 = vmatprep.subr.bf16.mxu0 %v11240_v39 }
 0x25f   : > { %v2557_v16 = vpop.f32.mrb[80].mxu0  ;;  %v14386_v42 = vpack.c.bf16 %v3278_v49, %v3262_v59 }
 0x260   : > { %v2558_v23 = vadd.f32 %v2557_v16, %v14249_v30  ;;  %v2559_v22 = vpop.f32.mrb[81].mxu0  ;;  %v11271_v16 = vcombine.low %v883_v61, %v891_v8 }
 0x261   : > { %v2560_v2 = vadd.f32 %v2559_v22, %v14280_v13  ;;  %v2561_v0 = vpop.f32.mrb[82].mxu0  ;;  %2962 = vmatpush1.bf16.msra.mxu0 %v11239_v6 }
 0x262   : > { %v2562_v40 = vadd.f32 %v2561_v0, %v14249_v30  ;;  %v2563_v9 = vpop.f32.mrb[83].mxu0  ;;  %2963 = vmatprep.subr.bf16.mxu0 %v11256_v32  ;;  %v3293_v3 = vmax.f32 %v2558_v23, 0.0 }
 0x263   : > { %v2564_v39 = vadd.f32 %v2563_v9, %v14280_v13  ;;  %v3294_v59 = vmax.f32 %v2560_v2, 0.0  ;;  %v12860_v2 = vld [vmem:[#allocation7] sm:$0xff]  }
 0x264   : > { %v3309_v51 = vmax.f32 %v2562_v40, 0.0  ;;  %2925 = vmatmul.mubr.bf16.gmra.mrb[188].mxu0 %v14025_v21 }
 0x265   : > { %v3310_v49 = vmax.f32 %v2564_v39, 0.0  ;;  %2964 = vmatpush1.bf16.msra.mxu0 %v11255_v46  ;;  %2967 = vmatprep.mubr.bf16.mxu0 %v13949_v20  ;;  %v12865_v20 = vld [vmem:[#allocation7 + $0x48] sm:$0xff]   ;;  %v12905_v39 = vld [vmem:[#allocation7 + $0x2c0] sm:$0xff]  }
 0x266   : > { %v14394_v22 = vpack.c.bf16 %v3309_v51, %v3293_v3  ;;  %2965 = vmatprep.subr.bf16.mxu0 %v11272_v26  ;;  %12153 = vmatprep.subr.bf16.mxu1 %v12905_v39  ;;  %v12878_v39 = vld [vmem:[#allocation7 + $0x18] sm:$0xff]  }
 0x267   : > { %v2567_v54 = vpop.f32.mrb[84].mxu0  ;;  %v14396_v6 = vpack.c.bf16 %v3310_v49, %v3294_v59  ;;  %v12866_v59 = vld [vmem:[#allocation7 + $0x8] sm:$0xff]  }
 0x268   : > { %v2568_v32 = vadd.f32 %v2567_v54, %v14249_v30  ;;  %v2569_v0 = vpop.f32.mrb[85].mxu0 }
 0x269   : > { %v2570_v23 = vadd.f32 %v2569_v0, %v14280_v13  ;;  %v2571_v40 = vpop.f32.mrb[86].mxu0  ;;  %2966 = vmatpush1.bf16.msra.mxu0 %v11271_v16  ;;  %v12871_v16 = vld [vmem:[#allocation7 + $0x50] sm:$0xff]  }
 0x26a   : > { %v2572_v46 = vadd.f32 %v2571_v40, %v14249_v30  ;;  %v2573_v8 = vpop.f32.mrb[87].mxu0  ;;  %11833 = vmatprep.subr.bf16.mxu0 %v12859_v52  ;;  %v3325_v9 = vmax.f32 %v2568_v32, 0.0 }
 0x26b   : > { %v2574_v61 = vadd.f32 %v2573_v8, %v14280_v13  ;;  %v3326_v3 = vmax.f32 %v2570_v23, 0.0  ;;  %v12872_v23 = vld [vmem:[#allocation7 + $0x10] sm:$0xff]  }
 0x26c   : > { %v3341_v26 = vmax.f32 %v2572_v46, 0.0  ;;  %2968 = vmatmul.mubr.bf16.vlgmr.msra.gmra.mrb[192].mxu0 %v13957_v12  ;;  %v12877_v46 = vld [vmem:[#allocation7 + $0x58] sm:$0xff]  }
 0x26d   : > { %v3342_v51 = vmax.f32 %v2574_v61, 0.0  ;;  %11834 = vmatpush3.bf16.msra.mxu0 %v12860_v2  ;;  %2977 = vmatprep.mubr.bf16.mxu0 %v13959_v14 }
 0x26e   : > { %v14404_v49 = vpack.c.bf16 %v3341_v26, %v3325_v9  ;;  %11835 = vmatprep.subr.bf16.mxu0 %v12865_v20 }
 0x26f   : > { %v2577_v52 = vpop.f32.mrb[88].mxu0  ;;  %v14406_v54 = vpack.c.bf16 %v3342_v51, %v3326_v3  ;;  %v12881_v51 = vld [vmem:[#allocation7 + $0x60] sm:$0xff]  }
 0x270   : > { %v2578_v32 = vadd.f32 %v2577_v52, %v14249_v30  ;;  %v2579_v0 = vpop.f32.mrb[89].mxu0 }
 0x271   : > { %v2580_v12 = vadd.f32 %v2579_v0, %v14280_v13  ;;  %v2581_v40 = vpop.f32.mrb[90].mxu0  ;;  %11836 = vmatpush3.bf16.msra.mxu0 %v12866_v59 }
 0x272   : > { %v2582_v2 = vadd.f32 %v2581_v40, %v14249_v30  ;;  %v2583_v14 = vpop.f32.mrb[91].mxu0  ;;  %11837 = vmatprep.subr.bf16.mxu0 %v12871_v16  ;;  %v3357_v20 = vmax.f32 %v2578_v32, 0.0 }
 0x273   : > { %v2584_v8 = vadd.f32 %v2583_v14, %v14280_v13  ;;  %v3358_v9 = vmax.f32 %v2580_v12, 0.0 }
 0x274   : > { %v3373_v61 = vmax.f32 %v2582_v2, 0.0  ;;  %2978 = vmatmul.mubr.bf16.gmra.mrb[196].mxu0 %v13967_v27  ;;  %v14421_v27 = vsub.s32 7, %v14079_v36  ;;  %v12883_v2 = vld [vmem:[#allocation7 + $0x68] sm:$0xff]  }
 0x275   : > { %v3374_v26 = vmax.f32 %v2584_v8, 0.0  ;;  %2987 = vmatprep.mubr.bf16.mxu0 %v13969_v29  ;;  %11838 = vmatpush3.bf16.msra.mxu0 %v12872_v23  ;;  %v12882_v29 = vld [vmem:[#allocation7 + $0x20] sm:$0xff]  }
 0x276   : > { %v14414_v3 = vpack.c.bf16 %v3373_v61, %v3357_v20  ;;  %11839 = vmatprep.subr.bf16.mxu0 %v12877_v46  ;;  %16730 = vst [vmem:[#allocation56_spill] sm:$0xff] %v14421_v27  ;;  %v14428_v20 = vrot.slane %v14276_v17, %v14252_v58  ;;  %v12935_v58 = vld [vmem:[#allocation7 + $0x278] sm:$0xff]  }
 0x277   : > { %v2587_v59 = vpop.f32.mrb[92].mxu0  ;;  %v14416_v52 = vpack.c.bf16 %v3374_v26, %v3358_v9  ;;  %v14432_v9 = vrot.slane %v14276_v17, %v14421_v27  ;;  %v12886_v17 = vld [vmem:[#allocation7 + $0x30] sm:$0xff]  }
 0x278   : > { %v2588_v16 = vadd.f32 %v2587_v59, %v14249_v30  ;;  %v2589_v0 = vpop.f32.mrb[93].mxu0 }
 0x279   : > { %v2590_v32 = vadd.f32 %v2589_v0, %v14280_v13  ;;  %v2591_v40 = vpop.f32.mrb[94].mxu0  ;;  %11840 = vmatpush3.bf16.msra.mxu0 %v12878_v39 }
 0x27a   : > { %v2592_v12 = vadd.f32 %v2591_v40, %v14249_v30  ;;  %v2593_v23 = vpop.f32.mrb[95].mxu0  ;;  %11841 = vmatprep.subr.bf16.mxu0 %v12881_v51  ;;  %v3389_v46 = vmax.f32 %v2588_v16, 0.0  ;;  %v12884_v30 = vld [vmem:[#allocation7 + $0x28] sm:$0xff]   ;;  %v12887_v40 = vld [vmem:[#allocation7 + $0x78] sm:$0xff]  }
 0x27b   : > { %v2594_v14 = vadd.f32 %v2593_v23, %v14280_v13  ;;  %v3390_v61 = vmax.f32 %v2590_v32, 0.0  ;;  %v12885_v13 = vld [vmem:[#allocation7 + $0x70] sm:$0xff]  }
 0x27c   : > { %v3405_v8 = vmax.f32 %v2592_v12, 0.0  ;;  %2988 = vmatmul.mubr.bf16.gmra.mrb[200].mxu0 %v13977_v41 }
 0x27d   : > { %v3406_v36 = vmax.f32 %v2594_v14, 0.0  ;;  %2997 = vmatprep.mubr.bf16.mxu0 %v13979_v43  ;;  %11842 = vmatpush3.bf16.msra.mxu0 %v12882_v29 }
 0x27e   : > { %v14435_v26 = vpack.c.bf16 %v3405_v8, %v3389_v46  ;;  %11843 = vmatprep.subr.bf16.mxu0 %v12883_v2  ;;  %v12888_v46 = vld [vmem:[#allocation7 + $0x38] sm:$0xff]  }
 0x27f   : > { %v2630_v39 = vpop.f32.mrb[96].mxu0  ;;  %v14437_v41 = vpack.c.bf16 %v3406_v36, %v3390_v61  ;;  %v12889_v61 = vld [vmem:[#allocation7 + $0x140] sm:$0xff]  }
 0x280   : > { %v2631_v51 = vadd.f32 %v2630_v39, %v14428_v20  ;;  %v2632_v59 = vpop.f32.mrb[97].mxu0  ;;  %v12906_v39 = vld [vmem:[#allocation7 + $0x280] sm:$0xff]  }
 0x281   : > { %v2633_v16 = vadd.f32 %v2632_v59, %v14432_v9  ;;  %v2634_v0 = vpop.f32.mrb[98].mxu0  ;;  %11844 = vmatpush3.bf16.msra.mxu0 %v12884_v30 }
 0x282   : > { %v2635_v32 = vadd.f32 %v2634_v0, %v14428_v20  ;;  %v2636_v43 = vpop.f32.mrb[99].mxu0  ;;  %11845 = vmatprep.subr.bf16.mxu0 %v12885_v13  ;;  %v3167_v12 = vmax.f32 %v2631_v51, 0.0  ;;  %v12909_v0 = vld [vmem:[#allocation7 + $0x2c8] sm:$0xff]  }
 0x283   : > { %v2637_v29 = vadd.f32 %v2636_v43, %v14432_v9  ;;  %v3168_v2 = vmax.f32 %v2633_v16, 0.0 }
 0x284   : > { %v3183_v23 = vmax.f32 %v2635_v32, 0.0  ;;  %2998 = vmatmul.mubr.bf16.gmra.mrb[204].mxu0 %v13987_v55 }
 0x285   : > { %v3184_v14 = vmax.f32 %v2637_v29, 0.0  ;;  %3007 = vmatprep.mubr.bf16.mxu0 %v13989_v57  ;;  %11846 = vmatpush3.bf16.msra.mxu0 %v12886_v17  ;;  %v12910_v17 = vld [vmem:[#allocation7 + $0x288] sm:$0xff]   ;;  %v12911_v29 = vld [vmem:[#allocation7 + $0x2d0] sm:$0xff]  }
 0x286   : > { %v3423_v8 = vpack.c.bf16 %v3183_v23, %v3167_v12  ;;  %11847 = vmatprep.subr.bf16.mxu0 %v12887_v40 }
 0x287   : > { %v2640_v36 = vpop.f32.mrb[100].mxu0  ;;  %v3424_v30 = vpack.c.bf16 %v3184_v14, %v3168_v2 }
 0x288   : > { %v2641_v13 = vadd.f32 %v2640_v36, %v14428_v20  ;;  %v2642_v59 = vpop.f32.mrb[101].mxu0 }
 0x289   : > { %v2643_v51 = vadd.f32 %v2642_v59, %v14432_v9  ;;  %v2644_v32 = vpop.f32.mrb[102].mxu0  ;;  %4899 = vmatprep.mubr.bf16.mxu1 %v3424_v30  ;;  %11848 = vmatpush3.bf16.msra.mxu0 %v12888_v46  ;;  %v12915_v30 = vld [vmem:[#allocation7 + $0x2d8] sm:$0xff]  }
 0x28a   : > { %v2645_v55 = vadd.f32 %v2644_v32, %v14428_v20  ;;  %v2646_v57 = vpop.f32.mrb[103].mxu0  ;;  %4900 = vmatmul.mubr.bf16.vlgmr.msra.gmra.mrb[64].mxu1 %v3423_v8  ;;  %11961 = vmatprep.subr.bf16.mxu0 %v12889_v61  ;;  %v3199_v43 = vmax.f32 %v2641_v13, 0.0  ;;  %v12912_v8 = vld [vmem:[#allocation7 + $0x290] sm:$0xff]  }
 0x28b   : > { %v2647_v16 = vadd.f32 %v2646_v57, %v14432_v9  ;;  %12154 = vmatpush3.bf16.msra.mxu1 %v12906_v39  ;;  %v3200_v12 = vmax.f32 %v2643_v51, 0.0 }
 0x28c   : > { %v3215_v40 = vmax.f32 %v2645_v55, 0.0  ;;  %3008 = vmatmul.mubr.bf16.gmra.mrb[208].mxu0 %v13997_v7  ;;  %12155 = vmatprep.subr.bf16.mxu1 %v12909_v0  ;;  %v12916_v0 = vld [vmem:[#allocation7 + $0x298] sm:$0xff]   ;;  %v12917_v55 = vld [vmem:[#allocation7 + $0x2e0] sm:$0xff]  }
 0x28d   : > { %v3216_v23 = vmax.f32 %v2647_v16, 0.0  ;;  %3017 = vmatprep.mubr.bf16.mxu0 %v13999_v10 }
 0x28e   : > { %v3439_v2 = vpack.c.bf16 %v3215_v40, %v3199_v43 }
 0x28f   : > { %v2650_v14 = vpop.f32.mrb[104].mxu0  ;;  %v3440_v46 = vpack.c.bf16 %v3216_v23, %v3200_v12  ;;  %12156 = vmatpush3.bf16.msra.mxu1 %v12910_v17 }
 0x290   : > { %v2651_v61 = vadd.f32 %v2650_v14, %v14428_v20  ;;  %v2652_v36 = vpop.f32.mrb[105].mxu0  ;;  %12157 = vmatprep.subr.bf16.mxu1 %v12911_v29  ;;  %v12918_v29 = vld [vmem:[#allocation7 + $0x2a0] sm:$0xff]  }
 0x291   : > { %v2653_v39 = vadd.f32 %v2652_v36, %v14432_v9  ;;  %v2654_v13 = vpop.f32.mrb[106].mxu0  ;;  %4907 = vmatprep.mubr.bf16.mxu1 %v3440_v46 }
 0x292   : > { %v2655_v7 = vadd.f32 %v2654_v13, %v14428_v20  ;;  %v2656_v59 = vpop.f32.mrb[107].mxu0  ;;  %4908 = vmatmul.mubr.bf16.gmra.mrb[68].mxu1 %v3439_v2  ;;  %v3231_v51 = vmax.f32 %v2651_v61, 0.0  ;;  %v12921_v2 = vld [vmem:[#allocation7 + $0x2e8] sm:$0xff]  }
 0x293   : > { %v2657_v10 = vadd.f32 %v2656_v59, %v14432_v9  ;;  %12158 = vmatpush3.bf16.msra.mxu1 %v12912_v8  ;;  %v3232_v57 = vmax.f32 %v2653_v39, 0.0  ;;  %v12922_v61 = vld [vmem:[#allocation7 + $0x2a8] sm:$0xff]   ;;  %v12923_v39 = vld [vmem:[#allocation7 + $0x2f0] sm:$0xff]  }
 0x294   : > { %v3247_v32 = vmax.f32 %v2655_v7, 0.0  ;;  %3018 = vmatmul.mubr.bf16.gmra.mrb[212].mxu0 %v14007_v34  ;;  %12159 = vmatprep.subr.bf16.mxu1 %v12915_v30 }
 0x295   : > { %v3248_v16 = vmax.f32 %v2657_v10, 0.0  ;;  %3027 = vmatprep.mubr.bf16.mxu0 %v14009_v37 }
 0x296   : > { %v3455_v17 = vpack.c.bf16 %v3247_v32, %v3231_v51  ;;  %v12924_v51 = vld [vmem:[#allocation7 + $0x2b0] sm:$0xff]  }
 0x297   : > { %v2660_v43 = vpop.f32.mrb[108].mxu0  ;;  %v3456_v40 = vpack.c.bf16 %v3248_v16, %v3232_v57  ;;  %12160 = vmatpush3.bf16.msra.mxu1 %v12916_v0  ;;  %v12927_v57 = vld [vmem:[#allocation7 + $0x2f8] sm:$0xff]  }
 0x298   : > { %v2661_v12 = vadd.f32 %v2660_v43, %v14428_v20  ;;  %v2662_v23 = vpop.f32.mrb[109].mxu0  ;;  %12161 = vmatprep.subr.bf16.mxu1 %v12917_v55 }
 0x299   : > { %v2663_v14 = vadd.f32 %v2662_v23, %v14432_v9  ;;  %v2664_v46 = vpop.f32.mrb[110].mxu0  ;;  %4915 = vmatprep.mubr.bf16.mxu1 %v3456_v40  ;;  %v12928_v40 = vld [vmem:[#allocation7 + $0x2b8] sm:$0xff]  }
 0x29a   : > { %v2665_v34 = vadd.f32 %v2664_v46, %v14428_v20  ;;  %v2666_v8 = vpop.f32.mrb[111].mxu0  ;;  %4916 = vmatmul.mubr.bf16.gmra.mrb[72].mxu1 %v3455_v17  ;;  %v3263_v36 = vmax.f32 %v2661_v12, 0.0 }
 0x29b   : > { %v2667_v37 = vadd.f32 %v2666_v8, %v14432_v9  ;;  %12162 = vmatpush3.bf16.msra.mxu1 %v12918_v29  ;;  %v3264_v13 = vmax.f32 %v2663_v14, 0.0 }
 0x29c   : > { %v3279_v30 = vmax.f32 %v2665_v34, 0.0  ;;  %3028 = vmatmul.mubr.bf16.gmra.mrb[216].mxu0 %v14017_v60  ;;  %12163 = vmatprep.subr.bf16.mxu1 %v12921_v2 }
 0x29d   : > { %v3280_v7 = vmax.f32 %v2667_v37, 0.0  ;;  %3037 = vmatprep.mubr.bf16.mxu0 %v14019_v63 }
 0x29e   : > { %v3471_v59 = vpack.c.bf16 %v3279_v30, %v3263_v36  ;;  %v12890_v30 = vld [vmem:[#allocation7 + $0x100] sm:$0xff]  }
 0x29f   : > { %v2670_v10 = vpop.f32.mrb[112].mxu0  ;;  %v3472_v0 = vpack.c.bf16 %v3280_v7, %v3264_v13  ;;  %12164 = vmatpush3.bf16.msra.mxu1 %v12922_v61  ;;  %v12891_v13 = vld [vmem:[#allocation7 + $0x148] sm:$0xff]  }
 0x2a0   : > { %v2671_v32 = vadd.f32 %v2670_v10, %v14428_v20  ;;  %v2672_v55 = vpop.f32.mrb[113].mxu0  ;;  %12165 = vmatprep.subr.bf16.mxu1 %v12923_v39 }
 0x2a1   : > { %v2673_v16 = vadd.f32 %v2672_v55, %v14432_v9  ;;  %v2674_v17 = vpop.f32.mrb[114].mxu0  ;;  %4923 = vmatprep.mubr.bf16.mxu1 %v3472_v0  ;;  %v12893_v55 = vld [vmem:[#allocation7 + $0x150] sm:$0xff]  }
 0x2a2   : > { %v2675_v60 = vadd.f32 %v2674_v17, %v14428_v20  ;;  %v2676_v43 = vpop.f32.mrb[115].mxu0  ;;  %4924 = vmatmul.mubr.bf16.gmra.mrb[76].mxu1 %v3471_v59  ;;  %v3295_v29 = vmax.f32 %v2671_v32, 0.0 }
 0x2a3   : > { %v2677_v63 = vadd.f32 %v2676_v43, %v14432_v9  ;;  %12166 = vmatpush3.bf16.msra.mxu1 %v12924_v51  ;;  %v3296_v23 = vmax.f32 %v2673_v16, 0.0  ;;  %v12892_v51 = vld [vmem:[#allocation7 + $0x108] sm:$0xff]  }
 0x2a4   : > { %v3311_v12 = vmax.f32 %v2675_v60, 0.0  ;;  %3038 = vmatmul.mubr.bf16.gmra.mrb[220].mxu0 %v14025_v21  ;;  %12167 = vmatprep.subr.bf16.mxu1 %v12927_v57 }
 0x2a5   : > { %v3312_v2 = vmax.f32 %v2677_v63, 0.0  ;;  %4608 = vmatprep.mubr.bf16.mxu0 %v14111_v25 }
 0x2a6   : > { %v3487_v14 = vpack.c.bf16 %v3311_v12, %v3295_v29 }
 0x2a7   : > { %v2680_v46 = vpop.f32.mrb[116].mxu0  ;;  %v3488_v34 = vpack.c.bf16 %v3312_v2, %v3296_v23  ;;  %12168 = vmatpush3.bf16.msra.mxu1 %v12928_v40 }
 0x2a8   : > { %v2681_v8 = vadd.f32 %v2680_v46, %v14428_v20  ;;  %v2682_v37 = vpop.f32.mrb[117].mxu0 }
 0x2a9   : > { %v2683_v61 = vadd.f32 %v2682_v37, %v14432_v9  ;;  %v2684_v36 = vpop.f32.mrb[118].mxu0  ;;  %4931 = vmatprep.mubr.bf16.mxu1 %v3488_v34  ;;  %v12896_v34 = vld [vmem:[#allocation7 + $0x118] sm:$0xff]   ;;  %v12897_v37 = vld [vmem:[#allocation7 + $0x160] sm:$0xff]  }
 0x2aa   : > { %v2685_v39 = vadd.f32 %v2684_v36, %v14428_v20  ;;  %v2686_v21 = vpop.f32.mrb[119].mxu0  ;;  %4932 = vmatmul.mubr.bf16.gmra.mrb[80].mxu1 %v3487_v14  ;;  %v3327_v25 = vmax.f32 %v2681_v8, 0.0 }
 0x2ab   : > { %v2687_v7 = vadd.f32 %v2686_v21, %v14432_v9  ;;  %v3328_v10 = vmax.f32 %v2683_v61, 0.0 }
 0x2ac   : > { %v3343_v59 = vmax.f32 %v2685_v39, 0.0  ;;  %4609 = vmatmul.mubr.bf16.vlgmr.msra.gmra.mrb[224].mxu0 %v14109_v18  ;;  %v12894_v18 = vld [vmem:[#allocation7 + $0x110] sm:$0xff]  }
 0x2ad   : > { %v3344_v0 = vmax.f32 %v2687_v7, 0.0  ;;  %4616 = vmatprep.mubr.bf16.mxu0 %v14121_v62  ;;  %11962 = vmatpush3.bf16.msra.mxu0 %v12890_v30  ;;  %v12895_v62 = vld [vmem:[#allocation7 + $0x158] sm:$0xff]  }
 0x2ae   : > { %v3503_v32 = vpack.c.bf16 %v3343_v59, %v3327_v25  ;;  %11963 = vmatprep.subr.bf16.mxu0 %v12891_v13 }
 0x2af   : > { %v2690_v57 = vpop.f32.mrb[120].mxu0  ;;  %v3504_v16 = vpack.c.bf16 %v3344_v0, %v3328_v10 }
 0x2b0   : > { %v2691_v17 = vadd.f32 %v2690_v57, %v14428_v20  ;;  %v2692_v60 = vpop.f32.mrb[121].mxu0  ;;  %v12900_v57 = vld [vmem:[#allocation7 + $0x128] sm:$0xff]  }
 0x2b1   : > { %v2693_v43 = vadd.f32 %v2692_v60, %v14432_v9  ;;  %v2694_v63 = vpop.f32.mrb[122].mxu0  ;;  %4939 = vmatprep.mubr.bf16.mxu1 %v3504_v16  ;;  %11964 = vmatpush3.bf16.msra.mxu0 %v12892_v51  ;;  %v14488_v51 = vrot.slane %v14261_v48, %v14083_v44 }
 0x2b2   : > { %v2695_v40 = vadd.f32 %v2694_v63, %v14428_v20  ;;  %v2696_v29 = vpop.f32.mrb[123].mxu0  ;;  %4940 = vmatmul.mubr.bf16.gmra.mrb[84].mxu1 %v3503_v32  ;;  %11965 = vmatprep.subr.bf16.mxu0 %v12893_v55  ;;  %v3359_v23 = vmax.f32 %v2691_v17, 0.0 }
 0x2b3   : > { %v2697_v12 = vadd.f32 %v2696_v29, %v14432_v9  ;;  %v3360_v14 = vmax.f32 %v2693_v43, 0.0  ;;  %v12903_v29 = vld [vmem:[#allocation7 + $0x178] sm:$0xff]  }
 0x2b4   : > { %v3375_v2 = vmax.f32 %v2695_v40, 0.0  ;;  %4617 = vmatmul.mubr.bf16.gmra.mrb[228].mxu0 %v14119_v56  ;;  %v12898_v56 = vld [vmem:[#allocation7 + $0x120] sm:$0xff]  }
 0x2b5   : > { %v3376_v46 = vmax.f32 %v2697_v12, 0.0  ;;  %4624 = vmatprep.mubr.bf16.mxu0 %v14131_v31  ;;  %11966 = vmatpush3.bf16.msra.mxu0 %v12894_v18  ;;  %v12899_v31 = vld [vmem:[#allocation7 + $0x168] sm:$0xff]  }
 0x2b6   : > { %v3519_v8 = vpack.c.bf16 %v3375_v2, %v3359_v23  ;;  %11967 = vmatprep.subr.bf16.mxu0 %v12895_v62 }
 0x2b7   : > { %v2700_v61 = vpop.f32.mrb[124].mxu0  ;;  %v3520_v36 = vpack.c.bf16 %v3376_v46, %v3360_v14  ;;  %v12904_v46 = vld [vmem:[#allocation7 + $0x138] sm:$0xff]  }
 0x2b8   : > { %v2701_v30 = vadd.f32 %v2700_v61, %v14428_v20  ;;  %v2702_v39 = vpop.f32.mrb[125].mxu0 }
 0x2b9   : > { %v2703_v21 = vadd.f32 %v2702_v39, %v14432_v9  ;;  %v2704_v13 = vpop.f32.mrb[126].mxu0  ;;  %4947 = vmatprep.mubr.bf16.mxu1 %v3520_v36  ;;  %11968 = vmatpush3.bf16.msra.mxu0 %v12896_v34 }
 0x2ba   : > { %v2705_v7 = vadd.f32 %v2704_v13, %v14428_v20  ;;  %v2706_v25 = vpop.f32.mrb[127].mxu0  ;;  %4948 = vmatmul.mubr.bf16.gmra.mrb[88].mxu1 %v3519_v8  ;;  %11969 = vmatprep.subr.bf16.mxu0 %v12897_v37  ;;  %v3391_v10 = vmax.f32 %v2701_v30, 0.0  ;;  %v14493_v20 = vrot.slane %v14261_v48, %v14091_v47  ;;  %v12907_v8 = vld [vmem:[#allocation7 + $0x240] sm:$0xff]  }
 0x2bb   : > { %v2707_v59 = vadd.f32 %v2706_v25, %v14432_v9  ;;  %v3392_v32 = vmax.f32 %v2703_v21, 0.0  ;;  %v12901_v9 = vld [vmem:[#allocation7 + $0x170] sm:$0xff]  }
 0x2bc   : > { %v3407_v0 = vmax.f32 %v2705_v7, 0.0  ;;  %4625 = vmatmul.mubr.bf16.gmra.mrb[232].mxu0 %v14129_v24 }
 0x2bd   : > { %v3408_v55 = vmax.f32 %v2707_v59, 0.0  ;;  %4632 = vmatprep.mubr.bf16.mxu0 %v14141_v5  ;;  %11970 = vmatpush3.bf16.msra.mxu0 %v12898_v56  ;;  %v12902_v5 = vld [vmem:[#allocation7 + $0x130] sm:$0xff]   ;;  %v16731_v59 = vld [vmem:[#allocation21_spill] sm:$0xff] }
 0x2be   : > { %v3535_v16 = vpack.c.bf16 %v3407_v0, %v3391_v10  ;;  %11971 = vmatprep.subr.bf16.mxu0 %v12899_v31 }
 0x2bf   : > { %v2743_v17 = vpop.f32.mrb[128].mxu0  ;;  %v3536_v60 = vpack.c.bf16 %v3408_v55, %v3392_v32 }
 0x2c0   : > { %v2744_v24 = vadd.f32 %v2743_v17, %v14488_v51  ;;  %v2745_v43 = vpop.f32.mrb[129].mxu0 }
 0x2c1   : > { %v2746_v63 = vadd.f32 %v2745_v43, %v14493_v20  ;;  %v2747_v18 = vpop.f32.mrb[130].mxu0  ;;  %4955 = vmatprep.mubr.bf16.mxu1 %v3536_v60  ;;  %11972 = vmatpush3.bf16.msra.mxu0 %v12900_v57 }
 0x2c2   : > { %v2748_v40 = vadd.f32 %v2747_v18, %v14488_v51  ;;  %v2749_v48 = vpop.f32.mrb[131].mxu0  ;;  %4956 = vmatmul.mubr.bf16.gmra.mrb[92].mxu1 %v3535_v16  ;;  %11973 = vmatprep.subr.bf16.mxu0 %v12901_v9  ;;  %v3169_v12 = vmax.f32 %v2744_v24, 0.0 }
 0x2c3   : > { %v2750_v62 = vadd.f32 %v2749_v48, %v14493_v20  ;;  %v3170_v2 = vmax.f32 %v2746_v63, 0.0  ;;  %v16732_v63 = vld [vmem:[#allocation20_spill] sm:$0xff] }
 0x2c4   : > { %v3185_v23 = vmax.f32 %v2748_v40, 0.0  ;;  %4633 = vmatmul.mubr.bf16.gmra.mrb[236].mxu0 %v14139_v1  ;;  %v16733_v40 = vld [vmem:[#allocation23_spill] sm:$0xff] }
 0x2c5   : > { %v3186_v14 = vmax.f32 %v2750_v62, 0.0  ;;  %4640 = vmatprep.mubr.bf16.mxu0 %v14151_v45  ;;  %11974 = vmatpush3.bf16.msra.mxu0 %v12902_v5 }
 0x2c6   : > { %v14501_v34 = vpack.c.bf16 %v3185_v23, %v3169_v12  ;;  %11975 = vmatprep.subr.bf16.mxu0 %v12903_v29 }
 0x2c7   : > { %v2753_v37 = vpop.f32.mrb[132].mxu0  ;;  %v14503_v61 = vpack.c.bf16 %v3186_v14, %v3170_v2 }
 0x2c8   : > { %v2754_v36 = vadd.f32 %v2753_v37, %v14488_v51  ;;  %v2755_v30 = vpop.f32.mrb[133].mxu0 }
 0x2c9   : > { %v2756_v39 = vadd.f32 %v2755_v30, %v14493_v20  ;;  %v2757_v21 = vpop.f32.mrb[134].mxu0  ;;  %11976 = vmatpush3.bf16.msra.mxu0 %v12904_v46 }
 0x2ca   : > { %v2758_v1 = vadd.f32 %v2757_v21, %v14488_v51  ;;  %v2759_v13 = vpop.f32.mrb[135].mxu0  ;;  %12089 = vmatprep.subr.bf16.mxu0 %v12907_v8  ;;  %v3201_v56 = vmax.f32 %v2754_v36, 0.0 }
 0x2cb   : > { %v2760_v45 = vadd.f32 %v2759_v13, %v14493_v20  ;;  %v3202_v25 = vmax.f32 %v2756_v39, 0.0  ;;  %v16734_v39 = vld [vmem:[#allocation22_spill] sm:$0xff]  ;;  %v16735_v13 = vld [vmem:[#allocation27_spill] sm:$0xff] }
 0x2cc   : > { %v3217_v7 = vmax.f32 %v2758_v1, 0.0  ;;  %4641 = vmatmul.mubr.bf16.gmra.mrb[240].mxu0 %v14149_v38 }
 0x2cd   : > { %v3218_v31 = vmax.f32 %v2760_v45, 0.0  ;;  %4648 = vmatprep.mubr.bf16.mxu0 %v16731_v59 }
 0x2ce   : > { %v14511_v10 = vpack.c.bf16 %v3217_v7, %v3201_v56 }
 0x2cf   : > { %v2763_v0 = vpop.f32.mrb[136].mxu0  ;;  %v14513_v32 = vpack.c.bf16 %v3218_v31, %v3202_v25 }
 0x2d0   : > { %v2764_v55 = vadd.f32 %v2763_v0, %v14488_v51  ;;  %v2765_v57 = vpop.f32.mrb[137].mxu0 }
 0x2d1   : > { %v2766_v16 = vadd.f32 %v2765_v57, %v14493_v20  ;;  %v2767_v9 = vpop.f32.mrb[138].mxu0 }
 0x2d2   : > { %v2768_v17 = vadd.f32 %v2767_v9, %v14488_v51  ;;  %v2769_v60 = vpop.f32.mrb[139].mxu0  ;;  %v3233_v24 = vmax.f32 %v2764_v55, 0.0 }
 0x2d3   : > { %v2770_v38 = vadd.f32 %v2769_v60, %v14493_v20  ;;  %v3234_v18 = vmax.f32 %v2766_v16, 0.0 }
 0x2d4   : > { %v3249_v43 = vmax.f32 %v2768_v17, 0.0  ;;  %4649 = vmatmul.mubr.bf16.gmra.mrb[244].mxu0 %v16732_v63 }
 0x2d5   : > { %v3250_v5 = vmax.f32 %v2770_v38, 0.0  ;;  %4656 = vmatprep.mubr.bf16.mxu0 %v16733_v40 }
 0x2d6   : > { %v14521_v48 = vpack.c.bf16 %v3249_v43, %v3233_v24 }
 0x2d7   : > { %v2773_v29 = vpop.f32.mrb[140].mxu0  ;;  %v14523_v62 = vpack.c.bf16 %v3250_v5, %v3234_v18  ;;  %v16737_v5 = vld [vmem:[#allocation26_spill] sm:$0xff] }
 0x2d8   : > { %v2774_v12 = vadd.f32 %v2773_v29, %v14488_v51  ;;  %v2775_v23 = vpop.f32.mrb[141].mxu0 }
 0x2d9   : > { %v2776_v2 = vadd.f32 %v2775_v23, %v14493_v20  ;;  %v2777_v14 = vpop.f32.mrb[142].mxu0 }
 0x2da   : > { %v2778_v46 = vadd.f32 %v2777_v14, %v14488_v51  ;;  %v2779_v8 = vpop.f32.mrb[143].mxu0  ;;  %v3265_v36 = vmax.f32 %v2774_v12, 0.0 }
 0x2db   : > { %v2780_v37 = vadd.f32 %v2779_v8, %v14493_v20  ;;  %v3266_v21 = vmax.f32 %v2776_v2, 0.0 }
 0x2dc   : > { %v3281_v30 = vmax.f32 %v2778_v46, 0.0  ;;  %4657 = vmatmul.mubr.bf16.gmra.mrb[248].mxu0 %v16734_v39 }
 0x2dd   : > { %v3282_v1 = vmax.f32 %v2780_v37, 0.0  ;;  %4664 = vmatprep.mubr.bf16.mxu0 %v16735_v13  ;;  %v11913_v45 = vpop.f32.mrb[32].mxu1  ;;  %v12908_v13 = vld [vmem:[#allocation7 + $0x200] sm:$0xff]  }
 0x2de   : > { %v14531_v56 = vpack.c.bf16 %v3281_v30, %v3265_v36  ;;  %v11914_v7 = vpop.f32.mrb[33].mxu1 }
 0x2df   : > { %v2783_v25 = vpop.f32.mrb[144].mxu0  ;;  %v11916_v31 = vpop.f32.mrb[34].mxu1  ;;  %v14533_v59 = vpack.c.bf16 %v3282_v1, %v3266_v21  ;;  %v14535_v0 = vadd.f32 %v11914_v7, %v11913_v45 }
 0x2e0   : > { %v2784_v55 = vadd.f32 %v2783_v25, %v14488_v51  ;;  %v2785_v57 = vpop.f32.mrb[145].mxu0  ;;  %v11917_v16 = vpop.f32.mrb[35].mxu1  ;;  %v12913_v25 = vld [vmem:[#allocation7 + $0x248] sm:$0xff]  }
 0x2e1   : > { %v2786_v9 = vadd.f32 %v2785_v57, %v14493_v20  ;;  %v2787_v17 = vpop.f32.mrb[146].mxu0  ;;  %v14539_v60 = vadd.f32 %v11917_v16, %v11916_v31  ;;  %v16740_v16 = vld [vmem:[#allocation36_spill] sm:$0xff] }
 0x2e2   : > { %v2788_v38 = vadd.f32 %v2787_v17, %v14488_v51  ;;  %v2789_v24 = vpop.f32.mrb[147].mxu0  ;;  %v3297_v63 = vmax.f32 %v2784_v55, 0.0 }
 0x2e3   : > { %16736 = vst [vmem:[#allocation21_spill] sm:$0xff] %v14539_v60  ;;  %v2790_v43 = vadd.f32 %v2789_v24, %v14493_v20  ;;  %v3298_v40 = vmax.f32 %v2786_v9, 0.0  ;;  %v12914_v24 = vld [vmem:[#allocation7 + $0x208] sm:$0xff]  }
 0x2e4   : > { %v3313_v18 = vmax.f32 %v2788_v38, 0.0  ;;  %4665 = vmatmul.mubr.bf16.gmra.mrb[252].mxu0 %v16737_v5  ;;  %v14561_v5 = vld [vmem:[#allocation7 + $0x3c0] sm:$0xff]  }
 0x2e5   : > { %v3314_v29 = vmax.f32 %v2790_v43, 0.0  ;;  %v11919_v12 = vpop.f32.mrb[36].mxu1  ;;  %4802 = vmatprep.mubr.bf16.mxu0 %v14318_v19  ;;  %12470 = vmatprep.subr.bf16.mxu1 %v14561_v5 }
 0x2e6   : > { %v14545_v23 = vpack.c.bf16 %v3313_v18, %v3297_v63  ;;  %v11920_v2 = vpop.f32.mrb[37].mxu1  ;;  %v12919_v18 = vld [vmem:[#allocation7 + $0x250] sm:$0xff]  }
 0x2e7   : > { %v2793_v14 = vpop.f32.mrb[148].mxu0  ;;  %v11922_v46 = vpop.f32.mrb[38].mxu1  ;;  %v14547_v8 = vpack.c.bf16 %v3314_v29, %v3298_v40  ;;  %v14549_v37 = vadd.f32 %v11920_v2, %v11919_v12 }
 0x2e8   : > { %v2794_v36 = vadd.f32 %v2793_v14, %v14488_v51  ;;  %v2795_v30 = vpop.f32.mrb[149].mxu0  ;;  %v11923_v39 = vpop.f32.mrb[39].mxu1 }
 0x2e9   : > { %16738 = vst [vmem:[#allocation20_spill] sm:$0xff] %v14549_v37  ;;  %v2796_v21 = vadd.f32 %v2795_v30, %v14493_v20  ;;  %v2797_v1 = vpop.f32.mrb[150].mxu0  ;;  %v14553_v45 = vadd.f32 %v11923_v39, %v11922_v46  ;;  %v12920_v39 = vld [vmem:[#allocation7 + $0x210] sm:$0xff]  }
 0x2ea   : > { %v2798_v19 = vadd.f32 %v2797_v1, %v14488_v51  ;;  %v2799_v7 = vpop.f32.mrb[151].mxu0  ;;  %v3329_v55 = vmax.f32 %v2794_v36, 0.0 }
 0x2eb   : > { %16739 = vst [vmem:[#allocation23_spill] sm:$0xff] %v14553_v45  ;;  %v2800_v31 = vadd.f32 %v2799_v7, %v14493_v20  ;;  %v3330_v9 = vmax.f32 %v2796_v21, 0.0 }
 0x2ec   : > { %v3345_v57 = vmax.f32 %v2798_v19, 0.0  ;;  %4803 = vmatmul.mubr.bf16.vlgmr.msra.gmra.mrb[0].mxu0 %v16740_v16  ;;  %v12925_v19 = vld [vmem:[#allocation7 + $0x258] sm:$0xff]  }
 0x2ed   : > { %v3346_v17 = vmax.f32 %v2800_v31, 0.0  ;;  %v11925_v38 = vpop.f32.mrb[40].mxu1  ;;  %4810 = vmatprep.mubr.bf16.mxu0 %v14338_v50  ;;  %12090 = vmatpush3.bf16.msra.mxu0 %v12908_v13 }
 0x2ee   : > { %v14559_v43 = vpack.c.bf16 %v3345_v57, %v3329_v55  ;;  %v11926_v63 = vpop.f32.mrb[41].mxu1  ;;  %12091 = vmatprep.subr.bf16.mxu0 %v12913_v25 }
 0x2ef   : > { %v2803_v40 = vpop.f32.mrb[152].mxu0  ;;  %v11928_v29 = vpop.f32.mrb[42].mxu1  ;;  %v14563_v12 = vpack.c.bf16 %v3346_v17, %v3330_v9  ;;  %v14565_v2 = vadd.f32 %v11926_v63, %v11925_v38  ;;  %v12926_v9 = vld [vmem:[#allocation7 + $0x218] sm:$0xff]  }
 0x2f0   : > { %v2804_v14 = vadd.f32 %v2803_v40, %v14488_v51  ;;  %v2805_v46 = vpop.f32.mrb[153].mxu0  ;;  %v11929_v36 = vpop.f32.mrb[43].mxu1 }
 0x2f1   : > { %16741 = vst [vmem:[#allocation22_spill] sm:$0xff] %v14565_v2  ;;  %v2806_v50 = vadd.f32 %v2805_v46, %v14493_v20  ;;  %v2807_v30 = vpop.f32.mrb[154].mxu0  ;;  %12092 = vmatpush3.bf16.msra.mxu0 %v12914_v24  ;;  %v14570_v21 = vadd.f32 %v11929_v36, %v11928_v29  ;;  %v12929_v24 = vld [vmem:[#allocation7 + $0x260] sm:$0xff]  }
 0x2f2   : > { %v2808_v1 = vadd.f32 %v2807_v30, %v14488_v51  ;;  %v2809_v13 = vpop.f32.mrb[155].mxu0  ;;  %12093 = vmatprep.subr.bf16.mxu0 %v12919_v18  ;;  %v3361_v25 = vmax.f32 %v2804_v14, 0.0 }
 0x2f3   : > { %16742 = vst [vmem:[#allocation27_spill] sm:$0xff] %v14570_v21  ;;  %v2810_v7 = vadd.f32 %v2809_v13, %v14493_v20  ;;  %v3362_v55 = vmax.f32 %v2806_v50, 0.0  ;;  %v12930_v50 = vld [vmem:[#allocation7 + $0x220] sm:$0xff]   ;;  %v12931_v13 = vld [vmem:[#allocation7 + $0x268] sm:$0xff]  }
 0x2f4   : > { %v3377_v31 = vmax.f32 %v2808_v1, 0.0  ;;  %4811 = vmatmul.mubr.bf16.gmra.mrb[4].mxu0 %v14326_v35 }
 0x2f5   : > { %v3378_v57 = vmax.f32 %v2810_v7, 0.0  ;;  %v11931_v16 = vpop.f32.mrb[44].mxu1  ;;  %4818 = vmatprep.mubr.bf16.mxu0 %v14364_v15  ;;  %12094 = vmatpush3.bf16.msra.mxu0 %v12920_v39 }
 0x2f6   : > { %v14576_v17 = vpack.c.bf16 %v3377_v31, %v3361_v25  ;;  %v11932_v38 = vpop.f32.mrb[45].mxu1  ;;  %12095 = vmatprep.subr.bf16.mxu0 %v12925_v19  ;;  %v14592_v31 = vld [vmem:[%s16628_s2 + $0x8] sm:$0xff] }
 0x2f7   : > { %v2813_v63 = vpop.f32.mrb[156].mxu0  ;;  %v11934_v18 = vpop.f32.mrb[46].mxu1  ;;  %v14578_v40 = vpack.c.bf16 %v3378_v57, %v3362_v55  ;;  %v14580_v29 = vadd.f32 %v11932_v38, %v11931_v16  ;;  %v16745_v55 = vld [vmem:[#allocation24_spill] sm:$0xff]  ;;  %v16746_v38 = vld [vmem:[#allocation25_spill] sm:$0xff] }
 0x2f8   : > { %v2814_v35 = vadd.f32 %v2813_v63, %v14488_v51  ;;  %v2815_v14 = vpop.f32.mrb[157].mxu0  ;;  %v11935_v46 = vpop.f32.mrb[47].mxu1  ;;  %v14596_v57 = vrot.slane %v14592_v31, %v16745_v55  ;;  %v14617_v55 = vld [vmem:[#allocation7 + $0x380] sm:$0xff]  }
 0x2f9   : > { %16743 = vst [vmem:[#allocation26_spill] sm:$0xff] %v14580_v29  ;;  %v2816_v36 = vadd.f32 %v2815_v14, %v14493_v20  ;;  %v2817_v15 = vpop.f32.mrb[158].mxu0  ;;  %12096 = vmatpush3.bf16.msra.mxu0 %v12926_v9  ;;  %v14584_v30 = vadd.f32 %v11935_v46, %v11934_v18  ;;  %v12933_v18 = vld [vmem:[#allocation7 + $0x270] sm:$0xff]  }
 0x2fa   : > { %v2818_v39 = vadd.f32 %v2817_v15, %v14488_v51  ;;  %v2819_v1 = vpop.f32.mrb[159].mxu0  ;;  %12097 = vmatprep.subr.bf16.mxu0 %v12929_v24  ;;  %v3393_v7 = vmax.f32 %v2814_v35, 0.0 }
 0x2fb   : > { %16744 = vst [vmem:[#allocation36_spill] sm:$0xff] %v14584_v30  ;;  %v2820_v19 = vadd.f32 %v2819_v1, %v14493_v20  ;;  %v3394_v16 = vmax.f32 %v2816_v36, 0.0  ;;  %v14601_v20 = vrot.slane %v14592_v31, %v16746_v38 }
 0x2fc   : > { %v3409_v25 = vmax.f32 %v2818_v39, 0.0  ;;  %4819 = vmatmul.mubr.bf16.gmra.mrb[8].mxu0 %v14354_v33  ;;  %v12932_v33 = vld [vmem:[#allocation7 + $0x228] sm:$0xff]  }
 0x2fd   : > { %v3410_v51 = vmax.f32 %v2820_v19, 0.0  ;;  %v11937_v9 = vpop.f32.mrb[48].mxu1  ;;  %4826 = vmatprep.mubr.bf16.mxu0 %v14386_v42  ;;  %12098 = vmatpush3.bf16.msra.mxu0 %v12930_v50  ;;  %v12934_v50 = vld [vmem:[#allocation7 + $0x230] sm:$0xff]  }
 0x2fe   : > { %v14603_v24 = vpack.c.bf16 %v3409_v25, %v3393_v7  ;;  %v11938_v63 = vpop.f32.mrb[49].mxu1  ;;  %12099 = vmatprep.subr.bf16.mxu0 %v12931_v13 }
 0x2ff   : > { %v2856_v35 = vpop.f32.mrb[160].mxu0  ;;  %v11940_v14 = vpop.f32.mrb[50].mxu1  ;;  %v14605_v46 = vpack.c.bf16 %v3410_v51, %v3394_v16  ;;  %v14607_v36 = vadd.f32 %v11938_v63, %v11937_v9 }
 0x300   : > { %v2857_v15 = vadd.f32 %v2856_v35, %v14596_v57  ;;  %v2858_v42 = vpop.f32.mrb[161].mxu0  ;;  %v11941_v39 = vpop.f32.mrb[51].mxu1 }
 0x301   : > { %16747 = vst [vmem:[#allocation57_spill] sm:$0xff] %v14607_v36  ;;  %v2859_v1 = vadd.f32 %v2858_v42, %v14601_v20  ;;  %v2860_v19 = vpop.f32.mrb[162].mxu0  ;;  %12100 = vmatpush3.bf16.msra.mxu0 %v12932_v33  ;;  %v14611_v7 = vadd.f32 %v11941_v39, %v11940_v14  ;;  %v12936_v33 = vld [vmem:[#allocation7 + $0x238] sm:$0xff]   ;;  %v12937_v39 = vld [vmem:[#allocation7 + $0x340] sm:$0xff]  }
 0x302   : > { %v2861_v13 = vadd.f32 %v2860_v19, %v14596_v57  ;;  %v2862_v25 = vpop.f32.mrb[163].mxu0  ;;  %12101 = vmatprep.subr.bf16.mxu0 %v12933_v18  ;;  %v3171_v51 = vmax.f32 %v2857_v15, 0.0 }
 0x303   : > { %16748 = vst [vmem:[#allocation58_spill] sm:$0xff] %v14611_v7  ;;  %v2863_v16 = vadd.f32 %v2862_v25, %v14601_v20  ;;  %v3172_v63 = vmax.f32 %v2859_v1, 0.0  ;;  %v14622_v25 = vld [vmem:[#allocation7 + $0x3c8] sm:$0xff]  }
 0x304   : > { %v3187_v9 = vmax.f32 %v2861_v13, 0.0  ;;  %4827 = vmatmul.mubr.bf16.gmra.mrb[12].mxu0 %v14384_v4 }
 0x305   : > { %v3188_v35 = vmax.f32 %v2863_v16, 0.0  ;;  %v11943_v38 = vpop.f32.mrb[52].mxu1  ;;  %4834 = vmatprep.mubr.bf16.mxu0 %v14396_v6  ;;  %12102 = vmatpush3.bf16.msra.mxu0 %v12934_v50 }
 0x306   : > { %v3427_v14 = vpack.c.bf16 %v3187_v9, %v3171_v51  ;;  %v11944_v42 = vpop.f32.mrb[53].mxu1  ;;  %12103 = vmatprep.subr.bf16.mxu0 %v12935_v58  ;;  %v14629_v9 = vld [vmem:[#allocation7 + $0x388] sm:$0xff]  }
 0x307   : > { %v2866_v19 = vpop.f32.mrb[164].mxu0  ;;  %v11946_v18 = vpop.f32.mrb[54].mxu1  ;;  %v3428_v47 = vpack.c.bf16 %v3188_v35, %v3172_v63  ;;  %v14619_v15 = vadd.f32 %v11944_v42, %v11943_v38  ;;  %v14633_v42 = vld [vmem:[#allocation7 + $0x3d0] sm:$0xff]  }
 0x308   : > { %v2867_v4 = vadd.f32 %v2866_v19, %v14596_v57  ;;  %v2868_v1 = vpop.f32.mrb[165].mxu0  ;;  %v11947_v13 = vpop.f32.mrb[55].mxu1 }
 0x309   : > { %16749 = vst [vmem:[#allocation59_spill] sm:$0xff] %v14619_v15  ;;  %v2869_v6 = vadd.f32 %v2868_v1, %v14601_v20  ;;  %v2870_v50 = vpop.f32.mrb[166].mxu0  ;;  %5093 = vmatprep.mubr.bf16.mxu1 %v3428_v47  ;;  %12104 = vmatpush3.bf16.msra.mxu0 %v12936_v33  ;;  %v14625_v58 = vadd.f32 %v11947_v13, %v11946_v18 }
 0x30a   : > { %v2871_v16 = vadd.f32 %v2870_v50, %v14596_v57  ;;  %v2872_v51 = vpop.f32.mrb[167].mxu0  ;;  %5094 = vmatmul.mubr.bf16.vlgmr.msra.gmra.mrb[96].mxu1 %v3427_v14  ;;  %12217 = vmatprep.subr.bf16.mxu0 %v12937_v39  ;;  %v3203_v63 = vmax.f32 %v2867_v4, 0.0  ;;  %v14639_v4 = vld [vmem:[#allocation7 + $0x390] sm:$0xff]  }
 0x30b   : > { %16750 = vst [vmem:[#allocation60_spill] sm:$0xff] %v14625_v58  ;;  %v2873_v38 = vadd.f32 %v2872_v51, %v14601_v20  ;;  %12478 = vmatpush3.bf16.msra.mxu1 %v14617_v55  ;;  %v3204_v47 = vmax.f32 %v2869_v6, 0.0  ;;  %v14643_v6 = vld [vmem:[#allocation7 + $0x3d8] sm:$0xff]  }
 0x30c   : > { %v3219_v35 = vmax.f32 %v2871_v16, 0.0  ;;  %4835 = vmatmul.mubr.bf16.gmra.mrb[16].mxu0 %v14394_v22  ;;  %12471 = vmatprep.subr.bf16.mxu1 %v14622_v25 }
 0x30d   : > { %v3220_v33 = vmax.f32 %v2873_v38, 0.0  ;;  %v11949_v19 = vpop.f32.mrb[56].mxu1  ;;  %4842 = vmatprep.mubr.bf16.mxu0 %v14406_v54 }
 0x30e   : > { %v11950_v14 = vpop.f32.mrb[57].mxu1  ;;  %v3443_v39 = vpack.c.bf16 %v3219_v35, %v3203_v63 }
 0x30f   : > { %v14637_v18 = vadd.f32 %v11950_v14, %v11949_v19  ;;  %v2876_v1 = vpop.f32.mrb[168].mxu0  ;;  %v11952_v13 = vpop.f32.mrb[58].mxu1  ;;  %v3444_v50 = vpack.c.bf16 %v3220_v33, %v3204_v47  ;;  %12479 = vmatpush3.bf16.msra.mxu1 %v14629_v9  ;;  %v14651_v19 = vld [vmem:[#allocation7 + $0x398] sm:$0xff]  }
 0x310   : > { %v2877_v22 = vadd.f32 %v2876_v1, %v14596_v57  ;;  %v2878_v16 = vpop.f32.mrb[169].mxu0  ;;  %v11953_v51 = vpop.f32.mrb[59].mxu1  ;;  %12472 = vmatprep.subr.bf16.mxu1 %v14633_v42 }
 0x311   : > { %16751 = vst [vmem:[#allocation61_spill] sm:$0xff] %v14637_v18  ;;  %v2879_v54 = vadd.f32 %v2878_v16, %v14601_v20  ;;  %v14647_v38 = vadd.f32 %v11953_v51, %v11952_v13  ;;  %v2880_v63 = vpop.f32.mrb[170].mxu0  ;;  %5101 = vmatprep.mubr.bf16.mxu1 %v3444_v50  ;;  %v14656_v13 = vld [vmem:[#allocation7 + $0x3e0] sm:$0xff]  }
 0x312   : > { %v2881_v35 = vadd.f32 %v2880_v63, %v14596_v57  ;;  %v2882_v47 = vpop.f32.mrb[171].mxu0  ;;  %5102 = vmatmul.mubr.bf16.gmra.mrb[100].mxu1 %v3443_v39  ;;  %v3235_v14 = vmax.f32 %v2877_v22, 0.0 }
 0x313   : > { %16752 = vst [vmem:[#allocation62_spill] sm:$0xff] %v14647_v38  ;;  %v2883_v33 = vadd.f32 %v2882_v47, %v14601_v20  ;;  %12480 = vmatpush3.bf16.msra.mxu1 %v14639_v4  ;;  %v3236_v16 = vmax.f32 %v2879_v54, 0.0  ;;  %v14661_v47 = vrot.slane %v14592_v31, %v14421_v27  ;;  %v14666_v38 = vld [vmem:[#allocation7 + $0x3a0] sm:$0xff]  }
 0x314   : > { %v3251_v1 = vmax.f32 %v2881_v35, 0.0  ;;  %4843 = vmatmul.mubr.bf16.gmra.mrb[20].mxu0 %v14404_v49  ;;  %12473 = vmatprep.subr.bf16.mxu1 %v14643_v6 }
 0x315   : > { %v3252_v50 = vmax.f32 %v2883_v33, 0.0  ;;  %v11955_v51 = vpop.f32.mrb[60].mxu1  ;;  %4850 = vmatprep.mubr.bf16.mxu0 %v14416_v52  ;;  %v14670_v52 = vld [vmem:[#allocation7 + $0x3e8] sm:$0xff]   ;;  %v3145_v27 = vadd.f32 %v14359_v11, %v14661_v47 }
 0x316   : > { %v11956_v39 = vpop.f32.mrb[61].mxu1  ;;  %v3459_v63 = vpack.c.bf16 %v3251_v1, %v3235_v14 }
 0x317   : > { %v14663_v44 = vadd.f32 %v11956_v39, %v11955_v51  ;;  %v2886_v22 = vpop.f32.mrb[172].mxu0  ;;  %v11958_v35 = vpop.f32.mrb[62].mxu1  ;;  %v3460_v49 = vpack.c.bf16 %v3252_v50, %v3236_v16  ;;  %12481 = vmatpush3.bf16.msra.mxu1 %v14651_v19  ;;  %v3368_v11 = vmax.f32 %v3145_v27, 0.0  ;;  %v14702_v27 = vld [vmem:[#allocation7 + $0x3f8] sm:$0xff]  }
 0x318   : > { %v2887_v54 = vadd.f32 %v2886_v22, %v14596_v57  ;;  %v2888_v33 = vpop.f32.mrb[173].mxu0  ;;  %v11959_v18 = vpop.f32.mrb[63].mxu1  ;;  %12474 = vmatprep.subr.bf16.mxu1 %v14656_v13  ;;  %v14678_v22 = vld [vmem:[#allocation7 + $0x3a8] sm:$0xff]  }
 0x319   : > { %16753 = vst [vmem:[#allocation63_spill] sm:$0xff] %v14663_v44  ;;  %v2889_v14 = vadd.f32 %v2888_v33, %v14601_v20  ;;  %v14673_v1 = vadd.f32 %v11959_v18, %v11958_v35  ;;  %v2890_v51 = vpop.f32.mrb[174].mxu0  ;;  %5109 = vmatprep.mubr.bf16.mxu1 %v3460_v49  ;;  %v3149_v33 = vadd.f32 %v14367_v28, %v14661_v47  ;;  %v14686_v49 = vld [vmem:[#allocation7 + $0x3f0] sm:$0xff]  }
 0x31a   : > { %v2891_v16 = vadd.f32 %v2890_v51, %v14596_v57  ;;  %v2892_v50 = vpop.f32.mrb[175].mxu0  ;;  %5110 = vmatmul.mubr.bf16.gmra.mrb[104].mxu1 %v3459_v63  ;;  %v3267_v18 = vmax.f32 %v2887_v54, 0.0  ;;  %v16755_v63 = vld [vmem:[#allocation31_spill] sm:$0xff]  ;;  %v16756_v51 = vld [vmem:[#allocation49_spill] sm:$0xff] }
 0x31b   : > { %16754 = vst [vmem:[#allocation64_spill] sm:$0xff] %v14673_v1  ;;  %v2893_v39 = vadd.f32 %v2892_v50, %v14601_v20  ;;  %12482 = vmatpush3.bf16.msra.mxu1 %v14666_v38  ;;  %v3143_v50 = vadd.f32 %v16756_v51, %v16755_v63  ;;  %v16757_v1 = vld [vmem:[#allocation51_spill] sm:$0xff]  ;;  %v3268_v58 = vmax.f32 %v2889_v14, 0.0  ;;  %v3384_v28 = vmax.f32 %v3149_v33, 0.0  ;;  %v14696_v51 = vld [vmem:[#allocation7 + $0x3b0] sm:$0xff]  }
 0x31c   : > { %v3283_v35 = vmax.f32 %v2891_v16, 0.0  ;;  %4851 = vmatmul.mubr.bf16.gmra.mrb[24].mxu0 %v14414_v3  ;;  %12475 = vmatprep.subr.bf16.mxu1 %v14670_v52  ;;  %v3147_v44 = vadd.f32 %v16757_v1, %v16755_v63  ;;  %v16758_v3 = vld [vmem:[#allocation32_spill] sm:$0xff] }
 0x31d   : > { %v3284_v15 = vmax.f32 %v2893_v39, 0.0  ;;  %4858 = vmatprep.mubr.bf16.mxu0 %v14437_v41  ;;  %v3367_v16 = vmax.f32 %v3143_v50, 0.0  ;;  %v3085_v36 = vadd.f32 %v16758_v3, %v14661_v47  ;;  %v14698_v21 = vpack.c.bf16 %v3384_v28, %v3368_v11  ;;  %v14712_v50 = vld [vmem:[#allocation7 + $0x3b8] sm:$0xff]   ;;  %v16760_v11 = vld [vmem:[#allocation55_spill] sm:$0xff]  ;;  %v16762_v3 = vld [vmem:[#allocation54_spill] sm:$0xff] }
 0x31e   : > { %v3475_v54 = vpack.c.bf16 %v3283_v35, %v3267_v18  ;;  %v3383_v7 = vmax.f32 %v3147_v44, 0.0 }
 0x31f   : > { %v2896_v30 = vpop.f32.mrb[176].mxu0  ;;  %v3476_v29 = vpack.c.bf16 %v3284_v15, %v3268_v58  ;;  %12483 = vmatpush3.bf16.msra.mxu1 %v14678_v22  ;;  %v16759_v15 = vld [vmem:[#allocation33_spill] sm:$0xff]  ;;  %v3176_v35 = vmax.f32 %v3085_v36, 0.0  ;;  %v16761_v36 = vld [vmem:[#allocation52_spill] sm:$0xff] }
 0x320   : > { %v2897_v14 = vadd.f32 %v2896_v30, %v14596_v57  ;;  %v2898_v1 = vpop.f32.mrb[177].mxu0  ;;  %12476 = vmatprep.subr.bf16.mxu1 %v14686_v49  ;;  %v14704_v41 = vpack.c.bf16 %v3383_v7, %v3367_v16  ;;  %v3089_v58 = vadd.f32 %v16759_v15, %v14661_v47  ;;  %v3155_v7 = vadd.f32 %v14373_v53, %v14661_v47 }
 0x321   : > { %v2899_v44 = vadd.f32 %v2898_v1, %v14601_v20  ;;  %v2900_v39 = vpop.f32.mrb[178].mxu0  ;;  %5117 = vmatprep.mubr.bf16.mxu1 %v3476_v29  ;;  %v3159_v29 = vadd.f32 %v16760_v11, %v14661_v47  ;;  %v3157_v1 = vadd.f32 %v16762_v3, %v16755_v63  ;;  %v12939_v3 = vld [vmem:[#allocation7 + $0x348] sm:$0xff]  }
 0x322   : > { %v2901_v33 = vadd.f32 %v2900_v39, %v14596_v57  ;;  %v2902_v18 = vpop.f32.mrb[179].mxu0  ;;  %5118 = vmatmul.mubr.bf16.gmra.mrb[108].mxu1 %v3475_v54  ;;  %v3299_v28 = vmax.f32 %v2897_v14, 0.0  ;;  %v3153_v54 = vadd.f32 %v16761_v36, %v16755_v63  ;;  %v3400_v53 = vmax.f32 %v3155_v7, 0.0 }
 0x323   : > { %v2903_v30 = vadd.f32 %v2902_v18, %v14601_v20  ;;  %12484 = vmatpush3.bf16.msra.mxu1 %v14696_v51  ;;  %v3300_v39 = vmax.f32 %v2899_v44, 0.0  ;;  %v3416_v18 = vmax.f32 %v3159_v29, 0.0  ;;  %v3192_v2 = vmax.f32 %v3089_v58, 0.0  ;;  %v16763_v58 = vld [vmem:[#allocation34_spill] sm:$0xff]  ;;  %v16764_v29 = vld [vmem:[#allocation35_spill] sm:$0xff] }
 0x324   : > { %v3315_v16 = vmax.f32 %v2901_v33, 0.0  ;;  %4859 = vmatmul.mubr.bf16.gmra.mrb[28].mxu0 %v14435_v26  ;;  %12477 = vmatprep.subr.bf16.mxu1 %v14702_v27  ;;  %v3399_v14 = vmax.f32 %v3153_v54, 0.0  ;;  %v3415_v33 = vmax.f32 %v3157_v1, 0.0  ;;  %v3095_v7 = vadd.f32 %v16763_v58, %v14661_v47 }
 0x325   : > { %v3316_v15 = vmax.f32 %v2903_v30, 0.0  ;;  %4996 = vmatprep.mubr.bf16.mxu0 %v14503_v61  ;;  %v14726_v37 = vpack.c.bf16 %v3416_v18, %v3400_v53  ;;  %v12938_v30 = vld [vmem:[#allocation7 + $0x300] sm:$0xff]   ;;  %v12940_v18 = vld [vmem:[#allocation7 + $0x308] sm:$0xff]  }
 0x326   : > { %v3491_v11 = vpack.c.bf16 %v3315_v16, %v3299_v28  ;;  %v14729_v63 = vpack.c.bf16 %v3415_v33, %v3399_v14  ;;  %v3099_v28 = vadd.f32 %v16764_v29, %v14661_v47  ;;  %v3208_v14 = vmax.f32 %v3095_v7, 0.0 }
 0x327   : > { %v2906_v45 = vpop.f32.mrb[180].mxu0  ;;  %v3492_v26 = vpack.c.bf16 %v3316_v15, %v3300_v39  ;;  %12485 = vmatpush3.bf16.msra.mxu1 %v14712_v50 }
 0x328   : > { %v2907_v36 = vadd.f32 %v2906_v45, %v14596_v57  ;;  %v2908_v60 = vpop.f32.mrb[181].mxu0  ;;  %v14737_v45 = vpack.c.bf16 %v3192_v2, %v3176_v35  ;;  %v3224_v33 = vmax.f32 %v3099_v28, 0.0 }
 0x329   : > { %v2909_v44 = vadd.f32 %v2908_v60, %v14601_v20  ;;  %v2910_v61 = vpop.f32.mrb[182].mxu0  ;;  %5125 = vmatprep.mubr.bf16.mxu1 %v3492_v26 }
 0x32a   : > { %v2911_v16 = vadd.f32 %v2910_v61, %v14596_v57  ;;  %v2912_v54 = vpop.f32.mrb[183].mxu0  ;;  %5126 = vmatmul.mubr.bf16.gmra.mrb[112].mxu1 %v3491_v11  ;;  %v3331_v39 = vmax.f32 %v2907_v36, 0.0  ;;  %v12941_v11 = vld [vmem:[#allocation7 + $0x350] sm:$0xff]   ;;  %v14745_v7 = vpack.c.bf16 %v3224_v33, %v3208_v14  ;;  %v12945_v33 = vld [vmem:[#allocation7 + $0x360] sm:$0xff]  }
 0x32b   : > { %v2913_v1 = vadd.f32 %v2912_v54, %v14601_v20  ;;  %v3332_v15 = vmax.f32 %v2909_v44, 0.0 }
 0x32c   : > { %v3347_v60 = vmax.f32 %v2911_v16, 0.0  ;;  %4997 = vmatmul.mubr.bf16.vlgmr.msra.gmra.mrb[32].mxu0 %v14501_v34  ;;  %v12942_v34 = vld [vmem:[#allocation7 + $0x310] sm:$0xff]  }
 0x32d   : > { %v3348_v53 = vmax.f32 %v2913_v1, 0.0  ;;  %5004 = vmatprep.mubr.bf16.mxu0 %v14513_v32  ;;  %12218 = vmatpush3.bf16.msra.mxu0 %v12938_v30  ;;  %v12943_v30 = vld [vmem:[#allocation7 + $0x358] sm:$0xff]  }
 0x32e   : > { %v3507_v26 = vpack.c.bf16 %v3347_v60, %v3331_v39  ;;  %12219 = vmatprep.subr.bf16.mxu0 %v12939_v3  ;;  %v16765_v3 = vld [vmem:[#allocation37_spill] sm:$0xff]  ;;  %v16766_v39 = vld [vmem:[#allocation39_spill] sm:$0xff] }
 0x32f   : > { %v2916_v61 = vpop.f32.mrb[184].mxu0  ;;  %v3508_v2 = vpack.c.bf16 %v3348_v53, %v3332_v15  ;;  %v3105_v1 = vadd.f32 %v16765_v3, %v14661_v47  ;;  %v3109_v60 = vadd.f32 %v16766_v39, %v14661_v47  ;;  %v16769_v39 = vld [vmem:[#allocation28_spill] sm:$0xff] }
 0x330   : > { %v2917_v35 = vadd.f32 %v2916_v61, %v14596_v57  ;;  %v2918_v58 = vpop.f32.mrb[185].mxu0 }
 0x331   : > { %v2919_v36 = vadd.f32 %v2918_v58, %v14601_v20  ;;  %v2920_v29 = vpop.f32.mrb[186].mxu0  ;;  %5133 = vmatprep.mubr.bf16.mxu1 %v3508_v2  ;;  %12220 = vmatpush3.bf16.msra.mxu0 %v12940_v18  ;;  %v12944_v18 = vld [vmem:[#allocation7 + $0x318] sm:$0xff]   ;;  %v3240_v2 = vmax.f32 %v3105_v1, 0.0 }
 0x332   : > { %v2921_v32 = vadd.f32 %v2920_v29, %v14596_v57  ;;  %v2922_v44 = vpop.f32.mrb[187].mxu0  ;;  %5134 = vmatmul.mubr.bf16.gmra.mrb[116].mxu1 %v3507_v26  ;;  %12221 = vmatprep.subr.bf16.mxu0 %v12941_v11  ;;  %v3363_v16 = vmax.f32 %v2917_v35, 0.0  ;;  %v3256_v35 = vmax.f32 %v3109_v60, 0.0  ;;  %v14765_v60 = vrot.slane %v14592_v31, %v16769_v39 }
 0x333   : > { %v2923_v28 = vadd.f32 %v2922_v44, %v14601_v20  ;;  %v3364_v15 = vmax.f32 %v2919_v36, 0.0  ;;  %v12946_v36 = vld [vmem:[#allocation7 + $0x320] sm:$0xff]   ;;  %v16767_v44 = vld [vmem:[#allocation41_spill] sm:$0xff] }
 0x334   : > { %v3379_v54 = vmax.f32 %v2921_v32, 0.0  ;;  %5005 = vmatmul.mubr.bf16.gmra.mrb[36].mxu0 %v14511_v10  ;;  %v12947_v32 = vld [vmem:[#allocation7 + $0x368] sm:$0xff]  }
 0x335   : > { %v3380_v53 = vmax.f32 %v2923_v28, 0.0  ;;  %5012 = vmatprep.mubr.bf16.mxu0 %v14523_v62  ;;  %12222 = vmatpush3.bf16.msra.mxu0 %v12942_v34 }
 0x336   : > { %v3523_v14 = vpack.c.bf16 %v3379_v54, %v3363_v16  ;;  %12223 = vmatprep.subr.bf16.mxu0 %v12943_v30  ;;  %v3115_v30 = vadd.f32 %v16767_v44, %v14661_v47  ;;  %v16768_v16 = vld [vmem:[#allocation42_spill] sm:$0xff] }
 0x337   : > { %v2926_v26 = vpop.f32.mrb[188].mxu0  ;;  %v3524_v11 = vpack.c.bf16 %v3380_v53, %v3364_v15  ;;  %v3119_v54 = vadd.f32 %v16768_v16, %v14661_v47  ;;  %v16770_v53 = vld [vmem:[#allocation30_spill] sm:$0xff]  ;;  %v16772_v16 = vld [vmem:[#allocation45_spill] sm:$0xff] }
 0x338   : > { %v2927_v61 = vadd.f32 %v2926_v26, %v14596_v57  ;;  %v2928_v10 = vpop.f32.mrb[189].mxu0  ;;  %v12949_v26 = vld [vmem:[#allocation7 + $0x370] sm:$0xff]  }
 0x339   : > { %v2929_v58 = vadd.f32 %v2928_v10, %v14601_v20  ;;  %v2930_v29 = vpop.f32.mrb[190].mxu0  ;;  %5141 = vmatprep.mubr.bf16.mxu1 %v3524_v11  ;;  %12224 = vmatpush3.bf16.msra.mxu0 %v12944_v18  ;;  %v14770_v18 = vrot.slane %v14592_v31, %v16770_v53  ;;  %v12950_v31 = vld [vmem:[#allocation7 + $0x330] sm:$0xff]  }
 0x33a   : > { %v2931_v62 = vadd.f32 %v2930_v29, %v14596_v57  ;;  %v2932_v34 = vpop.f32.mrb[191].mxu0  ;;  %5142 = vmatmul.mubr.bf16.gmra.mrb[120].mxu1 %v3523_v14  ;;  %12225 = vmatprep.subr.bf16.mxu0 %v12945_v33  ;;  %v3395_v3 = vmax.f32 %v2927_v61, 0.0  ;;  %v14772_v14 = vpack.c.bf16 %v3256_v35, %v3240_v2  ;;  %v3288_v29 = vmax.f32 %v3119_v54, 0.0  ;;  %v12951_v35 = vld [vmem:[#allocation7 + $0x378] sm:$0xff]  }
 0x33b   : > { %v2933_v28 = vadd.f32 %v2932_v34, %v14601_v20  ;;  %v3396_v57 = vmax.f32 %v2929_v58, 0.0  ;;  %v12948_v20 = vld [vmem:[#allocation7 + $0x328] sm:$0xff]   ;;  %v3272_v58 = vmax.f32 %v3115_v30, 0.0  ;;  %v3129_v54 = vadd.f32 %v16772_v16, %v14661_v47 }
 0x33c   : > { %v3411_v1 = vmax.f32 %v2931_v62, 0.0  ;;  %5013 = vmatmul.mubr.bf16.gmra.mrb[40].mxu0 %v14521_v48 }
 0x33d   : > { %v3412_v15 = vmax.f32 %v2933_v28, 0.0  ;;  %5020 = vmatprep.mubr.bf16.mxu0 %v14533_v59  ;;  %12226 = vmatpush3.bf16.msra.mxu0 %v12946_v36 }
 0x33e   : > { %v3539_v33 = vpack.c.bf16 %v3411_v1, %v3395_v3  ;;  %12227 = vmatprep.subr.bf16.mxu0 %v12947_v32  ;;  %v16771_v32 = vld [vmem:[#allocation44_spill] sm:$0xff] }
 0x33f   : > { %v2969_v48 = vpop.f32.mrb[192].mxu0  ;;  %v3540_v11 = vpack.c.bf16 %v3412_v15, %v3396_v57  ;;  %v3125_v44 = vadd.f32 %v16771_v32, %v14661_v47  ;;  %v12952_v57 = vld [vmem:[#allocation7 + $0x338] sm:$0xff]   ;;  %v14785_v15 = vpack.c.bf16 %v3288_v29, %v3272_v58  ;;  %v16773_v29 = vld [vmem:[#allocation46_spill] sm:$0xff] }
 0x340   : > { %v2970_v61 = vadd.f32 %v2969_v48, %v14765_v60  ;;  %v2971_v10 = vpop.f32.mrb[193].mxu0 }
 0x341   : > { %v2972_v59 = vadd.f32 %v2971_v10, %v14770_v18  ;;  %v2973_v62 = vpop.f32.mrb[194].mxu0  ;;  %5149 = vmatprep.mubr.bf16.mxu1 %v3540_v11  ;;  %12228 = vmatpush3.bf16.msra.mxu0 %v12948_v20  ;;  %v3304_v48 = vmax.f32 %v3125_v44, 0.0  ;;  %v3320_v11 = vmax.f32 %v3129_v54, 0.0 }
 0x342   : > { %v2974_v36 = vadd.f32 %v2973_v62, %v14765_v60  ;;  %v2975_v2 = vpop.f32.mrb[195].mxu0  ;;  %5150 = vmatmul.mubr.bf16.gmra.mrb[124].mxu1 %v3539_v33  ;;  %12229 = vmatprep.subr.bf16.mxu0 %v12949_v26  ;;  %v3173_v30 = vmax.f32 %v2970_v61, 0.0  ;;  %v3135_v62 = vadd.f32 %v16773_v29, %v14661_v47 }
 0x343   : > { %v2976_v34 = vadd.f32 %v2975_v2, %v14770_v18  ;;  %5335 = vmatprep.mubr.bf16.mxu1 %v14698_v21  ;;  %v3174_v3 = vmax.f32 %v2972_v59, 0.0  ;;  %v16774_v2 = vld [vmem:[#allocation48_spill] sm:$0xff] }
 0x344   : > { %v3189_v28 = vmax.f32 %v2974_v36, 0.0  ;;  %5021 = vmatmul.mubr.bf16.gmra.mrb[44].mxu0 %v14531_v56  ;;  %v3336_v16 = vmax.f32 %v3135_v62, 0.0 }
 0x345   : > { %v3190_v1 = vmax.f32 %v2976_v34, 0.0  ;;  %5028 = vmatprep.mubr.bf16.mxu0 %v14547_v8  ;;  %12230 = vmatpush3.bf16.msra.mxu0 %v12950_v31 }
 0x346   : > { %v14787_v20 = vpack.c.bf16 %v3189_v28, %v3173_v30  ;;  %12231 = vmatprep.subr.bf16.mxu0 %v12951_v35  ;;  %v3139_v35 = vadd.f32 %v16774_v2, %v14661_v47 }
 0x347   : > { %v2979_v21 = vpop.f32.mrb[196].mxu0  ;;  %v14789_v33 = vpack.c.bf16 %v3190_v1, %v3174_v3 }
 0x348   : > { %v2980_v26 = vadd.f32 %v2979_v21, %v14765_v60  ;;  %v2981_v56 = vpop.f32.mrb[197].mxu0  ;;  %v3352_v54 = vmax.f32 %v3139_v35, 0.0 }
 0x349   : > { %v2982_v61 = vadd.f32 %v2981_v56, %v14770_v18  ;;  %v2983_v10 = vpop.f32.mrb[198].mxu0  ;;  %12232 = vmatpush3.bf16.msra.mxu0 %v12952_v57 }
 0x34a   : > { %v2984_v8 = vadd.f32 %v2983_v10, %v14765_v60  ;;  %v2985_v59 = vpop.f32.mrb[199].mxu0  ;;  %12281 = vmatprep.subr.bf16.mxu0 %v14561_v5  ;;  %5336 = vmatmul.mubr.bf16.vlgmr.msra.gmra.mrb[128].mxu1 %v14704_v41  ;;  %v3205_v31 = vmax.f32 %v2980_v26, 0.0  ;;  %v14804_v5 = vpack.c.bf16 %v3320_v11, %v3304_v48  ;;  %v14817_v48 = vpack.c.bf16 %v3352_v54, %v3336_v16 }
 0x34b   : > { %v2986_v58 = vadd.f32 %v2985_v59, %v14770_v18  ;;  %5343 = vmatprep.mubr.bf16.mxu1 %v14726_v37  ;;  %v3206_v34 = vmax.f32 %v2982_v61, 0.0 }
 0x34c   : > { %v3221_v36 = vmax.f32 %v2984_v8, 0.0  ;;  %5029 = vmatmul.mubr.bf16.gmra.mrb[48].mxu0 %v14545_v23 }
 0x34d   : > { %v3222_v32 = vmax.f32 %v2986_v58, 0.0  ;;  %5036 = vmatprep.mubr.bf16.mxu0 %v14563_v12 }
 0x34e   : > { %v14806_v41 = vpack.c.bf16 %v3221_v36, %v3205_v31 }
 0x34f   : > { %v2989_v44 = vpop.f32.mrb[200].mxu0  ;;  %v14808_v37 = vpack.c.bf16 %v3222_v32, %v3206_v34 }
 0x350   : > { %v2990_v30 = vadd.f32 %v2989_v44, %v14765_v60  ;;  %v2991_v28 = vpop.f32.mrb[201].mxu0 }
 0x351   : > { %v2992_v23 = vadd.f32 %v2991_v28, %v14770_v18  ;;  %v2993_v3 = vpop.f32.mrb[202].mxu0 }
 0x352   : > { %v2994_v47 = vadd.f32 %v2993_v3, %v14765_v60  ;;  %v2995_v1 = vpop.f32.mrb[203].mxu0  ;;  %5344 = vmatmul.mubr.bf16.gmra.mrb[132].mxu1 %v14729_v63  ;;  %v3237_v57 = vmax.f32 %v2990_v30, 0.0 }
 0x353   : > { %v2996_v12 = vadd.f32 %v2995_v1, %v14770_v18  ;;  %v3238_v26 = vmax.f32 %v2992_v23, 0.0 }
 0x354   : > { %v3253_v21 = vmax.f32 %v2994_v47, 0.0  ;;  %5037 = vmatmul.mubr.bf16.gmra.mrb[52].mxu0 %v14559_v43 }
 0x355   : > { %v3254_v56 = vmax.f32 %v2996_v12, 0.0  ;;  %5044 = vmatprep.mubr.bf16.mxu0 %v14578_v40 }
 0x356   : > { %v14819_v11 = vpack.c.bf16 %v3253_v21, %v3237_v57 }
 0x357   : > { %v2999_v61 = vpop.f32.mrb[204].mxu0  ;;  %v14821_v10 = vpack.c.bf16 %v3254_v56, %v3238_v26 }
 0x358   : > { %v3000_v8 = vadd.f32 %v2999_v61, %v14765_v60  ;;  %v3001_v63 = vpop.f32.mrb[205].mxu0 }
 0x359   : > { %v3002_v59 = vadd.f32 %v3001_v63, %v14770_v18  ;;  %v3003_v58 = vpop.f32.mrb[206].mxu0 }
 0x35a   : > { %v3004_v29 = vadd.f32 %v3003_v58, %v14765_v60  ;;  %v3005_v43 = vpop.f32.mrb[207].mxu0  ;;  %v3269_v31 = vmax.f32 %v3000_v8, 0.0 }
 0x35b   : > { %v3006_v62 = vadd.f32 %v3005_v43, %v14770_v18  ;;  %v3270_v36 = vmax.f32 %v3002_v59, 0.0 }
 0x35c   : > { %v3285_v40 = vmax.f32 %v3004_v29, 0.0  ;;  %5045 = vmatmul.mubr.bf16.gmra.mrb[56].mxu0 %v14576_v17 }
 0x35d   : > { %v3286_v2 = vmax.f32 %v3006_v62, 0.0  ;;  %v12041_v35 = vpop.f32.mrb[64].mxu1  ;;  %5052 = vmatprep.mubr.bf16.mxu0 %v14605_v46 }
 0x35e   : > { %v14829_v34 = vpack.c.bf16 %v3285_v40, %v3269_v31  ;;  %v12042_v32 = vpop.f32.mrb[65].mxu1 }
 0x35f   : > { %v14831_v44 = vadd.f32 %v12042_v32, %v12041_v35  ;;  %v3009_v30 = vpop.f32.mrb[208].mxu0  ;;  %v12044_v28 = vpop.f32.mrb[66].mxu1  ;;  %v14833_v16 = vpack.c.bf16 %v3286_v2, %v3270_v36 }
 0x360   : > { %v3010_v54 = vadd.f32 %v3009_v30, %v14765_v60  ;;  %v3011_v23 = vpop.f32.mrb[209].mxu0  ;;  %v12045_v3 = vpop.f32.mrb[67].mxu1 }
 0x361   : > { %v3012_v17 = vadd.f32 %v3011_v23, %v14770_v18  ;;  %v14837_v47 = vadd.f32 %v12045_v3, %v12044_v28  ;;  %v3013_v1 = vpop.f32.mrb[210].mxu0 }
 0x362   : > { %v3014_v46 = vadd.f32 %v3013_v1, %v14765_v60  ;;  %v3015_v12 = vpop.f32.mrb[211].mxu0  ;;  %v3301_v21 = vmax.f32 %v3010_v54, 0.0 }
 0x363   : > { %v3016_v57 = vadd.f32 %v3015_v12, %v14770_v18  ;;  %v3302_v56 = vmax.f32 %v3012_v17, 0.0 }
 0x364   : > { %v3317_v26 = vmax.f32 %v3014_v46, 0.0  ;;  %5053 = vmatmul.mubr.bf16.gmra.mrb[60].mxu0 %v14603_v24 }
 0x365   : > { %v3318_v61 = vmax.f32 %v3016_v57, 0.0  ;;  %v12047_v8 = vpop.f32.mrb[68].mxu1  ;;  %5190 = vmatprep.mubr.bf16.mxu0 %v14789_v33 }
 0x366   : > { %v14843_v63 = vpack.c.bf16 %v3317_v26, %v3301_v21  ;;  %v12048_v59 = vpop.f32.mrb[69].mxu1 }
 0x367   : > { %v14845_v58 = vadd.f32 %v12048_v59, %v12047_v8  ;;  %v3019_v29 = vpop.f32.mrb[212].mxu0  ;;  %v12050_v43 = vpop.f32.mrb[70].mxu1  ;;  %v14847_v62 = vpack.c.bf16 %v3318_v61, %v3302_v56 }
 0x368   : > { %v3020_v31 = vadd.f32 %v3019_v29, %v14765_v60  ;;  %v3021_v40 = vpop.f32.mrb[213].mxu0  ;;  %v12051_v36 = vpop.f32.mrb[71].mxu1 }
 0x369   : > { %v3022_v24 = vadd.f32 %v3021_v40, %v14770_v18  ;;  %v14851_v2 = vadd.f32 %v12051_v36, %v12050_v43  ;;  %v3023_v35 = vpop.f32.mrb[214].mxu0 }
 0x36a   : > { %v3024_v33 = vadd.f32 %v3023_v35, %v14765_v60  ;;  %v3025_v32 = vpop.f32.mrb[215].mxu0  ;;  %v3333_v28 = vmax.f32 %v3020_v31, 0.0 }
 0x36b   : > { %v3026_v30 = vadd.f32 %v3025_v32, %v14770_v18  ;;  %v3334_v23 = vmax.f32 %v3022_v24, 0.0 }
 0x36c   : > { %v3349_v54 = vmax.f32 %v3024_v33, 0.0  ;;  %5191 = vmatmul.mubr.bf16.vlgmr.msra.gmra.mrb[64].mxu0 %v14787_v20 }
 0x36d   : > { %v3350_v3 = vmax.f32 %v3026_v30, 0.0  ;;  %v12053_v17 = vpop.f32.mrb[72].mxu1  ;;  %5198 = vmatprep.mubr.bf16.mxu0 %v14808_v37  ;;  %12282 = vmatpush3.bf16.msra.mxu0 %v14617_v55 }
 0x36e   : > { %v14858_v1 = vpack.c.bf16 %v3349_v54, %v3333_v28  ;;  %v12054_v46 = vpop.f32.mrb[73].mxu1  ;;  %12283 = vmatprep.subr.bf16.mxu0 %v14622_v25 }
 0x36f   : > { %v14861_v12 = vadd.f32 %v12054_v46, %v12053_v17  ;;  %v3029_v57 = vpop.f32.mrb[216].mxu0  ;;  %v12056_v21 = vpop.f32.mrb[74].mxu1  ;;  %v14863_v26 = vpack.c.bf16 %v3350_v3, %v3334_v23 }
 0x370   : > { %v3030_v20 = vadd.f32 %v3029_v57, %v14765_v60  ;;  %v3031_v56 = vpop.f32.mrb[217].mxu0  ;;  %v12057_v61 = vpop.f32.mrb[75].mxu1 }
 0x371   : > { %v3032_v8 = vadd.f32 %v3031_v56, %v14770_v18  ;;  %v14867_v37 = vadd.f32 %v12057_v61, %v12056_v21  ;;  %v3033_v55 = vpop.f32.mrb[218].mxu0  ;;  %12284 = vmatpush3.bf16.msra.mxu0 %v14629_v9 }
 0x372   : > { %v3034_v59 = vadd.f32 %v3033_v55, %v14765_v60  ;;  %v3035_v25 = vpop.f32.mrb[219].mxu0  ;;  %12285 = vmatprep.subr.bf16.mxu0 %v14633_v42  ;;  %v3365_v43 = vmax.f32 %v3030_v20, 0.0 }
 0x373   : > { %v3036_v29 = vadd.f32 %v3035_v25, %v14770_v18  ;;  %v3366_v40 = vmax.f32 %v3032_v8, 0.0 }
 0x374   : > { %v3381_v31 = vmax.f32 %v3034_v59, 0.0  ;;  %5199 = vmatmul.mubr.bf16.gmra.mrb[68].mxu0 %v14806_v41 }
 0x375   : > { %v3382_v36 = vmax.f32 %v3036_v29, 0.0  ;;  %v12059_v24 = vpop.f32.mrb[76].mxu1  ;;  %5206 = vmatprep.mubr.bf16.mxu0 %v14821_v10  ;;  %12286 = vmatpush3.bf16.msra.mxu0 %v14639_v4 }
 0x376   : > { %v14876_v35 = vpack.c.bf16 %v3381_v31, %v3365_v43  ;;  %v12060_v9 = vpop.f32.mrb[77].mxu1  ;;  %12287 = vmatprep.subr.bf16.mxu0 %v14643_v6 }
 0x377   : > { %v14879_v33 = vadd.f32 %v12060_v9, %v12059_v24  ;;  %v3039_v42 = vpop.f32.mrb[220].mxu0  ;;  %v12062_v32 = vpop.f32.mrb[78].mxu1  ;;  %v14881_v30 = vpack.c.bf16 %v3382_v36, %v3366_v40 }
 0x378   : > { %v3040_v41 = vadd.f32 %v3039_v42, %v14765_v60  ;;  %v3041_v28 = vpop.f32.mrb[221].mxu0  ;;  %v12063_v54 = vpop.f32.mrb[79].mxu1  ;;  %v16775_v42 = vld [vmem:[#allocation21_spill] sm:$0xff] }
 0x379   : > { %v3042_v23 = vadd.f32 %v3041_v28, %v14770_v18  ;;  %v14885_v10 = vadd.f32 %v12063_v54, %v12062_v32  ;;  %v3043_v4 = vpop.f32.mrb[222].mxu0  ;;  %12288 = vmatpush3.bf16.msra.mxu0 %v14651_v19 }
 0x37a   : > { %v3044_v3 = vadd.f32 %v3043_v4, %v14765_v60  ;;  %v3045_v6 = vpop.f32.mrb[223].mxu0  ;;  %12289 = vmatprep.subr.bf16.mxu0 %v14656_v13  ;;  %v3397_v46 = vmax.f32 %v3040_v41, 0.0 }
 0x37b   : > { %v3046_v17 = vadd.f32 %v3045_v6, %v14770_v18  ;;  %v3398_v21 = vmax.f32 %v3042_v23, 0.0 }
 0x37c   : > { %v3413_v57 = vmax.f32 %v3044_v3, 0.0  ;;  %5207 = vmatmul.mubr.bf16.gmra.mrb[72].mxu0 %v14819_v11  ;;  %v14904_v11 = vld [vmem:[%s16630_s4] ss:$0 sm:$0xff]  ;;  %v16776_v3 = vld [vmem:[#allocation20_spill] sm:$0xff] }
 0x37d   : > { %v3414_v20 = vmax.f32 %v3046_v17, 0.0  ;;  %v12065_v56 = vpop.f32.mrb[80].mxu1  ;;  %5214 = vmatprep.mubr.bf16.mxu0 %v14833_v16  ;;  %12290 = vmatpush3.bf16.msra.mxu0 %v14666_v38 }
 0x37e   : > { %v14894_v61 = vpack.c.bf16 %v3413_v57, %v3397_v46  ;;  %v12066_v19 = vpop.f32.mrb[81].mxu1  ;;  %12291 = vmatprep.subr.bf16.mxu0 %v14670_v52 }
 0x37f   : > { %v14897_v60 = vadd.f32 %v12066_v19, %v12065_v56  ;;  %v11849_v13 = vpop.f32.mrb[224].mxu0  ;;  %v12068_v18 = vpop.f32.mrb[82].mxu1  ;;  %v14899_v8 = vpack.c.bf16 %v3414_v20, %v3398_v21 }
 0x380   : > { %v11850_v55 = vpop.f32.mrb[225].mxu0  ;;  %v12069_v16 = vpop.f32.mrb[83].mxu1 }
 0x381   : > { %v11851_v59 = vadd.f32 %v11850_v55, %v11849_v13  ;;  %v14906_v38 = vadd.f32 %v12069_v16, %v12068_v18  ;;  %v11852_v25 = vpop.f32.mrb[226].mxu0  ;;  %12292 = vmatpush3.bf16.msra.mxu0 %v14678_v22 }
 0x382   : > { %v11853_v52 = vpop.f32.mrb[227].mxu0  ;;  %12293 = vmatprep.subr.bf16.mxu0 %v14686_v49 }
 0x383   : > { %v4611_v29 = vadd.f32 %v11851_v59, %v14904_v11  ;;  %v11854_v43 = vadd.f32 %v11853_v52, %v11852_v25  ;;  %v16778_v52 = vld [vmem:[#allocation22_spill] sm:$0xff] }
 0x384   : > { %5215 = vmatmul.mubr.bf16.gmra.mrb[76].mxu0 %v14829_v34 }
 0x385   : > { %v4614_v31 = vadd.f32 %v11854_v43, %v14904_v11  ;;  %v12071_v40 = vpop.f32.mrb[84].mxu1  ;;  %5222 = vmatprep.mubr.bf16.mxu0 %v14847_v62  ;;  %12294 = vmatpush3.bf16.msra.mxu0 %v14696_v51  ;;  %v14916_v36 = vadd.f32 %v14535_v0, %v4611_v29 }
 0x386   : > { %v12072_v24 = vpop.f32.mrb[85].mxu1  ;;  %12295 = vmatprep.subr.bf16.mxu0 %v14702_v27 }
 0x387   : > { %v14919_v22 = vadd.f32 %v12072_v24, %v12071_v40  ;;  %v11855_v49 = vpop.f32.mrb[228].mxu0  ;;  %v12074_v9 = vpop.f32.mrb[86].mxu1  ;;  %v14922_v32 = vadd.f32 %v16775_v42, %v4614_v31 }
 0x388   : > { %v11856_v34 = vpop.f32.mrb[229].mxu0  ;;  %v12075_v41 = vpop.f32.mrb[87].mxu1 }
 0x389   : > { %v11857_v28 = vadd.f32 %v11856_v34, %v11855_v49  ;;  %v14924_v54 = vadd.f32 %v12075_v41, %v12074_v9  ;;  %v11858_v62 = vpop.f32.mrb[230].mxu0  ;;  %12296 = vmatpush3.bf16.msra.mxu0 %v14712_v50  ;;  %v16777_v50 = vld [vmem:[#allocation23_spill] sm:$0xff] }
 0x38a   : > { %v11859_v0 = vpop.f32.mrb[231].mxu0  ;;  %v16779_v49 = vld [vmem:[#allocation27_spill] sm:$0xff] }
 0x38b   : > { %v4619_v51 = vadd.f32 %v11857_v28, %v14904_v11  ;;  %v11860_v23 = vadd.f32 %v11859_v0, %v11858_v62 }
 0x38c   : > { %5223 = vmatmul.mubr.bf16.gmra.mrb[80].mxu0 %v14843_v63 }
 0x38d   : > { %v4622_v27 = vadd.f32 %v11860_v23, %v14904_v11  ;;  %v12077_v4 = vpop.f32.mrb[88].mxu1  ;;  %5230 = vmatprep.mubr.bf16.mxu0 %v14863_v26  ;;  %v14932_v6 = vadd.f32 %v16776_v3, %v4619_v51  ;;  %v16780_v23 = vld [vmem:[#allocation26_spill] sm:$0xff]  ;;  %v16781_v3 = vld [vmem:[#allocation36_spill] sm:$0xff] }
 0x38e   : > { %v12078_v17 = vpop.f32.mrb[89].mxu1 }
 0x38f   : > { %v14934_v46 = vadd.f32 %v12078_v17, %v12077_v4  ;;  %v11861_v57 = vpop.f32.mrb[232].mxu0  ;;  %v12080_v21 = vpop.f32.mrb[90].mxu1  ;;  %v14937_v20 = vadd.f32 %v16777_v50, %v4622_v27 }
 0x390   : > { %v11862_v56 = vpop.f32.mrb[233].mxu0  ;;  %v12081_v19 = vpop.f32.mrb[91].mxu1 }
 0x391   : > { %v11863_v13 = vadd.f32 %v11862_v56, %v11861_v57  ;;  %v14939_v63 = vadd.f32 %v12081_v19, %v12080_v21  ;;  %v11864_v18 = vpop.f32.mrb[234].mxu0 }
 0x392   : > { %v11865_v55 = vpop.f32.mrb[235].mxu0 }
 0x393   : > { %v4627_v26 = vadd.f32 %v11863_v13, %v14904_v11  ;;  %v11866_v16 = vadd.f32 %v11865_v55, %v11864_v18 }
 0x394   : > { %5231 = vmatmul.mubr.bf16.gmra.mrb[84].mxu0 %v14858_v1 }
 0x395   : > { %v4630_v59 = vadd.f32 %v11866_v16, %v14904_v11  ;;  %v12083_v25 = vpop.f32.mrb[92].mxu1  ;;  %5238 = vmatprep.mubr.bf16.mxu0 %v14881_v30  ;;  %v14946_v29 = vadd.f32 %v16778_v52, %v4627_v26  ;;  %v16783_v26 = vld [vmem:[#allocation58_spill] sm:$0xff] }
 0x396   : > { %v12084_v43 = vpop.f32.mrb[93].mxu1 }
 0x397   : > { %v14948_v31 = vadd.f32 %v12084_v43, %v12083_v25  ;;  %v11867_v40 = vpop.f32.mrb[236].mxu0  ;;  %v12086_v24 = vpop.f32.mrb[94].mxu1  ;;  %v14951_v9 = vadd.f32 %v16779_v49, %v4630_v59  ;;  %v16784_v49 = vld [vmem:[#allocation38_spill] sm:$0xff] }
 0x398   : > { %v11868_v42 = vpop.f32.mrb[237].mxu0  ;;  %v12087_v34 = vpop.f32.mrb[95].mxu1 }
 0x399   : > { %v11869_v41 = vadd.f32 %v11868_v42, %v11867_v40  ;;  %v14953_v1 = vadd.f32 %v12087_v34, %v12086_v24  ;;  %v11870_v28 = vpop.f32.mrb[238].mxu0 }
 0x39a   : > { %v11871_v62 = vpop.f32.mrb[239].mxu0 }
 0x39b   : > { %v4635_v30 = vadd.f32 %v11869_v41, %v14904_v11  ;;  %v11872_v0 = vadd.f32 %v11871_v62, %v11870_v28  ;;  %v16786_v41 = vld [vmem:[#allocation60_spill] sm:$0xff] }
 0x39c   : > { %5239 = vmatmul.mubr.bf16.gmra.mrb[88].mxu0 %v14876_v35 }
 0x39d   : > { %v4638_v51 = vadd.f32 %v11872_v0, %v14904_v11  ;;  %5246 = vmatprep.mubr.bf16.mxu0 %v14899_v8  ;;  %v14960_v27 = vadd.f32 %v16780_v23, %v4635_v30  ;;  %v16782_v8 = vld [vmem:[#allocation57_spill] sm:$0xff] }
 0x39f   : > { %v11873_v4 = vpop.f32.mrb[240].mxu0  ;;  %v14963_v17 = vadd.f32 %v16781_v3, %v4638_v51  ;;  %v16787_v3 = vld [vmem:[#allocation40_spill] sm:$0xff] }
 0x3a0   : > { %v11874_v57 = vpop.f32.mrb[241].mxu0 }
 0x3a1   : > { %v11875_v21 = vadd.f32 %v11874_v57, %v11873_v4  ;;  %v11876_v50 = vpop.f32.mrb[242].mxu0 }
 0x3a2   : > { %v11877_v56 = vpop.f32.mrb[243].mxu0 }
 0x3a3   : > { %v4643_v19 = vadd.f32 %v11875_v21, %v14904_v11  ;;  %v11878_v13 = vadd.f32 %v11877_v56, %v11876_v50  ;;  %v16789_v56 = vld [vmem:[#allocation62_spill] sm:$0xff] }
 0x3a4   : > { %5247 = vmatmul.mubr.bf16.gmra.mrb[92].mxu0 %v14894_v61 }
 0x3a5   : > { %v4646_v35 = vadd.f32 %v11878_v13, %v14904_v11  ;;  %5287 = vmatprep.mubr.bf16.mxu0 %v14737_v45  ;;  %v14970_v18 = vadd.f32 %v16782_v8, %v4643_v19  ;;  %v16785_v45 = vld [vmem:[#allocation59_spill] sm:$0xff] }
 0x3a7   : > { %v11879_v55 = vpop.f32.mrb[244].mxu0  ;;  %v14973_v16 = vadd.f32 %v16783_v26, %v4646_v35 }
 0x3a8   : > { %v11880_v59 = vpop.f32.mrb[245].mxu0 }
 0x3a9   : > { %v11881_v25 = vadd.f32 %v11880_v59, %v11879_v55  ;;  %v11882_v52 = vpop.f32.mrb[246].mxu0 }
 0x3aa   : > { %v11883_v43 = vpop.f32.mrb[247].mxu0 }
 0x3ab   : > { %v4651_v40 = vadd.f32 %v11881_v25, %v14904_v11  ;;  %v11884_v24 = vadd.f32 %v11883_v43, %v11882_v52  ;;  %v16790_v25 = vld [vmem:[#allocation43_spill] sm:$0xff] }
 0x3ac   : > { %5288 = vmatmul.mubr.bf16.vlgmr.msra.gmra.mrb[96].mxu0 %v16784_v49 }
 0x3ad   : > { %v4654_v61 = vadd.f32 %v11884_v24, %v14904_v11  ;;  %5295 = vmatprep.mubr.bf16.mxu0 %v14745_v7  ;;  %v14980_v42 = vadd.f32 %v16785_v45, %v4651_v40  ;;  %v16788_v7 = vld [vmem:[#allocation61_spill] sm:$0xff]  ;;  %v16792_v24 = vld [vmem:[#allocation64_spill] sm:$0xff] }
 0x3af   : > { %v11885_v34 = vpop.f32.mrb[248].mxu0  ;;  %v14983_v28 = vadd.f32 %v16786_v41, %v4654_v61 }
 0x3b0   : > { %v11886_v62 = vpop.f32.mrb[249].mxu0 }
 0x3b1   : > { %v11887_v30 = vadd.f32 %v11886_v62, %v11885_v34  ;;  %v11888_v0 = vpop.f32.mrb[250].mxu0 }
 0x3b2   : > { %v11889_v51 = vpop.f32.mrb[251].mxu0 }
 0x3b3   : > { %v4659_v23 = vadd.f32 %v11887_v30, %v14904_v11  ;;  %v11890_v4 = vadd.f32 %v11889_v51, %v11888_v0  ;;  %v16793_v0 = vld [vmem:[#allocation47_spill] sm:$0xff] }
 0x3b4   : > { %5296 = vmatmul.mubr.bf16.gmra.mrb[100].mxu0 %v16787_v3 }
 0x3b5   : > { %v4662_v57 = vadd.f32 %v11890_v4, %v14904_v11  ;;  %5303 = vmatprep.mubr.bf16.mxu0 %v14772_v14  ;;  %v14990_v21 = vadd.f32 %v16788_v7, %v4659_v23  ;;  %v16791_v14 = vld [vmem:[#allocation63_spill] sm:$0xff] }
 0x3b7   : > { %v11891_v50 = vpop.f32.mrb[252].mxu0  ;;  %v14993_v19 = vadd.f32 %v16789_v56, %v4662_v57  ;;  %v16794_v56 = vld [vmem:[#allocation50_spill] sm:$0xff] }
 0x3b8   : > { %v11892_v13 = vpop.f32.mrb[253].mxu0 }
 0x3b9   : > { %v11893_v35 = vadd.f32 %v11892_v13, %v11891_v50  ;;  %v11894_v8 = vpop.f32.mrb[254].mxu0 }
 0x3ba   : > { %v11895_v55 = vpop.f32.mrb[255].mxu0 }
 0x3bb   : > { %v4667_v26 = vadd.f32 %v11893_v35, %v14904_v11  ;;  %v11896_v59 = vadd.f32 %v11895_v55, %v11894_v8 }
 0x3bc   : > { %5304 = vmatmul.mubr.bf16.gmra.mrb[104].mxu0 %v16790_v25 }
 0x3bd   : > { %v4670_v52 = vadd.f32 %v11896_v59, %v14904_v11  ;;  %5311 = vmatprep.mubr.bf16.mxu0 %v14785_v15  ;;  %v15000_v43 = vadd.f32 %v16791_v14, %v4667_v26  ;;  %v16795_v59 = vld [vmem:[#allocation53_spill] sm:$0xff] }
 0x3bf   : > { %v11977_v40 = vpop.f32.mrb[0].mxu0  ;;  %v15003_v49 = vadd.f32 %v16792_v24, %v4670_v52 }
 0x3c0   : > { %v11978_v61 = vpop.f32.mrb[1].mxu0 }
 0x3c1   : > { %v11979_v45 = vadd.f32 %v11978_v61, %v11977_v40  ;;  %v11980_v34 = vpop.f32.mrb[2].mxu0 }
 0x3c2   : > { %v11981_v41 = vpop.f32.mrb[3].mxu0 }
 0x3c3   : > { %v4805_v62 = vadd.f32 %v11979_v45, %v14916_v36  ;;  %v11982_v30 = vadd.f32 %v11981_v41, %v11980_v34 }
 0x3c4   : > { %5312 = vmatmul.mubr.bf16.gmra.mrb[108].mxu0 %v16793_v0 }
 0x3c5   : > { %v4808_v11 = vadd.f32 %v11982_v30, %v14922_v32  ;;  %5319 = vmatprep.mubr.bf16.mxu0 %v14804_v5  ;;  %v15010_v15 = vadd.f32 %v14831_v44, %v4805_v62 }
 0x3c7   : > { %v11983_v51 = vpop.f32.mrb[4].mxu0  ;;  %v15013_v23 = vadd.f32 %v14837_v47, %v4808_v11 }
 0x3c8   : > { %v11984_v4 = vpop.f32.mrb[5].mxu0 }
 0x3c9   : > { %v11985_v3 = vadd.f32 %v11984_v4, %v11983_v51  ;;  %v11986_v57 = vpop.f32.mrb[6].mxu0 }
 0x3ca   : > { %v11987_v7 = vpop.f32.mrb[7].mxu0 }
 0x3cb   : > { %v4813_v36 = vadd.f32 %v11985_v3, %v14932_v6  ;;  %v11988_v50 = vadd.f32 %v11987_v7, %v11986_v57 }
 0x3cc   : > { %5320 = vmatmul.mubr.bf16.gmra.mrb[112].mxu0 %v16794_v56 }
 0x3cd   : > { %v4816_v32 = vadd.f32 %v11988_v50, %v14937_v20  ;;  %5327 = vmatprep.mubr.bf16.mxu0 %v14817_v48  ;;  %v15020_v5 = vadd.f32 %v14845_v58, %v4813_v36 }
 0x3cf   : > { %v11989_v44 = vpop.f32.mrb[8].mxu0  ;;  %v15023_v47 = vadd.f32 %v14851_v2, %v4816_v32 }
 0x3d0   : > { %v11990_v13 = vpop.f32.mrb[9].mxu0 }
 0x3d1   : > { %v11991_v35 = vadd.f32 %v11990_v13, %v11989_v44  ;;  %v11992_v8 = vpop.f32.mrb[10].mxu0 }
 0x3d2   : > { %v11993_v55 = vpop.f32.mrb[11].mxu0 }
 0x3d3   : > { %v4821_v6 = vadd.f32 %v11991_v35, %v14946_v29  ;;  %v11994_v26 = vadd.f32 %v11993_v55, %v11992_v8 }
 0x3d4   : > { %5328 = vmatmul.mubr.bf16.gmra.mrb[116].mxu0 %v16795_v59 }
 0x3d5   : > { %v4824_v20 = vadd.f32 %v11994_v26, %v14951_v9  ;;  %v15029_v48 = vadd.f32 %v14861_v12, %v4821_v6  ;;  %v12970_v26 = vld [vmem:[%s16631_s5 + $0x8] sm:$0xff]  }
 0x3d7   : > { %v11995_v58 = vpop.f32.mrb[12].mxu0  ;;  %v15032_v25 = vadd.f32 %v14867_v37, %v4824_v20 }
 0x3d8   : > { %v11996_v2 = vpop.f32.mrb[13].mxu0 }
 0x3d9   : > { %v11997_v52 = vadd.f32 %v11996_v2, %v11995_v58  ;;  %v11998_v14 = vpop.f32.mrb[14].mxu0 }
 0x3da   : > { %v11999_v40 = vpop.f32.mrb[15].mxu0 }
 0x3db   : > { %v4829_v24 = vadd.f32 %v11997_v52, %v14960_v27  ;;  %v12000_v61 = vadd.f32 %v11999_v40, %v11998_v14  ;;  %v12971_v40 = vld [vmem:[%s16631_s5 + $0x10] sm:$0xff]  }
 0x3dd   : > { %v4832_v29 = vadd.f32 %v12000_v61, %v14963_v17  ;;  %v12169_v45 = vpop.f32.mrb[96].mxu1  ;;  %v15037_v34 = vadd.f32 %v14879_v33, %v4829_v24 }
 0x3de   : > { %v12170_v9 = vpop.f32.mrb[97].mxu1 }
 0x3df   : > { %v15039_v12 = vadd.f32 %v12170_v9, %v12169_v45  ;;  %v12001_v41 = vpop.f32.mrb[16].mxu0  ;;  %v12172_v62 = vpop.f32.mrb[98].mxu1  ;;  %v15042_v37 = vadd.f32 %v14885_v10, %v4832_v29  ;;  %v12969_v10 = vld [vmem:[%s16631_s5] sm:$0xff]  }
 0x3e0   : > { %v12002_v30 = vpop.f32.mrb[17].mxu0  ;;  %v12173_v0 = vpop.f32.mrb[99].mxu1  ;;  %12388 = vmatprep.subr.bf16.mxu0 %v12969_v10 }
 0x3e1   : > { %v12003_v11 = vadd.f32 %v12002_v30, %v12001_v41  ;;  %v15044_v51 = vadd.f32 %v12173_v0, %v12172_v62  ;;  %v12004_v27 = vpop.f32.mrb[18].mxu0  ;;  %12389 = vmatpush3.bf16.msra.mxu0 %v12969_v10 }
 0x3e2   : > { %v12005_v4 = vpop.f32.mrb[19].mxu0  ;;  %12390 = vmatprep.subr.bf16.mxu0 %v12970_v26 }
 0x3e3   : > { %v4837_v17 = vadd.f32 %v12003_v11, %v14970_v18  ;;  %v12006_v3 = vadd.f32 %v12005_v4, %v12004_v27 }
 0x3e5   : > { %v4840_v33 = vadd.f32 %v12006_v3, %v14973_v16  ;;  %v12175_v57 = vpop.f32.mrb[100].mxu1  ;;  %v15049_v7 = vadd.f32 %v14897_v60, %v4837_v17  ;;  %12391 = vmatpush3.bf16.msra.mxu0 %v12970_v26 }
 0x3e6   : > { %v12176_v36 = vpop.f32.mrb[101].mxu1  ;;  %12392 = vmatprep.subr.bf16.mxu0 %v12971_v40 }
 0x3e7   : > { %v15054_v50 = vadd.f32 %v12176_v36, %v12175_v57  ;;  %v12007_v56 = vpop.f32.mrb[20].mxu0  ;;  %v12178_v32 = vpop.f32.mrb[102].mxu1  ;;  %v15057_v44 = vadd.f32 %v14906_v38, %v4840_v33 }
 0x3e8   : > { %v12008_v18 = vpop.f32.mrb[21].mxu0  ;;  %v12179_v13 = vpop.f32.mrb[103].mxu1 }
 0x3e9   : > { %v12009_v16 = vadd.f32 %v12008_v18, %v12007_v56  ;;  %v15059_v35 = vadd.f32 %v12179_v13, %v12178_v32  ;;  %v12010_v60 = vpop.f32.mrb[22].mxu0  ;;  %12393 = vmatpush3.bf16.msra.mxu0 %v12971_v40 }
 0x3ea   : > { %v12011_v8 = vpop.f32.mrb[23].mxu0 }
 0x3eb   : > { %v4845_v55 = vadd.f32 %v12009_v16, %v14980_v42  ;;  %v12012_v6 = vadd.f32 %v12011_v8, %v12010_v60 }
 0x3ed   : > { %v4848_v59 = vadd.f32 %v12012_v6, %v14983_v28  ;;  %v12181_v38 = vpop.f32.mrb[104].mxu1  ;;  %v15067_v20 = vadd.f32 %v14919_v22, %v4845_v55 }
 0x3ee   : > { %v12182_v58 = vpop.f32.mrb[105].mxu1 }
 0x3ef   : > { %v15069_v2 = vadd.f32 %v12182_v58, %v12181_v38  ;;  %v12013_v52 = vpop.f32.mrb[24].mxu0  ;;  %v12184_v14 = vpop.f32.mrb[106].mxu1  ;;  %v15072_v42 = vadd.f32 %v14924_v54, %v4848_v59 }
 0x3f0   : > { %v12014_v24 = vpop.f32.mrb[25].mxu0  ;;  %v12185_v28 = vpop.f32.mrb[107].mxu1 }
 0x3f1   : > { %v12015_v61 = vadd.f32 %v12014_v24, %v12013_v52  ;;  %v15077_v29 = vadd.f32 %v12185_v28, %v12184_v14  ;;  %v12016_v22 = vpop.f32.mrb[26].mxu0  ;;  %v12974_v24 = vld [vmem:[%s16631_s5 + $0x28] sm:$0xff]  }
 0x3f2   : > { %v12017_v45 = vpop.f32.mrb[27].mxu0 }
 0x3f3   : > { %v4853_v9 = vadd.f32 %v12015_v61, %v14990_v21  ;;  %v12018_v41 = vadd.f32 %v12017_v45, %v12016_v22 }
 0x3f5   : > { %v4856_v62 = vadd.f32 %v12018_v41, %v14993_v19  ;;  %v12187_v54 = vpop.f32.mrb[108].mxu1  ;;  %v15082_v30 = vadd.f32 %v14934_v46, %v4853_v9  ;;  %v12972_v19 = vld [vmem:[%s16631_s5 + $0x18] sm:$0xff]  }
 0x3f6   : > { %v12188_v0 = vpop.f32.mrb[109].mxu1  ;;  %12394 = vmatprep.subr.bf16.mxu0 %v12972_v19 }
 0x3f7   : > { %v15084_v11 = vadd.f32 %v12188_v0, %v12187_v54  ;;  %v12019_v27 = vpop.f32.mrb[28].mxu0  ;;  %v12190_v4 = vpop.f32.mrb[110].mxu1  ;;  %v15087_v17 = vadd.f32 %v14939_v63, %v4856_v62  ;;  %12395 = vmatpush3.bf16.msra.mxu0 %v12972_v19 }
 0x3f8   : > { %v12020_v3 = vpop.f32.mrb[29].mxu0  ;;  %v12191_v33 = vpop.f32.mrb[111].mxu1 }
 0x3f9   : > { %v12021_v57 = vadd.f32 %v12020_v3, %v12019_v27  ;;  %v15089_v10 = vadd.f32 %v12191_v33, %v12190_v4  ;;  %v12022_v21 = vpop.f32.mrb[30].mxu0 }
 0x3fa   : > { %v12023_v46 = vpop.f32.mrb[31].mxu0 }
 0x3fb   : > { %v4861_v36 = vadd.f32 %v12021_v57, %v15000_v43  ;;  %v12024_v56 = vadd.f32 %v12023_v46, %v12022_v21  ;;  %v12973_v43 = vld [vmem:[%s16631_s5 + $0x20] sm:$0xff]  }
 0x3fc   : > { %12396 = vmatprep.subr.bf16.mxu0 %v12973_v43 }
 0x3fd   : > { %v4864_v32 = vadd.f32 %v12024_v56, %v15003_v49  ;;  %v12193_v63 = vpop.f32.mrb[112].mxu1  ;;  %v15097_v18 = vadd.f32 %v14948_v31, %v4861_v36  ;;  %12397 = vmatpush3.bf16.msra.mxu0 %v12973_v43 }
 0x3fe   : > { %v12194_v13 = vpop.f32.mrb[113].mxu1  ;;  %12398 = vmatprep.subr.bf16.mxu0 %v12974_v24 }
 0x3ff   : > { %v15099_v16 = vadd.f32 %v12194_v13, %v12193_v63  ;;  %v12105_v60 = vpop.f32.mrb[32].mxu0  ;;  %v12196_v8 = vpop.f32.mrb[114].mxu1  ;;  %v15102_v55 = vadd.f32 %v14953_v1, %v4864_v32 }
 0x400   : > { %v12106_v6 = vpop.f32.mrb[33].mxu0  ;;  %v12197_v26 = vpop.f32.mrb[115].mxu1 }
 0x401   : > { %v12107_v59 = vadd.f32 %v12106_v6, %v12105_v60  ;;  %v15107_v49 = vadd.f32 %v12197_v26, %v12196_v8  ;;  %v12108_v38 = vpop.f32.mrb[34].mxu0  ;;  %12399 = vmatpush3.bf16.msra.mxu0 %v12974_v24 }
 0x402   : > { %v12109_v31 = vpop.f32.mrb[35].mxu0 }
 0x403   : > { %v4999_v58 = vadd.f32 %v12107_v59, %v15010_v15  ;;  %v12110_v52 = vadd.f32 %v12109_v31, %v12108_v38  ;;  %v12975_v15 = vld [vmem:[%s16631_s5 + $0x30] sm:$0xff]  }
 0x404   : > { %12400 = vmatprep.subr.bf16.mxu0 %v12975_v15 }
 0x405   : > { %v5002_v14 = vadd.f32 %v12110_v52, %v15013_v23  ;;  %v12199_v1 = vpop.f32.mrb[116].mxu1  ;;  %v15112_v40 = vadd.f32 %v15039_v12, %v4999_v58  ;;  %12401 = vmatpush3.bf16.msra.mxu0 %v12975_v15 }
 0x406   : > { %v12200_v28 = vpop.f32.mrb[117].mxu1 }
 0x407   : > { %v15117_v61 = vadd.f32 %v12200_v28, %v12199_v1  ;;  %v12111_v22 = vpop.f32.mrb[36].mxu0  ;;  %v12202_v45 = vpop.f32.mrb[118].mxu1  ;;  %v15120_v9 = vadd.f32 %v15044_v51, %v5002_v14 }
 0x408   : > { %v12112_v23 = vpop.f32.mrb[37].mxu0  ;;  %v12203_v12 = vpop.f32.mrb[119].mxu1 }
 0x409   : > { %v12113_v41 = vadd.f32 %v12112_v23, %v12111_v22  ;;  %v15125_v62 = vadd.f32 %v12203_v12, %v12202_v45  ;;  %v12114_v54 = vpop.f32.mrb[38].mxu0 }
 0x40a   : > { %v12115_v0 = vpop.f32.mrb[39].mxu0 }
 0x40b   : > { %v5007_v27 = vadd.f32 %v12113_v41, %v15020_v5  ;;  %v12116_v4 = vadd.f32 %v12115_v0, %v12114_v54 }
 0x40d   : > { %v5010_v51 = vadd.f32 %v12116_v4, %v15023_v47  ;;  %v12205_v3 = vpop.f32.mrb[120].mxu1  ;;  %v15130_v33 = vadd.f32 %v15054_v50, %v5007_v27  ;;  %v12976_v47 = vld [vmem:[%s16631_s5 + $0x38] sm:$0xff]  }
 0x40e   : > { %v12206_v57 = vpop.f32.mrb[121].mxu1  ;;  %12402 = vmatprep.subr.bf16.mxu0 %v12976_v47 }
 0x40f   : > { %v15132_v21 = vadd.f32 %v12206_v57, %v12205_v3  ;;  %v12117_v19 = vpop.f32.mrb[40].mxu0  ;;  %v12208_v46 = vpop.f32.mrb[122].mxu1  ;;  %v15135_v36 = vadd.f32 %v15059_v35, %v5010_v51  ;;  %12403 = vmatpush3.bf16.msra.mxu0 %v12976_v47 }
 0x410   : > { %v12118_v56 = vpop.f32.mrb[41].mxu0  ;;  %v12209_v32 = vpop.f32.mrb[123].mxu1 }
 0x411   : > { %v12119_v63 = vadd.f32 %v12118_v56, %v12117_v19  ;;  %v15137_v5 = vadd.f32 %v12209_v32, %v12208_v46  ;;  %v12120_v13 = vpop.f32.mrb[42].mxu0 }
 0x412   : > { %v12121_v50 = vpop.f32.mrb[43].mxu0 }
 0x413   : > { %v5015_v60 = vadd.f32 %v12119_v63, %v15029_v48  ;;  %v12122_v8 = vadd.f32 %v12121_v50, %v12120_v13 }
 0x415   : > { %v5018_v43 = vadd.f32 %v12122_v8, %v15032_v25  ;;  %v12211_v35 = vpop.f32.mrb[124].mxu1  ;;  %v15145_v6 = vadd.f32 %v15069_v2, %v5015_v60 }
 0x416   : > { %v12212_v26 = vpop.f32.mrb[125].mxu1 }
 0x417   : > { %v15147_v59 = vadd.f32 %v12212_v26, %v12211_v35  ;;  %v12123_v38 = vpop.f32.mrb[44].mxu0  ;;  %v12214_v31 = vpop.f32.mrb[126].mxu1  ;;  %v15150_v58 = vadd.f32 %v15077_v29, %v5018_v43 }
 0x418   : > { %v12124_v52 = vpop.f32.mrb[45].mxu0  ;;  %v12215_v14 = vpop.f32.mrb[127].mxu1 }
 0x419   : > { %v12125_v48 = vadd.f32 %v12124_v52, %v12123_v38  ;;  %v12216_v1 = vadd.f32 %v12215_v14, %v12214_v31  ;;  %v12126_v24 = vpop.f32.mrb[46].mxu0 }
 0x41a   : > { %v12127_v28 = vpop.f32.mrb[47].mxu0 }
 0x41b   : > { %v5023_v25 = vadd.f32 %v12125_v48, %v15037_v34  ;;  %v12128_v22 = vadd.f32 %v12127_v28, %v12126_v24 }
 0x41d   : > { %v5026_v2 = vadd.f32 %v12128_v22, %v15042_v37  ;;  %v15155_v45 = vadd.f32 %v15084_v11, %v5023_v25  ;;  %v12333_v15 = vpop.f32.mrb[128].mxu1 }
 0x41e   : > { %v12334_v23 = vpop.f32.mrb[129].mxu1 }
 0x41f   : > { %v12129_v12 = vpop.f32.mrb[48].mxu0  ;;  %v15158_v29 = vadd.f32 %v15089_v10, %v5026_v2  ;;  %v15160_v41 = vadd.f32 %v12334_v23, %v12333_v15  ;;  %v12336_v54 = vpop.f32.mrb[130].mxu1 }
 0x420   : > { %v12130_v0 = vpop.f32.mrb[49].mxu0  ;;  %v12337_v27 = vpop.f32.mrb[131].mxu1 }
 0x421   : > { %v12131_v4 = vadd.f32 %v12130_v0, %v12129_v12  ;;  %v12132_v51 = vpop.f32.mrb[50].mxu0  ;;  %v15162_v34 = vadd.f32 %v12337_v27, %v12336_v54 }
 0x422   : > { %v12133_v3 = vpop.f32.mrb[51].mxu0 }
 0x423   : > { %v5031_v37 = vadd.f32 %v12131_v4, %v15049_v7  ;;  %v12134_v11 = vadd.f32 %v12133_v3, %v12132_v51 }
 0x425   : > { %v5034_v57 = vadd.f32 %v12134_v11, %v15057_v44  ;;  %v15167_v19 = vadd.f32 %v15099_v16, %v5031_v37  ;;  %v12339_v10 = vpop.f32.mrb[132].mxu1 }
 0x426   : > { %v12340_v46 = vpop.f32.mrb[133].mxu1 }
 0x427   : > { %v12135_v56 = vpop.f32.mrb[52].mxu0  ;;  %v15170_v32 = vadd.f32 %v15107_v49, %v5034_v57  ;;  %v15172_v63 = vadd.f32 %v12340_v46, %v12339_v10  ;;  %v12342_v13 = vpop.f32.mrb[134].mxu1 }
 0x428   : > { %v12136_v47 = vpop.f32.mrb[53].mxu0  ;;  %v12343_v50 = vpop.f32.mrb[135].mxu1 }
 0x429   : > { %v12137_v60 = vadd.f32 %v12136_v47, %v12135_v56  ;;  %v12138_v8 = vpop.f32.mrb[54].mxu0  ;;  %v15174_v7 = vadd.f32 %v12343_v50, %v12342_v13 }
 0x42a   : > { %v12139_v43 = vpop.f32.mrb[55].mxu0 }
 0x42b   : > { %v5039_v44 = vadd.f32 %v12137_v60, %v15067_v20  ;;  %v12140_v16 = vadd.f32 %v12139_v43, %v12138_v8 }
 0x42d   : > { %v5042_v35 = vadd.f32 %v12140_v16, %v15072_v42  ;;  %v15179_v26 = vadd.f32 %v15117_v61, %v5039_v44 }
 0x42f   : > { %v12141_v49 = vpop.f32.mrb[56].mxu0  ;;  %v15182_v38 = vadd.f32 %v15125_v62, %v5042_v35 }
 0x430   : > { %v12142_v31 = vpop.f32.mrb[57].mxu0 }
 0x431   : > { %v12143_v52 = vadd.f32 %v12142_v31, %v12141_v49  ;;  %v12144_v14 = vpop.f32.mrb[58].mxu0 }
 0x432   : > { %v12145_v48 = vpop.f32.mrb[59].mxu0 }
 0x433   : > { %v5047_v24 = vadd.f32 %v12143_v52, %v15082_v30  ;;  %v12146_v28 = vadd.f32 %v12145_v48, %v12144_v14 }
 0x435   : > { %v5050_v25 = vadd.f32 %v12146_v28, %v15087_v17  ;;  %v15187_v20 = vadd.f32 %v15132_v21, %v5047_v24 }
 0x437   : > { %v12147_v42 = vpop.f32.mrb[60].mxu0  ;;  %v15190_v61 = vadd.f32 %v15137_v5, %v5050_v25 }
 0x438   : > { %v12148_v22 = vpop.f32.mrb[61].mxu0 }
 0x439   : > { %v12149_v2 = vadd.f32 %v12148_v22, %v12147_v42  ;;  %v12150_v62 = vpop.f32.mrb[62].mxu0 }
 0x43a   : > { %v12151_v15 = vpop.f32.mrb[63].mxu0 }
 0x43b   : > { %v5055_v23 = vadd.f32 %v12149_v2, %v15097_v18  ;;  %v12152_v12 = vadd.f32 %v12151_v15, %v12150_v62 }
 0x43d   : > { %v5058_v54 = vadd.f32 %v12152_v12, %v15102_v55  ;;  %v15195_v30 = vadd.f32 %v15147_v59, %v5055_v23 }
 0x43f   : > { %v12233_v17 = vpop.f32.mrb[64].mxu0  ;;  %v15197_v0 = vadd.f32 %v12216_v1, %v5058_v54 }
 0x440   : > { %v12234_v21 = vpop.f32.mrb[65].mxu0 }
 0x441   : > { %v12235_v27 = vadd.f32 %v12234_v21, %v12233_v17  ;;  %v12236_v4 = vpop.f32.mrb[66].mxu0 }
 0x442   : > { %v12237_v5 = vpop.f32.mrb[67].mxu0 }
 0x443   : > { %v15200_v51 = vadd.f32 %v12235_v27, %v15112_v40  ;;  %v12238_v3 = vadd.f32 %v12237_v5, %v12236_v4 }
 0x445   : > { %v15203_v37 = vadd.f32 %v12238_v3, %v15120_v9 }
 0x447   : > { %v12239_v18 = vpop.f32.mrb[68].mxu0 }
 0x448   : > { %v12240_v11 = vpop.f32.mrb[69].mxu0 }
 0x449   : > { %v12241_v55 = vadd.f32 %v12240_v11, %v12239_v18  ;;  %v12242_v57 = vpop.f32.mrb[70].mxu0 }
 0x44a   : > { %v12243_v59 = vpop.f32.mrb[71].mxu0 }
 0x44b   : > { %v15206_v10 = vadd.f32 %v12241_v55, %v15130_v33  ;;  %v12244_v1 = vadd.f32 %v12243_v59, %v12242_v57 }
 0x44d   : > { %v15209_v46 = vadd.f32 %v12244_v1, %v15135_v36 }
 0x44f   : > { %v12245_v56 = vpop.f32.mrb[72].mxu0 }
 0x450   : > { %v12246_v13 = vpop.f32.mrb[73].mxu0 }
 0x451   : > { %v12247_v40 = vadd.f32 %v12246_v13, %v12245_v56  ;;  %v12248_v47 = vpop.f32.mrb[74].mxu0 }
 0x452   : > { %v12249_v50 = vpop.f32.mrb[75].mxu0 }
 0x453   : > { %v15212_v9 = vadd.f32 %v12247_v40, %v15145_v6  ;;  %v12250_v60 = vadd.f32 %v12249_v50, %v12248_v47 }
 0x455   : > { %v15215_v8 = vadd.f32 %v12250_v60, %v15150_v58 }
 0x457   : > { %v12251_v43 = vpop.f32.mrb[76].mxu0 }
 0x458   : > { %v12252_v44 = vpop.f32.mrb[77].mxu0 }
 0x459   : > { %v12253_v33 = vadd.f32 %v12252_v44, %v12251_v43  ;;  %v12254_v16 = vpop.f32.mrb[78].mxu0 }
 0x45a   : > { %v12255_v35 = vpop.f32.mrb[79].mxu0 }
 0x45b   : > { %v15218_v36 = vadd.f32 %v12253_v33, %v15155_v45  ;;  %v12256_v49 = vadd.f32 %v12255_v35, %v12254_v16 }
 0x45d   : > { %v15221_v31 = vadd.f32 %v12256_v49, %v15158_v29 }
 0x45f   : > { %v12257_v52 = vpop.f32.mrb[80].mxu0 }
 0x460   : > { %v12258_v14 = vpop.f32.mrb[81].mxu0 }
 0x461   : > { %v12259_v6 = vadd.f32 %v12258_v14, %v12257_v52  ;;  %v12260_v48 = vpop.f32.mrb[82].mxu0 }
 0x462   : > { %v12261_v24 = vpop.f32.mrb[83].mxu0 }
 0x463   : > { %v15224_v58 = vadd.f32 %v12259_v6, %v15167_v19  ;;  %v12262_v28 = vadd.f32 %v12261_v24, %v12260_v48 }
 0x465   : > { %v15227_v25 = vadd.f32 %v12262_v28, %v15170_v32 }
 0x467   : > { %v12263_v42 = vpop.f32.mrb[84].mxu0 }
 0x468   : > { %v12264_v22 = vpop.f32.mrb[85].mxu0 }
 0x469   : > { %v12265_v45 = vadd.f32 %v12264_v22, %v12263_v42  ;;  %v12266_v2 = vpop.f32.mrb[86].mxu0 }
 0x46a   : > { %v12267_v62 = vpop.f32.mrb[87].mxu0 }
 0x46b   : > { %v15230_v29 = vadd.f32 %v12265_v45, %v15179_v26  ;;  %v12268_v15 = vadd.f32 %v12267_v62, %v12266_v2 }
 0x46d   : > { %v15233_v23 = vadd.f32 %v12268_v15, %v15182_v38 }
 0x46f   : > { %v12269_v12 = vpop.f32.mrb[88].mxu0 }
 0x470   : > { %v12270_v54 = vpop.f32.mrb[89].mxu0 }
 0x471   : > { %v12271_v19 = vadd.f32 %v12270_v54, %v12269_v12  ;;  %v12272_v17 = vpop.f32.mrb[90].mxu0 }
 0x472   : > { %v12273_v21 = vpop.f32.mrb[91].mxu0 }
 0x473   : > { %v5241_v32 = vadd.f32 %v12271_v19, %v15187_v20  ;;  %v12274_v27 = vadd.f32 %v12273_v21, %v12272_v17 }
 0x475   : > { %v5244_v4 = vadd.f32 %v12274_v27, %v15190_v61  ;;  %v5338_v5 = vadd.f32 %v15160_v41, %v5241_v32 }
 0x477   : > { %v5341_v3 = vadd.f32 %v15162_v34, %v5244_v4  ;;  %v12275_v26 = vpop.f32.mrb[92].mxu0  ;;  %v5364_v11 = vmax.f32 %v5338_v5, 0.0 }
 0x478   : > { %v12276_v18 = vpop.f32.mrb[93].mxu0 }
 0x479   : > { %v5365_v55 = vmax.f32 %v5341_v3, 0.0  ;;  %v12277_v38 = vadd.f32 %v12276_v18, %v12275_v26  ;;  %v12278_v57 = vpop.f32.mrb[94].mxu0 }
 0x47a   : > { %v12279_v59 = vpop.f32.mrb[95].mxu0 }
 0x47b   : > { %v5249_v1 = vadd.f32 %v12277_v38, %v15195_v30  ;;  %v12280_v56 = vadd.f32 %v12279_v59, %v12278_v57  ;;  %v15240_v13 = vpack.c.bf16 %v5365_v55, %v5364_v11 }
 0x47d   : > { %v5252_v20 = vadd.f32 %v12280_v56, %v15197_v0  ;;  %v5346_v61 = vadd.f32 %v15172_v63, %v5249_v1 }
 0x47f   : > { %v5349_v41 = vadd.f32 %v15174_v7, %v5252_v20  ;;  %v12297_v40 = vpop.f32.mrb[96].mxu0  ;;  %v5366_v47 = vmax.f32 %v5346_v61, 0.0 }
 0x480   : > { %v12298_v34 = vpop.f32.mrb[97].mxu0 }
 0x481   : > { %v5367_v50 = vmax.f32 %v5349_v41, 0.0  ;;  %v12299_v60 = vadd.f32 %v12298_v34, %v12297_v40  ;;  %v12300_v43 = vpop.f32.mrb[98].mxu0 }
 0x482   : > { %v12301_v44 = vpop.f32.mrb[99].mxu0 }
 0x483   : > { %v15245_v33 = vpack.c.bf16 %v5367_v50, %v5366_v47  ;;  %v5290_v30 = vadd.f32 %v12299_v60, %v15200_v51  ;;  %v12302_v16 = vadd.f32 %v12301_v44, %v12300_v43 }
 0x485   : > { %v5293_v35 = vadd.f32 %v12302_v16, %v15203_v37  ;;  %v5352_v49 = vmax.f32 %v5290_v30, 0.0 }
 0x487   : > { %v5353_v0 = vmax.f32 %v5293_v35, 0.0  ;;  %v12303_v52 = vpop.f32.mrb[100].mxu0 }
 0x488   : > { %v12304_v63 = vpop.f32.mrb[101].mxu0 }
 0x489   : > { %v12305_v14 = vadd.f32 %v12304_v63, %v12303_v52  ;;  %v12306_v7 = vpop.f32.mrb[102].mxu0  ;;  %v5368_v6 = vpack.c.bf16 %v5353_v0, %v5352_v49 }
 0x48a   : > { %v12307_v48 = vpop.f32.mrb[103].mxu0 }
 0x48b   : > { %v5298_v24 = vadd.f32 %v12305_v14, %v15206_v10  ;;  %v12308_v28 = vadd.f32 %v12307_v48, %v12306_v7  ;;  %12404 = vmatprep.mubr.bf16.mxu0 %v5368_v6 }
 0x48d   : > { %v5301_v42 = vadd.f32 %v12308_v28, %v15209_v46  ;;  %v5354_v22 = vmax.f32 %v5298_v24, 0.0 }
 0x48f   : > { %v5355_v45 = vmax.f32 %v5301_v42, 0.0  ;;  %v12309_v51 = vpop.f32.mrb[104].mxu0 }
 0x490   : > { %v12310_v2 = vpop.f32.mrb[105].mxu0 }
 0x491   : > { %v5369_v62 = vpack.c.bf16 %v5355_v45, %v5354_v22  ;;  %v12311_v37 = vadd.f32 %v12310_v2, %v12309_v51  ;;  %v12312_v15 = vpop.f32.mrb[106].mxu0 }
 0x492   : > { %v12313_v12 = vpop.f32.mrb[107].mxu0 }
 0x493   : > { %v5306_v54 = vadd.f32 %v12311_v37, %v15212_v9  ;;  %v12314_v19 = vadd.f32 %v12313_v12, %v12312_v15  ;;  %12405 = vmatmul.mubr.bf16.vlgmr.msra.gmra.mrb[120].mxu0 %v5369_v62 }
 0x495   : > { %v5309_v17 = vadd.f32 %v12314_v19, %v15215_v8  ;;  %v5356_v21 = vmax.f32 %v5306_v54, 0.0 }
 0x497   : > { %v5357_v10 = vmax.f32 %v5309_v17, 0.0  ;;  %v12315_v32 = vpop.f32.mrb[108].mxu0 }
 0x498   : > { %v12316_v27 = vpop.f32.mrb[109].mxu0 }
 0x499   : > { %v12317_v4 = vadd.f32 %v12316_v27, %v12315_v32  ;;  %v12318_v46 = vpop.f32.mrb[110].mxu0  ;;  %v5370_v5 = vpack.c.bf16 %v5357_v10, %v5356_v21 }
 0x49a   : > { %v12319_v3 = vpop.f32.mrb[111].mxu0 }
 0x49b   : > { %v5314_v26 = vadd.f32 %v12317_v4, %v15218_v36  ;;  %v12320_v18 = vadd.f32 %v12319_v3, %v12318_v46  ;;  %12408 = vmatprep.mubr.bf16.mxu0 %v5370_v5 }
 0x49d   : > { %v5317_v11 = vadd.f32 %v12320_v18, %v15221_v31  ;;  %v5358_v55 = vmax.f32 %v5314_v26, 0.0 }
 0x49f   : > { %v5359_v9 = vmax.f32 %v5317_v11, 0.0  ;;  %v12321_v38 = vpop.f32.mrb[112].mxu0 }
 0x4a0   : > { %v12322_v57 = vpop.f32.mrb[113].mxu0 }
 0x4a1   : > { %v5371_v59 = vpack.c.bf16 %v5359_v9, %v5358_v55  ;;  %v12323_v8 = vadd.f32 %v12322_v57, %v12321_v38  ;;  %v12324_v1 = vpop.f32.mrb[114].mxu0 }
 0x4a2   : > { %v12325_v56 = vpop.f32.mrb[115].mxu0 }
 0x4a3   : > { %v5322_v20 = vadd.f32 %v12323_v8, %v15224_v58  ;;  %v12326_v61 = vadd.f32 %v12325_v56, %v12324_v1  ;;  %12409 = vmatmul.mubr.bf16.gmra.mrb[124].mxu0 %v5371_v59 }
 0x4a5   : > { %v5325_v41 = vadd.f32 %v12326_v61, %v15227_v25  ;;  %v5360_v40 = vmax.f32 %v5322_v20, 0.0  ;;  %v5560_v25 = vld [vmem:[%s16633_s7] sm:$0xff] }
 0x4a7   : > { %v5361_v36 = vmax.f32 %v5325_v41, 0.0  ;;  %v12327_v34 = vpop.f32.mrb[116].mxu0 }
 0x4a8   : > { %v12328_v47 = vpop.f32.mrb[117].mxu0 }
 0x4a9   : > { %v12329_v50 = vadd.f32 %v12328_v47, %v12327_v34  ;;  %v12330_v31 = vpop.f32.mrb[118].mxu0  ;;  %v5372_v60 = vpack.c.bf16 %v5361_v36, %v5360_v40 }
 0x4aa   : > { %v12331_v43 = vpop.f32.mrb[119].mxu0 }
 0x4ab   : > { %v5330_v44 = vadd.f32 %v12329_v50, %v15230_v29  ;;  %v12332_v30 = vadd.f32 %v12331_v43, %v12330_v31  ;;  %12412 = vmatprep.mubr.bf16.mxu0 %v5372_v60  ;;  %v5561_v29 = vld [vmem:[%s16633_s7 + $0x8] sm:$0xff]  ;;  %v12977_v50 = vld [vmem:[%s16797_s14] sm:$0xff]  }
 0x4ac   : > { %v12466_v0 = vpack.c.bf16 %v5561_v29, %v5560_v25  ;;  %12448 = vmatprep.subr.bf16.mxu0 %v12977_v50 }
 0x4ad   : > { %v5333_v16 = vadd.f32 %v12332_v30, %v15233_v23  ;;  %v5362_v35 = vmax.f32 %v5330_v44, 0.0  ;;  %v15270_v23 = vld [vmem:[%s16796_s13] ss:$0 sm:$0xff]  ;;  %12449 = vmatpush3.bf16.msra.mxu0 %v12977_v50 }
 0x4ae   : > { %12467 = vmatprep.subr.bf16.mxu1 %v12466_v0 }
 0x4af   : > { %v5363_v58 = vmax.f32 %v5333_v16, 0.0  ;;  %12469 = vmatpush3.bf16.msra.mxu1 %v12466_v0 }
 0x4b1   : > { %v5373_v49 = vpack.c.bf16 %v5363_v58, %v5362_v35 }
 0x4b3   : > { %12413 = vmatmul.mubr.bf16.gmra.mrb[128].mxu0 %v5373_v49 }
 0x4b4   : > { %12416 = vmatprep.mubr.bf16.mxu0 %v15240_v13 }
 0x4bb   : > { %12417 = vmatmul.mubr.bf16.gmra.mrb[132].mxu0 %v15245_v33 }
 0x566   : > { %v12406_v52 = vpop.f32.mrb[120].mxu0 }
 0x567   : > { %v5481_v13 = vpop.f32.mrb[121].mxu0  ;;  %v15276_v14 = vadd.f32 %v12406_v52, %v15270_v23 }
 0x568   : > { %v15273_v33 = vadd.f32 %v15270_v23, %v5481_v13  ;;  %v12407_v63 = vpop.f32.mrb[122].mxu0 }
 0x569   : > { %v5484_v7 = vpop.f32.mrb[123].mxu0  ;;  %v15283_v48 = vadd.f32 %v12407_v63, %v15270_v23 }
 0x56a   : > { %13362 = vtanh.f32 %v15273_v33  ;;  %v15280_v6 = vadd.f32 %v15270_v23, %v5484_v7  ;;  %v6005_v7 = vld [vmem:[#allocation8 + $0x8] sm:$0xff] }
 0x56c   : > { %13364 = vtanh.f32 %v15280_v6 }
 0x56d   : > { %13366 = vtanh.f32 %v15276_v14 }
 0x56e   : > { %13368 = vtanh.f32 %v15283_v48 }
 0x574   : > { %v15288_v24 = vpop.eup %13362 }
 0x575   : > { %12424 = vmatprep.mubr.msk.f32.mxu1 %vm5562_vm0, %v15288_v24 }
 0x576   : > { %v15292_v28 = vpop.eup %13364  ;;  %v12410_v42 = vpop.f32.mrb[124].mxu0 }
 0x577   : > { %v15294_v22 = vpop.eup %13366  ;;  %v5497_v45 = vpop.f32.mrb[125].mxu0  ;;  %12425 = vmatmul.mubr.msk.f32.vlgmr.msra.gmra.mrb[136].mxu1 %vm5562_vm0, %v15292_v28  ;;  %v15304_v62 = vadd.f32 %v12410_v42, %v15270_v23  ;;  %v6028_v42 = vld [vmem:[#allocation8 + $0xc0] sm:$0xff] }
 0x578   : > { %v15299_v51 = vadd.f32 %v15270_v23, %v5497_v45  ;;  %v12411_v2 = vpop.f32.mrb[126].mxu0  ;;  %12427 = vmatprep.mubr.msk.f32.mxu1 %vm5562_vm0, %v15294_v22  ;;  %v15306_v15 = vpop.eup %13368 }
 0x579   : > { %v5500_v37 = vpop.f32.mrb[127].mxu0  ;;  %v15315_v54 = vadd.f32 %v12411_v2, %v15270_v23  ;;  %v6044_v2 = vld [vmem:[#allocation8 + $0x140] sm:$0xff] }
 0x57a   : > { %13370 = vtanh.f32 %v15299_v51  ;;  %v15310_v12 = vadd.f32 %v15270_v23, %v5500_v37 }
 0x57b   : > { %12428 = vmatmul.mubr.msk.f32.gmra.mrb[138].mxu1 %vm5562_vm0, %v15306_v15 }
 0x57c   : > { %13372 = vtanh.f32 %v15310_v12 }
 0x57d   : > { %13374 = vtanh.f32 %v15304_v62 }
 0x57e   : > { %13376 = vtanh.f32 %v15315_v54 }
 0x584   : > { %v15320_v19 = vpop.eup %13370 }
 0x585   : > { %12430 = vmatprep.mubr.msk.f32.mxu1 %vm5562_vm0, %v15320_v19 }
 0x586   : > { %v15324_v17 = vpop.eup %13372  ;;  %v12414_v21 = vpop.f32.mrb[128].mxu0 }
 0x587   : > { %v15326_v10 = vpop.eup %13374  ;;  %v5513_v32 = vpop.f32.mrb[129].mxu0  ;;  %12431 = vmatmul.mubr.msk.f32.gmra.mrb[140].mxu1 %vm5562_vm0, %v15324_v17  ;;  %v15336_v46 = vadd.f32 %v12414_v21, %v15270_v23  ;;  %v6076_v21 = vld [vmem:[#allocation8 + $0x240] sm:$0xff] }
 0x588   : > { %v15331_v27 = vadd.f32 %v15270_v23, %v5513_v32  ;;  %v12415_v4 = vpop.f32.mrb[130].mxu0  ;;  %12433 = vmatprep.mubr.msk.f32.mxu1 %vm5562_vm0, %v15326_v10  ;;  %v15338_v3 = vpop.eup %13376 }
 0x589   : > { %v5516_v5 = vpop.f32.mrb[131].mxu0  ;;  %v15347_v18 = vadd.f32 %v12415_v4, %v15270_v23  ;;  %v6092_v4 = vld [vmem:[#allocation8 + $0x2c0] sm:$0xff] }
 0x58a   : > { %13378 = vtanh.f32 %v15331_v27  ;;  %v15342_v26 = vadd.f32 %v15270_v23, %v5516_v5 }
 0x58b   : > { %12434 = vmatmul.mubr.msk.f32.gmra.mrb[142].mxu1 %vm5562_vm0, %v15338_v3 }
 0x58c   : > { %13380 = vtanh.f32 %v15342_v26 }
 0x58d   : > { %13382 = vtanh.f32 %v15336_v46 }
 0x58e   : > { %v12418_v11 = vpop.f32.mrb[132].mxu0  ;;  %13384 = vtanh.f32 %v15347_v18 }
 0x58f   : > { %v5529_v55 = vpop.f32.mrb[133].mxu0  ;;  %v15356_v57 = vadd.f32 %v12418_v11, %v15270_v23 }
 0x590   : > { %v15353_v9 = vadd.f32 %v15270_v23, %v5529_v55  ;;  %v12419_v38 = vpop.f32.mrb[134].mxu0 }
 0x591   : > { %v5532_v59 = vpop.f32.mrb[135].mxu0  ;;  %v15365_v56 = vadd.f32 %v12419_v38, %v15270_v23 }
 0x592   : > { %13386 = vtanh.f32 %v15353_v9  ;;  %v15360_v8 = vadd.f32 %v15270_v23, %v5532_v59  ;;  %v6021_v59 = vld [vmem:[#allocation8 + $0x88] sm:$0xff] }
 0x594   : > { %v15362_v1 = vpop.eup %13378  ;;  %13388 = vtanh.f32 %v15360_v8 }
 0x595   : > { %13390 = vtanh.f32 %v15356_v57  ;;  %12436 = vmatprep.mubr.msk.f32.mxu1 %vm5562_vm0, %v15362_v1 }
 0x596   : > { %v13381_v20 = vpop.eup %13380  ;;  %13392 = vtanh.f32 %v15365_v56 }
 0x597   : > { %v13383_v61 = vpop.eup %13382  ;;  %12437 = vmatmul.mubr.msk.f32.gmra.mrb[144].mxu1 %vm5562_vm0, %v13381_v20 }
 0x598   : > { %12439 = vmatprep.mubr.msk.f32.mxu1 %vm5562_vm0, %v13383_v61  ;;  %v13385_v41 = vpop.eup %13384 }
 0x59b   : > { %12440 = vmatmul.mubr.msk.f32.gmra.mrb[146].mxu1 %vm5562_vm0, %v13385_v41 }
 0x59c   : > { %v13387_v40 = vpop.eup %13386 }
 0x59d   : > { %12442 = vmatprep.mubr.msk.f32.mxu1 %vm5562_vm0, %v13387_v40 }
 0x59e   : > { %v13389_v36 = vpop.eup %13388 }
 0x59f   : > { %v13391_v34 = vpop.eup %13390  ;;  %12443 = vmatmul.mubr.msk.f32.gmra.mrb[148].mxu1 %vm5562_vm0, %v13389_v36 }
 0x5a0   : > { %12445 = vmatprep.mubr.msk.f32.mxu1 %vm5562_vm0, %v13391_v34  ;;  %v13393_v47 = vpop.eup %13392 }
 0x5a3   : > { %12446 = vmatmul.mubr.msk.f32.gmra.mrb[150].mxu1 %vm5562_vm0, %v13393_v47 }
 0x64a   : > { %v15382_v31 = vpop.f32.mrb[136].mxu1 }
 0x64b   : > { %v15384_v60 = vpop.f32.mrb[137].mxu1 }
 0x64c   : > { %5772 = vrot.lane.b32.xlu0 %v15384_v60, %s13626_s15 }
 0x64e   : > { %v15387_v43 = vpop.f32.mrb[138].mxu1 }
 0x64f   : > { %v15389_v44 = vpop.f32.mrb[139].mxu1 }
 0x650   : > { %5774 = vrot.lane.b32.xlu0 %v15382_v31, %s13626_s15  ;;  %5776 = vrot.lane.b32.xlu1 %v15389_v44, %s13626_s15 }
 0x654   : > { %5778 = vrot.lane.b32.xlu1 %v15387_v43, %s13626_s15 }
 0x65a   : > { %v15394_v30 = vpop.f32.mrb[140].mxu1 }
 0x65b   : > { %5782 = vrot.lane.b32.xlu1 %v15394_v30, %s13626_s15  ;;  %v15397_v16 = vpop.f32.mrb[141].mxu1 }
 0x65c   : > { %5780 = vrot.lane.b32.xlu0 %v15397_v16, %s13626_s15 }
 0x65e   : > { %v15400_v35 = vpop.f32.mrb[142].mxu1 }
 0x65f   : > { %5786 = vrot.lane.b32.xlu1 %v15400_v35, %s13626_s15  ;;  %v15403_v58 = vpop.f32.mrb[143].mxu1 }
 0x660   : > { %5784 = vrot.lane.b32.xlu0 %v15403_v58, %s13626_s15 }
 0x66a   : > { %v15406_v49 = vpop.f32.mrb[144].mxu1 }
 0x66b   : > { %5790 = vrot.lane.b32.xlu1 %v15406_v49, %s13626_s15  ;;  %v15409_v25 = vpop.f32.mrb[145].mxu1 }
 0x66c   : > { %5788 = vrot.lane.b32.xlu0 %v15409_v25, %s13626_s15 }
 0x66e   : > { %v15412_v29 = vpop.f32.mrb[146].mxu1 }
 0x66f   : > { %5794 = vrot.lane.b32.xlu1 %v15412_v29, %s13626_s15  ;;  %v15415_v0 = vpop.f32.mrb[147].mxu1 }
 0x670   : > { %5792 = vrot.lane.b32.xlu0 %v15415_v0, %s13626_s15 }
 0x672   : > { %v15418_v23 = vpop.f32.mrb[148].mxu1 }
 0x673   : > { %5798 = vrot.lane.b32.xlu1 %v15418_v23, %s13626_s15  ;;  %v15421_v52 = vpop.f32.mrb[149].mxu1 }
 0x674   : > { %5796 = vrot.lane.b32.xlu0 %v15421_v52, %s13626_s15 }
 0x676   : > { %v15424_v13 = vpop.f32.mrb[150].mxu1 }
 0x677   : > { %5802 = vrot.lane.b32.xlu1 %v15424_v13, %s13626_s15  ;;  %v15427_v63 = vpop.f32.mrb[151].mxu1 }
 0x678   : > { %5800 = vrot.lane.b32.xlu0 %v15427_v63, %s13626_s15  ;;  %s16800_s15 = sld [smem:[#allocation68_spill]] }
 0x67b   : > { %10662 = vrot.lane.b32.xlu1 %v15292_v28, %s13627_s17  ;;  %v6020_v28 = vld [vmem:[#allocation8 + $0x80] sm:$0xff] }
 0x67c   : > { %10660 = vrot.lane.b32.xlu0 %v15288_v24, %s13627_s17  ;;  %v6013_v24 = vld [vmem:[#allocation8 + $0x48] sm:$0xff]  ;;  %v11456_v45 = vcombine.high %v6020_v28, %v6028_v42 }
 0x67f   : > { %10666 = vrot.lane.b32.xlu1 %v15306_v15, %s13627_s17  ;;  %v6052_v15 = vld [vmem:[#allocation8 + $0x180] sm:$0xff] }
 0x680   : > { %10664 = vrot.lane.b32.xlu0 %v15294_v22, %s13627_s17  ;;  %v11442_v22 = vcombine.high %v6005_v7, %v6013_v24 }
 0x682   : > { %6969 = vmatprep.subr.bf16.mxu0 %v11442_v22 }
 0x683   : > { %10670 = vrot.lane.b32.xlu1 %v15324_v17, %s13627_s17  ;;  %v6068_v17 = vld [vmem:[#allocation8 + $0x200] sm:$0xff] }
 0x684   : > { %10668 = vrot.lane.b32.xlu0 %v15320_v19, %s13627_s17  ;;  %v11504_v32 = vcombine.high %v6068_v17, %v6076_v21 }
 0x687   : > { %10674 = vrot.lane.b32.xlu1 %v15338_v3, %s13627_s17 }
 0x688   : > { %10672 = vrot.lane.b32.xlu0 %v15326_v10, %s13627_s17 }
 0x68b   : > { %10678 = vrot.lane.b32.xlu1 %v13381_v20, %s13627_s17  ;;  %v11441_v20 = vcombine.low %v6005_v7, %v6013_v24 }
 0x68c   : > { %10676 = vrot.lane.b32.xlu0 %v15362_v1, %s13627_s17 }
 0x68f   : > { %10682 = vrot.lane.b32.xlu1 %v13385_v41, %s13627_s17 }
 0x690   : > { %10680 = vrot.lane.b32.xlu0 %v13383_v61, %s13627_s17 }
 0x693   : > { %10686 = vrot.lane.b32.xlu1 %v13389_v36, %s13627_s17  ;;  %v6045_v36 = vld [vmem:[#allocation8 + $0x148] sm:$0xff] }
 0x694   : > { %10684 = vrot.lane.b32.xlu0 %v13387_v40, %s13627_s17  ;;  %v6037_v40 = vld [vmem:[#allocation8 + $0x108] sm:$0xff] }
 0x695   : > { %v11474_v50 = vcombine.high %v6037_v40, %v6045_v36  ;;  %v11473_v7 = vcombine.low %v6037_v40, %v6045_v36 }
 0x697   : > { %10690 = vrot.lane.b32.xlu1 %v13393_v47, %s13627_s17 }
 0x698   : > { %10688 = vrot.lane.b32.xlu0 %v13391_v34, %s13627_s17 }
 0x69b   : > { %10726 = vrot.lane.b32.xlu1 %v15280_v6, %s13627_s17 }
 0x69c   : > { %10724 = vrot.lane.b32.xlu0 %v15273_v33, %s13627_s17  ;;  %v6004_v33 = vld [vmem:[#allocation8] sm:$0xff] }
 0x69f   : > { %10730 = vrot.lane.b32.xlu1 %v15283_v48, %s13627_s17 }
 0x6a0   : > { %10728 = vrot.lane.b32.xlu0 %v15276_v14, %s13627_s17  ;;  %v6012_v14 = vld [vmem:[#allocation8 + $0x40] sm:$0xff] }
 0x6a1   : > { %v11439_v6 = vcombine.low %v6004_v33, %v6012_v14  ;;  %v11440_v48 = vcombine.high %v6004_v33, %v6012_v14 }
 0x6a3   : > { %10734 = vrot.lane.b32.xlu1 %v15310_v12, %s13627_s17  ;;  %6856 = vmatprep.subr.bf16.mxu1 %v11440_v48  ;;  %v6060_v12 = vld [vmem:[#allocation8 + $0x1c0] sm:$0xff]  ;;  %v6061_v48 = vld [vmem:[#allocation8 + $0x1c8] sm:$0xff] }
 0x6a4   : > { %10732 = vrot.lane.b32.xlu0 %v15299_v51, %s13627_s17  ;;  %v6036_v51 = vld [vmem:[#allocation8 + $0x100] sm:$0xff]  ;;  %6857 = vmatpush1.bf16.msra.mxu1 %v11439_v6  ;;  %v11488_v19 = vcombine.high %v6052_v15, %v6060_v12  ;;  %v11487_v10 = vcombine.low %v6052_v15, %v6060_v12  ;;  %v6053_v6 = vld [vmem:[#allocation8 + $0x188] sm:$0xff] }
 0x6a5   : > { %6858 = vmatprep.subr.bf16.mxu1 %v11456_v45  ;;  %v11472_v37 = vcombine.high %v6036_v51, %v6044_v2  ;;  %v11490_v22 = vcombine.high %v6053_v6, %v6061_v48  ;;  %v11489_v15 = vcombine.low %v6053_v6, %v6061_v48 }
 0x6a7   : > { %10738 = vrot.lane.b32.xlu1 %v15315_v54, %s13627_s17  ;;  %v11471_v54 = vcombine.low %v6036_v51, %v6044_v2  ;;  %v6069_v2 = vld [vmem:[#allocation8 + $0x208] sm:$0xff] }
 0x6a8   : > { %10736 = vrot.lane.b32.xlu0 %v15304_v62, %s13627_s17  ;;  %v11455_v62 = vcombine.low %v6020_v28, %v6028_v42 }
 0x6aa   : > { %6859 = vmatpush1.bf16.msra.mxu1 %v11455_v62  ;;  %v6077_v62 = vld [vmem:[#allocation8 + $0x248] sm:$0xff] }
 0x6ab   : > { %10742 = vrot.lane.b32.xlu1 %v15342_v26, %s13627_s17  ;;  %6860 = vmatprep.subr.bf16.mxu1 %v11472_v37 }
 0x6ac   : > { %10740 = vrot.lane.b32.xlu0 %v15331_v27, %s13627_s17  ;;  %v6084_v27 = vld [vmem:[#allocation8 + $0x280] sm:$0xff] }
 0x6ad   : > { %v11520_v3 = vcombine.high %v6084_v27, %v6092_v4  ;;  %v11519_v26 = vcombine.low %v6084_v27, %v6092_v4 }
 0x6ae   : > { %6861 = vmatpush1.bf16.msra.mxu1 %v11471_v54  ;;  %v11506_v54 = vcombine.high %v6069_v2, %v6077_v62 }
 0x6af   : > { %10746 = vrot.lane.b32.xlu1 %v15347_v18, %s13627_s17  ;;  %6862 = vmatprep.subr.bf16.mxu1 %v11488_v19  ;;  %v6085_v19 = vld [vmem:[#allocation8 + $0x288] sm:$0xff] }
 0x6b0   : > { %10744 = vrot.lane.b32.xlu0 %v15336_v46, %s13627_s17  ;;  %v11503_v46 = vcombine.low %v6068_v17, %v6076_v21  ;;  %v6093_v17 = vld [vmem:[#allocation8 + $0x2c8] sm:$0xff]  ;;  %v11505_v21 = vcombine.low %v6069_v2, %v6077_v62 }
 0x6b2   : > { %6863 = vmatpush1.bf16.msra.mxu1 %v11487_v10  ;;  %v11522_v10 = vcombine.high %v6085_v19, %v6093_v17 }
 0x6b3   : > { %10750 = vrot.lane.b32.xlu1 %v15360_v8, %s13627_s17  ;;  %6864 = vmatprep.subr.bf16.mxu1 %v11504_v32  ;;  %v6029_v8 = vld [vmem:[#allocation8 + $0xc8] sm:$0xff]  ;;  %v11521_v32 = vcombine.low %v6085_v19, %v6093_v17 }
 0x6b4   : > { %10748 = vrot.lane.b32.xlu0 %v15353_v9, %s13627_s17  ;;  %v11458_v41 = vcombine.high %v6021_v59, %v6029_v8  ;;  %v11457_v34 = vcombine.low %v6021_v59, %v6029_v8 }
 0x6b6   : > { %6865 = vmatpush1.bf16.msra.mxu1 %v11503_v46 }
 0x6b7   : > { %10754 = vrot.lane.b32.xlu1 %v15365_v56, %s13627_s17  ;;  %6866 = vmatprep.subr.bf16.mxu1 %v11520_v3 }
 0x6b8   : > { %10752 = vrot.lane.b32.xlu0 %v15356_v57, %s13627_s17  ;;  %s13629_s17 = smov [#allocation11]  }
 0x6b9   : > { %s13542_s29 = sshll.u32 %s13629_s17, 4  ;;  %s13543_s29 = int_to_ptr.vmem [resolvable:$false] %s13542_s29 }
 0x6ba   : > { %6867 = vmatpush1.bf16.msra.mxu1 %v11519_v26  ;;  %s13544_s24 = scalar_lea.vmem %s13543_s29, 8192 }
 0x6be   : > { %v5773_v5 = vpop.permute.xlu0 %5772 }
 0x6bf   : > { %v5820_v55 = vadd.f32 %v5773_v5, %v15384_v60 }
 0x6c2   : > { %v5775_v18 = vpop.permute.xlu0 %5774  ;;  %v5777_v11 = vpop.permute.xlu1 %5776 }
 0x6c3   : > { %v5821_v9 = vadd.f32 %v15382_v31, %v5775_v18  ;;  %v5822_v1 = vadd.f32 %v5777_v11, %v15389_v44 }
 0x6c5   : > { %v5836_v38 = vpack.c.bf16 %v5821_v9, %v5820_v55 }
 0x6c6   : > { %v5779_v57 = vpop.permute.xlu1 %5778 }
 0x6c7   : > { %v5823_v56 = vadd.f32 %v15387_v43, %v5779_v57  ;;  %12450 = vmatprep.mubr.msk.bf16.mxu0 %vm5562_vm0, %v5836_v38 }
 0x6c9   : > { %v5837_v61 = vpack.c.bf16 %v5823_v56, %v5822_v1 }
 0x6cb   : > { %12451 = vmatmul.mubr.msk.bf16.vlgmr.msra.gmra.mrb[136].mxu0 %vm5562_vm0, %v5837_v61 }
 0x6cc   : > { %6970 = vmatpush1.bf16.msra.mxu0 %v11441_v20 }
 0x6cd   : > { %v5783_v47 = vpop.permute.xlu1 %5782  ;;  %6971 = vmatprep.subr.bf16.mxu0 %v11458_v41 }
 0x6ce   : > { %v5825_v33 = vadd.f32 %v15394_v30, %v5783_v47  ;;  %v5781_v14 = vpop.permute.xlu0 %5780 }
 0x6cf   : > { %v5824_v28 = vadd.f32 %v5781_v14, %v15397_v16 }
 0x6d0   : > { %6972 = vmatpush1.bf16.msra.mxu0 %v11457_v34 }
 0x6d1   : > { %v5838_v24 = vpack.c.bf16 %v5825_v33, %v5824_v28  ;;  %v5787_v42 = vpop.permute.xlu1 %5786  ;;  %6973 = vmatprep.subr.bf16.mxu0 %v11474_v50 }
 0x6d2   : > { %v5827_v45 = vadd.f32 %v15400_v35, %v5787_v42  ;;  %v5785_v51 = vpop.permute.xlu0 %5784 }
 0x6d3   : > { %v5826_v37 = vadd.f32 %v5785_v51, %v15403_v58  ;;  %12454 = vmatprep.mubr.msk.bf16.mxu0 %vm5562_vm0, %v5838_v24 }
 0x6d4   : > { %6974 = vmatpush1.bf16.msra.mxu0 %v11473_v7 }
 0x6d5   : > { %v5839_v12 = vpack.c.bf16 %v5827_v45, %v5826_v37  ;;  %6975 = vmatprep.subr.bf16.mxu0 %v11490_v22 }
 0x6d7   : > { %12455 = vmatmul.mubr.msk.bf16.gmra.mrb[140].mxu0 %vm5562_vm0, %v5839_v12 }
 0x6d8   : > { %6976 = vmatpush1.bf16.msra.mxu0 %v11489_v15 }
 0x6d9   : > { %6977 = vmatprep.subr.bf16.mxu0 %v11506_v54 }
 0x6dc   : > { %6978 = vmatpush1.bf16.msra.mxu0 %v11505_v21 }
 0x6dd   : > { %v5791_v27 = vpop.permute.xlu1 %5790  ;;  %6979 = vmatprep.subr.bf16.mxu0 %v11522_v10 }
 0x6de   : > { %v5829_v4 = vadd.f32 %v15406_v49, %v5791_v27  ;;  %v5789_v46 = vpop.permute.xlu0 %5788 }
 0x6df   : > { %v5828_v5 = vadd.f32 %v5789_v46, %v15409_v25 }
 0x6e0   : > { %6980 = vmatpush1.bf16.msra.mxu0 %v11521_v32 }
 0x6e1   : > { %v5840_v3 = vpack.c.bf16 %v5829_v4, %v5828_v5  ;;  %v5795_v26 = vpop.permute.xlu1 %5794 }
 0x6e2   : > { %v5831_v18 = vadd.f32 %v15412_v29, %v5795_v26  ;;  %v5793_v11 = vpop.permute.xlu0 %5792 }
 0x6e3   : > { %v5830_v55 = vadd.f32 %v5793_v11, %v15415_v0  ;;  %12458 = vmatprep.mubr.msk.bf16.mxu0 %vm5562_vm0, %v5840_v3 }
 0x6e5   : > { %v5841_v9 = vpack.c.bf16 %v5831_v18, %v5830_v55  ;;  %v5799_v38 = vpop.permute.xlu1 %5798 }
 0x6e6   : > { %v5833_v57 = vadd.f32 %v15418_v23, %v5799_v38  ;;  %v5797_v59 = vpop.permute.xlu0 %5796 }
 0x6e7   : > { %v5832_v8 = vadd.f32 %v5797_v59, %v15421_v52  ;;  %12459 = vmatmul.mubr.msk.bf16.gmra.mrb[144].mxu0 %vm5562_vm0, %v5841_v9 }
 0x6e9   : > { %v5842_v1 = vpack.c.bf16 %v5833_v57, %v5832_v8  ;;  %v5803_v56 = vpop.permute.xlu1 %5802 }
 0x6ea   : > { %v5835_v20 = vadd.f32 %v15424_v13, %v5803_v56  ;;  %v5801_v61 = vpop.permute.xlu0 %5800 }
 0x6eb   : > { %v5834_v41 = vadd.f32 %v5801_v61, %v15427_v63  ;;  %12462 = vmatprep.mubr.msk.bf16.mxu0 %vm5562_vm0, %v5842_v1 }
 0x6ed   : > { %v5843_v40 = vpack.c.bf16 %v5835_v20, %v5834_v41  ;;  %v10663_v36 = vpop.permute.xlu1 %10662 }
 0x6ee   : > { %v10661_v34 = vpop.permute.xlu0 %10660  ;;  %v10774_v62 = vsel %vm10772_vm1, %v15382_v31, %v10663_v36 }
 0x6ef   : > { %12463 = vmatmul.mubr.msk.bf16.gmra.mrb[148].mxu0 %vm5562_vm0, %v5843_v40  ;;  %v10773_v15 = vsel %vm10772_vm1, %v15384_v60, %v10661_v34 }
 0x6f1   : > { %v10667_v47 = vpop.permute.xlu1 %10666 }
 0x6f2   : > { %v10665_v50 = vpop.permute.xlu0 %10664  ;;  %v10776_v21 = vsel %vm10772_vm1, %v15387_v43, %v10667_v47 }
 0x6f3   : > { %v10775_v60 = vsel %vm10772_vm1, %v15389_v44, %v10665_v50  ;;  %v6100_v50 = vld [vmem:[#allocation8 + $0x300] sm:$0xff] }
 0x6f5   : > { %v10671_v33 = vpop.permute.xlu1 %10670 }
 0x6f6   : > { %v10669_v14 = vpop.permute.xlu0 %10668  ;;  %v10778_v43 = vsel %vm10772_vm1, %v15394_v30, %v10671_v33  ;;  %v6108_v33 = vld [vmem:[#allocation8 + $0x340] sm:$0xff] }
 0x6f7   : > { %v10777_v44 = vsel %vm10772_vm1, %v15397_v16, %v10669_v14 }
 0x6f9   : > { %v10675_v6 = vpop.permute.xlu1 %10674 }
 0x6fa   : > { %v10673_v48 = vpop.permute.xlu0 %10672  ;;  %v10780_v30 = vsel %vm10772_vm1, %v15400_v35, %v10675_v6 }
 0x6fb   : > { %v10779_v16 = vsel %vm10772_vm1, %v15403_v58, %v10673_v48 }
 0x6fd   : > { %v10679_v28 = vpop.permute.xlu1 %10678 }
 0x6fe   : > { %v10677_v7 = vpop.permute.xlu0 %10676  ;;  %v10782_v35 = vsel %vm10772_vm1, %v15406_v49, %v10679_v28  ;;  %v11536_v28 = vcombine.high %v6100_v50, %v6108_v33 }
 0x6ff   : > { %v10781_v61 = vsel %vm10772_vm1, %v15409_v25, %v10677_v7  ;;  %v6101_v25 = vld [vmem:[#allocation8 + $0x308] sm:$0xff] }
 0x700   : > { %v6109_v7 = vld [vmem:[#allocation8 + $0x348] sm:$0xff]  ;;  %6868 = vmatprep.subr.bf16.mxu1 %v11536_v28  ;;  %v6046_v28 = vld [vmem:[#allocation8 + $0x150] sm:$0xff] }
 0x701   : > { %v15512_v24 = vpop.permute.xlu1 %10682 }
 0x702   : > { %v15514_v42 = vpop.permute.xlu0 %10680  ;;  %v10784_v49 = vsel %vm10772_vm1, %v15412_v29, %v15512_v24  ;;  %v11535_v29 = vcombine.low %v6100_v50, %v6108_v33  ;;  %v11537_v24 = vcombine.low %v6101_v25, %v6109_v7  ;;  %v6023_v33 = vld [vmem:[#allocation8 + $0x98] sm:$0xff] }
 0x703   : > { %v10783_v14 = vsel %vm10772_vm1, %v15415_v0, %v15514_v42 }
 0x704   : > { %6869 = vmatpush1.bf16.msra.mxu1 %v11535_v29 }
 0x705   : > { %v15516_v22 = vpop.permute.xlu1 %10686 }
 0x706   : > { %v15518_v45 = vpop.permute.xlu0 %10684  ;;  %v10786_v0 = vsel %vm10772_vm1, %v15418_v23, %v15516_v22 }
 0x707   : > { %v10785_v42 = vsel %vm10772_vm1, %v15421_v52, %v15518_v45 }
 0x709   : > { %v15520_v51 = vpop.permute.xlu1 %10690 }
 0x70a   : > { %v15522_v2 = vpop.permute.xlu0 %10688 }
 0x70d   : > { %v10727_v37 = vpop.permute.xlu1 %10726 }
 0x70e   : > { %v10791_v12 = vsel %vm10789_vm2, %v10774_v62, %v10727_v37  ;;  %v10725_v54 = vpop.permute.xlu0 %10724 }
 0x70f   : > { %v10808_v19 = vsel %vm10806_vm3, %v10791_v12, 0.0  ;;  %v10790_v31 = vsel %vm10789_vm2, %v10773_v15, %v10725_v54  ;;  %v11538_v12 = vcombine.high %v6101_v25, %v6109_v7  ;;  %v6031_v25 = vld [vmem:[#allocation8 + $0xd8] sm:$0xff] }
 0x710   : > { %10824 = vst [vmem:[%s15529_s11 + $0x8] sm:$0xff] %v10808_v19  ;;  %v10807_v17 = vsel %vm10806_vm3, %v10790_v31, 0.0  ;;  %v6116_v19 = vld [vmem:[#allocation8 + $0x380] sm:$0xff]  ;;  %v11462_v7 = vcombine.high %v6023_v33, %v6031_v25 }
 0x711   : > { %10823 = vst [vmem:[%s15529_s11] sm:$0xff] %v10807_v17  ;;  %v10731_v10 = vpop.permute.xlu1 %10730  ;;  %v6124_v31 = vld [vmem:[#allocation8 + $0x3c0] sm:$0xff]  ;;  %v6117_v17 = vld [vmem:[#allocation8 + $0x388] sm:$0xff]  ;;  %6981 = vmatprep.subr.bf16.mxu0 %v11538_v12  ;;  %v11461_v12 = vcombine.low %v6023_v33, %v6031_v25  ;;  %v6103_v33 = vld [vmem:[#allocation8 + $0x318] sm:$0xff] }
 0x712   : > { %v10793_v32 = vsel %vm10789_vm2, %v10776_v21, %v10731_v10  ;;  %v10729_v27 = vpop.permute.xlu0 %10728  ;;  %6982 = vmatpush1.bf16.msra.mxu0 %v11537_v24  ;;  %v6111_v25 = vld [vmem:[#allocation8 + $0x358] sm:$0xff] }
 0x713   : > { %v10810_v4 = vsel %vm10806_vm3, %v10793_v32, 0.0  ;;  %v10792_v46 = vsel %vm10789_vm2, %v10775_v60, %v10729_v27  ;;  %v11551_v60 = vcombine.low %v6116_v19, %v6124_v31  ;;  %v11552_v32 = vcombine.high %v6116_v19, %v6124_v31  ;;  %v6125_v27 = vld [vmem:[#allocation8 + $0x3c8] sm:$0xff]  ;;  %v6054_v31 = vld [vmem:[#allocation8 + $0x190] sm:$0xff] }
 0x714   : > { %10826 = vst [vmem:[%s15529_s11 + $0x18] sm:$0xff] %v10810_v4  ;;  %v10809_v5 = vsel %vm10806_vm3, %v10792_v46, 0.0  ;;  %v11553_v52 = vcombine.low %v6117_v17, %v6125_v27  ;;  %v11554_v45 = vcombine.high %v6117_v17, %v6125_v27  ;;  %v13628_v4 = vmov 0   ;;  %v6062_v17 = vld [vmem:[#allocation8 + $0x1d0] sm:$0xff] }
 0x715   : > { %10825 = vst [vmem:[%s15529_s11 + $0x10] sm:$0xff] %v10809_v5  ;;  %v10735_v3 = vpop.permute.xlu1 %10734  ;;  %6888 = vmatprep.mubr.bf16.mxu1 %v13628_v4  ;;  %6870 = vmatprep.subr.bf16.mxu1 %v11552_v32  ;;  %v6006_v5 = vld [vmem:[#allocation8 + $0x10] sm:$0xff]  ;;  %v6063_v32 = vld [vmem:[#allocation8 + $0x1d8] sm:$0xff] }
 0x716   : > { %v10795_v26 = vsel %vm10789_vm2, %v10778_v43, %v10735_v3  ;;  %v10733_v18 = vpop.permute.xlu0 %10732  ;;  %7001 = vmatprep.mubr.bf16.mxu0 %v13628_v4  ;;  %v6014_v43 = vld [vmem:[#allocation8 + $0x50] sm:$0xff]  ;;  %v10788_v3 = vsel %vm10772_vm1, %v15424_v13, %v15520_v51  ;;  %6983 = vmatprep.subr.bf16.mxu0 %v11554_v45  ;;  %v6007_v51 = vld [vmem:[#allocation8 + $0x18] sm:$0xff] }
 0x717   : > { %v10812_v11 = vsel %vm10806_vm3, %v10795_v26, 0.0  ;;  %v10794_v55 = vsel %vm10789_vm2, %v10777_v44, %v10733_v18  ;;  %6871 = vmatpush1.bf16.msra.mxu1 %v11551_v60  ;;  %v11443_v26 = vcombine.low %v6006_v5, %v6014_v43  ;;  %v11444_v18 = vcombine.high %v6006_v5, %v6014_v43  ;;  %6984 = vmatpush1.bf16.msra.mxu0 %v11553_v52  ;;  %v6055_v60 = vld [vmem:[#allocation8 + $0x198] sm:$0xff] }
 0x718   : > { %10828 = vst [vmem:[%s15529_s11 + $0x28] sm:$0xff] %v10812_v11  ;;  %v10811_v9 = vsel %vm10806_vm3, %v10794_v55, 0.0  ;;  %v10787_v11 = vsel %vm10772_vm1, %v15427_v63, %v15522_v2  ;;  %v15620_v63 = vld [vmem:[%s16799_s23] ss:$0 sm:$0xff]  ;;  %s16880_s23 = sld [smem:[#allocation70_spill]] }
 0x719   : > { %10827 = vst [vmem:[%s15529_s11 + $0x20] sm:$0xff] %v10811_v9  ;;  %v10739_v38 = vpop.permute.xlu1 %10738  ;;  %7082 = vmatprep.subr.bf16.mxu1 %v11444_v18  ;;  %v11494_v18 = vcombine.high %v6055_v60, %v6063_v32 }
 0x71a   : > { %v10797_v57 = vsel %vm10789_vm2, %v10780_v30, %v10739_v38  ;;  %v10737_v59 = vpop.permute.xlu0 %10736 }
 0x71b   : > { %v10814_v8 = vsel %vm10806_vm3, %v10797_v57, 0.0  ;;  %v10796_v1 = vsel %vm10789_vm2, %v10779_v16, %v10737_v59  ;;  %v6015_v16 = vld [vmem:[#allocation8 + $0x58] sm:$0xff] }
 0x71c   : > { %10830 = vst [vmem:[%s15529_s11 + $0x38] sm:$0xff] %v10814_v8  ;;  %v10813_v56 = vsel %vm10806_vm3, %v10796_v1, 0.0  ;;  %v11445_v57 = vcombine.low %v6007_v51, %v6015_v16  ;;  %v11446_v59 = vcombine.high %v6007_v51, %v6015_v16  ;;  %v6079_v51 = vld [vmem:[#allocation8 + $0x258] sm:$0xff]  ;;  %v6086_v16 = vld [vmem:[#allocation8 + $0x290] sm:$0xff] }
 0x71d   : > { %10829 = vst [vmem:[%s15529_s11 + $0x30] sm:$0xff] %v10813_v56  ;;  %v10743_v20 = vpop.permute.xlu1 %10742 }
 0x71e   : > { %v10799_v58 = vsel %vm10789_vm2, %v10782_v35, %v10743_v20  ;;  %v10741_v41 = vpop.permute.xlu0 %10740  ;;  %7195 = vmatprep.subr.bf16.mxu0 %v11446_v59  ;;  %v6087_v59 = vld [vmem:[#allocation8 + $0x298] sm:$0xff]  ;;  %s16577_s8 = scalar_lea.hbm %s16880_s23, %s11832_s9 }
 0x71f   : > { %v10816_v40 = vsel %vm10806_vm3, %v10799_v58, 0.0  ;;  %v10798_v36 = vsel %vm10789_vm2, %v10781_v61, %v10741_v41 }
 0x720   : > { %10832 = vst [vmem:[%s15529_s11 + $0x48] sm:$0xff] %v10816_v40  ;;  %v10815_v34 = vsel %vm10806_vm3, %v10798_v36, 0.0  ;;  %v6022_v36 = vld [vmem:[#allocation8 + $0x90] sm:$0xff] }
 0x721   : > { %10831 = vst [vmem:[%s15529_s11 + $0x40] sm:$0xff] %v10815_v34  ;;  %v10747_v47 = vpop.permute.xlu1 %10746  ;;  %v6030_v34 = vld [vmem:[#allocation8 + $0xd0] sm:$0xff] }
 0x722   : > { %v10801_v6 = vsel %vm10789_vm2, %v10784_v49, %v10747_v47  ;;  %v10745_v48 = vpop.permute.xlu0 %10744 }
 0x723   : > { %v10818_v62 = vsel %vm10806_vm3, %v10801_v6, 0.0  ;;  %v10800_v37 = vsel %vm10789_vm2, %v10783_v14, %v10745_v48  ;;  %v11460_v6 = vcombine.high %v6022_v36, %v6030_v34  ;;  %v6038_v48 = vld [vmem:[#allocation8 + $0x110] sm:$0xff] }
 0x724   : > { %10834 = vst [vmem:[%s15529_s11 + $0x58] sm:$0xff] %v10818_v62  ;;  %v10817_v15 = vsel %vm10806_vm3, %v10800_v37, 0.0  ;;  %v11459_v62 = vcombine.low %v6022_v36, %v6030_v34  ;;  %v11476_v29 = vcombine.high %v6038_v48, %v6046_v28 }
 0x725   : > { %10833 = vst [vmem:[%s15529_s11 + $0x50] sm:$0xff] %v10817_v15  ;;  %v10751_v54 = vpop.permute.xlu1 %10750 }
 0x726   : > { %v10803_v21 = vsel %vm10789_vm2, %v10786_v0, %v10751_v54  ;;  %v10749_v10 = vpop.permute.xlu0 %10748  ;;  %v6039_v0 = vld [vmem:[#allocation8 + $0x118] sm:$0xff] }
 0x727   : > { %v10820_v23 = vsel %vm10806_vm3, %v10803_v21, 0.0  ;;  %v10802_v22 = vsel %vm10789_vm2, %v10785_v42, %v10749_v10  ;;  %v6047_v42 = vld [vmem:[#allocation8 + $0x158] sm:$0xff] }
 0x728   : > { %10836 = vst [vmem:[%s15529_s11 + $0x68] sm:$0xff] %v10820_v23  ;;  %v10819_v46 = vsel %vm10806_vm3, %v10802_v22, 0.0  ;;  %v11475_v23 = vcombine.low %v6038_v48, %v6046_v28  ;;  %v11478_v22 = vcombine.high %v6039_v0, %v6047_v42  ;;  %v11477_v5 = vcombine.low %v6039_v0, %v6047_v42  ;;  %v6118_v28 = vld [vmem:[#allocation8 + $0x390] sm:$0xff] }
 0x729   : > { %10835 = vst [vmem:[%s15529_s11 + $0x60] sm:$0xff] %v10819_v46  ;;  %v10755_v44 = vpop.permute.xlu1 %10754  ;;  %v11492_v46 = vcombine.high %v6054_v31, %v6062_v17  ;;  %v11542_v0 = vcombine.high %v6103_v33, %v6111_v25 }
 0x72a   : > { %v10805_v55 = vsel %vm10789_vm2, %v10788_v3, %v10755_v44  ;;  %v10753_v9 = vpop.permute.xlu0 %10752  ;;  %v6070_v44 = vld [vmem:[#allocation8 + $0x210] sm:$0xff] }
 0x72b   : > { %v10822_v30 = vsel %vm10806_vm3, %v10805_v55, 0.0  ;;  %v10804_v38 = vsel %vm10789_vm2, %v10787_v11, %v10753_v9  ;;  %v11491_v9 = vcombine.low %v6054_v31, %v6062_v17  ;;  %v11541_v31 = vcombine.low %v6103_v33, %v6111_v25  ;;  %v6041_v33 = vld [vmem:[#allocation8 + $0x128] sm:$0xff] }
 0x72c   : > { %10838 = vst [vmem:[%s15529_s11 + $0x78] sm:$0xff] %v10822_v30  ;;  %v10821_v13 = vsel %vm10806_vm3, %v10804_v38, 0.0  ;;  %v11493_v38 = vcombine.low %v6055_v60, %v6063_v32  ;;  %v15656_v60 = vld [vmem:[#allocation8 + $0x20] sm:$0xff]  ;;  %v6049_v25 = vld [vmem:[#allocation8 + $0x168] sm:$0xff] }
 0x72d   : > { %10837 = vst [vmem:[%s15529_s11 + $0x70] sm:$0xff] %v10821_v13  ;;  %v6071_v13 = vld [vmem:[#allocation8 + $0x218] sm:$0xff]  ;;  %v6016_v32 = vld [vmem:[#allocation8 + $0x60] sm:$0xff]  ;;  %s10859_s11 = sshll.u32 %s16513_s18, 4  ;;  %s16579_s11 = int_to_ptr.vmem [resolvable:$true] %s10859_s11 }
 0x72e   : > { %s13538_s14 = scalar_lea.vmem %s16579_s11, 4096  ;;  %p13545_p1 = scmp.lt.s32.totalorder %s16579_s11, %s13543_s29 }
 0x72f   : > { %p13539_p3 = scmp.ne.s32.totalorder %s16579_s11, %s13538_s14  ;;  %p13546_p2 = scmp.lt.s32.totalorder %s13544_s24, %s13538_s14 }
 0x731   : > { %p13540_p7 = pnand %p13539_p3, %p13879_p5  ;;  %p13547_p13 = por %p13546_p2, %p13545_p1 }
 0x733   : > { %p13541_p12 = pneg %p13540_p7 }
 0x735   : > { %p13548_p9 = pnand %p13547_p13, %p13541_p12 }
 0x79e   : > { %v12452_v2 = vpop.f32.mrb[136].mxu0 }
 0x79f   : > { %v5926_v8 = vadd.f32 %v12452_v2, %v15620_v63  ;;  %v5917_v1 = vpop.f32.mrb[137].mxu0  ;;  %v6095_v2 = vld [vmem:[#allocation8 + $0x2d8] sm:$0xff] }
 0x7a0   : > { %v5918_v56 = vadd.f32 %v15620_v63, %v5917_v1  ;;  %v12453_v35 = vpop.f32.mrb[138].mxu0  ;;  %v11510_v1 = vcombine.high %v6071_v13, %v6079_v51 }
 0x7a1   : > { %v5929_v20 = vadd.f32 %v12453_v35, %v15620_v63  ;;  %v5920_v61 = vpop.f32.mrb[139].mxu0  ;;  %v5982_v41 = vmax.f32 %v5926_v8, 0.0  ;;  %v11509_v35 = vcombine.low %v6071_v13, %v6079_v51 }
 0x7a2   : > { %v5921_v58 = vadd.f32 %v15620_v63, %v5920_v61  ;;  %v5980_v49 = vmax.f32 %v5918_v56, 0.0  ;;  %v6110_v61 = vld [vmem:[#allocation8 + $0x350] sm:$0xff] }
 0x7a3   : > { %v5983_v40 = vmax.f32 %v5929_v20, 0.0  ;;  %v6102_v20 = vld [vmem:[#allocation8 + $0x310] sm:$0xff] }
 0x7a4   : > { %v5981_v47 = vmax.f32 %v5921_v58, 0.0  ;;  %v11526_v58 = vcombine.high %v6087_v59, %v6095_v2 }
 0x7a5   : > { %v15626_v50 = vpack.c.bf16 %v5983_v40, %v5982_v41 }
 0x7a6   : > { %v15628_v14 = vpack.c.bf16 %v5981_v47, %v5980_v49  ;;  %v11540_v49 = vcombine.high %v6102_v20, %v6110_v61  ;;  %v11525_v47 = vcombine.low %v6087_v59, %v6095_v2 }
 0x7a8   : > { %6889 = vmatmul.mubr.bf16.vlgmr.msra.gmra.mrb[152].mxu1 %v15628_v14  ;;  %7002 = vmatmul.mubr.bf16.vlgmr.msra.gmra.mrb[152].mxu0 %v15628_v14 }
 0x7a9   : > { %7083 = vmatpush1.bf16.msra.mxu1 %v11443_v26  ;;  %6898 = vmatprep.mubr.bf16.mxu1 %v13628_v4  ;;  %v6078_v26 = vld [vmem:[#allocation8 + $0x250] sm:$0xff] }
 0x7aa   : > { %v12456_v37 = vpop.f32.mrb[140].mxu0  ;;  %7011 = vmatprep.mubr.bf16.mxu0 %v13628_v4  ;;  %7084 = vmatprep.subr.bf16.mxu1 %v11460_v6  ;;  %v11508_v30 = vcombine.high %v6070_v44, %v6078_v26  ;;  %v11507_v8 = vcombine.low %v6070_v44, %v6078_v26  ;;  %v6017_v44 = vld [vmem:[#allocation8 + $0x68] sm:$0xff] }
 0x7ab   : > { %v5942_v24 = vadd.f32 %v12456_v37, %v15620_v63  ;;  %v5933_v15 = vpop.f32.mrb[141].mxu0  ;;  %7196 = vmatpush1.bf16.msra.mxu0 %v11445_v57  ;;  %v6094_v57 = vld [vmem:[#allocation8 + $0x2d0] sm:$0xff] }
 0x7ac   : > { %v5934_v54 = vadd.f32 %v15620_v63, %v5933_v15  ;;  %v12457_v19 = vpop.f32.mrb[142].mxu0  ;;  %7197 = vmatprep.subr.bf16.mxu0 %v11462_v7  ;;  %v11524_v56 = vcombine.high %v6086_v16, %v6094_v57  ;;  %v11523_v40 = vcombine.low %v6086_v16, %v6094_v57  ;;  %v6126_v7 = vld [vmem:[#allocation8 + $0x3d0] sm:$0xff] }
 0x7ad   : > { %v5945_v21 = vadd.f32 %v12457_v19, %v15620_v63  ;;  %v5936_v10 = vpop.f32.mrb[143].mxu0  ;;  %7085 = vmatpush1.bf16.msra.mxu1 %v11459_v62  ;;  %v5986_v52 = vmax.f32 %v5942_v24, 0.0  ;;  %v6127_v24 = vld [vmem:[#allocation8 + $0x3d8] sm:$0xff]  ;;  %v11556_v19 = vcombine.high %v6118_v28, %v6126_v7 }
 0x7ae   : > { %v5937_v27 = vadd.f32 %v15620_v63, %v5936_v10  ;;  %7086 = vmatprep.subr.bf16.mxu1 %v11476_v29  ;;  %v5984_v43 = vmax.f32 %v5934_v54, 0.0  ;;  %v6119_v29 = vld [vmem:[#allocation8 + $0x398] sm:$0xff] }
 0x7af   : > { %v5987_v45 = vmax.f32 %v5945_v21, 0.0  ;;  %7198 = vmatpush1.bf16.msra.mxu0 %v11461_v12  ;;  %v11539_v12 = vcombine.low %v6102_v20, %v6110_v61  ;;  %v11558_v10 = vcombine.high %v6119_v29, %v6127_v24  ;;  %v6033_v20 = vld [vmem:[#allocation8 + $0xe8] sm:$0xff] }
 0x7b0   : > { %v5985_v3 = vmax.f32 %v5937_v27, 0.0  ;;  %6899 = vmatmul.mubr.bf16.gmra.mrb[156].mxu1 %v15626_v50  ;;  %7012 = vmatmul.mubr.bf16.gmra.mrb[156].mxu0 %v15626_v50 }
 0x7b1   : > { %v15640_v11 = vpack.c.bf16 %v5987_v45, %v5986_v52  ;;  %6908 = vmatprep.mubr.bf16.mxu1 %v13628_v4  ;;  %7021 = vmatprep.mubr.bf16.mxu0 %v13628_v4  ;;  %v11555_v52 = vcombine.low %v6118_v28, %v6126_v7  ;;  %v6057_v28 = vld [vmem:[#allocation8 + $0x1a8] sm:$0xff] }
 0x7b2   : > { %v15644_v55 = vpack.c.bf16 %v5985_v3, %v5984_v43  ;;  %7087 = vmatpush1.bf16.msra.mxu1 %v11475_v23  ;;  %7199 = vmatprep.subr.bf16.mxu0 %v11478_v22  ;;  %v11448_v43 = vcombine.high %v15656_v60, %v6016_v32  ;;  %v6009_v3 = vld [vmem:[#allocation8 + $0x28] sm:$0xff] }
 0x7b3   : > { %7088 = vmatprep.subr.bf16.mxu1 %v11492_v46  ;;  %7200 = vmatpush1.bf16.msra.mxu0 %v11477_v5  ;;  %v11557_v5 = vcombine.low %v6119_v29, %v6127_v24  ;;  %v11450_v13 = vcombine.high %v6009_v3, %v6017_v44  ;;  %v6065_v7 = vld [vmem:[#allocation8 + $0x1e8] sm:$0xff]  ;;  %v11481_v24 = vcombine.low %v6041_v33, %v6049_v25 }
 0x7b4   : > { %7201 = vmatprep.subr.bf16.mxu0 %v11494_v18 }
 0x7b6   : > { %7089 = vmatpush1.bf16.msra.mxu1 %v11491_v9 }
 0x7b7   : > { %7090 = vmatprep.subr.bf16.mxu1 %v11508_v30  ;;  %7202 = vmatpush1.bf16.msra.mxu0 %v11493_v38 }
 0x7b8   : > { %6909 = vmatmul.mubr.bf16.gmra.mrb[160].mxu1 %v15644_v55  ;;  %7022 = vmatmul.mubr.bf16.gmra.mrb[160].mxu0 %v15644_v55 }
 0x7b9   : > { %6918 = vmatprep.mubr.bf16.mxu1 %v13628_v4  ;;  %7031 = vmatprep.mubr.bf16.mxu0 %v13628_v4 }
 0x7ba   : > { %v12460_v41 = vpop.f32.mrb[144].mxu0  ;;  %7091 = vmatpush1.bf16.msra.mxu1 %v11507_v8  ;;  %7203 = vmatprep.subr.bf16.mxu0 %v11510_v1  ;;  %v6032_v1 = vld [vmem:[#allocation8 + $0xe0] sm:$0xff] }
 0x7bb   : > { %v5958_v36 = vadd.f32 %v12460_v41, %v15620_v63  ;;  %v5949_v34 = vpop.f32.mrb[145].mxu0  ;;  %7092 = vmatprep.subr.bf16.mxu1 %v11524_v56  ;;  %7204 = vmatpush1.bf16.msra.mxu0 %v11509_v35  ;;  %v11447_v56 = vcombine.low %v15656_v60, %v6016_v32  ;;  %v6025_v35 = vld [vmem:[#allocation8 + $0xa8] sm:$0xff]  ;;  %v6048_v41 = vld [vmem:[#allocation8 + $0x160] sm:$0xff] }
 0x7bc   : > { %v5950_v6 = vadd.f32 %v15620_v63, %v5949_v34  ;;  %v12461_v48 = vpop.f32.mrb[146].mxu0  ;;  %7205 = vmatprep.subr.bf16.mxu0 %v11526_v58  ;;  %v6040_v58 = vld [vmem:[#allocation8 + $0x120] sm:$0xff]  ;;  %v6089_v60 = vld [vmem:[#allocation8 + $0x2a8] sm:$0xff] }
 0x7bd   : > { %v5961_v62 = vadd.f32 %v12461_v48, %v15620_v63  ;;  %v5952_v37 = vpop.f32.mrb[147].mxu0  ;;  %v5990_v42 = vmax.f32 %v5958_v36, 0.0  ;;  %v11466_v36 = vcombine.high %v6025_v35, %v6033_v20  ;;  %v6064_v48 = vld [vmem:[#allocation8 + $0x1e0] sm:$0xff]  ;;  %v6097_v32 = vld [vmem:[#allocation8 + $0x2e8] sm:$0xff] }
 0x7be   : > { %v5953_v15 = vadd.f32 %v15620_v63, %v5952_v37  ;;  %7093 = vmatpush1.bf16.msra.mxu1 %v11523_v40  ;;  %v5988_v17 = vmax.f32 %v5950_v6, 0.0  ;;  %v11449_v40 = vcombine.low %v6009_v3, %v6017_v44  ;;  %v6056_v6 = vld [vmem:[#allocation8 + $0x1a0] sm:$0xff]  ;;  %v11482_v37 = vcombine.high %v6041_v33, %v6049_v25  ;;  %v6027_v25 = vld [vmem:[#allocation8 + $0xb8] sm:$0xff] }
 0x7bf   : > { %v5991_v54 = vmax.f32 %v5961_v62, 0.0  ;;  %7094 = vmatprep.subr.bf16.mxu1 %v11540_v49  ;;  %7206 = vmatpush1.bf16.msra.mxu0 %v11525_v47  ;;  %v11480_v49 = vcombine.high %v6040_v58, %v6048_v41  ;;  %v11465_v47 = vcombine.low %v6025_v35, %v6033_v20  ;;  %v11479_v62 = vcombine.low %v6040_v58, %v6048_v41  ;;  %v6010_v35 = vld [vmem:[#allocation8 + $0x30] sm:$0xff] }
 0x7c0   : > { %v5989_v21 = vmax.f32 %v5953_v15, 0.0  ;;  %6919 = vmatmul.mubr.bf16.gmra.mrb[164].mxu1 %v15640_v11  ;;  %7032 = vmatmul.mubr.bf16.gmra.mrb[164].mxu0 %v15640_v11  ;;  %v11496_v29 = vcombine.high %v6056_v6, %v6064_v48  ;;  %v6072_v15 = vld [vmem:[#allocation8 + $0x220] sm:$0xff]  ;;  %v11530_v3 = vcombine.high %v6089_v60, %v6097_v32  ;;  %v6018_v20 = vld [vmem:[#allocation8 + $0x70] sm:$0xff] }
 0x7c1   : > { %v15658_v27 = vpack.c.bf16 %v5991_v54, %v5990_v42  ;;  %6928 = vmatprep.mubr.bf16.mxu1 %v13628_v4  ;;  %7041 = vmatprep.mubr.bf16.mxu0 %v13628_v4  ;;  %v11495_v42 = vcombine.low %v6056_v6, %v6064_v48  ;;  %v11452_v41 = vcombine.high %v6010_v35, %v6018_v20  ;;  %v6035_v6 = vld [vmem:[#allocation8 + $0xf8] sm:$0xff] }
 0x7c2   : > { %v15662_v23 = vpack.c.bf16 %v5989_v21, %v5988_v17  ;;  %v12464_v22 = vpop.f32.mrb[148].mxu0  ;;  %7095 = vmatpush1.bf16.msra.mxu1 %v11539_v12  ;;  %7207 = vmatprep.subr.bf16.mxu0 %v11542_v0  ;;  %v6080_v12 = vld [vmem:[#allocation8 + $0x260] sm:$0xff]  ;;  %v11498_v0 = vcombine.high %v6057_v28, %v6065_v7  ;;  %v6081_v17 = vld [vmem:[#allocation8 + $0x268] sm:$0xff]  ;;  %v11451_v33 = vcombine.low %v6010_v35, %v6018_v20  ;;  %v6107_v35 = vld [vmem:[#allocation8 + $0x338] sm:$0xff] }
 0x7c3   : > { %v5974_v45 = vadd.f32 %v12464_v22, %v15620_v63  ;;  %v5965_v46 = vpop.f32.mrb[149].mxu0  ;;  %7096 = vmatprep.subr.bf16.mxu1 %v11556_v19  ;;  %7208 = vmatpush1.bf16.msra.mxu0 %v11541_v31  ;;  %v11512_v54 = vcombine.high %v6072_v15, %v6080_v12  ;;  %v11497_v19 = vcombine.low %v6057_v28, %v6065_v7  ;;  %v6073_v31 = vld [vmem:[#allocation8 + $0x228] sm:$0xff]  ;;  %v6088_v21 = vld [vmem:[#allocation8 + $0x2a0] sm:$0xff]  ;;  %v6042_v28 = vld [vmem:[#allocation8 + $0x130] sm:$0xff] }
 0x7c4   : > { %v5966_v26 = vadd.f32 %v15620_v63, %v5965_v46  ;;  %v12465_v18 = vpop.f32.mrb[150].mxu0  ;;  %7209 = vmatprep.subr.bf16.mxu0 %v11558_v10  ;;  %v6096_v10 = vld [vmem:[#allocation8 + $0x2e0] sm:$0xff]  ;;  %v11511_v22 = vcombine.low %v6072_v15, %v6080_v12  ;;  %v11513_v46 = vcombine.low %v6073_v31, %v6081_v17  ;;  %v6050_v7 = vld [vmem:[#allocation8 + $0x170] sm:$0xff]  ;;  %v11469_v15 = vcombine.low %v6027_v25, %v6035_v6  ;;  %v6043_v12 = vld [vmem:[#allocation8 + $0x138] sm:$0xff] }
 0x7c5   : > { %v5977_v9 = vadd.f32 %v12465_v18, %v15620_v63  ;;  %v5968_v30 = vpop.f32.mrb[151].mxu0  ;;  %v5994_v51 = vmax.f32 %v5974_v45, 0.0  ;;  %v11528_v45 = vcombine.high %v6088_v21, %v6096_v10  ;;  %v11527_v44 = vcombine.low %v6088_v21, %v6096_v10  ;;  %v6115_v20 = vld [vmem:[#allocation8 + $0x378] sm:$0xff] }
 0x7c6   : > { %v5969_v38 = vadd.f32 %v15620_v63, %v5968_v30  ;;  %7097 = vmatpush1.bf16.msra.mxu1 %v11555_v52  ;;  %v5992_v57 = vmax.f32 %v5966_v26, 0.0  ;;  %v6024_v63 = vld [vmem:[#allocation8 + $0xa0] sm:$0xff]  ;;  %v11514_v52 = vcombine.high %v6073_v31, %v6081_v17  ;;  %v11529_v18 = vcombine.low %v6089_v60, %v6097_v32  ;;  %v6113_v30 = vld [vmem:[#allocation8 + $0x368] sm:$0xff]  ;;  %v6067_v31 = vld [vmem:[#allocation8 + $0x1f8] sm:$0xff] }
 0x7c7   : > { %v5995_v16 = vmax.f32 %v5977_v9, 0.0  ;;  %7210 = vmatpush1.bf16.msra.mxu0 %v11557_v5  ;;  %7308 = vmatprep.subr.bf16.mxu1 %v11448_v43  ;;  %v11464_v61 = vcombine.high %v6024_v63, %v6032_v1  ;;  %v11463_v34 = vcombine.low %v6024_v63, %v6032_v1  ;;  %v6104_v5 = vld [vmem:[#allocation8 + $0x320] sm:$0xff]  ;;  %v6105_v9 = vld [vmem:[#allocation8 + $0x328] sm:$0xff]  ;;  %v11483_v17 = vcombine.low %v6042_v28, %v6050_v7  ;;  %v6074_v32 = vld [vmem:[#allocation8 + $0x230] sm:$0xff] }
 0x7c8   : > { %v5993_v59 = vmax.f32 %v5969_v38, 0.0  ;;  %6929 = vmatmul.mubr.bf16.gmra.mrb[168].mxu1 %v15662_v23  ;;  %7042 = vmatmul.mubr.bf16.gmra.mrb[168].mxu0 %v15662_v23  ;;  %v6112_v43 = vld [vmem:[#allocation8 + $0x360] sm:$0xff]  ;;  %v11545_v1 = vcombine.low %v6105_v9, %v6113_v30 }
 0x7c9   : > { %v15671_v2 = vpack.c.bf16 %v5995_v16, %v5994_v51  ;;  %6938 = vmatprep.mubr.bf16.mxu1 %v13628_v4  ;;  %7051 = vmatprep.mubr.bf16.mxu0 %v13628_v4  ;;  %v11544_v26 = vcombine.high %v6104_v5, %v6112_v43  ;;  %v6120_v38 = vld [vmem:[#allocation8 + $0x3a0] sm:$0xff]  ;;  %v6121_v51 = vld [vmem:[#allocation8 + $0x3a8] sm:$0xff] }
 0x7ca   : > { %v15675_v8 = vpack.c.bf16 %v5993_v59, %v5992_v57  ;;  %7421 = vmatprep.subr.bf16.mxu0 %v11450_v13  ;;  %v6128_v13 = vld [vmem:[#allocation8 + $0x3e0] sm:$0xff]  ;;  %v6129_v16 = vld [vmem:[#allocation8 + $0x3e8] sm:$0xff]  ;;  %v11543_v57 = vcombine.low %v6104_v5, %v6112_v43  ;;  %v11546_v59 = vcombine.high %v6105_v9, %v6113_v30  ;;  %v6075_v43 = vld [vmem:[#allocation8 + $0x238] sm:$0xff] }
 0x7cb   : > { %v11560_v63 = vcombine.high %v6120_v38, %v6128_v13  ;;  %v11561_v58 = vcombine.low %v6121_v51, %v6129_v16  ;;  %v6099_v9 = vld [vmem:[#allocation8 + $0x2f8] sm:$0xff] }
 0x7d0   : > { %6939 = vmatmul.mubr.bf16.gmra.mrb[172].mxu1 %v15658_v27  ;;  %7052 = vmatmul.mubr.bf16.gmra.mrb[172].mxu0 %v15658_v27 }
 0x7d1   : > { %6948 = vmatprep.mubr.bf16.mxu1 %v13628_v4  ;;  %7061 = vmatprep.mubr.bf16.mxu0 %v13628_v4 }
 0x7d8   : > { %6949 = vmatmul.mubr.bf16.gmra.mrb[176].mxu1 %v15675_v8  ;;  %7062 = vmatmul.mubr.bf16.gmra.mrb[176].mxu0 %v15675_v8 }
 0x7d9   : > { %6958 = vmatprep.mubr.bf16.mxu1 %v13628_v4  ;;  %7071 = vmatprep.mubr.bf16.mxu0 %v13628_v4 }
 0x7e0   : > { %6959 = vmatmul.mubr.bf16.gmra.mrb[180].mxu1 %v15671_v2  ;;  %7072 = vmatmul.mubr.bf16.gmra.mrb[180].mxu0 %v15671_v2 }
 0x7e1   : > { %7114 = vmatprep.mubr.bf16.mxu1 %v13628_v4  ;;  %7227 = vmatprep.mubr.bf16.mxu0 %v13628_v4 }
 0x7e8   : > { %7115 = vmatmul.mubr.bf16.vlgmr.msra.gmra.mrb[184].mxu1 %v15628_v14  ;;  %7228 = vmatmul.mubr.bf16.vlgmr.msra.gmra.mrb[184].mxu0 %v15628_v14 }
 0x7e9   : > { %7309 = vmatpush1.bf16.msra.mxu1 %v11447_v56  ;;  %7124 = vmatprep.mubr.bf16.mxu1 %v13628_v4  ;;  %v11562_v56 = vcombine.high %v6121_v51, %v6129_v16  ;;  %v6106_v16 = vld [vmem:[#allocation8 + $0x330] sm:$0xff] }
 0x7ea   : > { %7237 = vmatprep.mubr.bf16.mxu0 %v13628_v4  ;;  %7310 = vmatprep.subr.bf16.mxu1 %v11464_v61  ;;  %v11559_v61 = vcombine.low %v6120_v38, %v6128_v13 }
 0x7eb   : > { %7422 = vmatpush1.bf16.msra.mxu0 %v11449_v40  ;;  %v6011_v40 = vld [vmem:[#allocation8 + $0x38] sm:$0xff] }
 0x7ec   : > { %7423 = vmatprep.subr.bf16.mxu0 %v11466_v36  ;;  %v6019_v36 = vld [vmem:[#allocation8 + $0x78] sm:$0xff] }
 0x7ed   : > { %7311 = vmatpush1.bf16.msra.mxu1 %v11463_v34  ;;  %v11454_v34 = vcombine.high %v6011_v40, %v6019_v36 }
 0x7ee   : > { %7312 = vmatprep.subr.bf16.mxu1 %v11480_v49  ;;  %v6026_v49 = vld [vmem:[#allocation8 + $0xb0] sm:$0xff] }
 0x7ef   : > { %7424 = vmatpush1.bf16.msra.mxu0 %v11465_v47  ;;  %v6034_v47 = vld [vmem:[#allocation8 + $0xf0] sm:$0xff] }
 0x7f0   : > { %7125 = vmatmul.mubr.bf16.gmra.mrb[188].mxu1 %v15626_v50  ;;  %7238 = vmatmul.mubr.bf16.gmra.mrb[188].mxu0 %v15626_v50  ;;  %v11468_v48 = vcombine.high %v6026_v49, %v6034_v47 }
 0x7f1   : > { %7134 = vmatprep.mubr.bf16.mxu1 %v13628_v4  ;;  %7247 = vmatprep.mubr.bf16.mxu0 %v13628_v4 }
 0x7f2   : > { %7313 = vmatpush1.bf16.msra.mxu1 %v11479_v62  ;;  %7425 = vmatprep.subr.bf16.mxu0 %v11482_v37  ;;  %v11453_v62 = vcombine.low %v6011_v40, %v6019_v36  ;;  %v11470_v37 = vcombine.high %v6027_v25, %v6035_v6  ;;  %v6131_v40 = vld [vmem:[#allocation8 + $0x3f8] sm:$0xff] }
 0x7f3   : > { %7314 = vmatprep.subr.bf16.mxu1 %v11496_v29  ;;  %7426 = vmatpush1.bf16.msra.mxu0 %v11481_v24  ;;  %v11467_v29 = vcombine.low %v6026_v49, %v6034_v47  ;;  %v11484_v24 = vcombine.high %v6042_v28, %v6050_v7  ;;  %v11549_v47 = vcombine.low %v6107_v35, %v6115_v20  ;;  %v12978_v28 = vld [vmem:[#allocation10] ss:$8 sps:$4 sm:$0xff]   ;;  %v12983_v7 = vld [vmem:[#allocation10 + $0x14] ss:$8 sps:$4 sm:$0xff]  }
 0x7f4   : > { %7427 = vmatprep.subr.bf16.mxu0 %v11498_v0  ;;  %v6051_v0 = vld [vmem:[#allocation8 + $0x178] sm:$0xff] }
 0x7f5   : > { %v11486_v21 = vcombine.high %v6043_v12, %v6051_v0  ;;  %v11485_v60 = vcombine.low %v6043_v12, %v6051_v0  ;;  %v12990_v12 = vld [vmem:[#allocation10 + $0x40] ss:$8 sps:$4 sm:$0xff]  }
 0x7f6   : > { %7315 = vmatpush1.bf16.msra.mxu1 %v11495_v42  ;;  %v6058_v42 = vld [vmem:[#allocation8 + $0x1b0] sm:$0xff]  ;;  %v15765_v0 = vld [vmem:[%s16800_s15] sm:$0xff] }
 0x7f7   : > { %7316 = vmatprep.subr.bf16.mxu1 %v11512_v54  ;;  %7428 = vmatpush1.bf16.msra.mxu0 %v11497_v19  ;;  %v6066_v54 = vld [vmem:[#allocation8 + $0x1f0] sm:$0xff]  ;;  %v6059_v19 = vld [vmem:[#allocation8 + $0x1b8] sm:$0xff] }
 0x7f8   : > { %7135 = vmatmul.mubr.bf16.gmra.mrb[192].mxu1 %v15644_v55  ;;  %7248 = vmatmul.mubr.bf16.gmra.mrb[192].mxu0 %v15644_v55  ;;  %v11500_v10 = vcombine.high %v6058_v42, %v6066_v54  ;;  %v11501_v5 = vcombine.low %v6059_v19, %v6067_v31 }
 0x7f9   : > { %7144 = vmatprep.mubr.bf16.mxu1 %v13628_v4  ;;  %7257 = vmatprep.mubr.bf16.mxu0 %v13628_v4 }
 0x7fa   : > { %7317 = vmatpush1.bf16.msra.mxu1 %v11511_v22  ;;  %7429 = vmatprep.subr.bf16.mxu0 %v11514_v52  ;;  %v6082_v22 = vld [vmem:[#allocation8 + $0x270] sm:$0xff]  ;;  %v11502_v52 = vcombine.high %v6059_v19, %v6067_v31 }
 0x7fb   : > { %7318 = vmatprep.subr.bf16.mxu1 %v11528_v45  ;;  %7430 = vmatpush1.bf16.msra.mxu0 %v11513_v46  ;;  %v11499_v45 = vcombine.low %v6058_v42, %v6066_v54  ;;  %v11516_v46 = vcombine.high %v6074_v32, %v6082_v22  ;;  %v11515_v30 = vcombine.low %v6074_v32, %v6082_v22  ;;  %v12995_v42 = vld [vmem:[#allocation10 + $0x54] ss:$8 sps:$4 sm:$0xff]   ;;  %v12993_v32 = vld [vmem:[#allocation10 + $0x50] ss:$8 sps:$4 sm:$0xff]  }
 0x7fc   : > { %7431 = vmatprep.subr.bf16.mxu0 %v11530_v3  ;;  %v6083_v3 = vld [vmem:[#allocation8 + $0x278] sm:$0xff]  ;;  %v16802_v19 = vld [vmem:[#allocation24_spill] sm:$0xff] }
 0x7fd   : > { %v11518_v38 = vcombine.high %v6075_v43, %v6083_v3  ;;  %v11517_v51 = vcombine.low %v6075_v43, %v6083_v3  ;;  %v15775_v31 = vrot.slane %v15765_v0, %v16802_v19 }
 0x7fe   : > { %7319 = vmatpush1.bf16.msra.mxu1 %v11527_v44  ;;  %v6090_v44 = vld [vmem:[#allocation8 + $0x2b0] sm:$0xff] }
 0x7ff   : > { %7320 = vmatprep.subr.bf16.mxu1 %v11544_v26  ;;  %7432 = vmatpush1.bf16.msra.mxu0 %v11529_v18  ;;  %v6098_v26 = vld [vmem:[#allocation8 + $0x2f0] sm:$0xff]  ;;  %v6091_v18 = vld [vmem:[#allocation8 + $0x2b8] sm:$0xff] }
 0x800   : > { %7145 = vmatmul.mubr.bf16.gmra.mrb[196].mxu1 %v15640_v11  ;;  %7258 = vmatmul.mubr.bf16.gmra.mrb[196].mxu0 %v15640_v11  ;;  %v11532_v13 = vcombine.high %v6090_v44, %v6098_v26 }
 0x801   : > { %7154 = vmatprep.mubr.bf16.mxu1 %v13628_v4  ;;  %7267 = vmatprep.mubr.bf16.mxu0 %v13628_v4 }
 0x802   : > { %7321 = vmatpush1.bf16.msra.mxu1 %v11543_v57  ;;  %7433 = vmatprep.subr.bf16.mxu0 %v11546_v59  ;;  %v6114_v57 = vld [vmem:[#allocation8 + $0x370] sm:$0xff]  ;;  %v11534_v59 = vcombine.high %v6091_v18, %v6099_v9 }
 0x803   : > { %7322 = vmatprep.subr.bf16.mxu1 %v11560_v63  ;;  %7434 = vmatpush1.bf16.msra.mxu0 %v11545_v1  ;;  %v11531_v63 = vcombine.low %v6090_v44, %v6098_v26  ;;  %v11548_v1 = vcombine.high %v6106_v16, %v6114_v57  ;;  %v11547_v36 = vcombine.low %v6106_v16, %v6114_v57  ;;  %v13001_v16 = vld [vmem:[#allocation10 + $0x74] ss:$8 sps:$4 sm:$0xff]  }
 0x804   : > { %7435 = vmatprep.subr.bf16.mxu0 %v11562_v56  ;;  %v11533_v56 = vcombine.low %v6091_v18, %v6099_v9  ;;  %v12996_v9 = vld [vmem:[#allocation10 + $0x60] ss:$8 sps:$4 sm:$0xff]  }
 0x806   : > { %7323 = vmatpush1.bf16.msra.mxu1 %v11559_v61  ;;  %v6122_v61 = vld [vmem:[#allocation8 + $0x3b0] sm:$0xff] }
 0x807   : > { %7436 = vmatpush1.bf16.msra.mxu0 %v11561_v58  ;;  %7534 = vmatprep.subr.bf16.mxu1 %v11452_v41  ;;  %v6130_v58 = vld [vmem:[#allocation8 + $0x3f0] sm:$0xff]  ;;  %v6123_v41 = vld [vmem:[#allocation8 + $0x3b8] sm:$0xff] }
 0x808   : > { %7155 = vmatmul.mubr.bf16.gmra.mrb[200].mxu1 %v15662_v23  ;;  %7268 = vmatmul.mubr.bf16.gmra.mrb[200].mxu0 %v15662_v23  ;;  %v11564_v49 = vcombine.high %v6122_v61, %v6130_v58  ;;  %v11563_v25 = vcombine.low %v6122_v61, %v6130_v58  ;;  %v11565_v6 = vcombine.low %v6123_v41, %v6131_v40 }
 0x809   : > { %7164 = vmatprep.mubr.bf16.mxu1 %v13628_v4  ;;  %7277 = vmatprep.mubr.bf16.mxu0 %v13628_v4 }
 0x80a   : > { %7647 = vmatprep.subr.bf16.mxu0 %v11454_v34  ;;  %v11550_v34 = vcombine.high %v6107_v35, %v6115_v20 }
 0x810   : > { %7165 = vmatmul.mubr.bf16.gmra.mrb[204].mxu1 %v15658_v27  ;;  %7278 = vmatmul.mubr.bf16.gmra.mrb[204].mxu0 %v15658_v27 }
 0x811   : > { %7174 = vmatprep.mubr.bf16.mxu1 %v13628_v4  ;;  %7287 = vmatprep.mubr.bf16.mxu0 %v13628_v4 }
 0x818   : > { %7175 = vmatmul.mubr.bf16.gmra.mrb[208].mxu1 %v15675_v8  ;;  %7288 = vmatmul.mubr.bf16.gmra.mrb[208].mxu0 %v15675_v8 }
 0x819   : > { %7184 = vmatprep.mubr.bf16.mxu1 %v13628_v4  ;;  %7297 = vmatprep.mubr.bf16.mxu0 %v13628_v4 }
 0x820   : > { %7185 = vmatmul.mubr.bf16.gmra.mrb[212].mxu1 %v15671_v2  ;;  %7298 = vmatmul.mubr.bf16.gmra.mrb[212].mxu0 %v15671_v2 }
 0x821   : > { %7340 = vmatprep.mubr.bf16.mxu1 %v13628_v4  ;;  %7453 = vmatprep.mubr.bf16.mxu0 %v13628_v4 }
 0x828   : > { %7341 = vmatmul.mubr.bf16.vlgmr.msra.gmra.mrb[216].mxu1 %v15628_v14  ;;  %7454 = vmatmul.mubr.bf16.vlgmr.msra.gmra.mrb[216].mxu0 %v15628_v14 }
 0x829   : > { %7535 = vmatpush1.bf16.msra.mxu1 %v11451_v33  ;;  %7350 = vmatprep.mubr.bf16.mxu1 %v13628_v4  ;;  %v11566_v33 = vcombine.high %v6123_v41, %v6131_v40  ;;  %v12999_v40 = vld [vmem:[#allocation10 + $0x70] ss:$8 sps:$4 sm:$0xff]  }
 0x82a   : > { %7463 = vmatprep.mubr.bf16.mxu0 %v13628_v4  ;;  %7536 = vmatprep.subr.bf16.mxu1 %v11468_v48  ;;  %v12980_v48 = vld [vmem:[#allocation10 + $0x4] ss:$8 sps:$4 sm:$0xff]  }
 0x82b   : > { %7648 = vmatpush1.bf16.msra.mxu0 %v11453_v62  ;;  %v12981_v62 = vld [vmem:[#allocation10 + $0x10] ss:$8 sps:$4 sm:$0xff]  }
 0x82c   : > { %7649 = vmatprep.subr.bf16.mxu0 %v11470_v37  ;;  %v12986_v37 = vld [vmem:[#allocation10 + $0x24] ss:$8 sps:$4 sm:$0xff]  }
 0x82d   : > { %7537 = vmatpush1.bf16.msra.mxu1 %v11467_v29  ;;  %v12984_v29 = vld [vmem:[#allocation10 + $0x20] ss:$8 sps:$4 sm:$0xff]  }
 0x82e   : > { %7538 = vmatprep.subr.bf16.mxu1 %v11484_v24  ;;  %v12989_v24 = vld [vmem:[#allocation10 + $0x34] ss:$8 sps:$4 sm:$0xff]  }
 0x82f   : > { %7650 = vmatpush1.bf16.msra.mxu0 %v11469_v15  ;;  %v12987_v15 = vld [vmem:[#allocation10 + $0x30] ss:$8 sps:$4 sm:$0xff]  }
 0x830   : > { %7351 = vmatmul.mubr.bf16.gmra.mrb[220].mxu1 %v15626_v50  ;;  %7464 = vmatmul.mubr.bf16.gmra.mrb[220].mxu0 %v15626_v50 }
 0x831   : > { %7360 = vmatprep.mubr.bf16.mxu1 %v13628_v4  ;;  %7473 = vmatprep.mubr.bf16.mxu0 %v13628_v4 }
 0x832   : > { %7539 = vmatpush1.bf16.msra.mxu1 %v11483_v17  ;;  %7651 = vmatprep.subr.bf16.mxu0 %v11486_v21  ;;  %v16803_v17 = vld [vmem:[#allocation19_spill] sm:$0xff] }
 0x833   : > { %7540 = vmatprep.subr.bf16.mxu1 %v11500_v10  ;;  %7652 = vmatpush1.bf16.msra.mxu0 %v11485_v60  ;;  %v15779_v21 = vrot.slane %v15765_v0, %v16803_v17  ;;  %v16804_v10 = vld [vmem:[#allocation25_spill] sm:$0xff] }
 0x834   : > { %7653 = vmatprep.subr.bf16.mxu0 %v11502_v52  ;;  %v15783_v60 = vrot.slane %v15765_v0, %v16804_v10 }
 0x836   : > { %7541 = vmatpush1.bf16.msra.mxu1 %v11499_v45 }
 0x837   : > { %7542 = vmatprep.subr.bf16.mxu1 %v11516_v46  ;;  %7654 = vmatpush1.bf16.msra.mxu0 %v11501_v5 }
 0x838   : > { %7361 = vmatmul.mubr.bf16.gmra.mrb[224].mxu1 %v15644_v55  ;;  %7474 = vmatmul.mubr.bf16.gmra.mrb[224].mxu0 %v15644_v55 }
 0x839   : > { %7370 = vmatprep.mubr.bf16.mxu1 %v13628_v4  ;;  %7483 = vmatprep.mubr.bf16.mxu0 %v13628_v4 }
 0x83a   : > { %7543 = vmatpush1.bf16.msra.mxu1 %v11515_v30  ;;  %7655 = vmatprep.subr.bf16.mxu0 %v11518_v38 }
 0x83b   : > { %7544 = vmatprep.subr.bf16.mxu1 %v11532_v13  ;;  %7656 = vmatpush1.bf16.msra.mxu0 %v11517_v51 }
 0x83c   : > { %7657 = vmatprep.subr.bf16.mxu0 %v11534_v59 }
 0x83e   : > { %7545 = vmatpush1.bf16.msra.mxu1 %v11531_v63 }
 0x83f   : > { %7546 = vmatprep.subr.bf16.mxu1 %v11548_v1  ;;  %7658 = vmatpush1.bf16.msra.mxu0 %v11533_v56 }
 0x840   : > { %7371 = vmatmul.mubr.bf16.gmra.mrb[228].mxu1 %v15640_v11  ;;  %7484 = vmatmul.mubr.bf16.gmra.mrb[228].mxu0 %v15640_v11 }
 0x841   : > { %7380 = vmatprep.mubr.bf16.mxu1 %v13628_v4  ;;  %7493 = vmatprep.mubr.bf16.mxu0 %v13628_v4 }
 0x842   : > { %7547 = vmatpush1.bf16.msra.mxu1 %v11547_v36  ;;  %7659 = vmatprep.subr.bf16.mxu0 %v11550_v34 }
 0x843   : > { %7548 = vmatprep.subr.bf16.mxu1 %v11564_v49  ;;  %7660 = vmatpush1.bf16.msra.mxu0 %v11549_v47  ;;  %v13004_v49 = vld [vmem:[#allocation10 + $0x84] ss:$8 sps:$4 sm:$0xff]  }
 0x844   : > { %7661 = vmatprep.subr.bf16.mxu0 %v11566_v33 }
 0x846   : > { %7549 = vmatpush1.bf16.msra.mxu1 %v11563_v25 }
 0x847   : > { %7662 = vmatpush1.bf16.msra.mxu0 %v11565_v6  ;;  %9692 = vmatprep.subr.bf16.mxu1 %v12980_v48 }
 0x848   : > { %7381 = vmatmul.mubr.bf16.gmra.mrb[232].mxu1 %v15662_v23  ;;  %7494 = vmatmul.mubr.bf16.gmra.mrb[232].mxu0 %v15662_v23 }
 0x849   : > { %7390 = vmatprep.mubr.bf16.mxu1 %v13628_v4  ;;  %7503 = vmatprep.mubr.bf16.mxu0 %v13628_v4 }
 0x850   : > { %7391 = vmatmul.mubr.bf16.gmra.mrb[236].mxu1 %v15658_v27  ;;  %7504 = vmatmul.mubr.bf16.gmra.mrb[236].mxu0 %v15658_v27 }
 0x851   : > { %7400 = vmatprep.mubr.bf16.mxu1 %v13628_v4  ;;  %7513 = vmatprep.mubr.bf16.mxu0 %v13628_v4 }
 0x858   : > { %7401 = vmatmul.mubr.bf16.gmra.mrb[240].mxu1 %v15675_v8  ;;  %7514 = vmatmul.mubr.bf16.gmra.mrb[240].mxu0 %v15675_v8 }
 0x859   : > { %7410 = vmatprep.mubr.bf16.mxu1 %v13628_v4  ;;  %7523 = vmatprep.mubr.bf16.mxu0 %v13628_v4 }
 0x860   : > { %7411 = vmatmul.mubr.bf16.gmra.mrb[244].mxu1 %v15671_v2  ;;  %7524 = vmatmul.mubr.bf16.gmra.mrb[244].mxu0 %v15671_v2 }
 0x861   : > { %7566 = vmatprep.mubr.bf16.mxu1 %v13628_v4  ;;  %7679 = vmatprep.mubr.bf16.mxu0 %v13628_v4 }
 0x868   : > { %7567 = vmatmul.mubr.bf16.vlgmr.msra.gmra.mrb[248].mxu1 %v15628_v14  ;;  %7680 = vmatmul.mubr.bf16.vlgmr.msra.gmra.mrb[248].mxu0 %v15628_v14  ;;  %v12992_v14 = vld [vmem:[#allocation10 + $0x44] ss:$8 sps:$4 sm:$0xff]  }
 0x869   : > { %9693 = vmatpush1.bf16.msra.mxu1 %v12978_v28  ;;  %7576 = vmatprep.mubr.bf16.mxu1 %v13628_v4 }
 0x86a   : > { %9694 = vmatprep.subr.bf16.mxu1 %v12983_v7  ;;  %7689 = vmatprep.mubr.bf16.mxu0 %v13628_v4 }
 0x86d   : > { %9695 = vmatpush1.bf16.msra.mxu1 %v12981_v62 }
 0x86e   : > { %9696 = vmatprep.subr.bf16.mxu1 %v12986_v37 }
 0x870   : > { %7577 = vmatmul.mubr.bf16.gmra.mrb[252].mxu1 %v15626_v50  ;;  %7690 = vmatmul.mubr.bf16.gmra.mrb[252].mxu0 %v15626_v50  ;;  %v16801_v50 = vld [vmem:[#allocation18_spill] sm:$0xff] }
 0x871   : > { %9697 = vmatpush1.bf16.msra.mxu1 %v12984_v29  ;;  %7586 = vmatprep.mubr.bf16.mxu1 %v13628_v4  ;;  %v15771_v54 = vrot.slane %v15765_v0, %v16801_v50 }
 0x872   : > { %9698 = vmatprep.subr.bf16.mxu1 %v12989_v24  ;;  %7699 = vmatprep.mubr.bf16.mxu0 %v13628_v4 }
 0x875   : > { %9699 = vmatpush1.bf16.msra.mxu1 %v12987_v15  ;;  %v13002_v15 = vld [vmem:[#allocation10 + $0x80] ss:$8 sps:$4 sm:$0xff]  }
 0x876   : > { %9700 = vmatprep.subr.bf16.mxu1 %v12992_v14 }
 0x878   : > { %7587 = vmatmul.mubr.bf16.gmra.mrb[0].mxu1 %v15644_v55  ;;  %7700 = vmatmul.mubr.bf16.gmra.mrb[0].mxu0 %v15644_v55  ;;  %v12998_v55 = vld [vmem:[#allocation10 + $0x64] ss:$8 sps:$4 sm:$0xff]  }
 0x879   : > { %9701 = vmatpush1.bf16.msra.mxu1 %v12990_v12  ;;  %7596 = vmatprep.mubr.bf16.mxu1 %v13628_v4 }
 0x87a   : > { %9702 = vmatprep.subr.bf16.mxu1 %v12995_v42  ;;  %7709 = vmatprep.mubr.bf16.mxu0 %v13628_v4 }
 0x87b   : > { %v6890_v22 = vpop.f32.mrb[152].mxu1  ;;  %v7003_v52 = vpop.f32.mrb[152].mxu0 }
 0x87c   : > { %v6891_v45 = vadd.f32 %v6890_v22, %v15771_v54  ;;  %v7004_v46 = vadd.f32 %v7003_v52, %v15775_v31  ;;  %v6892_v5 = vpop.f32.mrb[153].mxu1  ;;  %v7005_v43 = vpop.f32.mrb[153].mxu0 }
 0x87d   : > { %v6893_v3 = vadd.f32 %v6892_v5, %v15779_v21  ;;  %v7006_v44 = vadd.f32 %v7005_v43, %v15783_v60  ;;  %v6894_v26 = vpop.f32.mrb[154].mxu1  ;;  %v7007_v18 = vpop.f32.mrb[154].mxu0  ;;  %9703 = vmatpush1.bf16.msra.mxu1 %v12993_v32 }
 0x87e   : > { %v6895_v30 = vadd.f32 %v6894_v26, %v15771_v54  ;;  %v7008_v38 = vadd.f32 %v7007_v18, %v15775_v31  ;;  %v6896_v13 = vpop.f32.mrb[155].mxu1  ;;  %v7009_v51 = vpop.f32.mrb[155].mxu0  ;;  %9704 = vmatprep.subr.bf16.mxu1 %v12998_v55  ;;  %v7760_v63 = vmax.f32 %v6891_v45, 0.0  ;;  %v7762_v1 = vmax.f32 %v7004_v46, 0.0  ;;  %v13007_v55 = vld [vmem:[#allocation10 + $0x94] ss:$8 sps:$4 sm:$0xff]  }
 0x87f   : > { %v6897_v57 = vadd.f32 %v6896_v13, %v15779_v21  ;;  %v7010_v59 = vadd.f32 %v7009_v51, %v15783_v60  ;;  %v7761_v20 = vmax.f32 %v6893_v3, 0.0  ;;  %v7763_v61 = vmax.f32 %v7006_v44, 0.0  ;;  %v13010_v13 = vld [vmem:[#allocation10 + $0xa4] ss:$8 sps:$4 sm:$0xff]  }
 0x880   : > { %v7776_v56 = vmax.f32 %v6895_v30, 0.0  ;;  %v7778_v35 = vmax.f32 %v7008_v38, 0.0  ;;  %7597 = vmatmul.mubr.bf16.gmra.mrb[4].mxu1 %v15640_v11  ;;  %7710 = vmatmul.mubr.bf16.gmra.mrb[4].mxu0 %v15640_v11 }
 0x881   : > { %v7777_v58 = vmax.f32 %v6897_v57, 0.0  ;;  %v7779_v41 = vmax.f32 %v7010_v59, 0.0  ;;  %9705 = vmatpush1.bf16.msra.mxu1 %v12996_v9  ;;  %7606 = vmatprep.mubr.bf16.mxu1 %v13628_v4  ;;  %v13005_v9 = vld [vmem:[#allocation10 + $0x90] ss:$8 sps:$4 sm:$0xff]  }
 0x882   : > { %v15798_v36 = vpack.c.bf16 %v7776_v56, %v7760_v63  ;;  %v15800_v34 = vpack.c.bf16 %v7778_v35, %v7762_v1  ;;  %9706 = vmatprep.subr.bf16.mxu1 %v13001_v16  ;;  %7719 = vmatprep.mubr.bf16.mxu0 %v13628_v4 }
 0x883   : > { %v15803_v47 = vpack.c.bf16 %v7777_v58, %v7761_v20  ;;  %v15805_v33 = vpack.c.bf16 %v7779_v41, %v7763_v61  ;;  %v6900_v11 = vpop.f32.mrb[156].mxu1  ;;  %v7013_v25 = vpop.f32.mrb[156].mxu0  ;;  %v13008_v41 = vld [vmem:[#allocation10 + $0xa0] ss:$8 sps:$4 sm:$0xff]  }
 0x884   : > { %v6901_v6 = vadd.f32 %v6900_v11, %v15771_v54  ;;  %v7014_v48 = vadd.f32 %v7013_v25, %v15775_v31  ;;  %v6902_v28 = vpop.f32.mrb[157].mxu1  ;;  %v7015_v7 = vpop.f32.mrb[157].mxu0 }
 0x885   : > { %v6903_v62 = vadd.f32 %v6902_v28, %v15779_v21  ;;  %v7016_v37 = vadd.f32 %v7015_v7, %v15783_v60  ;;  %v6904_v29 = vpop.f32.mrb[158].mxu1  ;;  %v7017_v24 = vpop.f32.mrb[158].mxu0  ;;  %9707 = vmatpush1.bf16.msra.mxu1 %v12999_v40 }
 0x886   : > { %v6905_v14 = vadd.f32 %v6904_v29, %v15771_v54  ;;  %v7018_v12 = vadd.f32 %v7017_v24, %v15775_v31  ;;  %v6906_v42 = vpop.f32.mrb[159].mxu1  ;;  %v7019_v32 = vpop.f32.mrb[159].mxu0  ;;  %9708 = vmatprep.subr.bf16.mxu1 %v13004_v49  ;;  %v7792_v45 = vmax.f32 %v6901_v6, 0.0  ;;  %v7794_v46 = vmax.f32 %v7014_v48, 0.0  ;;  %v13013_v6 = vld [vmem:[#allocation10 + $0xb4] ss:$8 sps:$4 sm:$0xff]  }
 0x887   : > { %v6907_v22 = vadd.f32 %v6906_v42, %v15779_v21  ;;  %v7020_v52 = vadd.f32 %v7019_v32, %v15783_v60  ;;  %v7793_v3 = vmax.f32 %v6903_v62, 0.0  ;;  %v7795_v44 = vmax.f32 %v7016_v37, 0.0  ;;  %v13011_v42 = vld [vmem:[#allocation10 + $0xb0] ss:$8 sps:$4 sm:$0xff]  }
 0x888   : > { %v7808_v5 = vmax.f32 %v6905_v14, 0.0  ;;  %v7810_v43 = vmax.f32 %v7018_v12, 0.0  ;;  %7607 = vmatmul.mubr.bf16.gmra.mrb[8].mxu1 %v15662_v23  ;;  %7720 = vmatmul.mubr.bf16.gmra.mrb[8].mxu0 %v15662_v23 }
 0x889   : > { %v7809_v26 = vmax.f32 %v6907_v22, 0.0  ;;  %v7811_v18 = vmax.f32 %v7020_v52, 0.0  ;;  %9709 = vmatpush1.bf16.msra.mxu1 %v13002_v15  ;;  %7616 = vmatprep.mubr.bf16.mxu1 %v13628_v4  ;;  %v13016_v22 = vld [vmem:[#allocation10 + $0xc4] ss:$8 sps:$4 sm:$0xff]  }
 0x88a   : > { %v15818_v30 = vpack.c.bf16 %v7808_v5, %v7792_v45  ;;  %v15820_v38 = vpack.c.bf16 %v7810_v43, %v7794_v46  ;;  %9710 = vmatprep.subr.bf16.mxu1 %v13007_v55  ;;  %7729 = vmatprep.mubr.bf16.mxu0 %v13628_v4 }
 0x88b   : > { %v15823_v51 = vpack.c.bf16 %v7809_v26, %v7793_v3  ;;  %v15825_v16 = vpack.c.bf16 %v7811_v18, %v7795_v44  ;;  %v6910_v23 = vpop.f32.mrb[160].mxu1  ;;  %v7023_v57 = vpop.f32.mrb[160].mxu0 }
 0x88c   : > { %v6911_v59 = vadd.f32 %v6910_v23, %v15771_v54  ;;  %v7024_v63 = vadd.f32 %v7023_v57, %v15775_v31  ;;  %v6912_v1 = vpop.f32.mrb[161].mxu1  ;;  %v7025_v56 = vpop.f32.mrb[161].mxu0  ;;  %v13014_v23 = vld [vmem:[#allocation10 + $0xc0] ss:$8 sps:$4 sm:$0xff]  }
 0x88d   : > { %v6913_v35 = vadd.f32 %v6912_v1, %v15779_v21  ;;  %v7026_v20 = vadd.f32 %v7025_v56, %v15783_v60  ;;  %v6914_v61 = vpop.f32.mrb[162].mxu1  ;;  %v7027_v58 = vpop.f32.mrb[162].mxu0  ;;  %9711 = vmatpush1.bf16.msra.mxu1 %v13005_v9  ;;  %v13019_v56 = vld [vmem:[#allocation10 + $0xd4] ss:$8 sps:$4 sm:$0xff]  }
 0x88e   : > { %v6915_v40 = vadd.f32 %v6914_v61, %v15771_v54  ;;  %v7028_v49 = vadd.f32 %v7027_v58, %v15775_v31  ;;  %v6916_v11 = vpop.f32.mrb[163].mxu1  ;;  %v7029_v25 = vpop.f32.mrb[163].mxu0  ;;  %9712 = vmatprep.subr.bf16.mxu1 %v13010_v13  ;;  %v7824_v7 = vmax.f32 %v6911_v59, 0.0  ;;  %v7826_v62 = vmax.f32 %v7024_v63, 0.0 }
 0x88f   : > { %v6917_v48 = vadd.f32 %v6916_v11, %v15779_v21  ;;  %v7030_v28 = vadd.f32 %v7029_v25, %v15783_v60  ;;  %v7825_v24 = vmax.f32 %v6913_v35, 0.0  ;;  %v7827_v15 = vmax.f32 %v7026_v20, 0.0 }
 0x890   : > { %v7840_v37 = vmax.f32 %v6915_v40, 0.0  ;;  %v7842_v29 = vmax.f32 %v7028_v49, 0.0  ;;  %7617 = vmatmul.mubr.bf16.gmra.mrb[12].mxu1 %v15658_v27  ;;  %7730 = vmatmul.mubr.bf16.gmra.mrb[12].mxu0 %v15658_v27 }
 0x891   : > { %v7841_v14 = vmax.f32 %v6917_v48, 0.0  ;;  %v7843_v12 = vmax.f32 %v7030_v28, 0.0  ;;  %9713 = vmatpush1.bf16.msra.mxu1 %v13008_v41  ;;  %7626 = vmatprep.mubr.bf16.mxu1 %v13628_v4  ;;  %v13017_v48 = vld [vmem:[#allocation10 + $0xd0] ss:$8 sps:$4 sm:$0xff]  }
 0x892   : > { %v15838_v32 = vpack.c.bf16 %v7840_v37, %v7824_v7  ;;  %v15840_v55 = vpack.c.bf16 %v7842_v29, %v7826_v62  ;;  %9714 = vmatprep.subr.bf16.mxu1 %v13013_v6  ;;  %7739 = vmatprep.mubr.bf16.mxu0 %v13628_v4  ;;  %v13022_v62 = vld [vmem:[#allocation10 + $0xe4] ss:$8 sps:$4 sm:$0xff]  }
 0x893   : > { %v15843_v52 = vpack.c.bf16 %v7841_v14, %v7825_v24  ;;  %v15845_v45 = vpack.c.bf16 %v7843_v12, %v7827_v15  ;;  %v6920_v27 = vpop.f32.mrb[164].mxu1  ;;  %v7033_v46 = vpop.f32.mrb[164].mxu0 }
 0x894   : > { %v6921_v5 = vadd.f32 %v6920_v27, %v15771_v54  ;;  %v7034_v43 = vadd.f32 %v7033_v46, %v15775_v31  ;;  %v6922_v3 = vpop.f32.mrb[165].mxu1  ;;  %v7035_v44 = vpop.f32.mrb[165].mxu0 }
 0x895   : > { %v6923_v26 = vadd.f32 %v6922_v3, %v15779_v21  ;;  %v7036_v18 = vadd.f32 %v7035_v44, %v15783_v60  ;;  %v6924_v9 = vpop.f32.mrb[166].mxu1  ;;  %v7037_v13 = vpop.f32.mrb[166].mxu0  ;;  %9715 = vmatpush1.bf16.msra.mxu1 %v13011_v42 }
 0x896   : > { %v6925_v57 = vadd.f32 %v6924_v9, %v15771_v54  ;;  %v7038_v59 = vadd.f32 %v7037_v13, %v15775_v31  ;;  %v6926_v63 = vpop.f32.mrb[167].mxu1  ;;  %v7039_v1 = vpop.f32.mrb[167].mxu0  ;;  %9716 = vmatprep.subr.bf16.mxu1 %v13016_v22  ;;  %v7856_v61 = vmax.f32 %v6921_v5, 0.0  ;;  %v7858_v58 = vmax.f32 %v7034_v43, 0.0 }
 0x897   : > { %v6927_v35 = vadd.f32 %v6926_v63, %v15779_v21  ;;  %v7040_v20 = vadd.f32 %v7039_v1, %v15783_v60  ;;  %v7857_v49 = vmax.f32 %v6923_v26, 0.0  ;;  %v7859_v11 = vmax.f32 %v7036_v18, 0.0  ;;  %v13025_v18 = vld [vmem:[#allocation10 + $0xf4] ss:$8 sps:$4 sm:$0xff]  }
 0x898   : > { %v7872_v41 = vmax.f32 %v6925_v57, 0.0  ;;  %v7874_v40 = vmax.f32 %v7038_v59, 0.0  ;;  %7627 = vmatmul.mubr.bf16.gmra.mrb[16].mxu1 %v15675_v8  ;;  %7740 = vmatmul.mubr.bf16.gmra.mrb[16].mxu0 %v15675_v8 }
 0x899   : > { %v7873_v25 = vmax.f32 %v6927_v35, 0.0  ;;  %v7875_v6 = vmax.f32 %v7040_v20, 0.0  ;;  %9717 = vmatpush1.bf16.msra.mxu1 %v13014_v23  ;;  %7636 = vmatprep.mubr.bf16.mxu1 %v13628_v4 }
 0x89a   : > { %v15858_v28 = vpack.c.bf16 %v7872_v41, %v7856_v61  ;;  %v15860_v7 = vpack.c.bf16 %v7874_v40, %v7858_v58  ;;  %9718 = vmatprep.subr.bf16.mxu1 %v13019_v56  ;;  %7749 = vmatprep.mubr.bf16.mxu0 %v13628_v4  ;;  %v13020_v4 = vld [vmem:[#allocation10 + $0xe0] ss:$8 sps:$4 sm:$0xff]   ;;  %v13023_v61 = vld [vmem:[#allocation10 + $0xf0] ss:$8 sps:$4 sm:$0xff]   ;;  %v13028_v40 = vld [vmem:[#allocation10 + $0x104] ss:$8 sps:$4 sm:$0xff]  }
 0x89b   : > { %v15863_v37 = vpack.c.bf16 %v7873_v25, %v7857_v49  ;;  %v15865_v29 = vpack.c.bf16 %v7875_v6, %v7859_v11  ;;  %v6930_v8 = vpop.f32.mrb[168].mxu1  ;;  %v7043_v24 = vpop.f32.mrb[168].mxu0 }
 0x89c   : > { %v6931_v15 = vadd.f32 %v6930_v8, %v15771_v54  ;;  %v7044_v14 = vadd.f32 %v7043_v24, %v15775_v31  ;;  %v6932_v12 = vpop.f32.mrb[169].mxu1  ;;  %v7045_v42 = vpop.f32.mrb[169].mxu0 }
 0x89d   : > { %v6933_v22 = vadd.f32 %v6932_v12, %v15779_v21  ;;  %v7046_v27 = vadd.f32 %v7045_v42, %v15783_v60  ;;  %v6934_v46 = vpop.f32.mrb[170].mxu1  ;;  %v7047_v5 = vpop.f32.mrb[170].mxu0  ;;  %9719 = vmatpush1.bf16.msra.mxu1 %v13017_v48  ;;  %v13026_v12 = vld [vmem:[#allocation10 + $0x100] ss:$8 sps:$4 sm:$0xff]  }
 0x89e   : > { %v6935_v43 = vadd.f32 %v6934_v46, %v15771_v54  ;;  %v7048_v3 = vadd.f32 %v7047_v5, %v15775_v31  ;;  %v6936_v44 = vpop.f32.mrb[171].mxu1  ;;  %v7049_v26 = vpop.f32.mrb[171].mxu0  ;;  %9720 = vmatprep.subr.bf16.mxu1 %v13022_v62  ;;  %v7888_v23 = vmax.f32 %v6931_v15, 0.0  ;;  %v7890_v57 = vmax.f32 %v7044_v14, 0.0  ;;  %v13031_v5 = vld [vmem:[#allocation10 + $0x114] ss:$8 sps:$4 sm:$0xff]  }
 0x89f   : > { %v6937_v9 = vadd.f32 %v6936_v44, %v15779_v21  ;;  %v7050_v13 = vadd.f32 %v7049_v26, %v15783_v60  ;;  %v7889_v1 = vmax.f32 %v6933_v22, 0.0  ;;  %v7891_v56 = vmax.f32 %v7046_v27, 0.0 }
 0x8a0   : > { %v7904_v59 = vmax.f32 %v6935_v43, 0.0  ;;  %v7906_v63 = vmax.f32 %v7048_v3, 0.0  ;;  %7637 = vmatmul.mubr.bf16.gmra.mrb[20].mxu1 %v15671_v2  ;;  %7750 = vmatmul.mubr.bf16.gmra.mrb[20].mxu0 %v15671_v2 }
 0x8a1   : > { %v7905_v35 = vmax.f32 %v6937_v9, 0.0  ;;  %v7907_v20 = vmax.f32 %v7050_v13, 0.0  ;;  %9721 = vmatpush1.bf16.msra.mxu1 %v13020_v4  ;;  %9724 = vmatprep.mubr.bf16.mxu1 %v15803_v47 }
 0x8a2   : > { %v15878_v58 = vpack.c.bf16 %v7904_v59, %v7888_v23  ;;  %v15880_v41 = vpack.c.bf16 %v7906_v63, %v7890_v57  ;;  %9722 = vmatprep.subr.bf16.mxu1 %v13025_v18  ;;  %v13029_v59 = vld [vmem:[#allocation10 + $0x110] ss:$8 sps:$4 sm:$0xff]  }
 0x8a3   : > { %v15882_v49 = vpack.c.bf16 %v7905_v35, %v7889_v1  ;;  %v15884_v11 = vpack.c.bf16 %v7907_v20, %v7891_v56  ;;  %v6940_v25 = vpop.f32.mrb[172].mxu1  ;;  %v7053_v2 = vpop.f32.mrb[172].mxu0  ;;  %v13034_v56 = vld [vmem:[#allocation10 + $0x124] ss:$8 sps:$4 sm:$0xff]  }
 0x8a4   : > { %v6941_v6 = vadd.f32 %v6940_v25, %v15771_v54  ;;  %v7054_v48 = vadd.f32 %v7053_v2, %v15775_v31  ;;  %v6942_v62 = vpop.f32.mrb[173].mxu1  ;;  %v7055_v8 = vpop.f32.mrb[173].mxu0 }
 0x8a5   : > { %v6943_v47 = vadd.f32 %v6942_v62, %v15779_v21  ;;  %v7056_v24 = vadd.f32 %v7055_v8, %v15783_v60  ;;  %v6944_v15 = vpop.f32.mrb[174].mxu1  ;;  %v7057_v14 = vpop.f32.mrb[174].mxu0  ;;  %9723 = vmatpush1.bf16.msra.mxu1 %v13023_v61 }
 0x8a6   : > { %v6945_v42 = vadd.f32 %v6944_v15, %v15771_v54  ;;  %v7058_v22 = vadd.f32 %v7057_v14, %v15775_v31  ;;  %v6946_v27 = vpop.f32.mrb[175].mxu1  ;;  %v7059_v46 = vpop.f32.mrb[175].mxu0  ;;  %9805 = vmatprep.subr.bf16.mxu1 %v13028_v40  ;;  %v7920_v3 = vmax.f32 %v6941_v6, 0.0  ;;  %v7922_v44 = vmax.f32 %v7054_v48, 0.0 }
 0x8a7   : > { %v6947_v4 = vadd.f32 %v6946_v27, %v15779_v21  ;;  %v7060_v43 = vadd.f32 %v7059_v46, %v15783_v60  ;;  %v7921_v9 = vmax.f32 %v6943_v47, 0.0  ;;  %v7923_v13 = vmax.f32 %v7056_v24, 0.0  ;;  %v13032_v47 = vld [vmem:[#allocation10 + $0x120] ss:$8 sps:$4 sm:$0xff]  }
 0x8a8   : > { %v7936_v26 = vmax.f32 %v6945_v42, 0.0  ;;  %v7938_v18 = vmax.f32 %v7058_v22, 0.0  ;;  %9725 = vmatmul.mubr.bf16.vlgmr.msra.gmra.mrb[24].mxu1 %v15798_v36  ;;  %v13037_v42 = vld [vmem:[#allocation10 + $0x134] ss:$8 sps:$4 sm:$0xff]  }
 0x8a9   : > { %v7937_v23 = vmax.f32 %v6947_v4, 0.0  ;;  %v7939_v57 = vmax.f32 %v7060_v43, 0.0  ;;  %9734 = vmatprep.mubr.bf16.mxu1 %v15823_v51  ;;  %9806 = vmatpush1.bf16.msra.mxu1 %v13026_v12 }
 0x8aa   : > { %v15896_v63 = vpack.c.bf16 %v7936_v26, %v7920_v3  ;;  %v15898_v1 = vpack.c.bf16 %v7938_v18, %v7922_v44  ;;  %9807 = vmatprep.subr.bf16.mxu1 %v13031_v5 }
 0x8ab   : > { %v15900_v35 = vpack.c.bf16 %v7937_v23, %v7921_v9  ;;  %v15902_v20 = vpack.c.bf16 %v7939_v57, %v7923_v13  ;;  %v6950_v61 = vpop.f32.mrb[176].mxu1  ;;  %v7063_v36 = vpop.f32.mrb[176].mxu0  ;;  %v13035_v9 = vld [vmem:[#allocation10 + $0x130] ss:$8 sps:$4 sm:$0xff]   ;;  %v13040_v57 = vld [vmem:[#allocation10 + $0x144] ss:$8 sps:$4 sm:$0xff]  }
 0x8ac   : > { %v6951_v40 = vadd.f32 %v6950_v61, %v15771_v54  ;;  %v7064_v25 = vadd.f32 %v7063_v36, %v15775_v31  ;;  %v6952_v2 = vpop.f32.mrb[177].mxu1  ;;  %v7065_v51 = vpop.f32.mrb[177].mxu0 }
 0x8ad   : > { %v6953_v6 = vadd.f32 %v6952_v2, %v15779_v21  ;;  %v7066_v48 = vadd.f32 %v7065_v51, %v15783_v60  ;;  %v6954_v62 = vpop.f32.mrb[178].mxu1  ;;  %v7067_v8 = vpop.f32.mrb[178].mxu0  ;;  %9808 = vmatpush1.bf16.msra.mxu1 %v13029_v59 }
 0x8ae   : > { %v6955_v24 = vadd.f32 %v6954_v62, %v15771_v54  ;;  %v7068_v15 = vadd.f32 %v7067_v8, %v15775_v31  ;;  %v6956_v14 = vpop.f32.mrb[179].mxu1  ;;  %v7069_v12 = vpop.f32.mrb[179].mxu0  ;;  %9809 = vmatprep.subr.bf16.mxu1 %v13034_v56  ;;  %v7952_v46 = vmax.f32 %v6951_v40, 0.0  ;;  %v7954_v5 = vmax.f32 %v7064_v25, 0.0  ;;  %v13038_v62 = vld [vmem:[#allocation10 + $0x140] ss:$8 sps:$4 sm:$0xff]  }
 0x8af   : > { %v6957_v22 = vadd.f32 %v6956_v14, %v15779_v21  ;;  %v7070_v27 = vadd.f32 %v7069_v12, %v15783_v60  ;;  %v7953_v3 = vmax.f32 %v6953_v6, 0.0  ;;  %v7955_v44 = vmax.f32 %v7066_v48, 0.0  ;;  %v16805_v12 = vld [vmem:[#allocation29_spill] sm:$0xff] }
 0x8b0   : > { %v7968_v4 = vmax.f32 %v6955_v24, 0.0  ;;  %v7970_v43 = vmax.f32 %v7068_v15, 0.0  ;;  %9735 = vmatmul.mubr.bf16.gmra.mrb[28].mxu1 %v15818_v30  ;;  %v15930_v14 = vrot.slane %v15765_v0, %v16769_v39 }
 0x8b1   : > { %v7969_v26 = vmax.f32 %v6957_v22, 0.0  ;;  %v7971_v18 = vmax.f32 %v7070_v27, 0.0  ;;  %9744 = vmatprep.mubr.bf16.mxu1 %v15843_v52  ;;  %9810 = vmatpush1.bf16.msra.mxu1 %v13032_v47  ;;  %v13043_v22 = vld [vmem:[#allocation10 + $0x154] ss:$8 sps:$4 sm:$0xff]  }
 0x8b2   : > { %v15914_v13 = vpack.c.bf16 %v7968_v4, %v7952_v46  ;;  %v15916_v23 = vpack.c.bf16 %v7970_v43, %v7954_v5  ;;  %9811 = vmatprep.subr.bf16.mxu1 %v13037_v42  ;;  %v15934_v42 = vrot.slane %v15765_v0, %v16805_v12 }
 0x8b3   : > { %v15918_v59 = vpack.c.bf16 %v7969_v26, %v7953_v3  ;;  %v15920_v56 = vpack.c.bf16 %v7971_v18, %v7955_v44  ;;  %v6960_v61 = vpop.f32.mrb[180].mxu1  ;;  %v7073_v30 = vpop.f32.mrb[180].mxu0 }
 0x8b4   : > { %v6961_v36 = vadd.f32 %v6960_v61, %v15771_v54  ;;  %v7074_v40 = vadd.f32 %v7073_v30, %v15775_v31  ;;  %v6962_v25 = vpop.f32.mrb[181].mxu1  ;;  %v7075_v52 = vpop.f32.mrb[181].mxu0 }
 0x8b5   : > { %v6963_v2 = vadd.f32 %v6962_v25, %v15779_v21  ;;  %v7076_v51 = vadd.f32 %v7075_v52, %v15783_v60  ;;  %v6964_v6 = vpop.f32.mrb[182].mxu1  ;;  %v7077_v48 = vpop.f32.mrb[182].mxu0  ;;  %9812 = vmatpush1.bf16.msra.mxu1 %v13035_v9 }
 0x8b6   : > { %v6965_v8 = vadd.f32 %v6964_v6, %v15771_v54  ;;  %v7078_v47 = vadd.f32 %v7077_v48, %v15775_v31  ;;  %v6966_v24 = vpop.f32.mrb[183].mxu1  ;;  %v7079_v15 = vpop.f32.mrb[183].mxu0  ;;  %9813 = vmatprep.subr.bf16.mxu1 %v13040_v57  ;;  %v15940_v54 = vrot.slane %v15765_v0, %v16770_v53  ;;  %v16806_v31 = vld [vmem:[#allocation56_spill] sm:$0xff]  ;;  %v7984_v4 = vmax.f32 %v6961_v36, 0.0 }
 0x8b7   : > { %v6967_v27 = vadd.f32 %v6966_v24, %v15779_v21  ;;  %v7080_v46 = vadd.f32 %v7079_v15, %v15783_v60  ;;  %v15944_v5 = vrot.slane %v15765_v0, %v16806_v31  ;;  %v7986_v43 = vmax.f32 %v7074_v40, 0.0  ;;  %v13041_v60 = vld [vmem:[#allocation10 + $0x150] ss:$8 sps:$4 sm:$0xff]   ;;  %v13046_v0 = vld [vmem:[#allocation10 + $0x164] ss:$8 sps:$4 sm:$0xff]  }
 0x8b8   : > { %v8000_v3 = vmax.f32 %v6965_v8, 0.0  ;;  %v8002_v44 = vmax.f32 %v7078_v47, 0.0  ;;  %9745 = vmatmul.mubr.bf16.gmra.mrb[32].mxu1 %v15838_v32  ;;  %v7985_v26 = vmax.f32 %v6963_v2, 0.0  ;;  %v7987_v18 = vmax.f32 %v7076_v51, 0.0  ;;  %v13044_v8 = vld [vmem:[#allocation10 + $0x160] ss:$8 sps:$4 sm:$0xff]  }
 0x8b9   : > { %v8001_v9 = vmax.f32 %v6967_v27, 0.0  ;;  %v8003_v21 = vmax.f32 %v7080_v46, 0.0  ;;  %9754 = vmatprep.mubr.bf16.mxu1 %v15863_v37  ;;  %9814 = vmatpush1.bf16.msra.mxu1 %v13038_v62  ;;  %v13049_v27 = vld [vmem:[#allocation10 + $0x174] ss:$8 sps:$4 sm:$0xff]  }
 0x8ba   : > { %v15948_v57 = vpack.c.bf16 %v8000_v3, %v7984_v4  ;;  %v15950_v61 = vpack.c.bf16 %v8002_v44, %v7986_v43  ;;  %9815 = vmatprep.subr.bf16.mxu1 %v13043_v22 }
 0x8bb   : > { %v15952_v30 = vpack.c.bf16 %v8001_v9, %v7985_v26  ;;  %v15954_v36 = vpack.c.bf16 %v8003_v21, %v7987_v18  ;;  %v7116_v40 = vpop.f32.mrb[184].mxu1  ;;  %v7229_v32 = vpop.f32.mrb[184].mxu0 }
 0x8bc   : > { %v7117_v25 = vadd.f32 %v7116_v40, %v15930_v14  ;;  %v7230_v52 = vadd.f32 %v7229_v32, %v15934_v42  ;;  %v7118_v2 = vpop.f32.mrb[185].mxu1  ;;  %v7231_v37 = vpop.f32.mrb[185].mxu0  ;;  %v13047_v40 = vld [vmem:[#allocation10 + $0x170] ss:$8 sps:$4 sm:$0xff]  }
 0x8bd   : > { %v7119_v51 = vadd.f32 %v7118_v2, %v15940_v54  ;;  %v7232_v6 = vadd.f32 %v7231_v37, %v15944_v5  ;;  %v7120_v48 = vpop.f32.mrb[186].mxu1  ;;  %v7233_v62 = vpop.f32.mrb[186].mxu0  ;;  %9816 = vmatpush1.bf16.msra.mxu1 %v13041_v60  ;;  %v13052_v2 = vld [vmem:[#allocation10 + $0x184] ss:$8 sps:$4 sm:$0xff]  }
 0x8be   : > { %v7121_v47 = vadd.f32 %v7120_v48, %v15930_v14  ;;  %v7234_v24 = vadd.f32 %v7233_v62, %v15934_v42  ;;  %v7122_v15 = vpop.f32.mrb[187].mxu1  ;;  %v7235_v22 = vpop.f32.mrb[187].mxu0  ;;  %9817 = vmatprep.subr.bf16.mxu1 %v13046_v0  ;;  %v7764_v43 = vmax.f32 %v7117_v25, 0.0  ;;  %v7766_v3 = vmax.f32 %v7230_v52, 0.0 }
 0x8bf   : > { %v7123_v46 = vadd.f32 %v7122_v15, %v15940_v54  ;;  %v7236_v4 = vadd.f32 %v7235_v22, %v15944_v5  ;;  %v7765_v18 = vmax.f32 %v7119_v51, 0.0  ;;  %v7767_v9 = vmax.f32 %v7232_v6, 0.0  ;;  %v13050_v15 = vld [vmem:[#allocation10 + $0x180] ss:$8 sps:$4 sm:$0xff]  }
 0x8c0   : > { %v7780_v44 = vmax.f32 %v7121_v47, 0.0  ;;  %v7782_v26 = vmax.f32 %v7234_v24, 0.0  ;;  %9755 = vmatmul.mubr.bf16.gmra.mrb[36].mxu1 %v15858_v28 }
 0x8c1   : > { %v7781_v21 = vmax.f32 %v7123_v46, 0.0  ;;  %v7783_v60 = vmax.f32 %v7236_v4, 0.0  ;;  %9764 = vmatprep.mubr.bf16.mxu1 %v15882_v49  ;;  %9818 = vmatpush1.bf16.msra.mxu1 %v13044_v8 }
 0x8c2   : > { %v15966_v0 = vpack.c.bf16 %v7780_v44, %v7764_v43  ;;  %v15968_v32 = vpack.c.bf16 %v7782_v26, %v7766_v3  ;;  %9819 = vmatprep.subr.bf16.mxu1 %v13049_v27  ;;  %v13055_v43 = vld [vmem:[#allocation10 + $0x194] ss:$8 sps:$4 sm:$0xff]  }
 0x8c3   : > { %v15970_v25 = vpack.c.bf16 %v7781_v21, %v7765_v18  ;;  %v15972_v52 = vpack.c.bf16 %v7783_v60, %v7767_v9  ;;  %v7126_v37 = vpop.f32.mrb[188].mxu1  ;;  %v7239_v28 = vpop.f32.mrb[188].mxu0 }
 0x8c4   : > { %v7127_v51 = vadd.f32 %v7126_v37, %v15930_v14  ;;  %v7240_v6 = vadd.f32 %v7239_v28, %v15934_v42  ;;  %v7128_v48 = vpop.f32.mrb[189].mxu1  ;;  %v7241_v49 = vpop.f32.mrb[189].mxu0 }
 0x8c5   : > { %v7129_v62 = vadd.f32 %v7128_v48, %v15940_v54  ;;  %v7242_v8 = vadd.f32 %v7241_v49, %v15944_v5  ;;  %v7130_v47 = vpop.f32.mrb[190].mxu1  ;;  %v7243_v24 = vpop.f32.mrb[190].mxu0  ;;  %9820 = vmatpush1.bf16.msra.mxu1 %v13047_v40  ;;  %v13053_v48 = vld [vmem:[#allocation10 + $0x190] ss:$8 sps:$4 sm:$0xff]  }
 0x8c6   : > { %v7131_v22 = vadd.f32 %v7130_v47, %v15930_v14  ;;  %v7244_v27 = vadd.f32 %v7243_v24, %v15934_v42  ;;  %v7132_v46 = vpop.f32.mrb[191].mxu1  ;;  %v7245_v4 = vpop.f32.mrb[191].mxu0  ;;  %9821 = vmatprep.subr.bf16.mxu1 %v13052_v2  ;;  %v7796_v26 = vmax.f32 %v7127_v51, 0.0  ;;  %v7798_v18 = vmax.f32 %v7240_v6, 0.0  ;;  %v13058_v47 = vld [vmem:[#allocation10 + $0x1a4] ss:$8 sps:$4 sm:$0xff]  }
 0x8c7   : > { %v7133_v3 = vadd.f32 %v7132_v46, %v15940_v54  ;;  %v7246_v44 = vadd.f32 %v7245_v4, %v15944_v5  ;;  %v7797_v60 = vmax.f32 %v7129_v62, 0.0  ;;  %v7799_v40 = vmax.f32 %v7242_v8, 0.0 }
 0x8c8   : > { %v7812_v9 = vmax.f32 %v7131_v22, 0.0  ;;  %v7814_v21 = vmax.f32 %v7244_v27, 0.0  ;;  %9765 = vmatmul.mubr.bf16.gmra.mrb[40].mxu1 %v15878_v58 }
 0x8c9   : > { %v7813_v37 = vmax.f32 %v7133_v3, 0.0  ;;  %v7815_v28 = vmax.f32 %v7246_v44, 0.0  ;;  %9774 = vmatprep.mubr.bf16.mxu1 %v15900_v35  ;;  %9822 = vmatpush1.bf16.msra.mxu1 %v13050_v15 }
 0x8ca   : > { %v15984_v2 = vpack.c.bf16 %v7812_v9, %v7796_v26  ;;  %v15986_v49 = vpack.c.bf16 %v7814_v21, %v7798_v18  ;;  %9823 = vmatprep.subr.bf16.mxu1 %v13055_v43  ;;  %v13056_v43 = vld [vmem:[#allocation10 + $0x1a0] ss:$8 sps:$4 sm:$0xff]   ;;  %v13061_v9 = vld [vmem:[#allocation10 + $0x1b4] ss:$8 sps:$4 sm:$0xff]  }
 0x8cb   : > { %v15988_v51 = vpack.c.bf16 %v7813_v37, %v7797_v60  ;;  %v15990_v6 = vpack.c.bf16 %v7815_v28, %v7799_v40  ;;  %v7136_v24 = vpop.f32.mrb[192].mxu1  ;;  %v7249_v58 = vpop.f32.mrb[192].mxu0 }
 0x8cc   : > { %v7137_v62 = vadd.f32 %v7136_v24, %v15930_v14  ;;  %v7250_v8 = vadd.f32 %v7249_v58, %v15934_v42  ;;  %v7138_v22 = vpop.f32.mrb[193].mxu1  ;;  %v7251_v35 = vpop.f32.mrb[193].mxu0 }
 0x8cd   : > { %v7139_v15 = vadd.f32 %v7138_v22, %v15940_v54  ;;  %v7252_v27 = vadd.f32 %v7251_v35, %v15944_v5  ;;  %v7140_v46 = vpop.f32.mrb[194].mxu1  ;;  %v7253_v4 = vpop.f32.mrb[194].mxu0  ;;  %9824 = vmatpush1.bf16.msra.mxu1 %v13053_v48 }
 0x8ce   : > { %v7141_v3 = vadd.f32 %v7140_v46, %v15930_v14  ;;  %v7254_v44 = vadd.f32 %v7253_v4, %v15934_v42  ;;  %v7142_v26 = vpop.f32.mrb[195].mxu1  ;;  %v7255_v18 = vpop.f32.mrb[195].mxu0  ;;  %9825 = vmatprep.subr.bf16.mxu1 %v13058_v47  ;;  %v7828_v40 = vmax.f32 %v7137_v62, 0.0  ;;  %v7830_v37 = vmax.f32 %v7250_v8, 0.0  ;;  %v13059_v46 = vld [vmem:[#allocation10 + $0x1b0] ss:$8 sps:$4 sm:$0xff]  }
 0x8cf   : > { %v7143_v21 = vadd.f32 %v7142_v26, %v15940_v54  ;;  %v7256_v60 = vadd.f32 %v7255_v18, %v15944_v5  ;;  %v7829_v48 = vmax.f32 %v7139_v15, 0.0  ;;  %v7831_v58 = vmax.f32 %v7252_v27, 0.0  ;;  %v13064_v26 = vld [vmem:[#allocation10 + $0x1c4] ss:$8 sps:$4 sm:$0xff]  }
 0x8d0   : > { %v7844_v28 = vmax.f32 %v7141_v3, 0.0  ;;  %v7846_v24 = vmax.f32 %v7254_v44, 0.0  ;;  %9775 = vmatmul.mubr.bf16.gmra.mrb[44].mxu1 %v15896_v63 }
 0x8d1   : > { %v7845_v22 = vmax.f32 %v7143_v21, 0.0  ;;  %v7847_v35 = vmax.f32 %v7256_v60, 0.0  ;;  %9784 = vmatprep.mubr.bf16.mxu1 %v15918_v59  ;;  %9826 = vmatpush1.bf16.msra.mxu1 %v13056_v43 }
 0x8d2   : > { %v16002_v47 = vpack.c.bf16 %v7844_v28, %v7828_v40  ;;  %v16004_v4 = vpack.c.bf16 %v7846_v24, %v7830_v37  ;;  %9827 = vmatprep.subr.bf16.mxu1 %v13061_v9  ;;  %v13062_v9 = vld [vmem:[#allocation10 + $0x1c0] ss:$8 sps:$4 sm:$0xff]  }
 0x8d3   : > { %v16006_v62 = vpack.c.bf16 %v7845_v22, %v7829_v48  ;;  %v16008_v8 = vpack.c.bf16 %v7847_v35, %v7831_v58  ;;  %v7146_v3 = vpop.f32.mrb[196].mxu1  ;;  %v7259_v63 = vpop.f32.mrb[196].mxu0  ;;  %v13067_v48 = vld [vmem:[#allocation10 + $0x1d4] ss:$8 sps:$4 sm:$0xff]  }
 0x8d4   : > { %16807 = vst [vmem:[#allocation31_spill] sm:$0xff] %v16004_v4  ;;  %v7147_v15 = vadd.f32 %v7146_v3, %v15930_v14  ;;  %v7260_v27 = vadd.f32 %v7259_v63, %v15934_v42  ;;  %v7148_v44 = vpop.f32.mrb[197].mxu1  ;;  %v7261_v59 = vpop.f32.mrb[197].mxu0 }
 0x8d5   : > { %16808 = vst [vmem:[#allocation49_spill] sm:$0xff] %v16008_v8  ;;  %v7149_v43 = vadd.f32 %v7148_v44, %v15940_v54  ;;  %v7262_v18 = vadd.f32 %v7261_v59, %v15944_v5  ;;  %v7150_v21 = vpop.f32.mrb[198].mxu1  ;;  %v7263_v60 = vpop.f32.mrb[198].mxu0  ;;  %9828 = vmatpush1.bf16.msra.mxu1 %v13059_v46 }
 0x8d6   : > { %v7151_v40 = vadd.f32 %v7150_v21, %v15930_v14  ;;  %v7264_v37 = vadd.f32 %v7263_v60, %v15934_v42  ;;  %v7152_v28 = vpop.f32.mrb[199].mxu1  ;;  %v7265_v24 = vpop.f32.mrb[199].mxu0  ;;  %9829 = vmatprep.subr.bf16.mxu1 %v13064_v26  ;;  %v7860_v35 = vmax.f32 %v7147_v15, 0.0  ;;  %v7862_v3 = vmax.f32 %v7260_v27, 0.0  ;;  %v13065_v60 = vld [vmem:[#allocation10 + $0x1d0] ss:$8 sps:$4 sm:$0xff]  }
 0x8d7   : > { %v7153_v58 = vadd.f32 %v7152_v28, %v15940_v54  ;;  %v7266_v22 = vadd.f32 %v7265_v24, %v15944_v5  ;;  %v7861_v46 = vmax.f32 %v7149_v43, 0.0  ;;  %v7863_v59 = vmax.f32 %v7262_v18, 0.0  ;;  %v13070_v28 = vld [vmem:[#allocation10 + $0x1e4] ss:$8 sps:$4 sm:$0xff]  }
 0x8d8   : > { %v7876_v63 = vmax.f32 %v7151_v40, 0.0  ;;  %v7878_v44 = vmax.f32 %v7264_v37, 0.0  ;;  %9785 = vmatmul.mubr.bf16.gmra.mrb[48].mxu1 %v15914_v13 }
 0x8d9   : > { %v7877_v4 = vmax.f32 %v7153_v58, 0.0  ;;  %v7879_v21 = vmax.f32 %v7266_v22, 0.0  ;;  %9794 = vmatprep.mubr.bf16.mxu1 %v15952_v30  ;;  %9830 = vmatpush1.bf16.msra.mxu1 %v13062_v9 }
 0x8da   : > { %v16020_v26 = vpack.c.bf16 %v7876_v63, %v7860_v35  ;;  %v16022_v8 = vpack.c.bf16 %v7878_v44, %v7862_v3  ;;  %9831 = vmatprep.subr.bf16.mxu1 %v13067_v48  ;;  %v13068_v48 = vld [vmem:[#allocation10 + $0x1e0] ss:$8 sps:$4 sm:$0xff]   ;;  %v13073_v44 = vld [vmem:[#allocation10 + $0x1f4] ss:$8 sps:$4 sm:$0xff]  }
 0x8db   : > { %v16024_v15 = vpack.c.bf16 %v7877_v4, %v7861_v46  ;;  %v16026_v27 = vpack.c.bf16 %v7879_v21, %v7863_v59  ;;  %v7156_v40 = vpop.f32.mrb[200].mxu1  ;;  %v7269_v13 = vpop.f32.mrb[200].mxu0 }
 0x8dc   : > { %16809 = vst [vmem:[#allocation51_spill] sm:$0xff] %v16022_v8  ;;  %v7157_v43 = vadd.f32 %v7156_v40, %v15930_v14  ;;  %v7270_v18 = vadd.f32 %v7269_v13, %v15934_v42  ;;  %v7158_v37 = vpop.f32.mrb[201].mxu1  ;;  %v7271_v30 = vpop.f32.mrb[201].mxu0 }
 0x8dd   : > { %16810 = vst [vmem:[#allocation32_spill] sm:$0xff] %v16026_v27  ;;  %v7159_v9 = vadd.f32 %v7158_v37, %v15940_v54  ;;  %v7272_v24 = vadd.f32 %v7271_v30, %v15944_v5  ;;  %v7160_v58 = vpop.f32.mrb[202].mxu1  ;;  %v7273_v22 = vpop.f32.mrb[202].mxu0  ;;  %9832 = vmatpush1.bf16.msra.mxu1 %v13065_v60 }
 0x8de   : > { %v7161_v4 = vadd.f32 %v7160_v58, %v15930_v14  ;;  %v7274_v35 = vadd.f32 %v7273_v22, %v15934_v42  ;;  %v7162_v3 = vpop.f32.mrb[203].mxu1  ;;  %v7275_v63 = vpop.f32.mrb[203].mxu0  ;;  %9833 = vmatprep.subr.bf16.mxu1 %v13070_v28  ;;  %v7892_v21 = vmax.f32 %v7157_v43, 0.0  ;;  %v7894_v40 = vmax.f32 %v7270_v18, 0.0  ;;  %v13071_v22 = vld [vmem:[#allocation10 + $0x1f0] ss:$8 sps:$4 sm:$0xff]  }
 0x8df   : > { %v7163_v46 = vadd.f32 %v7162_v3, %v15940_v54  ;;  %v7276_v59 = vadd.f32 %v7275_v63, %v15944_v5  ;;  %v7893_v60 = vmax.f32 %v7159_v9, 0.0  ;;  %v7895_v30 = vmax.f32 %v7272_v24, 0.0  ;;  %v13076_v3 = vld [vmem:[#allocation10 + $0x204] ss:$8 sps:$4 sm:$0xff]  }
 0x8e0   : > { %v7908_v13 = vmax.f32 %v7161_v4, 0.0  ;;  %v7910_v37 = vmax.f32 %v7274_v35, 0.0  ;;  %9795 = vmatmul.mubr.bf16.gmra.mrb[52].mxu1 %v15948_v57 }
 0x8e1   : > { %v7909_v8 = vmax.f32 %v7163_v46, 0.0  ;;  %v7911_v58 = vmax.f32 %v7276_v59, 0.0  ;;  %9834 = vmatpush1.bf16.msra.mxu1 %v13068_v48  ;;  %9837 = vmatprep.mubr.bf16.mxu1 %v15805_v33 }
 0x8e2   : > { %v16038_v28 = vpack.c.bf16 %v7908_v13, %v7892_v21  ;;  %v16040_v27 = vpack.c.bf16 %v7910_v37, %v7894_v40  ;;  %9835 = vmatprep.subr.bf16.mxu1 %v13073_v44  ;;  %v13074_v44 = vld [vmem:[#allocation10 + $0x200] ss:$8 sps:$4 sm:$0xff]   ;;  %v13079_v37 = vld [vmem:[#allocation10 + $0x214] ss:$8 sps:$4 sm:$0xff]  }
 0x8e3   : > { %v16042_v43 = vpack.c.bf16 %v7909_v8, %v7893_v60  ;;  %v16044_v18 = vpack.c.bf16 %v7911_v58, %v7895_v30  ;;  %v7166_v4 = vpop.f32.mrb[204].mxu1  ;;  %v7279_v57 = vpop.f32.mrb[204].mxu0 }
 0x8e4   : > { %16811 = vst [vmem:[#allocation33_spill] sm:$0xff] %v16040_v27  ;;  %v7167_v9 = vadd.f32 %v7166_v4, %v15930_v14  ;;  %v7280_v24 = vadd.f32 %v7279_v57, %v15934_v42  ;;  %v7168_v48 = vpop.f32.mrb[205].mxu1  ;;  %v7281_v35 = vpop.f32.mrb[205].mxu0 }
 0x8e5   : > { %16812 = vst [vmem:[#allocation55_spill] sm:$0xff] %v16044_v18  ;;  %v7169_v33 = vadd.f32 %v7168_v48, %v15940_v54  ;;  %v7282_v63 = vadd.f32 %v7281_v35, %v15944_v5  ;;  %v7170_v46 = vpop.f32.mrb[206].mxu1  ;;  %v7283_v59 = vpop.f32.mrb[206].mxu0  ;;  %9836 = vmatpush1.bf16.msra.mxu1 %v13071_v22 }
 0x8e6   : > { %v7171_v8 = vadd.f32 %v7170_v46, %v15930_v14  ;;  %v7284_v21 = vadd.f32 %v7283_v59, %v15934_v42  ;;  %v7172_v40 = vpop.f32.mrb[207].mxu1  ;;  %v7285_v13 = vpop.f32.mrb[207].mxu0  ;;  %9918 = vmatprep.subr.bf16.mxu1 %v13076_v3  ;;  %v7924_v58 = vmax.f32 %v7167_v9, 0.0  ;;  %v7926_v4 = vmax.f32 %v7280_v24, 0.0  ;;  %v13077_v59 = vld [vmem:[#allocation10 + $0x210] ss:$8 sps:$4 sm:$0xff]  }
 0x8e7   : > { %v7173_v60 = vadd.f32 %v7172_v40, %v15940_v54  ;;  %v7286_v30 = vadd.f32 %v7285_v13, %v15944_v5  ;;  %v7925_v22 = vmax.f32 %v7169_v33, 0.0  ;;  %v7927_v35 = vmax.f32 %v7282_v63, 0.0  ;;  %v13082_v40 = vld [vmem:[#allocation10 + $0x224] ss:$8 sps:$4 sm:$0xff]  }
 0x8e8   : > { %v7940_v57 = vmax.f32 %v7171_v8, 0.0  ;;  %v7942_v48 = vmax.f32 %v7284_v21, 0.0  ;;  %9838 = vmatmul.mubr.bf16.vlgmr.msra.gmra.mrb[24].mxu1 %v15800_v34 }
 0x8e9   : > { %v7941_v27 = vmax.f32 %v7173_v60, 0.0  ;;  %v7943_v46 = vmax.f32 %v7286_v30, 0.0  ;;  %9847 = vmatprep.mubr.bf16.mxu1 %v15825_v16  ;;  %9919 = vmatpush1.bf16.msra.mxu1 %v13074_v44 }
 0x8ea   : > { %v16056_v3 = vpack.c.bf16 %v7940_v57, %v7924_v58  ;;  %v16058_v18 = vpack.c.bf16 %v7942_v48, %v7926_v4  ;;  %9920 = vmatprep.subr.bf16.mxu1 %v13079_v37  ;;  %v13080_v37 = vld [vmem:[#allocation10 + $0x220] ss:$8 sps:$4 sm:$0xff]   ;;  %v13085_v48 = vld [vmem:[#allocation10 + $0x234] ss:$8 sps:$4 sm:$0xff]  }
 0x8eb   : > { %v16060_v9 = vpack.c.bf16 %v7941_v27, %v7925_v22  ;;  %v16062_v24 = vpack.c.bf16 %v7943_v46, %v7927_v35  ;;  %v7176_v8 = vpop.f32.mrb[208].mxu1  ;;  %v7289_v34 = vpop.f32.mrb[208].mxu0 }
 0x8ec   : > { %16813 = vst [vmem:[#allocation52_spill] sm:$0xff] %v16058_v18  ;;  %v7177_v33 = vadd.f32 %v7176_v8, %v15930_v14  ;;  %v7290_v63 = vadd.f32 %v7289_v34, %v15934_v42  ;;  %v7178_v21 = vpop.f32.mrb[209].mxu1  ;;  %v7291_v16 = vpop.f32.mrb[209].mxu0 }
 0x8ed   : > { %16814 = vst [vmem:[#allocation54_spill] sm:$0xff] %v16062_v24  ;;  %v7179_v44 = vadd.f32 %v7178_v21, %v15940_v54  ;;  %v7292_v13 = vadd.f32 %v7291_v16, %v15944_v5  ;;  %v7180_v60 = vpop.f32.mrb[210].mxu1  ;;  %v7293_v30 = vpop.f32.mrb[210].mxu0  ;;  %9921 = vmatpush1.bf16.msra.mxu1 %v13077_v59 }
 0x8ee   : > { %v7181_v27 = vadd.f32 %v7180_v60, %v15930_v14  ;;  %v7294_v58 = vadd.f32 %v7293_v30, %v15934_v42  ;;  %v7182_v4 = vpop.f32.mrb[211].mxu1  ;;  %v7295_v57 = vpop.f32.mrb[211].mxu0  ;;  %9922 = vmatprep.subr.bf16.mxu1 %v13082_v40  ;;  %v7956_v46 = vmax.f32 %v7177_v33, 0.0  ;;  %v7958_v8 = vmax.f32 %v7290_v63, 0.0  ;;  %v13083_v30 = vld [vmem:[#allocation10 + $0x230] ss:$8 sps:$4 sm:$0xff]  }
 0x8ef   : > { %v7183_v22 = vadd.f32 %v7182_v4, %v15940_v54  ;;  %v7296_v35 = vadd.f32 %v7295_v57, %v15944_v5  ;;  %v7957_v59 = vmax.f32 %v7179_v44, 0.0  ;;  %v7959_v16 = vmax.f32 %v7292_v13, 0.0  ;;  %v13088_v4 = vld [vmem:[#allocation10 + $0x244] ss:$8 sps:$4 sm:$0xff]  }
 0x8f0   : > { %v7972_v34 = vmax.f32 %v7181_v27, 0.0  ;;  %v7974_v21 = vmax.f32 %v7294_v58, 0.0  ;;  %9848 = vmatmul.mubr.bf16.gmra.mrb[28].mxu1 %v15820_v38  ;;  %v16085_v44 = vld [vmem:[%s16800_s15 + $0x8] sm:$0xff] }
 0x8f1   : > { %v7973_v18 = vmax.f32 %v7183_v22, 0.0  ;;  %v7975_v60 = vmax.f32 %v7296_v35, 0.0  ;;  %9857 = vmatprep.mubr.bf16.mxu1 %v15845_v45  ;;  %9923 = vmatpush1.bf16.msra.mxu1 %v13080_v37  ;;  %v13086_v35 = vld [vmem:[#allocation10 + $0x240] ss:$8 sps:$4 sm:$0xff]  }
 0x8f2   : > { %v16074_v40 = vpack.c.bf16 %v7972_v34, %v7956_v46  ;;  %v16076_v24 = vpack.c.bf16 %v7974_v21, %v7958_v8  ;;  %9924 = vmatprep.subr.bf16.mxu1 %v13085_v48 }
 0x8f3   : > { %v16078_v33 = vpack.c.bf16 %v7973_v18, %v7957_v59  ;;  %v16080_v63 = vpack.c.bf16 %v7975_v60, %v7959_v16  ;;  %v7186_v27 = vpop.f32.mrb[212].mxu1  ;;  %v7299_v38 = vpop.f32.mrb[212].mxu0  ;;  %v16095_v59 = vrot.slane %v16085_v44, %v16801_v50  ;;  %v16099_v16 = vrot.slane %v16085_v44, %v16802_v19  ;;  %v13091_v60 = vld [vmem:[#allocation10 + $0x254] ss:$8 sps:$4 sm:$0xff]  }
 0x8f4   : > { %v7187_v45 = vadd.f32 %v7186_v27, %v15930_v14  ;;  %v7300_v13 = vadd.f32 %v7299_v38, %v15934_v42  ;;  %v7188_v37 = vpop.f32.mrb[213].mxu1  ;;  %v7301_v58 = vpop.f32.mrb[213].mxu0 }
 0x8f5   : > { %v7189_v57 = vadd.f32 %v7188_v37, %v15940_v54  ;;  %v7302_v18 = vadd.f32 %v7301_v58, %v15944_v5  ;;  %v7190_v48 = vpop.f32.mrb[214].mxu1  ;;  %v7303_v22 = vpop.f32.mrb[214].mxu0  ;;  %9925 = vmatpush1.bf16.msra.mxu1 %v13083_v30 }
 0x8f6   : > { %v7191_v46 = vadd.f32 %v7190_v48, %v15930_v14  ;;  %v7304_v8 = vadd.f32 %v7303_v22, %v15934_v42  ;;  %v7192_v34 = vpop.f32.mrb[215].mxu1  ;;  %v7305_v21 = vpop.f32.mrb[215].mxu0  ;;  %9926 = vmatprep.subr.bf16.mxu1 %v13088_v4  ;;  %v16105_v14 = vrot.slane %v16085_v44, %v16803_v17  ;;  %v16109_v42 = vrot.slane %v16085_v44, %v16804_v10  ;;  %v13094_v10 = vld [vmem:[#allocation10 + $0x264] ss:$8 sps:$4 sm:$0xff]  }
 0x8f7   : > { %v7193_v27 = vadd.f32 %v7192_v34, %v15940_v54  ;;  %v7306_v30 = vadd.f32 %v7305_v21, %v15944_v5  ;;  %v7988_v4 = vmax.f32 %v7187_v45, 0.0  ;;  %v7990_v38 = vmax.f32 %v7300_v13, 0.0  ;;  %v13089_v5 = vld [vmem:[#allocation10 + $0x250] ss:$8 sps:$4 sm:$0xff]  }
 0x8f8   : > { %v8004_v37 = vmax.f32 %v7191_v46, 0.0  ;;  %v8006_v58 = vmax.f32 %v7304_v8, 0.0  ;;  %9858 = vmatmul.mubr.bf16.gmra.mrb[32].mxu1 %v15840_v55  ;;  %v7989_v19 = vmax.f32 %v7189_v57, 0.0  ;;  %v7991_v48 = vmax.f32 %v7302_v18, 0.0 }
 0x8f9   : > { %v8005_v22 = vmax.f32 %v7193_v27, 0.0  ;;  %v8007_v54 = vmax.f32 %v7306_v30, 0.0  ;;  %9867 = vmatprep.mubr.bf16.mxu1 %v15865_v29  ;;  %9927 = vmatpush1.bf16.msra.mxu1 %v13086_v35 }
 0x8fa   : > { %v16113_v34 = vpack.c.bf16 %v8004_v37, %v7988_v4  ;;  %v16115_v21 = vpack.c.bf16 %v8006_v58, %v7990_v38  ;;  %9928 = vmatprep.subr.bf16.mxu1 %v13091_v60  ;;  %v13092_v60 = vld [vmem:[#allocation10 + $0x260] ss:$8 sps:$4 sm:$0xff]  }
 0x8fb   : > { %v16117_v45 = vpack.c.bf16 %v8005_v22, %v7989_v19  ;;  %v16119_v13 = vpack.c.bf16 %v8007_v54, %v7991_v48  ;;  %v7342_v46 = vpop.f32.mrb[216].mxu1  ;;  %v7455_v55 = vpop.f32.mrb[216].mxu0  ;;  %v13097_v48 = vld [vmem:[#allocation10 + $0x274] ss:$8 sps:$4 sm:$0xff]  }
 0x8fc   : > { %16815 = vst [vmem:[#allocation34_spill] sm:$0xff] %v16115_v21  ;;  %v7343_v57 = vadd.f32 %v7342_v46, %v16095_v59  ;;  %v7456_v18 = vadd.f32 %v7455_v55, %v16099_v16  ;;  %v7344_v8 = vpop.f32.mrb[217].mxu1  ;;  %v7457_v29 = vpop.f32.mrb[217].mxu0 }
 0x8fd   : > { %v7345_v35 = vadd.f32 %v7344_v8, %v16105_v14  ;;  %v7458_v27 = vadd.f32 %v7457_v29, %v16109_v42  ;;  %v7346_v30 = vpop.f32.mrb[218].mxu1  ;;  %v7459_v4 = vpop.f32.mrb[218].mxu0  ;;  %9929 = vmatpush1.bf16.msra.mxu1 %v13089_v5 }
 0x8fe   : > { %v7347_v38 = vadd.f32 %v7346_v30, %v16095_v59  ;;  %v7460_v37 = vadd.f32 %v7459_v4, %v16099_v16  ;;  %v7348_v58 = vpop.f32.mrb[219].mxu1  ;;  %v7461_v19 = vpop.f32.mrb[219].mxu0  ;;  %9930 = vmatprep.subr.bf16.mxu1 %v13094_v10  ;;  %v7768_v46 = vmax.f32 %v7343_v57, 0.0  ;;  %v7770_v55 = vmax.f32 %v7456_v18, 0.0  ;;  %v13095_v4 = vld [vmem:[#allocation10 + $0x270] ss:$8 sps:$4 sm:$0xff]  }
 0x8ff   : > { %v7349_v22 = vadd.f32 %v7348_v58, %v16105_v14  ;;  %v7462_v54 = vadd.f32 %v7461_v19, %v16109_v42  ;;  %v7769_v5 = vmax.f32 %v7345_v35, 0.0  ;;  %v7771_v17 = vmax.f32 %v7458_v27, 0.0  ;;  %v13100_v58 = vld [vmem:[#allocation10 + $0x284] ss:$8 sps:$4 sm:$0xff]  }
 0x900   : > { %v7784_v8 = vmax.f32 %v7347_v38, 0.0  ;;  %v7786_v29 = vmax.f32 %v7460_v37, 0.0  ;;  %9868 = vmatmul.mubr.bf16.gmra.mrb[36].mxu1 %v15860_v7 }
 0x901   : > { %v7785_v50 = vmax.f32 %v7349_v22, 0.0  ;;  %v7787_v30 = vmax.f32 %v7462_v54, 0.0  ;;  %9877 = vmatprep.mubr.bf16.mxu1 %v15884_v11  ;;  %9931 = vmatpush1.bf16.msra.mxu1 %v13092_v60 }
 0x902   : > { %v16131_v10 = vpack.c.bf16 %v7784_v8, %v7768_v46  ;;  %v16133_v21 = vpack.c.bf16 %v7786_v29, %v7770_v55  ;;  %9932 = vmatprep.subr.bf16.mxu1 %v13097_v48  ;;  %v13098_v48 = vld [vmem:[#allocation10 + $0x280] ss:$8 sps:$4 sm:$0xff]   ;;  %v13103_v8 = vld [vmem:[#allocation10 + $0x294] ss:$8 sps:$4 sm:$0xff]  }
 0x903   : > { %v16135_v57 = vpack.c.bf16 %v7785_v50, %v7769_v5  ;;  %v16137_v18 = vpack.c.bf16 %v7787_v30, %v7771_v17  ;;  %v7352_v38 = vpop.f32.mrb[220].mxu1  ;;  %v7465_v7 = vpop.f32.mrb[220].mxu0 }
 0x904   : > { %16816 = vst [vmem:[#allocation35_spill] sm:$0xff] %v16133_v21  ;;  %v7353_v35 = vadd.f32 %v7352_v38, %v16095_v59  ;;  %v7466_v27 = vadd.f32 %v7465_v7, %v16099_v16  ;;  %v7354_v37 = vpop.f32.mrb[221].mxu1  ;;  %v7467_v11 = vpop.f32.mrb[221].mxu0 }
 0x905   : > { %16817 = vst [vmem:[#allocation37_spill] sm:$0xff] %v16137_v18  ;;  %v7355_v60 = vadd.f32 %v7354_v37, %v16105_v14  ;;  %v7468_v19 = vadd.f32 %v7467_v11, %v16109_v42  ;;  %v7356_v22 = vpop.f32.mrb[222].mxu1  ;;  %v7469_v54 = vpop.f32.mrb[222].mxu0  ;;  %9933 = vmatpush1.bf16.msra.mxu1 %v13095_v4 }
 0x906   : > { %v7357_v50 = vadd.f32 %v7356_v22, %v16095_v59  ;;  %v7470_v17 = vadd.f32 %v7469_v54, %v16099_v16  ;;  %v7358_v46 = vpop.f32.mrb[223].mxu1  ;;  %v7471_v55 = vpop.f32.mrb[223].mxu0  ;;  %9934 = vmatprep.subr.bf16.mxu1 %v13100_v58  ;;  %v7800_v30 = vmax.f32 %v7353_v35, 0.0  ;;  %v7802_v38 = vmax.f32 %v7466_v27, 0.0  ;;  %v13101_v54 = vld [vmem:[#allocation10 + $0x290] ss:$8 sps:$4 sm:$0xff]  }
 0x907   : > { %v7359_v29 = vadd.f32 %v7358_v46, %v16105_v14  ;;  %v7472_v5 = vadd.f32 %v7471_v55, %v16109_v42  ;;  %v7801_v4 = vmax.f32 %v7355_v60, 0.0  ;;  %v7803_v11 = vmax.f32 %v7468_v19, 0.0  ;;  %v13106_v46 = vld [vmem:[#allocation10 + $0x2a4] ss:$8 sps:$4 sm:$0xff]  }
 0x908   : > { %v7816_v7 = vmax.f32 %v7357_v50, 0.0  ;;  %v7818_v37 = vmax.f32 %v7470_v17, 0.0  ;;  %9878 = vmatmul.mubr.bf16.gmra.mrb[40].mxu1 %v15880_v41 }
 0x909   : > { %v7817_v21 = vmax.f32 %v7359_v29, 0.0  ;;  %v7819_v22 = vmax.f32 %v7472_v5, 0.0  ;;  %9887 = vmatprep.mubr.bf16.mxu1 %v15902_v20  ;;  %9935 = vmatpush1.bf16.msra.mxu1 %v13098_v48 }
 0x90a   : > { %v16149_v58 = vpack.c.bf16 %v7816_v7, %v7800_v30  ;;  %v16151_v18 = vpack.c.bf16 %v7818_v37, %v7802_v38  ;;  %9936 = vmatprep.subr.bf16.mxu1 %v13103_v8  ;;  %v13104_v8 = vld [vmem:[#allocation10 + $0x2a0] ss:$8 sps:$4 sm:$0xff]   ;;  %v13109_v37 = vld [vmem:[#allocation10 + $0x2b4] ss:$8 sps:$4 sm:$0xff]  }
 0x90b   : > { %v16153_v35 = vpack.c.bf16 %v7817_v21, %v7801_v4  ;;  %v16155_v27 = vpack.c.bf16 %v7819_v22, %v7803_v11  ;;  %v7362_v50 = vpop.f32.mrb[224].mxu1  ;;  %v7475_v41 = vpop.f32.mrb[224].mxu0 }
 0x90c   : > { %16818 = vst [vmem:[#allocation39_spill] sm:$0xff] %v16151_v18  ;;  %v7363_v60 = vadd.f32 %v7362_v50, %v16095_v59  ;;  %v7476_v19 = vadd.f32 %v7475_v41, %v16099_v16  ;;  %v7364_v17 = vpop.f32.mrb[225].mxu1  ;;  %v7477_v20 = vpop.f32.mrb[225].mxu0 }
 0x90d   : > { %16819 = vst [vmem:[#allocation41_spill] sm:$0xff] %v16155_v27  ;;  %v7365_v48 = vadd.f32 %v7364_v17, %v16105_v14  ;;  %v7478_v55 = vadd.f32 %v7477_v20, %v16109_v42  ;;  %v7366_v29 = vpop.f32.mrb[226].mxu1  ;;  %v7479_v5 = vpop.f32.mrb[226].mxu0  ;;  %9937 = vmatpush1.bf16.msra.mxu1 %v13101_v54 }
 0x90e   : > { %v7367_v21 = vadd.f32 %v7366_v29, %v16095_v59  ;;  %v7480_v30 = vadd.f32 %v7479_v5, %v16099_v16  ;;  %v7368_v38 = vpop.f32.mrb[227].mxu1  ;;  %v7481_v7 = vpop.f32.mrb[227].mxu0  ;;  %9938 = vmatprep.subr.bf16.mxu1 %v13106_v46  ;;  %v7832_v22 = vmax.f32 %v7363_v60, 0.0  ;;  %v7834_v50 = vmax.f32 %v7476_v19, 0.0  ;;  %v13107_v5 = vld [vmem:[#allocation10 + $0x2b0] ss:$8 sps:$4 sm:$0xff]  }
 0x90f   : > { %v7369_v4 = vadd.f32 %v7368_v38, %v16105_v14  ;;  %v7482_v11 = vadd.f32 %v7481_v7, %v16109_v42  ;;  %v7833_v54 = vmax.f32 %v7365_v48, 0.0  ;;  %v7835_v20 = vmax.f32 %v7478_v55, 0.0  ;;  %v13112_v38 = vld [vmem:[#allocation10 + $0x2c4] ss:$8 sps:$4 sm:$0xff]  }
 0x910   : > { %v7848_v41 = vmax.f32 %v7367_v21, 0.0  ;;  %v7850_v17 = vmax.f32 %v7480_v30, 0.0  ;;  %9888 = vmatmul.mubr.bf16.gmra.mrb[44].mxu1 %v15898_v1 }
 0x911   : > { %v7849_v18 = vmax.f32 %v7369_v4, 0.0  ;;  %v7851_v29 = vmax.f32 %v7482_v11, 0.0  ;;  %9897 = vmatprep.mubr.bf16.mxu1 %v15920_v56  ;;  %9939 = vmatpush1.bf16.msra.mxu1 %v13104_v8 }
 0x912   : > { %v16167_v46 = vpack.c.bf16 %v7848_v41, %v7832_v22  ;;  %v16169_v27 = vpack.c.bf16 %v7850_v17, %v7834_v50  ;;  %9940 = vmatprep.subr.bf16.mxu1 %v13109_v37  ;;  %v13110_v37 = vld [vmem:[#allocation10 + $0x2c0] ss:$8 sps:$4 sm:$0xff]   ;;  %v13115_v17 = vld [vmem:[#allocation10 + $0x2d4] ss:$8 sps:$4 sm:$0xff]  }
 0x913   : > { %v16171_v60 = vpack.c.bf16 %v7849_v18, %v7833_v54  ;;  %v16173_v19 = vpack.c.bf16 %v7851_v29, %v7835_v20  ;;  %v7372_v21 = vpop.f32.mrb[228].mxu1  ;;  %v7485_v1 = vpop.f32.mrb[228].mxu0 }
 0x914   : > { %16820 = vst [vmem:[#allocation42_spill] sm:$0xff] %v16169_v27  ;;  %v7373_v48 = vadd.f32 %v7372_v21, %v16095_v59  ;;  %v7486_v55 = vadd.f32 %v7485_v1, %v16099_v16  ;;  %v7374_v30 = vpop.f32.mrb[229].mxu1  ;;  %v7487_v56 = vpop.f32.mrb[229].mxu0 }
 0x915   : > { %16821 = vst [vmem:[#allocation28_spill] sm:$0xff] %v16173_v19  ;;  %v7375_v8 = vadd.f32 %v7374_v30, %v16105_v14  ;;  %v7488_v7 = vadd.f32 %v7487_v56, %v16109_v42  ;;  %v7376_v4 = vpop.f32.mrb[230].mxu1  ;;  %v7489_v11 = vpop.f32.mrb[230].mxu0  ;;  %9941 = vmatpush1.bf16.msra.mxu1 %v13107_v5 }
 0x916   : > { %v7377_v18 = vadd.f32 %v7376_v4, %v16095_v59  ;;  %v7490_v22 = vadd.f32 %v7489_v11, %v16099_v16  ;;  %v7378_v50 = vpop.f32.mrb[231].mxu1  ;;  %v7491_v41 = vpop.f32.mrb[231].mxu0  ;;  %9942 = vmatprep.subr.bf16.mxu1 %v13112_v38  ;;  %v7864_v29 = vmax.f32 %v7373_v48, 0.0  ;;  %v7866_v21 = vmax.f32 %v7486_v55, 0.0  ;;  %v13113_v11 = vld [vmem:[#allocation10 + $0x2d0] ss:$8 sps:$4 sm:$0xff]  }
 0x917   : > { %v7379_v54 = vadd.f32 %v7378_v50, %v16105_v14  ;;  %v7492_v20 = vadd.f32 %v7491_v41, %v16109_v42  ;;  %v7865_v5 = vmax.f32 %v7375_v8, 0.0  ;;  %v7867_v56 = vmax.f32 %v7488_v7, 0.0  ;;  %v13118_v50 = vld [vmem:[#allocation10 + $0x2e4] ss:$8 sps:$4 sm:$0xff]  }
 0x918   : > { %v7880_v1 = vmax.f32 %v7377_v18, 0.0  ;;  %v7882_v30 = vmax.f32 %v7490_v22, 0.0  ;;  %9898 = vmatmul.mubr.bf16.gmra.mrb[48].mxu1 %v15916_v23 }
 0x919   : > { %v7881_v27 = vmax.f32 %v7379_v54, 0.0  ;;  %v7883_v4 = vmax.f32 %v7492_v20, 0.0  ;;  %9907 = vmatprep.mubr.bf16.mxu1 %v15954_v36  ;;  %9943 = vmatpush1.bf16.msra.mxu1 %v13110_v37 }
 0x91a   : > { %v16185_v38 = vpack.c.bf16 %v7880_v1, %v7864_v29  ;;  %v16187_v19 = vpack.c.bf16 %v7882_v30, %v7866_v21  ;;  %9944 = vmatprep.subr.bf16.mxu1 %v13115_v17  ;;  %v13116_v17 = vld [vmem:[#allocation10 + $0x2e0] ss:$8 sps:$4 sm:$0xff]   ;;  %v13121_v30 = vld [vmem:[#allocation10 + $0x2f4] ss:$8 sps:$4 sm:$0xff]  }
 0x91b   : > { %v16189_v48 = vpack.c.bf16 %v7881_v27, %v7865_v5  ;;  %v16191_v55 = vpack.c.bf16 %v7883_v4, %v7867_v56  ;;  %v7382_v18 = vpop.f32.mrb[232].mxu1  ;;  %v7495_v23 = vpop.f32.mrb[232].mxu0 }
 0x91c   : > { %16822 = vst [vmem:[#allocation30_spill] sm:$0xff] %v16187_v19  ;;  %v7383_v8 = vadd.f32 %v7382_v18, %v16095_v59  ;;  %v7496_v7 = vadd.f32 %v7495_v23, %v16099_v16  ;;  %v7384_v22 = vpop.f32.mrb[233].mxu1  ;;  %v7497_v36 = vpop.f32.mrb[233].mxu0 }
 0x91d   : > { %16823 = vst [vmem:[#allocation44_spill] sm:$0xff] %v16191_v55  ;;  %v7385_v37 = vadd.f32 %v7384_v22, %v16105_v14  ;;  %v7498_v41 = vadd.f32 %v7497_v36, %v16109_v42  ;;  %v7386_v54 = vpop.f32.mrb[234].mxu1  ;;  %v7499_v20 = vpop.f32.mrb[234].mxu0  ;;  %9945 = vmatpush1.bf16.msra.mxu1 %v13113_v11 }
 0x91e   : > { %v7387_v27 = vadd.f32 %v7386_v54, %v16095_v59  ;;  %v7500_v29 = vadd.f32 %v7499_v20, %v16099_v16  ;;  %v7388_v21 = vpop.f32.mrb[235].mxu1  ;;  %v7501_v1 = vpop.f32.mrb[235].mxu0  ;;  %9946 = vmatprep.subr.bf16.mxu1 %v13118_v50  ;;  %v7896_v4 = vmax.f32 %v7383_v8, 0.0  ;;  %v7898_v18 = vmax.f32 %v7496_v7, 0.0  ;;  %v13119_v20 = vld [vmem:[#allocation10 + $0x2f0] ss:$8 sps:$4 sm:$0xff]  }
 0x91f   : > { %v7389_v5 = vadd.f32 %v7388_v21, %v16105_v14  ;;  %v7502_v56 = vadd.f32 %v7501_v1, %v16109_v42  ;;  %v7897_v11 = vmax.f32 %v7385_v37, 0.0  ;;  %v7899_v36 = vmax.f32 %v7498_v41, 0.0  ;;  %v13124_v21 = vld [vmem:[#allocation10 + $0x304] ss:$8 sps:$4 sm:$0xff]  }
 0x920   : > { %v7912_v23 = vmax.f32 %v7387_v27, 0.0  ;;  %v7914_v22 = vmax.f32 %v7500_v29, 0.0  ;;  %9908 = vmatmul.mubr.bf16.gmra.mrb[52].mxu1 %v15950_v61 }
 0x921   : > { %v7913_v19 = vmax.f32 %v7389_v5, 0.0  ;;  %v7915_v54 = vmax.f32 %v7502_v56, 0.0  ;;  %9947 = vmatpush1.bf16.msra.mxu1 %v13116_v17  ;;  %9950 = vmatprep.mubr.bf16.mxu1 %v15970_v25 }
 0x922   : > { %v16203_v50 = vpack.c.bf16 %v7912_v23, %v7896_v4  ;;  %v16205_v55 = vpack.c.bf16 %v7914_v22, %v7898_v18  ;;  %9948 = vmatprep.subr.bf16.mxu1 %v13121_v30  ;;  %v13122_v30 = vld [vmem:[#allocation10 + $0x300] ss:$8 sps:$4 sm:$0xff]   ;;  %v13127_v22 = vld [vmem:[#allocation10 + $0x314] ss:$8 sps:$4 sm:$0xff]  }
 0x923   : > { %v16207_v8 = vpack.c.bf16 %v7913_v19, %v7897_v11  ;;  %v16209_v7 = vpack.c.bf16 %v7915_v54, %v7899_v36  ;;  %v7392_v27 = vpop.f32.mrb[236].mxu1  ;;  %v7505_v61 = vpop.f32.mrb[236].mxu0 }
 0x924   : > { %16824 = vst [vmem:[#allocation45_spill] sm:$0xff] %v16205_v55  ;;  %v7393_v37 = vadd.f32 %v7392_v27, %v16095_v59  ;;  %v7506_v41 = vadd.f32 %v7505_v61, %v16099_v16  ;;  %v7394_v17 = vpop.f32.mrb[237].mxu1  ;;  %v7507_v29 = vpop.f32.mrb[237].mxu0 }
 0x925   : > { %16825 = vst [vmem:[#allocation46_spill] sm:$0xff] %v16209_v7  ;;  %v7395_v25 = vadd.f32 %v7394_v17, %v16105_v14  ;;  %v7508_v1 = vadd.f32 %v7507_v29, %v16109_v42  ;;  %v7396_v5 = vpop.f32.mrb[238].mxu1  ;;  %v7509_v56 = vpop.f32.mrb[238].mxu0  ;;  %9949 = vmatpush1.bf16.msra.mxu1 %v13119_v20 }
 0x926   : > { %v7397_v19 = vadd.f32 %v7396_v5, %v16095_v59  ;;  %v7510_v4 = vadd.f32 %v7509_v56, %v16099_v16  ;;  %v7398_v18 = vpop.f32.mrb[239].mxu1  ;;  %v7511_v23 = vpop.f32.mrb[239].mxu0  ;;  %10031 = vmatprep.subr.bf16.mxu1 %v13124_v21  ;;  %v7928_v54 = vmax.f32 %v7393_v37, 0.0  ;;  %v7930_v27 = vmax.f32 %v7506_v41, 0.0  ;;  %v13125_v56 = vld [vmem:[#allocation10 + $0x310] ss:$8 sps:$4 sm:$0xff]  }
 0x927   : > { %v7399_v11 = vadd.f32 %v7398_v18, %v16105_v14  ;;  %v7512_v36 = vadd.f32 %v7511_v23, %v16109_v42  ;;  %v7929_v20 = vmax.f32 %v7395_v25, 0.0  ;;  %v7931_v29 = vmax.f32 %v7508_v1, 0.0  ;;  %v13130_v18 = vld [vmem:[#allocation10 + $0x324] ss:$8 sps:$4 sm:$0xff]  }
 0x928   : > { %v7944_v61 = vmax.f32 %v7397_v19, 0.0  ;;  %v7946_v17 = vmax.f32 %v7510_v4, 0.0  ;;  %9951 = vmatmul.mubr.bf16.vlgmr.msra.gmra.mrb[24].mxu1 %v15966_v0 }
 0x929   : > { %v7945_v55 = vmax.f32 %v7399_v11, 0.0  ;;  %v7947_v5 = vmax.f32 %v7512_v36, 0.0  ;;  %9960 = vmatprep.mubr.bf16.mxu1 %v15988_v51  ;;  %10032 = vmatpush1.bf16.msra.mxu1 %v13122_v30 }
 0x92a   : > { %v16221_v21 = vpack.c.bf16 %v7944_v61, %v7928_v54  ;;  %v16223_v7 = vpack.c.bf16 %v7946_v17, %v7930_v27  ;;  %10033 = vmatprep.subr.bf16.mxu1 %v13127_v22  ;;  %v13128_v22 = vld [vmem:[#allocation10 + $0x320] ss:$8 sps:$4 sm:$0xff]   ;;  %v13133_v17 = vld [vmem:[#allocation10 + $0x334] ss:$8 sps:$4 sm:$0xff]  }
 0x92b   : > { %v16225_v37 = vpack.c.bf16 %v7945_v55, %v7929_v20  ;;  %v16227_v41 = vpack.c.bf16 %v7947_v5, %v7931_v29  ;;  %v7402_v19 = vpop.f32.mrb[240].mxu1  ;;  %v7515_v0 = vpop.f32.mrb[240].mxu0 }
 0x92c   : > { %16826 = vst [vmem:[#allocation48_spill] sm:$0xff] %v16223_v7  ;;  %v7403_v25 = vadd.f32 %v7402_v19, %v16095_v59  ;;  %v7516_v1 = vadd.f32 %v7515_v0, %v16099_v16  ;;  %v7404_v4 = vpop.f32.mrb[241].mxu1  ;;  %v7517_v51 = vpop.f32.mrb[241].mxu0 }
 0x92d   : > { %16827 = vst [vmem:[#allocation21_spill] sm:$0xff] %v16227_v41  ;;  %v7405_v30 = vadd.f32 %v7404_v4, %v16105_v14  ;;  %v7518_v23 = vadd.f32 %v7517_v51, %v16109_v42  ;;  %v7406_v11 = vpop.f32.mrb[242].mxu1  ;;  %v7519_v36 = vpop.f32.mrb[242].mxu0  ;;  %10034 = vmatpush1.bf16.msra.mxu1 %v13125_v56 }
 0x92e   : > { %v7407_v55 = vadd.f32 %v7406_v11, %v16095_v59  ;;  %v7520_v54 = vadd.f32 %v7519_v36, %v16099_v16  ;;  %v7408_v27 = vpop.f32.mrb[243].mxu1  ;;  %v7521_v61 = vpop.f32.mrb[243].mxu0  ;;  %10035 = vmatprep.subr.bf16.mxu1 %v13130_v18  ;;  %v7960_v5 = vmax.f32 %v7403_v25, 0.0  ;;  %v7962_v19 = vmax.f32 %v7516_v1, 0.0  ;;  %v13131_v36 = vld [vmem:[#allocation10 + $0x330] ss:$8 sps:$4 sm:$0xff]  }
 0x92f   : > { %v7409_v20 = vadd.f32 %v7408_v27, %v16105_v14  ;;  %v7522_v29 = vadd.f32 %v7521_v61, %v16109_v42  ;;  %v7961_v56 = vmax.f32 %v7405_v30, 0.0  ;;  %v7963_v51 = vmax.f32 %v7518_v23, 0.0  ;;  %v13136_v27 = vld [vmem:[#allocation10 + $0x344] ss:$8 sps:$4 sm:$0xff]  }
 0x930   : > { %v7976_v0 = vmax.f32 %v7407_v55, 0.0  ;;  %v7978_v4 = vmax.f32 %v7520_v54, 0.0  ;;  %9961 = vmatmul.mubr.bf16.gmra.mrb[28].mxu1 %v15984_v2 }
 0x931   : > { %v7977_v7 = vmax.f32 %v7409_v20, 0.0  ;;  %v7979_v11 = vmax.f32 %v7522_v29, 0.0  ;;  %9970 = vmatprep.mubr.bf16.mxu1 %v16006_v62  ;;  %10036 = vmatpush1.bf16.msra.mxu1 %v13128_v22 }
 0x932   : > { %v16239_v18 = vpack.c.bf16 %v7976_v0, %v7960_v5  ;;  %v16241_v41 = vpack.c.bf16 %v7978_v4, %v7962_v19  ;;  %10037 = vmatprep.subr.bf16.mxu1 %v13133_v17  ;;  %v13134_v17 = vld [vmem:[#allocation10 + $0x340] ss:$8 sps:$4 sm:$0xff]   ;;  %v16255_v4 = vrot.slane %v16085_v44, %v16769_v39 }
 0x933   : > { %v16243_v25 = vpack.c.bf16 %v7977_v7, %v7961_v56  ;;  %v16245_v1 = vpack.c.bf16 %v7979_v11, %v7963_v51  ;;  %v7412_v55 = vpop.f32.mrb[244].mxu1  ;;  %v7525_v2 = vpop.f32.mrb[244].mxu0  ;;  %v16259_v56 = vrot.slane %v16085_v44, %v16805_v12  ;;  %v13139_v51 = vld [vmem:[#allocation10 + $0x354] ss:$8 sps:$4 sm:$0xff]  }
 0x934   : > { %v7413_v30 = vadd.f32 %v7412_v55, %v16095_v59  ;;  %v7526_v23 = vadd.f32 %v7525_v2, %v16099_v16  ;;  %v7414_v54 = vpop.f32.mrb[245].mxu1  ;;  %v7527_v62 = vpop.f32.mrb[245].mxu0 }
 0x935   : > { %v7415_v22 = vadd.f32 %v7414_v54, %v16105_v14  ;;  %v7528_v61 = vadd.f32 %v7527_v62, %v16109_v42  ;;  %v7416_v20 = vpop.f32.mrb[246].mxu1  ;;  %v7529_v29 = vpop.f32.mrb[246].mxu0  ;;  %10038 = vmatpush1.bf16.msra.mxu1 %v13131_v36 }
 0x936   : > { %v7417_v7 = vadd.f32 %v7416_v20, %v16095_v59  ;;  %v7530_v5 = vadd.f32 %v7529_v29, %v16099_v16  ;;  %v7418_v19 = vpop.f32.mrb[247].mxu1  ;;  %v7531_v0 = vpop.f32.mrb[247].mxu0  ;;  %10039 = vmatprep.subr.bf16.mxu1 %v13136_v27  ;;  %v16265_v59 = vrot.slane %v16085_v44, %v16770_v53  ;;  %v16269_v16 = vrot.slane %v16085_v44, %v16806_v31  ;;  %v13142_v31 = vld [vmem:[#allocation10 + $0x364] ss:$8 sps:$4 sm:$0xff]  }
 0x937   : > { %v7419_v11 = vadd.f32 %v7418_v19, %v16105_v14  ;;  %v7532_v36 = vadd.f32 %v7531_v0, %v16109_v42  ;;  %v7992_v27 = vmax.f32 %v7413_v30, 0.0  ;;  %v7994_v39 = vmax.f32 %v7526_v23, 0.0  ;;  %v13137_v42 = vld [vmem:[#allocation10 + $0x350] ss:$8 sps:$4 sm:$0xff]   ;;  %v13140_v0 = vld [vmem:[#allocation10 + $0x360] ss:$8 sps:$4 sm:$0xff]  }
 0x938   : > { %v8008_v55 = vmax.f32 %v7417_v7, 0.0  ;;  %v8010_v2 = vmax.f32 %v7530_v5, 0.0  ;;  %9971 = vmatmul.mubr.bf16.gmra.mrb[32].mxu1 %v16002_v47  ;;  %v7993_v12 = vmax.f32 %v7415_v22, 0.0  ;;  %v7995_v54 = vmax.f32 %v7528_v61, 0.0 }
 0x939   : > { %v8009_v62 = vmax.f32 %v7419_v11, 0.0  ;;  %v8011_v14 = vmax.f32 %v7532_v36, 0.0  ;;  %9980 = vmatprep.mubr.bf16.mxu1 %v16024_v15  ;;  %10040 = vmatpush1.bf16.msra.mxu1 %v13134_v17 }
 0x93a   : > { %v16273_v53 = vpack.c.bf16 %v8008_v55, %v7992_v27  ;;  %v16275_v20 = vpack.c.bf16 %v8010_v2, %v7994_v39  ;;  %10041 = vmatprep.subr.bf16.mxu1 %v13139_v51  ;;  %v13145_v39 = vld [vmem:[#allocation10 + $0x374] ss:$8 sps:$4 sm:$0xff]  }
 0x93b   : > { %v16277_v44 = vpack.c.bf16 %v8009_v62, %v7993_v12  ;;  %v16279_v30 = vpack.c.bf16 %v8011_v14, %v7995_v54  ;;  %v7568_v23 = vpop.f32.mrb[248].mxu1  ;;  %v7681_v47 = vpop.f32.mrb[248].mxu0 }
 0x93c   : > { %v7569_v22 = vadd.f32 %v7568_v23, %v16255_v4  ;;  %v7682_v61 = vadd.f32 %v7681_v47, %v16259_v56  ;;  %v7570_v29 = vpop.f32.mrb[249].mxu1  ;;  %v7683_v15 = vpop.f32.mrb[249].mxu0 }
 0x93d   : > { %v7571_v17 = vadd.f32 %v7570_v29, %v16265_v59  ;;  %v7684_v7 = vadd.f32 %v7683_v15, %v16269_v16  ;;  %v7572_v5 = vpop.f32.mrb[250].mxu1  ;;  %v7685_v19 = vpop.f32.mrb[250].mxu0  ;;  %10042 = vmatpush1.bf16.msra.mxu1 %v13137_v42  ;;  %v13143_v15 = vld [vmem:[#allocation10 + $0x370] ss:$8 sps:$4 sm:$0xff]  }
 0x93e   : > { %v7573_v51 = vadd.f32 %v7572_v5, %v16255_v4  ;;  %v7686_v11 = vadd.f32 %v7685_v19, %v16259_v56  ;;  %v7574_v36 = vpop.f32.mrb[251].mxu1  ;;  %v7687_v27 = vpop.f32.mrb[251].mxu0  ;;  %10043 = vmatprep.subr.bf16.mxu1 %v13142_v31  ;;  %v7772_v12 = vmax.f32 %v7569_v22, 0.0  ;;  %v7774_v54 = vmax.f32 %v7682_v61, 0.0  ;;  %v13148_v19 = vld [vmem:[#allocation10 + $0x384] ss:$8 sps:$4 sm:$0xff]  }
 0x93f   : > { %v7575_v55 = vadd.f32 %v7574_v36, %v16265_v59  ;;  %v7688_v2 = vadd.f32 %v7687_v27, %v16269_v16  ;;  %v7773_v42 = vmax.f32 %v7571_v17, 0.0  ;;  %v7775_v23 = vmax.f32 %v7684_v7, 0.0 }
 0x940   : > { %v7788_v62 = vmax.f32 %v7573_v51, 0.0  ;;  %v7790_v14 = vmax.f32 %v7686_v11, 0.0  ;;  %9981 = vmatmul.mubr.bf16.gmra.mrb[36].mxu1 %v16020_v26 }
 0x941   : > { %v7789_v47 = vmax.f32 %v7575_v55, 0.0  ;;  %v7791_v29 = vmax.f32 %v7688_v2, 0.0  ;;  %9990 = vmatprep.mubr.bf16.mxu1 %v16042_v43  ;;  %10044 = vmatpush1.bf16.msra.mxu1 %v13140_v0 }
 0x942   : > { %v16291_v31 = vpack.c.bf16 %v7788_v62, %v7772_v12  ;;  %v16293_v5 = vpack.c.bf16 %v7790_v14, %v7774_v54  ;;  %10045 = vmatprep.subr.bf16.mxu1 %v13145_v39  ;;  %v13146_v39 = vld [vmem:[#allocation10 + $0x380] ss:$8 sps:$4 sm:$0xff]   ;;  %v13151_v14 = vld [vmem:[#allocation10 + $0x394] ss:$8 sps:$4 sm:$0xff]  }
 0x943   : > { %v16295_v22 = vpack.c.bf16 %v7789_v47, %v7773_v42  ;;  %v16297_v61 = vpack.c.bf16 %v7791_v29, %v7775_v23  ;;  %v7578_v51 = vpop.f32.mrb[252].mxu1  ;;  %v7691_v26 = vpop.f32.mrb[252].mxu0 }
 0x944   : > { %16828 = vst [vmem:[#allocation20_spill] sm:$0xff] %v16293_v5  ;;  %v7579_v17 = vadd.f32 %v7578_v51, %v16255_v4  ;;  %v7692_v7 = vadd.f32 %v7691_v26, %v16259_v56  ;;  %v7580_v11 = vpop.f32.mrb[253].mxu1  ;;  %v7693_v43 = vpop.f32.mrb[253].mxu0 }
 0x945   : > { %16829 = vst [vmem:[#allocation23_spill] sm:$0xff] %v16297_v61  ;;  %v7581_v0 = vadd.f32 %v7580_v11, %v16265_v59  ;;  %v7694_v36 = vadd.f32 %v7693_v43, %v16269_v16  ;;  %v7582_v27 = vpop.f32.mrb[254].mxu1  ;;  %v7695_v55 = vpop.f32.mrb[254].mxu0  ;;  %10046 = vmatpush1.bf16.msra.mxu1 %v13143_v15 }
 0x946   : > { %v7583_v2 = vadd.f32 %v7582_v27, %v16255_v4  ;;  %v7696_v12 = vadd.f32 %v7695_v55, %v16259_v56  ;;  %v7584_v54 = vpop.f32.mrb[255].mxu1  ;;  %v7697_v62 = vpop.f32.mrb[255].mxu0  ;;  %10047 = vmatprep.subr.bf16.mxu1 %v13148_v19  ;;  %v7804_v47 = vmax.f32 %v7579_v17, 0.0  ;;  %v7806_v29 = vmax.f32 %v7692_v7, 0.0  ;;  %v13149_v55 = vld [vmem:[#allocation10 + $0x390] ss:$8 sps:$4 sm:$0xff]  }
 0x947   : > { %v7585_v42 = vadd.f32 %v7584_v54, %v16265_v59  ;;  %v7698_v23 = vadd.f32 %v7697_v62, %v16269_v16  ;;  %v7805_v15 = vmax.f32 %v7581_v0, 0.0  ;;  %v7807_v11 = vmax.f32 %v7694_v36, 0.0  ;;  %v13154_v54 = vld [vmem:[#allocation10 + $0x3a4] ss:$8 sps:$4 sm:$0xff]  }
 0x948   : > { %v7820_v51 = vmax.f32 %v7583_v2, 0.0  ;;  %v7822_v26 = vmax.f32 %v7696_v12, 0.0  ;;  %9991 = vmatmul.mubr.bf16.gmra.mrb[40].mxu1 %v16038_v28 }
 0x949   : > { %v7821_v43 = vmax.f32 %v7585_v42, 0.0  ;;  %v7823_v27 = vmax.f32 %v7698_v23, 0.0  ;;  %10000 = vmatprep.mubr.bf16.mxu1 %v16060_v9  ;;  %10048 = vmatpush1.bf16.msra.mxu1 %v13146_v39 }
 0x94a   : > { %v16309_v19 = vpack.c.bf16 %v7820_v51, %v7804_v47  ;;  %v16311_v5 = vpack.c.bf16 %v7822_v26, %v7806_v29  ;;  %10049 = vmatprep.subr.bf16.mxu1 %v13151_v14  ;;  %v13152_v14 = vld [vmem:[#allocation10 + $0x3a0] ss:$8 sps:$4 sm:$0xff]  }
 0x94b   : > { %v16313_v17 = vpack.c.bf16 %v7821_v43, %v7805_v15  ;;  %v16315_v7 = vpack.c.bf16 %v7823_v27, %v7807_v11  ;;  %v7588_v2 = vpop.f32.mrb[0].mxu1  ;;  %v7701_v28 = vpop.f32.mrb[0].mxu0  ;;  %v13157_v15 = vld [vmem:[#allocation10 + $0x3b4] ss:$8 sps:$4 sm:$0xff]  }
 0x94c   : > { %16830 = vst [vmem:[#allocation22_spill] sm:$0xff] %v16311_v5  ;;  %v7589_v0 = vadd.f32 %v7588_v2, %v16255_v4  ;;  %v7702_v36 = vadd.f32 %v7701_v28, %v16259_v56  ;;  %v7590_v12 = vpop.f32.mrb[1].mxu1  ;;  %v7703_v9 = vpop.f32.mrb[1].mxu0 }
 0x94d   : > { %16831 = vst [vmem:[#allocation27_spill] sm:$0xff] %v16315_v7  ;;  %v7591_v39 = vadd.f32 %v7590_v12, %v16265_v59  ;;  %v7704_v62 = vadd.f32 %v7703_v9, %v16269_v16  ;;  %v7592_v42 = vpop.f32.mrb[2].mxu1  ;;  %v7705_v23 = vpop.f32.mrb[2].mxu0  ;;  %10050 = vmatpush1.bf16.msra.mxu1 %v13149_v55 }
 0x94e   : > { %v7593_v47 = vadd.f32 %v7592_v42, %v16255_v4  ;;  %v7706_v29 = vadd.f32 %v7705_v23, %v16259_v56  ;;  %v7594_v51 = vpop.f32.mrb[3].mxu1  ;;  %v7707_v26 = vpop.f32.mrb[3].mxu0  ;;  %10051 = vmatprep.subr.bf16.mxu1 %v13154_v54  ;;  %v7836_v27 = vmax.f32 %v7589_v0, 0.0  ;;  %v7838_v2 = vmax.f32 %v7702_v36, 0.0  ;;  %v13155_v23 = vld [vmem:[#allocation10 + $0x3b0] ss:$8 sps:$4 sm:$0xff]  }
 0x94f   : > { %v7595_v11 = vadd.f32 %v7594_v51, %v16265_v59  ;;  %v7708_v43 = vadd.f32 %v7707_v26, %v16269_v16  ;;  %v7837_v55 = vmax.f32 %v7591_v39, 0.0  ;;  %v7839_v9 = vmax.f32 %v7704_v62, 0.0  ;;  %v13160_v51 = vld [vmem:[#allocation10 + $0x3c4] ss:$8 sps:$4 sm:$0xff]  }
 0x950   : > { %v7852_v28 = vmax.f32 %v7593_v47, 0.0  ;;  %v7854_v12 = vmax.f32 %v7706_v29, 0.0  ;;  %10001 = vmatmul.mubr.bf16.gmra.mrb[44].mxu1 %v16056_v3 }
 0x951   : > { %v7853_v5 = vmax.f32 %v7595_v11, 0.0  ;;  %v7855_v42 = vmax.f32 %v7708_v43, 0.0  ;;  %10010 = vmatprep.mubr.bf16.mxu1 %v16078_v33  ;;  %10052 = vmatpush1.bf16.msra.mxu1 %v13152_v14 }
 0x952   : > { %v16327_v54 = vpack.c.bf16 %v7852_v28, %v7836_v27  ;;  %v16329_v7 = vpack.c.bf16 %v7854_v12, %v7838_v2  ;;  %10053 = vmatprep.subr.bf16.mxu1 %v13157_v15  ;;  %v13158_v15 = vld [vmem:[#allocation10 + $0x3c0] ss:$8 sps:$4 sm:$0xff]   ;;  %v13163_v12 = vld [vmem:[#allocation10 + $0x3d4] ss:$8 sps:$4 sm:$0xff]  }
 0x953   : > { %v16331_v0 = vpack.c.bf16 %v7853_v5, %v7837_v55  ;;  %v16333_v36 = vpack.c.bf16 %v7855_v42, %v7839_v9  ;;  %v7598_v47 = vpop.f32.mrb[4].mxu1  ;;  %v7711_v3 = vpop.f32.mrb[4].mxu0 }
 0x954   : > { %16832 = vst [vmem:[#allocation26_spill] sm:$0xff] %v16329_v7  ;;  %v7599_v39 = vadd.f32 %v7598_v47, %v16255_v4  ;;  %v7712_v62 = vadd.f32 %v7711_v3, %v16259_v56  ;;  %v7600_v29 = vpop.f32.mrb[5].mxu1  ;;  %v7713_v33 = vpop.f32.mrb[5].mxu0 }
 0x955   : > { %16833 = vst [vmem:[#allocation36_spill] sm:$0xff] %v16333_v36  ;;  %v7601_v14 = vadd.f32 %v7600_v29, %v16265_v59  ;;  %v7714_v26 = vadd.f32 %v7713_v33, %v16269_v16  ;;  %v7602_v11 = vpop.f32.mrb[6].mxu1  ;;  %v7715_v43 = vpop.f32.mrb[6].mxu0  ;;  %10054 = vmatpush1.bf16.msra.mxu1 %v13155_v23 }
 0x956   : > { %v7603_v5 = vadd.f32 %v7602_v11, %v16255_v4  ;;  %v7716_v27 = vadd.f32 %v7715_v43, %v16259_v56  ;;  %v7604_v2 = vpop.f32.mrb[7].mxu1  ;;  %v7717_v28 = vpop.f32.mrb[7].mxu0  ;;  %10055 = vmatprep.subr.bf16.mxu1 %v13160_v51  ;;  %v7868_v42 = vmax.f32 %v7599_v39, 0.0  ;;  %v7870_v47 = vmax.f32 %v7712_v62, 0.0  ;;  %v13161_v43 = vld [vmem:[#allocation10 + $0x3d0] ss:$8 sps:$4 sm:$0xff]  }
 0x957   : > { %v7605_v55 = vadd.f32 %v7604_v2, %v16265_v59  ;;  %v7718_v9 = vadd.f32 %v7717_v28, %v16269_v16  ;;  %v7869_v23 = vmax.f32 %v7601_v14, 0.0  ;;  %v7871_v33 = vmax.f32 %v7714_v26, 0.0  ;;  %v13166_v2 = vld [vmem:[#allocation10 + $0x3e4] ss:$8 sps:$4 sm:$0xff]  }
 0x958   : > { %v7884_v3 = vmax.f32 %v7603_v5, 0.0  ;;  %v7886_v29 = vmax.f32 %v7716_v27, 0.0  ;;  %10011 = vmatmul.mubr.bf16.gmra.mrb[48].mxu1 %v16074_v40 }
 0x959   : > { %v7885_v7 = vmax.f32 %v7605_v55, 0.0  ;;  %v7887_v11 = vmax.f32 %v7718_v9, 0.0  ;;  %10020 = vmatprep.mubr.bf16.mxu1 %v16117_v45  ;;  %10056 = vmatpush1.bf16.msra.mxu1 %v13158_v15 }
 0x95a   : > { %v16345_v51 = vpack.c.bf16 %v7884_v3, %v7868_v42  ;;  %v16347_v36 = vpack.c.bf16 %v7886_v29, %v7870_v47  ;;  %10057 = vmatprep.subr.bf16.mxu1 %v13163_v12  ;;  %v13164_v12 = vld [vmem:[#allocation10 + $0x3e0] ss:$8 sps:$4 sm:$0xff]   ;;  %v13169_v29 = vld [vmem:[#allocation10 + $0x3f4] ss:$8 sps:$4 sm:$0xff]  }
 0x95b   : > { %v16349_v39 = vpack.c.bf16 %v7885_v7, %v7869_v23  ;;  %v16351_v62 = vpack.c.bf16 %v7887_v11, %v7871_v33  ;;  %v7608_v5 = vpop.f32.mrb[8].mxu1  ;;  %v7721_v40 = vpop.f32.mrb[8].mxu0 }
 0x95c   : > { %16834 = vst [vmem:[#allocation57_spill] sm:$0xff] %v16347_v36  ;;  %v7609_v14 = vadd.f32 %v7608_v5, %v16255_v4  ;;  %v7722_v26 = vadd.f32 %v7721_v40, %v16259_v56  ;;  %v7610_v27 = vpop.f32.mrb[9].mxu1  ;;  %v7723_v45 = vpop.f32.mrb[9].mxu0 }
 0x95d   : > { %16835 = vst [vmem:[#allocation58_spill] sm:$0xff] %v16351_v62  ;;  %v7611_v15 = vadd.f32 %v7610_v27, %v16265_v59  ;;  %v7724_v28 = vadd.f32 %v7723_v45, %v16269_v16  ;;  %v7612_v55 = vpop.f32.mrb[10].mxu1  ;;  %v7725_v9 = vpop.f32.mrb[10].mxu0  ;;  %10058 = vmatpush1.bf16.msra.mxu1 %v13161_v43 }
 0x95e   : > { %v7613_v7 = vadd.f32 %v7612_v55, %v16255_v4  ;;  %v7726_v42 = vadd.f32 %v7725_v9, %v16259_v56  ;;  %v7614_v47 = vpop.f32.mrb[11].mxu1  ;;  %v7727_v3 = vpop.f32.mrb[11].mxu0  ;;  %10059 = vmatprep.subr.bf16.mxu1 %v13166_v2  ;;  %v7900_v11 = vmax.f32 %v7609_v14, 0.0  ;;  %v7902_v5 = vmax.f32 %v7722_v26, 0.0  ;;  %v13167_v9 = vld [vmem:[#allocation10 + $0x3f0] ss:$8 sps:$4 sm:$0xff]  }
 0x95f   : > { %v7615_v23 = vadd.f32 %v7614_v47, %v16265_v59  ;;  %v7728_v33 = vadd.f32 %v7727_v3, %v16269_v16  ;;  %v7901_v43 = vmax.f32 %v7611_v15, 0.0  ;;  %v7903_v45 = vmax.f32 %v7724_v28, 0.0  ;;  %v13172_v47 = vld [vmem:[#allocation10 + $0x404] ss:$8 sps:$4 sm:$0xff]  }
 0x960   : > { %v7916_v40 = vmax.f32 %v7613_v7, 0.0  ;;  %v7918_v27 = vmax.f32 %v7726_v42, 0.0  ;;  %10021 = vmatmul.mubr.bf16.gmra.mrb[52].mxu1 %v16113_v34 }
 0x961   : > { %v7917_v36 = vmax.f32 %v7615_v23, 0.0  ;;  %v7919_v55 = vmax.f32 %v7728_v33, 0.0  ;;  %10060 = vmatpush1.bf16.msra.mxu1 %v13164_v12  ;;  %10063 = vmatprep.mubr.bf16.mxu1 %v15972_v52 }
 0x962   : > { %v16363_v2 = vpack.c.bf16 %v7916_v40, %v7900_v11  ;;  %v16365_v62 = vpack.c.bf16 %v7918_v27, %v7902_v5  ;;  %10061 = vmatprep.subr.bf16.mxu1 %v13169_v29  ;;  %v13170_v29 = vld [vmem:[#allocation10 + $0x400] ss:$8 sps:$4 sm:$0xff]   ;;  %v13175_v27 = vld [vmem:[#allocation10 + $0x414] ss:$8 sps:$4 sm:$0xff]  }
 0x963   : > { %v16367_v14 = vpack.c.bf16 %v7917_v36, %v7901_v43  ;;  %v16369_v26 = vpack.c.bf16 %v7919_v55, %v7903_v45  ;;  %v7618_v7 = vpop.f32.mrb[12].mxu1  ;;  %v7731_v34 = vpop.f32.mrb[12].mxu0 }
 0x964   : > { %16836 = vst [vmem:[#allocation38_spill] sm:$0xff] %v16365_v62  ;;  %v7619_v15 = vadd.f32 %v7618_v7, %v16255_v4  ;;  %v7732_v28 = vadd.f32 %v7731_v34, %v16259_v56  ;;  %v7620_v12 = vpop.f32.mrb[13].mxu1  ;;  %v7733_v42 = vpop.f32.mrb[13].mxu0 }
 0x965   : > { %16837 = vst [vmem:[#allocation59_spill] sm:$0xff] %v16369_v26  ;;  %v7621_v52 = vadd.f32 %v7620_v12, %v16265_v59  ;;  %v7734_v3 = vadd.f32 %v7733_v42, %v16269_v16  ;;  %v7622_v23 = vpop.f32.mrb[14].mxu1  ;;  %v7735_v33 = vpop.f32.mrb[14].mxu0  ;;  %10062 = vmatpush1.bf16.msra.mxu1 %v13167_v9 }
 0x966   : > { %v7623_v36 = vadd.f32 %v7622_v23, %v16255_v4  ;;  %v7736_v11 = vadd.f32 %v7735_v33, %v16259_v56  ;;  %v7624_v5 = vpop.f32.mrb[15].mxu1  ;;  %v7737_v40 = vpop.f32.mrb[15].mxu0  ;;  %10144 = vmatprep.subr.bf16.mxu1 %v13172_v47  ;;  %v7932_v55 = vmax.f32 %v7619_v15, 0.0  ;;  %v7934_v7 = vmax.f32 %v7732_v28, 0.0  ;;  %v13173_v33 = vld [vmem:[#allocation10 + $0x410] ss:$8 sps:$4 sm:$0xff]  }
 0x967   : > { %v7625_v43 = vadd.f32 %v7624_v5, %v16265_v59  ;;  %v7738_v45 = vadd.f32 %v7737_v40, %v16269_v16  ;;  %v7933_v9 = vmax.f32 %v7621_v52, 0.0  ;;  %v7935_v42 = vmax.f32 %v7734_v3, 0.0  ;;  %v13178_v5 = vld [vmem:[#allocation10 + $0x424] ss:$8 sps:$4 sm:$0xff]  }
 0x968   : > { %v7948_v34 = vmax.f32 %v7623_v36, 0.0  ;;  %v7950_v12 = vmax.f32 %v7736_v11, 0.0  ;;  %10064 = vmatmul.mubr.bf16.vlgmr.msra.gmra.mrb[24].mxu1 %v15968_v32 }
 0x969   : > { %v7949_v62 = vmax.f32 %v7625_v43, 0.0  ;;  %v7951_v23 = vmax.f32 %v7738_v45, 0.0  ;;  %10073 = vmatprep.mubr.bf16.mxu1 %v15990_v6  ;;  %10145 = vmatpush1.bf16.msra.mxu1 %v13170_v29 }
 0x96a   : > { %v16381_v47 = vpack.c.bf16 %v7948_v34, %v7932_v55  ;;  %v16383_v26 = vpack.c.bf16 %v7950_v12, %v7934_v7  ;;  %10146 = vmatprep.subr.bf16.mxu1 %v13175_v27  ;;  %v13176_v27 = vld [vmem:[#allocation10 + $0x420] ss:$8 sps:$4 sm:$0xff]   ;;  %v13181_v12 = vld [vmem:[#allocation10 + $0x434] ss:$8 sps:$4 sm:$0xff]  }
 0x96b   : > { %v16385_v15 = vpack.c.bf16 %v7949_v62, %v7933_v9  ;;  %v16387_v28 = vpack.c.bf16 %v7951_v23, %v7935_v42  ;;  %v7628_v36 = vpop.f32.mrb[16].mxu1  ;;  %v7741_v32 = vpop.f32.mrb[16].mxu0 }
 0x96c   : > { %16838 = vst [vmem:[#allocation60_spill] sm:$0xff] %v16383_v26  ;;  %v7629_v52 = vadd.f32 %v7628_v36, %v16255_v4  ;;  %v7742_v3 = vadd.f32 %v7741_v32, %v16259_v56  ;;  %v7630_v11 = vpop.f32.mrb[17].mxu1  ;;  %v7743_v6 = vpop.f32.mrb[17].mxu0 }
 0x96d   : > { %16839 = vst [vmem:[#allocation40_spill] sm:$0xff] %v16387_v28  ;;  %v7631_v29 = vadd.f32 %v7630_v11, %v16265_v59  ;;  %v7744_v40 = vadd.f32 %v7743_v6, %v16269_v16  ;;  %v7632_v43 = vpop.f32.mrb[18].mxu1  ;;  %v7745_v45 = vpop.f32.mrb[18].mxu0  ;;  %10147 = vmatpush1.bf16.msra.mxu1 %v13173_v33  ;;  %v16840_v28 = vld [vmem:[#allocation49_spill] sm:$0xff] }
 0x96e   : > { %v7633_v62 = vadd.f32 %v7632_v43, %v16255_v4  ;;  %v7746_v55 = vadd.f32 %v7745_v45, %v16259_v56  ;;  %v7634_v7 = vpop.f32.mrb[19].mxu1  ;;  %v7747_v34 = vpop.f32.mrb[19].mxu0  ;;  %10148 = vmatprep.subr.bf16.mxu1 %v13178_v5  ;;  %v7964_v23 = vmax.f32 %v7629_v52, 0.0  ;;  %v7966_v36 = vmax.f32 %v7742_v3, 0.0  ;;  %v13179_v45 = vld [vmem:[#allocation10 + $0x430] ss:$8 sps:$4 sm:$0xff]  }
 0x96f   : > { %v7635_v9 = vadd.f32 %v7634_v7, %v16265_v59  ;;  %v7748_v42 = vadd.f32 %v7747_v34, %v16269_v16  ;;  %v7965_v33 = vmax.f32 %v7631_v29, 0.0  ;;  %v7967_v6 = vmax.f32 %v7744_v40, 0.0  ;;  %v13184_v7 = vld [vmem:[#allocation10 + $0x444] ss:$8 sps:$4 sm:$0xff]  }
 0x970   : > { %v7980_v32 = vmax.f32 %v7633_v62, 0.0  ;;  %v7982_v11 = vmax.f32 %v7746_v55, 0.0  ;;  %10074 = vmatmul.mubr.bf16.gmra.mrb[28].mxu1 %v15986_v49 }
 0x971   : > { %v7981_v26 = vmax.f32 %v7635_v9, 0.0  ;;  %v7983_v43 = vmax.f32 %v7748_v42, 0.0  ;;  %10083 = vmatprep.mubr.bf16.mxu1 %v16840_v28  ;;  %10149 = vmatpush1.bf16.msra.mxu1 %v13176_v27 }
 0x972   : > { %v16399_v5 = vpack.c.bf16 %v7980_v32, %v7964_v23  ;;  %v16401_v61 = vpack.c.bf16 %v7982_v11, %v7966_v36  ;;  %10150 = vmatprep.subr.bf16.mxu1 %v13181_v12  ;;  %v13182_v12 = vld [vmem:[#allocation10 + $0x440] ss:$8 sps:$4 sm:$0xff]   ;;  %v13187_v11 = vld [vmem:[#allocation10 + $0x454] ss:$8 sps:$4 sm:$0xff]  }
 0x973   : > { %v16403_v52 = vpack.c.bf16 %v7981_v26, %v7965_v33  ;;  %v16405_v3 = vpack.c.bf16 %v7983_v43, %v7967_v6  ;;  %v7638_v62 = vpop.f32.mrb[20].mxu1  ;;  %v7751_v49 = vpop.f32.mrb[20].mxu0 }
 0x974   : > { %16841 = vst [vmem:[#allocation61_spill] sm:$0xff] %v16401_v61  ;;  %v7639_v29 = vadd.f32 %v7638_v62, %v16255_v4  ;;  %v7752_v40 = vadd.f32 %v7751_v49, %v16259_v56  ;;  %v7640_v55 = vpop.f32.mrb[21].mxu1  ;;  %v7753_v28 = vpop.f32.mrb[21].mxu0 }
 0x975   : > { %16842 = vst [vmem:[#allocation62_spill] sm:$0xff] %v16405_v3  ;;  %v7641_v27 = vadd.f32 %v7640_v55, %v16265_v59  ;;  %v7754_v34 = vadd.f32 %v7753_v28, %v16269_v16  ;;  %v7642_v9 = vpop.f32.mrb[22].mxu1  ;;  %v7755_v42 = vpop.f32.mrb[22].mxu0  ;;  %10151 = vmatpush1.bf16.msra.mxu1 %v13179_v45  ;;  %v16843_v28 = vld [vmem:[#allocation31_spill] sm:$0xff] }
 0x976   : > { %v7643_v26 = vadd.f32 %v7642_v9, %v16255_v4  ;;  %v7756_v23 = vadd.f32 %v7755_v42, %v16259_v56  ;;  %v7644_v36 = vpop.f32.mrb[23].mxu1  ;;  %v7757_v32 = vpop.f32.mrb[23].mxu0  ;;  %10152 = vmatprep.subr.bf16.mxu1 %v13184_v7  ;;  %v7996_v43 = vmax.f32 %v7639_v29, 0.0  ;;  %v7998_v62 = vmax.f32 %v7752_v40, 0.0  ;;  %v16844_v9 = vld [vmem:[#allocation32_spill] sm:$0xff] }
 0x977   : > { %v7645_v33 = vadd.f32 %v7644_v36, %v16265_v59  ;;  %v7758_v6 = vadd.f32 %v7757_v32, %v16269_v16  ;;  %v7997_v45 = vmax.f32 %v7641_v27, 0.0  ;;  %v7999_v61 = vmax.f32 %v7754_v34, 0.0  ;;  %v13185_v56 = vld [vmem:[#allocation10 + $0x450] ss:$8 sps:$4 sm:$0xff]   ;;  %v13190_v59 = vld [vmem:[#allocation10 + $0x464] ss:$8 sps:$4 sm:$0xff]  }
 0x978   : > { %v8012_v49 = vmax.f32 %v7643_v26, 0.0  ;;  %v8014_v55 = vmax.f32 %v7756_v23, 0.0  ;;  %10084 = vmatmul.mubr.bf16.gmra.mrb[32].mxu1 %v16843_v28  ;;  %v13188_v40 = vld [vmem:[#allocation10 + $0x460] ss:$8 sps:$4 sm:$0xff]   ;;  %v13193_v27 = vld [vmem:[#allocation10 + $0x474] ss:$8 sps:$4 sm:$0xff]  }
 0x979   : > { %v8013_v3 = vmax.f32 %v7645_v33, 0.0  ;;  %v8015_v4 = vmax.f32 %v7758_v6, 0.0  ;;  %10093 = vmatprep.mubr.bf16.mxu1 %v16844_v9  ;;  %10153 = vmatpush1.bf16.msra.mxu1 %v13182_v12  ;;  %v16845_v34 = vld [vmem:[#allocation51_spill] sm:$0xff]  ;;  %v13191_v12 = vld [vmem:[#allocation10 + $0x470] ss:$8 sps:$4 sm:$0xff]  }
 0x97a   : > { %v16417_v7 = vpack.c.bf16 %v8012_v49, %v7996_v43  ;;  %v16419_v42 = vpack.c.bf16 %v8014_v55, %v7998_v62  ;;  %10154 = vmatprep.subr.bf16.mxu1 %v13187_v11  ;;  %v16846_v26 = vld [vmem:[#allocation55_spill] sm:$0xff]  ;;  %v13199_v32 = vld [vmem:[#allocation10 + $0x494] ss:$8 sps:$4 sm:$0xff]   ;;  %v13197_v11 = vld [vmem:[#allocation10 + $0x490] ss:$8 sps:$4 sm:$0xff]  }
 0x97b   : > { %v16421_v16 = vpack.c.bf16 %v8013_v3, %v7997_v45  ;;  %v16423_v29 = vpack.c.bf16 %v8015_v4, %v7999_v61  ;;  %v13196_v23 = vld [vmem:[#allocation10 + $0x484] ss:$8 sps:$4 sm:$0xff]   ;;  %v13194_v36 = vld [vmem:[#allocation10 + $0x480] ss:$8 sps:$4 sm:$0xff]   ;;  %v16847_v3 = vld [vmem:[#allocation33_spill] sm:$0xff] }
 0x97c   : > { %v16848_v61 = vld [vmem:[#allocation54_spill] sm:$0xff]  ;;  %v13205_v43 = vld [vmem:[#allocation10 + $0x4b4] ss:$8 sps:$4 sm:$0xff]   ;;  %v13203_v49 = vld [vmem:[#allocation10 + $0x4b0] ss:$8 sps:$4 sm:$0xff]  }
 0x97d   : > { %10155 = vmatpush1.bf16.msra.mxu1 %v13185_v56  ;;  %v13202_v33 = vld [vmem:[#allocation10 + $0x4a4] ss:$8 sps:$4 sm:$0xff]   ;;  %v13200_v6 = vld [vmem:[#allocation10 + $0x4a0] ss:$8 sps:$4 sm:$0xff]   ;;  %v16849_v62 = vld [vmem:[#allocation52_spill] sm:$0xff] }
 0x97e   : > { %10156 = vmatprep.subr.bf16.mxu1 %v13190_v59  ;;  %v13208_v55 = vld [vmem:[#allocation10 + $0x4c4] ss:$8 sps:$4 sm:$0xff]   ;;  %v13206_v28 = vld [vmem:[#allocation10 + $0x4c0] ss:$8 sps:$4 sm:$0xff]   ;;  %v13211_v45 = vld [vmem:[#allocation10 + $0x4d4] ss:$8 sps:$4 sm:$0xff]  }
 0x97f   : > { %v13209_v4 = vld [vmem:[#allocation10 + $0x4d0] ss:$8 sps:$4 sm:$0xff]   ;;  %v13214_v9 = vld [vmem:[#allocation10 + $0x4e4] ss:$8 sps:$4 sm:$0xff]   ;;  %v13212_v56 = vld [vmem:[#allocation10 + $0x4e0] ss:$8 sps:$4 sm:$0xff]  }
 0x980   : > { %10094 = vmatmul.mubr.bf16.gmra.mrb[36].mxu1 %v16845_v34  ;;  %v16850_v59 = vld [vmem:[#allocation34_spill] sm:$0xff]  ;;  %v13221_v34 = vld [vmem:[#allocation10 + $0x510] ss:$8 sps:$4 sm:$0xff]  }
 0x981   : > { %10103 = vmatprep.mubr.bf16.mxu1 %v16846_v26  ;;  %10157 = vmatpush1.bf16.msra.mxu1 %v13188_v40  ;;  %v13215_v40 = vld [vmem:[#allocation10 + $0x4f0] ss:$8 sps:$4 sm:$0xff]   ;;  %v13226_v26 = vld [vmem:[#allocation10 + $0x524] ss:$8 sps:$4 sm:$0xff]  }
 0x982   : > { %10158 = vmatprep.subr.bf16.mxu1 %v13193_v27  ;;  %v13220_v27 = vld [vmem:[#allocation10 + $0x504] ss:$8 sps:$4 sm:$0xff]  }
 0x985   : > { %10159 = vmatpush1.bf16.msra.mxu1 %v13191_v12  ;;  %v13224_v12 = vld [vmem:[#allocation10 + $0x520] ss:$8 sps:$4 sm:$0xff]  }
 0x986   : > { %10160 = vmatprep.subr.bf16.mxu1 %v13196_v23  ;;  %v13229_v23 = vld [vmem:[#allocation10 + $0x534] ss:$8 sps:$4 sm:$0xff]  }
 0x988   : > { %10104 = vmatmul.mubr.bf16.gmra.mrb[40].mxu1 %v16847_v3  ;;  %v13238_v3 = vld [vmem:[#allocation10 + $0x564] ss:$8 sps:$4 sm:$0xff]  }
 0x989   : > { %10113 = vmatprep.mubr.bf16.mxu1 %v16848_v61  ;;  %10161 = vmatpush1.bf16.msra.mxu1 %v13194_v36  ;;  %v13232_v36 = vld [vmem:[#allocation10 + $0x544] ss:$8 sps:$4 sm:$0xff]   ;;  %v13239_v61 = vld [vmem:[#allocation10 + $0x570] ss:$8 sps:$4 sm:$0xff]  }
 0x98a   : > { %10162 = vmatprep.subr.bf16.mxu1 %v13199_v32  ;;  %v13233_v32 = vld [vmem:[#allocation10 + $0x550] ss:$8 sps:$4 sm:$0xff]  }
 0x98d   : > { %10163 = vmatpush1.bf16.msra.mxu1 %v13197_v11  ;;  %v13244_v11 = vld [vmem:[#allocation10 + $0x584] ss:$8 sps:$4 sm:$0xff]  }
 0x98e   : > { %10164 = vmatprep.subr.bf16.mxu1 %v13202_v33  ;;  %v13245_v33 = vld [vmem:[#allocation10 + $0x590] ss:$8 sps:$4 sm:$0xff]  }
 0x990   : > { %10114 = vmatmul.mubr.bf16.gmra.mrb[44].mxu1 %v16849_v62  ;;  %v13256_v62 = vld [vmem:[#allocation10 + $0x5c4] ss:$8 sps:$4 sm:$0xff]  }
 0x991   : > { %10123 = vmatprep.mubr.bf16.mxu1 %v16080_v63  ;;  %10165 = vmatpush1.bf16.msra.mxu1 %v13200_v6  ;;  %v13217_v63 = vld [vmem:[#allocation10 + $0x4f4] ss:$8 sps:$4 sm:$0xff]   ;;  %v13250_v6 = vld [vmem:[#allocation10 + $0x5a4] ss:$8 sps:$4 sm:$0xff]  }
 0x992   : > { %10166 = vmatprep.subr.bf16.mxu1 %v13205_v43  ;;  %v13251_v43 = vld [vmem:[#allocation10 + $0x5b0] ss:$8 sps:$4 sm:$0xff]  }
 0x995   : > { %10167 = vmatpush1.bf16.msra.mxu1 %v13203_v49  ;;  %v13257_v49 = vld [vmem:[#allocation10 + $0x5d0] ss:$8 sps:$4 sm:$0xff]  }
 0x996   : > { %10168 = vmatprep.subr.bf16.mxu1 %v13208_v55  ;;  %v13262_v55 = vld [vmem:[#allocation10 + $0x5e4] ss:$8 sps:$4 sm:$0xff]  }
 0x998   : > { %10124 = vmatmul.mubr.bf16.gmra.mrb[48].mxu1 %v16076_v24  ;;  %v13218_v24 = vld [vmem:[#allocation10 + $0x500] ss:$8 sps:$4 sm:$0xff]  }
 0x999   : > { %10133 = vmatprep.mubr.bf16.mxu1 %v16119_v13  ;;  %10169 = vmatpush1.bf16.msra.mxu1 %v13206_v28  ;;  %v13223_v13 = vld [vmem:[#allocation10 + $0x514] ss:$8 sps:$4 sm:$0xff]  }
 0x99a   : > { %10170 = vmatprep.subr.bf16.mxu1 %v13211_v45  ;;  %v16851_v28 = vld [vmem:[#allocation37_spill] sm:$0xff] }
 0x99b   : > { %v13263_v45 = vld [vmem:[#allocation10 + $0x5f0] ss:$8 sps:$4 sm:$0xff]  }
 0x99d   : > { %10171 = vmatpush1.bf16.msra.mxu1 %v13209_v4  ;;  %v13268_v4 = vld [vmem:[#allocation10 + $0x604] ss:$8 sps:$4 sm:$0xff]  }
 0x99e   : > { %10172 = vmatprep.subr.bf16.mxu1 %v13214_v9  ;;  %v16852_v9 = vld [vmem:[#allocation35_spill] sm:$0xff] }
 0x9a0   : > { %10134 = vmatmul.mubr.bf16.gmra.mrb[52].mxu1 %v16850_v59  ;;  %v13274_v59 = vld [vmem:[#allocation10 + $0x624] ss:$8 sps:$4 sm:$0xff]  }
 0x9a1   : > { %10173 = vmatpush1.bf16.msra.mxu1 %v13212_v56  ;;  %10176 = vmatprep.mubr.bf16.mxu1 %v16135_v57  ;;  %v13227_v57 = vld [vmem:[#allocation10 + $0x530] ss:$8 sps:$4 sm:$0xff]  }
 0x9a2   : > { %10174 = vmatprep.subr.bf16.mxu1 %v13217_v63  ;;  %v16853_v56 = vld [vmem:[#allocation41_spill] sm:$0xff] }
 0x9a3   : > { %v13269_v63 = vld [vmem:[#allocation10 + $0x610] ss:$8 sps:$4 sm:$0xff]  }
 0x9a5   : > { %10175 = vmatpush1.bf16.msra.mxu1 %v13215_v40  ;;  %v13277_v40 = vld [vmem:[#allocation10 + $0x634] ss:$8 sps:$4 sm:$0xff]  }
 0x9a6   : > { %10257 = vmatprep.subr.bf16.mxu1 %v13220_v27  ;;  %v16854_v27 = vld [vmem:[#allocation39_spill] sm:$0xff] }
 0x9a8   : > { %10177 = vmatmul.mubr.bf16.vlgmr.msra.gmra.mrb[24].mxu1 %v16131_v10  ;;  %v13230_v10 = vld [vmem:[#allocation10 + $0x540] ss:$8 sps:$4 sm:$0xff]  }
 0x9a9   : > { %10186 = vmatprep.mubr.bf16.mxu1 %v16153_v35  ;;  %10258 = vmatpush1.bf16.msra.mxu1 %v13218_v24  ;;  %v13235_v35 = vld [vmem:[#allocation10 + $0x554] ss:$8 sps:$4 sm:$0xff]  }
 0x9aa   : > { %10259 = vmatprep.subr.bf16.mxu1 %v13223_v13  ;;  %v16855_v24 = vld [vmem:[#allocation28_spill] sm:$0xff] }
 0x9ab   : > { %v13275_v13 = vld [vmem:[#allocation10 + $0x630] ss:$8 sps:$4 sm:$0xff]  }
 0x9ad   : > { %10260 = vmatpush1.bf16.msra.mxu1 %v13221_v34  ;;  %v13280_v34 = vld [vmem:[#allocation10 + $0x644] ss:$8 sps:$4 sm:$0xff]  }
 0x9ae   : > { %10261 = vmatprep.subr.bf16.mxu1 %v13226_v26  ;;  %v13278_v26 = vld [vmem:[#allocation10 + $0x640] ss:$8 sps:$4 sm:$0xff]  }
 0x9b0   : > { %10187 = vmatmul.mubr.bf16.gmra.mrb[28].mxu1 %v16149_v58  ;;  %v13236_v58 = vld [vmem:[#allocation10 + $0x560] ss:$8 sps:$4 sm:$0xff]  }
 0x9b1   : > { %10196 = vmatprep.mubr.bf16.mxu1 %v16171_v60  ;;  %10262 = vmatpush1.bf16.msra.mxu1 %v13224_v12  ;;  %v13241_v60 = vld [vmem:[#allocation10 + $0x574] ss:$8 sps:$4 sm:$0xff]  }
 0x9b2   : > { %10263 = vmatprep.subr.bf16.mxu1 %v13229_v23  ;;  %v13283_v12 = vld [vmem:[#allocation10 + $0x654] ss:$8 sps:$4 sm:$0xff]   ;;  %v16856_v23 = vld [vmem:[#allocation42_spill] sm:$0xff] }
 0x9b5   : > { %10264 = vmatpush1.bf16.msra.mxu1 %v13227_v57  ;;  %v16857_v57 = vld [vmem:[#allocation44_spill] sm:$0xff] }
 0x9b6   : > { %10265 = vmatprep.subr.bf16.mxu1 %v13232_v36  ;;  %v13281_v36 = vld [vmem:[#allocation10 + $0x650] ss:$8 sps:$4 sm:$0xff]  }
 0x9b8   : > { %10197 = vmatmul.mubr.bf16.gmra.mrb[32].mxu1 %v16167_v46  ;;  %v13242_v46 = vld [vmem:[#allocation10 + $0x580] ss:$8 sps:$4 sm:$0xff]  }
 0x9b9   : > { %10206 = vmatprep.mubr.bf16.mxu1 %v16189_v48  ;;  %10266 = vmatpush1.bf16.msra.mxu1 %v13230_v10  ;;  %v13247_v48 = vld [vmem:[#allocation10 + $0x594] ss:$8 sps:$4 sm:$0xff]   ;;  %v13286_v10 = vld [vmem:[#allocation10 + $0x664] ss:$8 sps:$4 sm:$0xff]  }
 0x9ba   : > { %10267 = vmatprep.subr.bf16.mxu1 %v13235_v35  ;;  %v13284_v35 = vld [vmem:[#allocation10 + $0x660] ss:$8 sps:$4 sm:$0xff]  }
 0x9bd   : > { %10268 = vmatpush1.bf16.msra.mxu1 %v13233_v32  ;;  %v13289_v32 = vld [vmem:[#allocation10 + $0x674] ss:$8 sps:$4 sm:$0xff]  }
 0x9be   : > { %10269 = vmatprep.subr.bf16.mxu1 %v13238_v3  ;;  %v16858_v3 = vld [vmem:[#allocation30_spill] sm:$0xff] }
 0x9c0   : > { %10207 = vmatmul.mubr.bf16.gmra.mrb[36].mxu1 %v16185_v38  ;;  %v13248_v38 = vld [vmem:[#allocation10 + $0x5a0] ss:$8 sps:$4 sm:$0xff]  }
 0x9c1   : > { %10216 = vmatprep.mubr.bf16.mxu1 %v16207_v8  ;;  %10270 = vmatpush1.bf16.msra.mxu1 %v13236_v58  ;;  %v13253_v8 = vld [vmem:[#allocation10 + $0x5b4] ss:$8 sps:$4 sm:$0xff]   ;;  %v16859_v58 = vld [vmem:[#allocation46_spill] sm:$0xff] }
 0x9c2   : > { %10271 = vmatprep.subr.bf16.mxu1 %v13241_v60  ;;  %v13287_v60 = vld [vmem:[#allocation10 + $0x670] ss:$8 sps:$4 sm:$0xff]  }
 0x9c5   : > { %10272 = vmatpush1.bf16.msra.mxu1 %v13239_v61  ;;  %v13292_v61 = vld [vmem:[#allocation10 + $0x684] ss:$8 sps:$4 sm:$0xff]  }
 0x9c6   : > { %10273 = vmatprep.subr.bf16.mxu1 %v13244_v11  ;;  %v13290_v11 = vld [vmem:[#allocation10 + $0x680] ss:$8 sps:$4 sm:$0xff]  }
 0x9c8   : > { %10217 = vmatmul.mubr.bf16.gmra.mrb[40].mxu1 %v16203_v50  ;;  %v13254_v50 = vld [vmem:[#allocation10 + $0x5c0] ss:$8 sps:$4 sm:$0xff]  }
 0x9c9   : > { %10226 = vmatprep.mubr.bf16.mxu1 %v16225_v37  ;;  %10274 = vmatpush1.bf16.msra.mxu1 %v13242_v46  ;;  %v13259_v37 = vld [vmem:[#allocation10 + $0x5d4] ss:$8 sps:$4 sm:$0xff]  }
 0x9ca   : > { %10275 = vmatprep.subr.bf16.mxu1 %v13247_v48  ;;  %v13295_v46 = vld [vmem:[#allocation10 + $0x694] ss:$8 sps:$4 sm:$0xff]  }
 0x9cb   : > { %v16860_v48 = vld [vmem:[#allocation45_spill] sm:$0xff] }
 0x9cd   : > { %10276 = vmatpush1.bf16.msra.mxu1 %v13245_v33  ;;  %v16861_v33 = vld [vmem:[#allocation21_spill] sm:$0xff] }
 0x9ce   : > { %10277 = vmatprep.subr.bf16.mxu1 %v13250_v6  ;;  %v13293_v6 = vld [vmem:[#allocation10 + $0x690] ss:$8 sps:$4 sm:$0xff]  }
 0x9d0   : > { %10227 = vmatmul.mubr.bf16.gmra.mrb[44].mxu1 %v16221_v21  ;;  %v13260_v21 = vld [vmem:[#allocation10 + $0x5e0] ss:$8 sps:$4 sm:$0xff]  }
 0x9d1   : > { %10236 = vmatprep.mubr.bf16.mxu1 %v16243_v25  ;;  %10278 = vmatpush1.bf16.msra.mxu1 %v13248_v38  ;;  %v13265_v25 = vld [vmem:[#allocation10 + $0x5f4] ss:$8 sps:$4 sm:$0xff]   ;;  %v13298_v38 = vld [vmem:[#allocation10 + $0x6a4] ss:$8 sps:$4 sm:$0xff]  }
 0x9d2   : > { %10279 = vmatprep.subr.bf16.mxu1 %v13253_v8  ;;  %v13296_v8 = vld [vmem:[#allocation10 + $0x6a0] ss:$8 sps:$4 sm:$0xff]  }
 0x9d5   : > { %10280 = vmatpush1.bf16.msra.mxu1 %v13251_v43  ;;  %v13301_v43 = vld [vmem:[#allocation10 + $0x6b4] ss:$8 sps:$4 sm:$0xff]  }
 0x9d6   : > { %10281 = vmatprep.subr.bf16.mxu1 %v13256_v62  ;;  %v16862_v62 = vld [vmem:[#allocation48_spill] sm:$0xff] }
 0x9d8   : > { %10237 = vmatmul.mubr.bf16.gmra.mrb[48].mxu1 %v16239_v18  ;;  %v13266_v18 = vld [vmem:[#allocation10 + $0x600] ss:$8 sps:$4 sm:$0xff]  }
 0x9d9   : > { %10246 = vmatprep.mubr.bf16.mxu1 %v16277_v44  ;;  %10282 = vmatpush1.bf16.msra.mxu1 %v13254_v50  ;;  %v13271_v44 = vld [vmem:[#allocation10 + $0x614] ss:$8 sps:$4 sm:$0xff]   ;;  %v13299_v50 = vld [vmem:[#allocation10 + $0x6b0] ss:$8 sps:$4 sm:$0xff]  }
 0x9da   : > { %10283 = vmatprep.subr.bf16.mxu1 %v13259_v37  ;;  %v13304_v37 = vld [vmem:[#allocation10 + $0x6c4] ss:$8 sps:$4 sm:$0xff]  }
 0x9dd   : > { %10284 = vmatpush1.bf16.msra.mxu1 %v13257_v49  ;;  %v13302_v49 = vld [vmem:[#allocation10 + $0x6c0] ss:$8 sps:$4 sm:$0xff]  }
 0x9de   : > { %10285 = vmatprep.subr.bf16.mxu1 %v13262_v55  ;;  %v13307_v55 = vld [vmem:[#allocation10 + $0x6d4] ss:$8 sps:$4 sm:$0xff]  }
 0x9e0   : > { %10247 = vmatmul.mubr.bf16.gmra.mrb[52].mxu1 %v16273_v53  ;;  %v13272_v53 = vld [vmem:[#allocation10 + $0x620] ss:$8 sps:$4 sm:$0xff]  }
 0x9e1   : > { %10286 = vmatpush1.bf16.msra.mxu1 %v13260_v21  ;;  %10289 = vmatprep.mubr.bf16.mxu1 %v16851_v28  ;;  %v13305_v21 = vld [vmem:[#allocation10 + $0x6d0] ss:$8 sps:$4 sm:$0xff]   ;;  %v13308_v28 = vld [vmem:[#allocation10 + $0x6e0] ss:$8 sps:$4 sm:$0xff]  }
 0x9e2   : > { %10287 = vmatprep.subr.bf16.mxu1 %v13265_v25  ;;  %v13310_v25 = vld [vmem:[#allocation10 + $0x6e4] ss:$8 sps:$4 sm:$0xff]  }
 0x9e5   : > { %10288 = vmatpush1.bf16.msra.mxu1 %v13263_v45  ;;  %v13311_v45 = vld [vmem:[#allocation10 + $0x6f0] ss:$8 sps:$4 sm:$0xff]  }
 0x9e6   : > { %10370 = vmatprep.subr.bf16.mxu1 %v13268_v4  ;;  %v13316_v4 = vld [vmem:[#allocation10 + $0x704] ss:$8 sps:$4 sm:$0xff]  }
 0x9e8   : > { %10290 = vmatmul.mubr.bf16.vlgmr.msra.gmra.mrb[24].mxu1 %v16852_v9  ;;  %v13325_v9 = vld [vmem:[#allocation10 + $0x734] ss:$8 sps:$4 sm:$0xff]  }
 0x9e9   : > { %10299 = vmatprep.mubr.bf16.mxu1 %v16853_v56  ;;  %10371 = vmatpush1.bf16.msra.mxu1 %v13266_v18  ;;  %v13317_v18 = vld [vmem:[#allocation10 + $0x710] ss:$8 sps:$4 sm:$0xff]   ;;  %v13328_v56 = vld [vmem:[#allocation10 + $0x744] ss:$8 sps:$4 sm:$0xff]  }
 0x9ea   : > { %10372 = vmatprep.subr.bf16.mxu1 %v13271_v44  ;;  %v13322_v44 = vld [vmem:[#allocation10 + $0x724] ss:$8 sps:$4 sm:$0xff]  }
 0x9ed   : > { %10373 = vmatpush1.bf16.msra.mxu1 %v13269_v63  ;;  %v13329_v63 = vld [vmem:[#allocation10 + $0x750] ss:$8 sps:$4 sm:$0xff]  }
 0x9ee   : > { %10374 = vmatprep.subr.bf16.mxu1 %v13274_v59  ;;  %v13334_v59 = vld [vmem:[#allocation10 + $0x764] ss:$8 sps:$4 sm:$0xff]  }
 0x9f0   : > { %10300 = vmatmul.mubr.bf16.gmra.mrb[28].mxu1 %v16854_v27  ;;  %v13341_v27 = vld [vmem:[#allocation10 + $0x790] ss:$8 sps:$4 sm:$0xff]  }
 0x9f1   : > { %10309 = vmatprep.mubr.bf16.mxu1 %v16855_v24  ;;  %10375 = vmatpush1.bf16.msra.mxu1 %v13272_v53  ;;  %v13335_v53 = vld [vmem:[#allocation10 + $0x770] ss:$8 sps:$4 sm:$0xff]   ;;  %v13346_v24 = vld [vmem:[#allocation10 + $0x7a4] ss:$8 sps:$4 sm:$0xff]  }
 0x9f2   : > { %10376 = vmatprep.subr.bf16.mxu1 %v13277_v40  ;;  %v13340_v40 = vld [vmem:[#allocation10 + $0x784] ss:$8 sps:$4 sm:$0xff]  }
 0x9f5   : > { %10377 = vmatpush1.bf16.msra.mxu1 %v13275_v13  ;;  %v13347_v13 = vld [vmem:[#allocation10 + $0x7b0] ss:$8 sps:$4 sm:$0xff]  }
 0x9f6   : > { %10378 = vmatprep.subr.bf16.mxu1 %v13280_v34  ;;  %v13352_v34 = vld [vmem:[#allocation10 + $0x7c4] ss:$8 sps:$4 sm:$0xff]  }
 0x9f8   : > { %10310 = vmatmul.mubr.bf16.gmra.mrb[32].mxu1 %v16856_v23  ;;  %v16863_v23 = vld [vmem:[#allocation23_spill] sm:$0xff] }
 0x9f9   : > { %10319 = vmatprep.mubr.bf16.mxu1 %v16857_v57  ;;  %10379 = vmatpush1.bf16.msra.mxu1 %v13278_v26  ;;  %v13353_v26 = vld [vmem:[#allocation10 + $0x7d0] ss:$8 sps:$4 sm:$0xff]  }
 0x9fa   : > { %10380 = vmatprep.subr.bf16.mxu1 %v13283_v12  ;;  %v13358_v12 = vld [vmem:[#allocation10 + $0x7e4] ss:$8 sps:$4 sm:$0xff]   ;;  %v13359_v57 = vld [vmem:[#allocation10 + $0x7f0] ss:$8 sps:$4 sm:$0xff]  }
 0x9fd   : > { %10381 = vmatpush1.bf16.msra.mxu1 %v13281_v36  ;;  %v16864_v36 = vld [vmem:[#allocation20_spill] sm:$0xff] }
 0x9fe   : > { %10382 = vmatprep.subr.bf16.mxu1 %v13286_v10  ;;  %v16867_v10 = vld [vmem:[#allocation36_spill] sm:$0xff] }
 0xa00   : > { %10320 = vmatmul.mubr.bf16.gmra.mrb[36].mxu1 %v16858_v3  ;;  %v16870_v3 = vld [vmem:[#allocation57_spill] sm:$0xff] }
 0xa01   : > { %10329 = vmatprep.mubr.bf16.mxu1 %v16859_v58  ;;  %10383 = vmatpush1.bf16.msra.mxu1 %v13284_v35  ;;  %v16868_v35 = vld [vmem:[#allocation26_spill] sm:$0xff] }
 0xa02   : > { %10384 = vmatprep.subr.bf16.mxu1 %v13289_v32  ;;  %v16869_v32 = vld [vmem:[#allocation58_spill] sm:$0xff] }
 0xa03   : > { %v16872_v58 = vld [vmem:[#allocation38_spill] sm:$0xff] }
 0xa05   : > { %10385 = vmatpush1.bf16.msra.mxu1 %v13287_v60  ;;  %v16873_v60 = vld [vmem:[#allocation40_spill] sm:$0xff] }
 0xa06   : > { %10386 = vmatprep.subr.bf16.mxu1 %v13292_v61  ;;  %v16874_v61 = vld [vmem:[#allocation60_spill] sm:$0xff] }
 0xa08   : > { %10330 = vmatmul.mubr.bf16.gmra.mrb[40].mxu1 %v16860_v48  ;;  %v8400_v48 = vld [vmem:[%s16877_s28] sm:$0x3] }
 0xa09   : > { %10339 = vmatprep.mubr.bf16.mxu1 %v16861_v33  ;;  %10387 = vmatpush1.bf16.msra.mxu1 %v13290_v11  ;;  %v16875_v11 = vld [vmem:[#allocation62_spill] sm:$0xff] }
 0xa0a   : > { %10388 = vmatprep.subr.bf16.mxu1 %v13295_v46  ;;  %v16876_v46 = vld [vmem:[#allocation61_spill] sm:$0xff]  ;;  %v16878_v33 = vld [vmem:[#allocation18_spill] sm:$0xff] }
 0xa0d   : > { %10389 = vmatpush1.bf16.msra.mxu1 %v13293_v6  ;;  %v16502_v6 = vrot.slane %v8400_v48, %v16878_v33 }
 0xa0e   : > { %10390 = vmatprep.subr.bf16.mxu1 %v13298_v38  ;;  %v16879_v38 = vld [vmem:[#allocation19_spill] sm:$0xff] }
 0xa10   : > { %10340 = vmatmul.mubr.bf16.gmra.mrb[44].mxu1 %v16862_v62 }
 0xa11   : > { %10349 = vmatprep.mubr.bf16.mxu1 %v16245_v1  ;;  %10391 = vmatpush1.bf16.msra.mxu1 %v13296_v8  ;;  %v13313_v1 = vld [vmem:[#allocation10 + $0x6f4] ss:$8 sps:$4 sm:$0xff]   ;;  %v16505_v8 = vrot.slane %v8400_v48, %v16879_v38 }
 0xa12   : > { %10392 = vmatprep.subr.bf16.mxu1 %v13301_v43 }
 0xa15   : > { %10393 = vmatpush1.bf16.msra.mxu1 %v13299_v50 }
 0xa16   : > { %10394 = vmatprep.subr.bf16.mxu1 %v13304_v37 }
 0xa18   : > { %10350 = vmatmul.mubr.bf16.gmra.mrb[48].mxu1 %v16241_v41  ;;  %v13314_v41 = vld [vmem:[#allocation10 + $0x700] ss:$8 sps:$4 sm:$0xff]  }
 0xa19   : > { %10359 = vmatprep.mubr.bf16.mxu1 %v16279_v30  ;;  %10395 = vmatpush1.bf16.msra.mxu1 %v13302_v49  ;;  %v13319_v30 = vld [vmem:[#allocation10 + $0x714] ss:$8 sps:$4 sm:$0xff]  }
 0xa1a   : > { %10396 = vmatprep.subr.bf16.mxu1 %v13307_v55 }
 0xa1d   : > { %10397 = vmatpush1.bf16.msra.mxu1 %v13305_v21 }
 0xa1e   : > { %10398 = vmatprep.subr.bf16.mxu1 %v13310_v25 }
 0xa20   : > { %10360 = vmatmul.mubr.bf16.gmra.mrb[52].mxu1 %v16275_v20  ;;  %v13320_v20 = vld [vmem:[#allocation10 + $0x720] ss:$8 sps:$4 sm:$0xff]  }
 0xa21   : > { %10399 = vmatpush1.bf16.msra.mxu1 %v13308_v28  ;;  %10402 = vmatprep.mubr.bf16.mxu1 %v16295_v22  ;;  %v13323_v22 = vld [vmem:[#allocation10 + $0x730] ss:$8 sps:$4 sm:$0xff]  }
 0xa22   : > { %10400 = vmatprep.subr.bf16.mxu1 %v13313_v1 }
 0xa25   : > { %10401 = vmatpush1.bf16.msra.mxu1 %v13311_v45 }
 0xa26   : > { %10483 = vmatprep.subr.bf16.mxu1 %v13316_v4 }
 0xa28   : > { %10403 = vmatmul.mubr.bf16.vlgmr.msra.gmra.mrb[24].mxu1 %v16291_v31  ;;  %v13326_v31 = vld [vmem:[#allocation10 + $0x740] ss:$8 sps:$4 sm:$0xff]  }
 0xa29   : > { %10412 = vmatprep.mubr.bf16.mxu1 %v16313_v17  ;;  %10484 = vmatpush1.bf16.msra.mxu1 %v13314_v41  ;;  %v13331_v17 = vld [vmem:[#allocation10 + $0x754] ss:$8 sps:$4 sm:$0xff]  }
 0xa2a   : > { %10485 = vmatprep.subr.bf16.mxu1 %v13319_v30 }
 0xa2d   : > { %10486 = vmatpush1.bf16.msra.mxu1 %v13317_v18 }
 0xa2e   : > { %10487 = vmatprep.subr.bf16.mxu1 %v13322_v44 }
 0xa30   : > { %10413 = vmatmul.mubr.bf16.gmra.mrb[28].mxu1 %v16309_v19  ;;  %v13332_v19 = vld [vmem:[#allocation10 + $0x760] ss:$8 sps:$4 sm:$0xff]  }
 0xa31   : > { %10422 = vmatprep.mubr.bf16.mxu1 %v16331_v0  ;;  %10488 = vmatpush1.bf16.msra.mxu1 %v13320_v20  ;;  %v13337_v0 = vld [vmem:[#allocation10 + $0x774] ss:$8 sps:$4 sm:$0xff]  }
 0xa32   : > { %10489 = vmatprep.subr.bf16.mxu1 %v13325_v9 }
 0xa35   : > { %10490 = vmatpush1.bf16.msra.mxu1 %v13323_v22 }
 0xa36   : > { %10491 = vmatprep.subr.bf16.mxu1 %v13328_v56 }
 0xa38   : > { %10423 = vmatmul.mubr.bf16.gmra.mrb[32].mxu1 %v16327_v54  ;;  %v13338_v54 = vld [vmem:[#allocation10 + $0x780] ss:$8 sps:$4 sm:$0xff]  }
 0xa39   : > { %10432 = vmatprep.mubr.bf16.mxu1 %v16349_v39  ;;  %10492 = vmatpush1.bf16.msra.mxu1 %v13326_v31  ;;  %v13343_v39 = vld [vmem:[#allocation10 + $0x794] ss:$8 sps:$4 sm:$0xff]  }
 0xa3a   : > { %10493 = vmatprep.subr.bf16.mxu1 %v13331_v17 }
 0xa3d   : > { %10494 = vmatpush1.bf16.msra.mxu1 %v13329_v63 }
 0xa3e   : > { %10495 = vmatprep.subr.bf16.mxu1 %v13334_v59 }
 0xa40   : > { %10433 = vmatmul.mubr.bf16.gmra.mrb[36].mxu1 %v16345_v51  ;;  %v13344_v51 = vld [vmem:[#allocation10 + $0x7a0] ss:$8 sps:$4 sm:$0xff]  }
 0xa41   : > { %10442 = vmatprep.mubr.bf16.mxu1 %v16367_v14  ;;  %10496 = vmatpush1.bf16.msra.mxu1 %v13332_v19  ;;  %v13349_v14 = vld [vmem:[#allocation10 + $0x7b4] ss:$8 sps:$4 sm:$0xff]  }
 0xa42   : > { %10497 = vmatprep.subr.bf16.mxu1 %v13337_v0 }
 0xa45   : > { %10498 = vmatpush1.bf16.msra.mxu1 %v13335_v53 }
 0xa46   : > { %10499 = vmatprep.subr.bf16.mxu1 %v13340_v40 }
 0xa48   : > { %10443 = vmatmul.mubr.bf16.gmra.mrb[40].mxu1 %v16363_v2  ;;  %v13350_v2 = vld [vmem:[#allocation10 + $0x7c0] ss:$8 sps:$4 sm:$0xff]  }
 0xa49   : > { %10452 = vmatprep.mubr.bf16.mxu1 %v16385_v15  ;;  %10500 = vmatpush1.bf16.msra.mxu1 %v13338_v54  ;;  %v13355_v15 = vld [vmem:[#allocation10 + $0x7d4] ss:$8 sps:$4 sm:$0xff]  }
 0xa4a   : > { %10501 = vmatprep.subr.bf16.mxu1 %v13343_v39 }
 0xa4d   : > { %10502 = vmatpush1.bf16.msra.mxu1 %v13341_v27 }
 0xa4e   : > { %10503 = vmatprep.subr.bf16.mxu1 %v13346_v24 }
 0xa50   : > { %10453 = vmatmul.mubr.bf16.gmra.mrb[44].mxu1 %v16381_v47  ;;  %v13356_v47 = vld [vmem:[#allocation10 + $0x7e0] ss:$8 sps:$4 sm:$0xff]  }
 0xa51   : > { %10462 = vmatprep.mubr.bf16.mxu1 %v16403_v52  ;;  %10504 = vmatpush1.bf16.msra.mxu1 %v13344_v51  ;;  %v13361_v52 = vld [vmem:[#allocation10 + $0x7f4] ss:$8 sps:$4 sm:$0xff]  }
 0xa52   : > { %10505 = vmatprep.subr.bf16.mxu1 %v13349_v14 }
 0xa55   : > { %10506 = vmatpush1.bf16.msra.mxu1 %v13347_v13 }
 0xa56   : > { %10507 = vmatprep.subr.bf16.mxu1 %v13352_v34 }
 0xa58   : > { %10463 = vmatmul.mubr.bf16.gmra.mrb[48].mxu1 %v16399_v5  ;;  %v16865_v5 = vld [vmem:[#allocation27_spill] sm:$0xff] }
 0xa59   : > { %10472 = vmatprep.mubr.bf16.mxu1 %v16421_v16  ;;  %10508 = vmatpush1.bf16.msra.mxu1 %v13350_v2  ;;  %v16866_v16 = vld [vmem:[#allocation22_spill] sm:$0xff] }
 0xa5a   : > { %10509 = vmatprep.subr.bf16.mxu1 %v13355_v15 }
 0xa5d   : > { %10510 = vmatpush1.bf16.msra.mxu1 %v13353_v26 }
 0xa5e   : > { %10511 = vmatprep.subr.bf16.mxu1 %v13358_v12 }
 0xa60   : > { %10473 = vmatmul.mubr.bf16.gmra.mrb[52].mxu1 %v16417_v7  ;;  %v16871_v7 = vld [vmem:[#allocation59_spill] sm:$0xff] }
 0xa61   : > { %10512 = vmatpush1.bf16.msra.mxu1 %v13356_v47  ;;  %10515 = vmatprep.mubr.bf16.mxu1 %v16863_v23 }
 0xa62   : > { %10513 = vmatprep.subr.bf16.mxu1 %v13361_v52 }
 0xa65   : > { %10514 = vmatpush1.bf16.msra.mxu1 %v13359_v57 }
 0xa68   : > { %10516 = vmatmul.mubr.bf16.vlgmr.msra.gmra.mrb[24].mxu1 %v16864_v36 }
 0xa69   : > { %10525 = vmatprep.mubr.bf16.mxu1 %v16865_v5 }
 0xa70   : > { %10526 = vmatmul.mubr.bf16.gmra.mrb[28].mxu1 %v16866_v16 }
 0xa71   : > { %10535 = vmatprep.mubr.bf16.mxu1 %v16867_v10 }
 0xa78   : > { %10536 = vmatmul.mubr.bf16.gmra.mrb[32].mxu1 %v16868_v35 }
 0xa79   : > { %10545 = vmatprep.mubr.bf16.mxu1 %v16869_v32 }
 0xa80   : > { %10546 = vmatmul.mubr.bf16.gmra.mrb[36].mxu1 %v16870_v3 }
 0xa81   : > { %10555 = vmatprep.mubr.bf16.mxu1 %v16871_v7 }
 0xa88   : > { %10556 = vmatmul.mubr.bf16.gmra.mrb[40].mxu1 %v16872_v58 }
 0xa89   : > { %10565 = vmatprep.mubr.bf16.mxu1 %v16873_v60 }
 0xa90   : > { %10566 = vmatmul.mubr.bf16.gmra.mrb[44].mxu1 %v16874_v61 }
 0xa91   : > { %10575 = vmatprep.mubr.bf16.mxu1 %v16875_v11 }
 0xa98   : > { %10576 = vmatmul.mubr.bf16.gmra.mrb[48].mxu1 %v16876_v46 }
 0xa99   : > { %10585 = vmatprep.mubr.bf16.mxu1 %v16423_v29 }
 0xaa0   : > { %10586 = vmatmul.mubr.bf16.gmra.mrb[52].mxu1 %v16419_v42 }
 0xb3b   : > { %v10517_v43 = vpop.f32.mrb[24].mxu1 }
 0xb3c   : > { %v12486_v62 = vadd.f32 %v10517_v43, %v16502_v6  ;;  %v10519_v50 = vpop.f32.mrb[25].mxu1 }
 0xb3d   : > { %v12487_v37 = vadd.f32 %v10519_v50, %v16505_v8  ;;  %v10521_v49 = vpop.f32.mrb[26].mxu1 }
 0xb3e   : > { %v10596_v29 = vmax.f32 %v12486_v62, 0.0  ;;  %v12488_v42 = vadd.f32 %v10521_v49, %v16502_v6  ;;  %v10523_v55 = vpop.f32.mrb[27].mxu1 }
 0xb3f   : > { %v10597_v21 = vmax.f32 %v12487_v37, 0.0  ;;  %v12489_v25 = vadd.f32 %v10523_v55, %v16505_v8 }
 0xb40   : > { %10628 = vst [vmem:[%s16513_s18] sm:$0xff] %v10596_v29  ;;  %v10598_v28 = vmax.f32 %v12488_v42, 0.0 }
 0xb41   : > { %10629 = vst [vmem:[%s16513_s18 + $0x8] sm:$0xff] %v10597_v21  ;;  %v10599_v1 = vmax.f32 %v12489_v25, 0.0 }
 0xb42   : > { %10630 = vst [vmem:[%s16513_s18 + $0x10] sm:$0xff] %v10598_v28 }
 0xb43   : > { %10631 = vst [vmem:[%s16513_s18 + $0x18] sm:$0xff] %v10599_v1  ;;  %v10527_v45 = vpop.f32.mrb[28].mxu1 }
 0xb44   : > { %v12490_v4 = vadd.f32 %v10527_v45, %v16502_v6  ;;  %v10529_v41 = vpop.f32.mrb[29].mxu1 }
 0xb45   : > { %v12491_v30 = vadd.f32 %v10529_v41, %v16505_v8  ;;  %v10531_v18 = vpop.f32.mrb[30].mxu1 }
 0xb46   : > { %v10600_v44 = vmax.f32 %v12490_v4, 0.0  ;;  %v12492_v20 = vadd.f32 %v10531_v18, %v16502_v6  ;;  %v10533_v9 = vpop.f32.mrb[31].mxu1 }
 0xb47   : > { %v10601_v22 = vmax.f32 %v12491_v30, 0.0  ;;  %v12493_v56 = vadd.f32 %v10533_v9, %v16505_v8 }
 0xb48   : > { %10632 = vst [vmem:[%s16513_s18 + $0x20] sm:$0xff] %v10600_v44  ;;  %v10602_v31 = vmax.f32 %v12492_v20, 0.0 }
 0xb49   : > { %10633 = vst [vmem:[%s16513_s18 + $0x28] sm:$0xff] %v10601_v22  ;;  %v10603_v17 = vmax.f32 %v12493_v56, 0.0 }
 0xb4a   : > { %10634 = vst [vmem:[%s16513_s18 + $0x30] sm:$0xff] %v10602_v31 }
 0xb4b   : > { %10635 = vst [vmem:[%s16513_s18 + $0x38] sm:$0xff] %v10603_v17  ;;  %v10537_v63 = vpop.f32.mrb[32].mxu1 }
 0xb4c   : > { %v12494_v59 = vadd.f32 %v10537_v63, %v16502_v6  ;;  %v10539_v19 = vpop.f32.mrb[33].mxu1 }
 0xb4d   : > { %v12495_v0 = vadd.f32 %v10539_v19, %v16505_v8  ;;  %v10541_v53 = vpop.f32.mrb[34].mxu1 }
 0xb4e   : > { %v10604_v40 = vmax.f32 %v12494_v59, 0.0  ;;  %v12496_v54 = vadd.f32 %v10541_v53, %v16502_v6  ;;  %v10543_v39 = vpop.f32.mrb[35].mxu1 }
 0xb4f   : > { %v10605_v27 = vmax.f32 %v12495_v0, 0.0  ;;  %v12497_v24 = vadd.f32 %v10543_v39, %v16505_v8 }
 0xb50   : > { %10636 = vst [vmem:[%s16513_s18 + $0x40] sm:$0xff] %v10604_v40  ;;  %v10606_v51 = vmax.f32 %v12496_v54, 0.0 }
 0xb51   : > { %10637 = vst [vmem:[%s16513_s18 + $0x48] sm:$0xff] %v10605_v27  ;;  %v10607_v14 = vmax.f32 %v12497_v24, 0.0 }
 0xb52   : > { %10638 = vst [vmem:[%s16513_s18 + $0x50] sm:$0xff] %v10606_v51 }
 0xb53   : > { %10639 = vst [vmem:[%s16513_s18 + $0x58] sm:$0xff] %v10607_v14  ;;  %v10547_v13 = vpop.f32.mrb[36].mxu1 }
 0xb54   : > { %v12498_v34 = vadd.f32 %v10547_v13, %v16502_v6  ;;  %v10549_v2 = vpop.f32.mrb[37].mxu1 }
 0xb55   : > { %v12499_v15 = vadd.f32 %v10549_v2, %v16505_v8  ;;  %v10551_v26 = vpop.f32.mrb[38].mxu1 }
 0xb56   : > { %v10608_v12 = vmax.f32 %v12498_v34, 0.0  ;;  %v12500_v47 = vadd.f32 %v10551_v26, %v16502_v6  ;;  %v10553_v52 = vpop.f32.mrb[39].mxu1 }
 0xb57   : > { %v10609_v23 = vmax.f32 %v12499_v15, 0.0  ;;  %v12501_v57 = vadd.f32 %v10553_v52, %v16505_v8 }
 0xb58   : > { %10640 = vst [vmem:[%s16513_s18 + $0x60] sm:$0xff] %v10608_v12  ;;  %v10610_v36 = vmax.f32 %v12500_v47, 0.0 }
 0xb59   : > { %10641 = vst [vmem:[%s16513_s18 + $0x68] sm:$0xff] %v10609_v23  ;;  %v10611_v5 = vmax.f32 %v12501_v57, 0.0 }
 0xb5a   : > { %10642 = vst [vmem:[%s16513_s18 + $0x70] sm:$0xff] %v10610_v36 }
 0xb5b   : > { %10643 = vst [vmem:[%s16513_s18 + $0x78] sm:$0xff] %v10611_v5  ;;  %v10557_v16 = vpop.f32.mrb[40].mxu1 }
 0xb5c   : > { %v12502_v10 = vadd.f32 %v10557_v16, %v16502_v6  ;;  %v10559_v35 = vpop.f32.mrb[41].mxu1 }
 0xb5d   : > { %v12503_v32 = vadd.f32 %v10559_v35, %v16505_v8  ;;  %v10561_v3 = vpop.f32.mrb[42].mxu1 }
 0xb5e   : > { %v10612_v7 = vmax.f32 %v12502_v10, 0.0  ;;  %v12504_v58 = vadd.f32 %v10561_v3, %v16502_v6  ;;  %v10563_v60 = vpop.f32.mrb[43].mxu1 }
 0xb5f   : > { %v10613_v61 = vmax.f32 %v12503_v32, 0.0  ;;  %v12505_v11 = vadd.f32 %v10563_v60, %v16505_v8 }
 0xb60   : > { %10644 = vst [vmem:[%s16513_s18 + $0x80] sm:$0xff] %v10612_v7  ;;  %v10614_v46 = vmax.f32 %v12504_v58, 0.0 }
 0xb61   : > { %10645 = vst [vmem:[%s16513_s18 + $0x88] sm:$0xff] %v10613_v61  ;;  %v10615_v48 = vmax.f32 %v12505_v11, 0.0 }
 0xb62   : > { %10646 = vst [vmem:[%s16513_s18 + $0x90] sm:$0xff] %v10614_v46 }
 0xb63   : > { %10647 = vst [vmem:[%s16513_s18 + $0x98] sm:$0xff] %v10615_v48  ;;  %v10567_v33 = vpop.f32.mrb[44].mxu1 }
 0xb64   : > { %v12506_v38 = vadd.f32 %v10567_v33, %v16502_v6  ;;  %v10569_v43 = vpop.f32.mrb[45].mxu1 }
 0xb65   : > { %v12507_v62 = vadd.f32 %v10569_v43, %v16505_v8  ;;  %v10571_v50 = vpop.f32.mrb[46].mxu1 }
 0xb66   : > { %v10616_v37 = vmax.f32 %v12506_v38, 0.0  ;;  %v12508_v49 = vadd.f32 %v10571_v50, %v16502_v6  ;;  %v10573_v29 = vpop.f32.mrb[47].mxu1 }
 0xb67   : > { %v10617_v42 = vmax.f32 %v12507_v62, 0.0  ;;  %v12509_v55 = vadd.f32 %v10573_v29, %v16505_v8 }
 0xb68   : > { %10648 = vst [vmem:[%s16513_s18 + $0xa0] sm:$0xff] %v10616_v37  ;;  %v10618_v21 = vmax.f32 %v12508_v49, 0.0 }
 0xb69   : > { %10649 = vst [vmem:[%s16513_s18 + $0xa8] sm:$0xff] %v10617_v42  ;;  %v10619_v25 = vmax.f32 %v12509_v55, 0.0 }
 0xb6a   : > { %10650 = vst [vmem:[%s16513_s18 + $0xb0] sm:$0xff] %v10618_v21 }
 0xb6b   : > { %10651 = vst [vmem:[%s16513_s18 + $0xb8] sm:$0xff] %v10619_v25  ;;  %v10577_v28 = vpop.f32.mrb[48].mxu1 }
 0xb6c   : > { %v12510_v1 = vadd.f32 %v10577_v28, %v16502_v6  ;;  %v10579_v45 = vpop.f32.mrb[49].mxu1 }
 0xb6d   : > { %v12511_v4 = vadd.f32 %v10579_v45, %v16505_v8  ;;  %v10581_v41 = vpop.f32.mrb[50].mxu1 }
 0xb6e   : > { %v10620_v30 = vmax.f32 %v12510_v1, 0.0  ;;  %v12512_v18 = vadd.f32 %v10581_v41, %v16502_v6  ;;  %v10583_v44 = vpop.f32.mrb[51].mxu1 }
 0xb6f   : > { %v10621_v20 = vmax.f32 %v12511_v4, 0.0  ;;  %v12513_v9 = vadd.f32 %v10583_v44, %v16505_v8 }
 0xb70   : > { %10652 = vst [vmem:[%s16513_s18 + $0xc0] sm:$0xff] %v10620_v30  ;;  %v10622_v22 = vmax.f32 %v12512_v18, 0.0 }
 0xb71   : > { %10653 = vst [vmem:[%s16513_s18 + $0xc8] sm:$0xff] %v10621_v20  ;;  %v10623_v56 = vmax.f32 %v12513_v9, 0.0 }
 0xb72   : > { %10654 = vst [vmem:[%s16513_s18 + $0xd0] sm:$0xff] %v10622_v22 }
 0xb73   : > { %10655 = vst [vmem:[%s16513_s18 + $0xd8] sm:$0xff] %v10623_v56  ;;  %v10587_v31 = vpop.f32.mrb[52].mxu1 }
 0xb74   : > { %v12514_v17 = vadd.f32 %v10587_v31, %v16502_v6  ;;  %v10589_v63 = vpop.f32.mrb[53].mxu1 }
 0xb75   : > { %v12515_v59 = vadd.f32 %v10589_v63, %v16505_v8  ;;  %v10591_v19 = vpop.f32.mrb[54].mxu1 }
 0xb76   : > { %v10624_v0 = vmax.f32 %v12514_v17, 0.0  ;;  %v12516_v53 = vadd.f32 %v10591_v19, %v16502_v6  ;;  %v10593_v40 = vpop.f32.mrb[55].mxu1 }
 0xb77   : > { %v10625_v54 = vmax.f32 %v12515_v59, 0.0  ;;  %v12517_v39 = vadd.f32 %v10593_v40, %v16505_v8 }
 0xb78   : > { %10656 = vst [vmem:[%s16513_s18 + $0xe0] sm:$0xff] %v10624_v0  ;;  %v10626_v27 = vmax.f32 %v12516_v53, 0.0 }
 0xb79   : > { %10657 = vst [vmem:[%s16513_s18 + $0xe8] sm:$0xff] %v10625_v54  ;;  %v10627_v24 = vmax.f32 %v12517_v39, 0.0 }
 0xb7a   : > { %10658 = vst [vmem:[%s16513_s18 + $0xf0] sm:$0xff] %v10626_v27 }
 0xb7b   : > { %10659 = vst [vmem:[%s16513_s18 + $0xf8] sm:$0xff] %v10627_v24 }
 0xb7c   : > { %13551 = shalt.err (!%p13548_p9)
}
 0xb7d   : > { %s13552_s26 = scalar_lea.hbm %s16577_s8, 4096  ;;  %s13556_s9 = scalar_lea.hbm %s16880_s23, 8192 }
 0xb7e   : > { %p13553_p0 = scmp.ne.s32.totalorder %s16577_s8, %s13552_s26  ;;  %p13557_p8 = scmp.lt.u32.totalorder %s16577_s8, %s16880_s23 }
 0xb7f   : > { %p13558_p6 = scmp.lt.u32.totalorder %s13556_s9, %s13552_s26  ;;  %p13560_p3 = scmp.lt.u32.totalorder %s13552_s26, %s16577_s8 }
 0xb80   : > { %p13554_p11 = pnand %p13553_p0, %p13879_p5 }
 0xb81   : > { %p13559_p10 = por %p13558_p6, %p13557_p8 }
 0xb82   : > { %p13555_p4 = pneg %p13554_p11 }
 0xb83   : > { %p13561_p7 = por %p13560_p3, %p13559_p10 }
 0xb85   : > { %p13562_p12 = pnand %p13561_p7, %p13555_p4 }
 0xb87   : > { %13565 = shalt.err (!%p13562_p12)
}
 0xb88   : > { %s13630_s14 = smov 256   ;;  %s13631_s17 = smov 16  }
 0xb89   : > { %12760 = dma.vmem_to_hbm [thread:$0]  (%p13879_p5), %s16579_s11, 4096, %s16577_s8, %s10840_s22, %s13630_s14, %s13630_s14, %s13631_s17  }
 0xb8a PF: > { %s16881_s29 = sld [smem:[#allocation16_spill]]  ;;  %s16882_s24 = sld [smem:[#allocation17_spill]] }
 0xb8b   : > { %p16884_p2 = scmp.ge.s32.totalorder %s13612_s21, 2 }
 0xb90   : > { %s10878_s28 = sand.u32 1, %s16881_s29   ;;  %p16883_p1 = scmp.ne.s32.totalorder %s16882_s24, 0 }
 0xb91   : > { %s10879_s26 = scalar_lea.sflag [#allocation4], %s10878_s28 }
 0xb92   : > { %p12780_p13 = pnand %p16884_p2, %p16883_p1 }
 0xb94   : > { %13595 = dma.done.wait (!%p12780_p13), %s10879_s26, 4096  }
 0xb95   : > { %13597 = vsyncadd (!%p12780_p13), %s10879_s26, 4294963200  ;;  %p31_p9 = scmp.ge.s32.totalorder %s13865_s6, 4   ;;  %s16885_s18 = smov %s13604_s19 }
 0xb96   : > { %s16886_s19 = smov %s13608_s20  ;;  %s16887_s20 = smov %s13875_s25 }
 0xb97   : > { %s16888_s21 = smov %s13865_s6  ;;  %33 = sbr.rel (!%p31_p9) target bundleno = 15 (0xf), region = 149 }
 0xb9e   :  { %10892 = vsyncpa [#allocation3], 1 }
 0xb9f   :  { %10894 = vsyncpa [#allocation3 + $0x1], 1 }
 0xba0   :  { %10895 = vsyncpa [#allocation6], 1 }
 0xba1   :  { %10896 = vsyncpa [#allocation9], 1 }
 0xba2   :  { %10897 = vsyncpa [#allocation4], 1 }
 0xba3   :  { %10899 = vsyncpa [#allocation4 + $0x1], 1 }

</bundles_post_ra>
